<compile_context>
chip_gen: v6e
topology: v6e:2x2x1
jax: 0.10.0
libtpu: 0.0.40
codegen_flags: <defaults>
</compile_context>

<pallas_src>
import numpy as np

import jax
import jax.numpy as jnp
from jax.experimental import pallas as pl
from jax.experimental.pallas import tpu as pltpu


# ----------------------------------------------------------------------------
# Kernel
# ----------------------------------------------------------------------------
def _upsample_module_kernel(x_ref, uw1_ref, w1_ref, b1_ref,
                            uw2_ref, w2_ref, b2_ref, o_ref):
    cdt = x_ref.dtype

    def up2x_conv3x3_relu(a, uw_ref, w_ref, b_ref):
        # a: (h, Cin, w) activation -- H leading, C on sublanes, W on lanes.
        # Returns relu(conv3x3_pad1(nearest_up2x(a)) + b): (2h, Cout, 2w), f32.
        h, cin, w = a.shape
        cout = w_ref.shape[2]
        h2, w2 = 2 * h, 2 * w
        acc = jnp.zeros((h2, cout, w2), jnp.float32)
        for kx in range(3):
            # Padded nearest-2x upsample along W, pre-shifted for conv tap kx,
            # as one MXU matmul with a constant 0/1 matrix (halo + lane shift
            # are baked into the matrix -> no lane-misaligned in-kernel slice).
            awk = jax.lax.dot_general(
                a, uw_ref[kx],
                (((2,), (0,)), ((), ())),
                preferred_element_type=jnp.float32).astype(cdt)   # (h, Cin, 2w)
            # Nearest-2x upsample along H: duplicate rows (leading-dim concat +
            # leading-dim reshape, layout-free), then add the 1-row zero halo.
            up = jnp.concatenate([awk[:, None], awk[:, None]], axis=1)
            up = up.reshape(h2, cin, w2)                          # (2h, Cin, 2w)
            zrow = jnp.zeros((1, cin, w2), cdt)
            upp = jnp.concatenate([zrow, up, zrow], axis=0)       # (2h+2, Cin, 2w)
            for ky in range(3):
                wtap = w_ref[ky, kx]                              # (Cout, Cin)
                wtap_b = jnp.broadcast_to(wtap[None], (h2, cout, cin))
                slab = upp[ky:ky + h2]                            # (2h, Cin, 2w)
                # Batched matmul: batch = rows, contract = Cin, N = 2w lanes.
                acc = acc + jax.lax.dot_general(
                    wtap_b, slab,
                    (((2,), (1,)), ((0,), (0,))),
                    preferred_element_type=jnp.float32)           # (2h, Cout, 2w)
        bias = b_ref[...].astype(jnp.float32)                     # (Cout, 1)
        return jnp.maximum(acc + bias[None, :, :], 0.0)

    x = x_ref[0]                                                  # (H, Cin, W)
    y1 = up2x_conv3x3_relu(x, uw1_ref, w1_ref, b1_ref).astype(cdt)   # (2H, Cout, 2W)
    y2 = up2x_conv3x3_relu(y1, uw2_ref, w2_ref, b2_ref)              # (4H, Cout, 4W)
    o_ref[0] = y2.astype(o_ref.dtype)


# ----------------------------------------------------------------------------
# Wrapper
# ----------------------------------------------------------------------------
def _upsample_tap_matrices(w, dtype):
    """Nearest-2x upsample along the last axis, with the conv's zero halo and the
    per-tap kx shift folded in: returns (3, w, 2w) constant 0/1 matrices."""
    full = np.zeros((w, 2 * w + 2), np.float32)      # cols 0 and 2w+1 = zero halo
    rows = np.arange(w)
    full[rows, 2 * rows + 1] = 1.0
    full[rows, 2 * rows + 2] = 1.0
    taps = np.stack([full[:, kx:kx + 2 * w] for kx in range(3)], axis=0)
    return jnp.asarray(taps, dtype=dtype)


def upsample_module_forward(params, x_nchw):
    """UpsampleModule forward.  x_nchw: (N, Cin, H, W) -> (N, Cout, 4H, 4W)."""
    N, Cin, H, W = x_nchw.shape
    w1, b1 = params["conv1"]          # (Cout, Cin, 3, 3) OIHW, (Cout,)
    w2, b2 = params["conv2"]          # (Cout, Cout, 3, 3) OIHW, (Cout,)
    Cout = w1.shape[0]
    cdt = x_nchw.dtype

    # Layout plumbing (wrapper-side, pure XLA): NCHW -> (N, H, C, W) so W is the
    # lane axis inside the kernel; weights to (kh, kw, Cout, Cin).
    x_t = jnp.transpose(x_nchw, (0, 2, 1, 3))
    w1_t = jnp.transpose(w1, (2, 3, 0, 1)).astype(cdt)
    w2_t = jnp.transpose(w2, (2, 3, 0, 1)).astype(cdt)
    b1_c = b1.astype(jnp.float32).reshape(Cout, 1)
    b2_c = b2.astype(jnp.float32).reshape(Cout, 1)
    uw1 = _upsample_tap_matrices(W, cdt)          # (3, W, 2W)
    uw2 = _upsample_tap_matrices(2 * W, cdt)      # (3, 2W, 4W)

    out_t = pl.pallas_call(
        _upsample_module_kernel,
        out_shape=jax.ShapeDtypeStruct((N, 4 * H, Cout, 4 * W), cdt),
        grid=(N,),
        in_specs=[
            pl.BlockSpec((1, H, Cin, W), lambda n: (n, 0, 0, 0)),
            pl.BlockSpec((3, W, 2 * W), lambda n: (0, 0, 0)),
            pl.BlockSpec((3, 3, Cout, Cin), lambda n: (0, 0, 0, 0)),
            pl.BlockSpec((Cout, 1), lambda n: (0, 0)),
            pl.BlockSpec((3, 2 * W, 4 * W), lambda n: (0, 0, 0)),
            pl.BlockSpec((3, 3, Cout, Cout), lambda n: (0, 0, 0, 0)),
            pl.BlockSpec((Cout, 1), lambda n: (0, 0)),
        ],
        out_specs=pl.BlockSpec((1, 4 * H, Cout, 4 * W), lambda n: (n, 0, 0, 0)),
        compiler_params=pltpu.CompilerParams(
            dimension_semantics=("parallel",),
            vmem_limit_bytes=64 * 1024 * 1024),
    )(x_t, uw1, w1_t, b1_c, uw2, w2_t, b2_c)

    return jnp.transpose(out_t, (0, 2, 1, 3))     # (N, Cout, 4H, 4W)


# ----------------------------------------------------------------------------
# Parameters (deterministic, synthetic) and pure-JAX reference
# ----------------------------------------------------------------------------
def init_upsample_module_params(key, in_channels, out_channels):
    k1w, k1b, k2w, k2b = jax.random.split(key, 4)

    def conv_init(kw, kb, cin, cout):
        fan_in = cin * 9
        w = ((2.0 / fan_in) ** 0.5) * jax.random.normal(
            kw, (cout, cin, 3, 3), jnp.float32)              # OIHW
        b = 0.01 * jax.random.normal(kb, (cout,), jnp.float32)
        return w, b

    return {
        "conv1": conv_init(k1w, k1b, in_channels, out_channels),
        "conv2": conv_init(k2w, k2b, out_channels, out_channels),
    }


def upsample_module_ref(params, x):
    def up2(t):
        return jnp.repeat(jnp.repeat(t, 2, axis=2), 2, axis=3)

    def conv_relu(t, w, b):
        y = jax.lax.conv_general_dilated(
            t, w, window_strides=(1, 1), padding=((1, 1), (1, 1)),
            dimension_numbers=("NCHW", "OIHW", "NCHW"))
        return jnp.maximum(y + b[None, :, None, None], 0.0)

    w1, b1 = params["conv1"]
    w2, b2 = params["conv2"]
    return conv_relu(up2(conv_relu(up2(x), w1, b1)), w2, b2)


if __name__ == "__main__":
    key = jax.random.PRNGKey(0)
    k_params, k_x = jax.random.split(key)

    batch, in_channels, out_channels, H, W = 2, 4, 8, 16, 16

    params = init_upsample_module_params(k_params, in_channels, out_channels)
    x = jax.random.normal(k_x, (batch, in_channels, H, W), jnp.float32)  # NCHW

    out = jax.block_until_ready(upsample_module_forward(params, x))
    assert out.shape == (batch, out_channels, 4 * H, 4 * W), out.shape

    ref = jax.block_until_ready(upsample_module_ref(params, x))
    max_err = float(jnp.max(jnp.abs(out - ref)))
    assert jnp.allclose(out, ref, atol=2e-4, rtol=2e-4), max_err

    print("KERNEL_OK")
</pallas_src>

<mosaic_0001>
module attributes {stable_mosaic.version = 11 : i64} {
  func.func @_upsample_module_kernel(%arg0: i32, %arg1: memref<1x16x4x16xf32, #tpu.memory_space<vmem>>, %arg2: memref<3x16x32xf32, #tpu.memory_space<vmem>>, %arg3: memref<3x3x8x4xf32, #tpu.memory_space<vmem>>, %arg4: memref<8x1xf32, #tpu.memory_space<vmem>>, %arg5: memref<3x32x64xf32, #tpu.memory_space<vmem>>, %arg6: memref<3x3x8x8xf32, #tpu.memory_space<vmem>>, %arg7: memref<8x1xf32, #tpu.memory_space<vmem>>, %arg8: memref<1x64x8x64xf32, #tpu.memory_space<vmem>>) attributes {dimension_semantics = [#tpu.dimension_semantics<parallel>], iteration_bounds = array<i64: 2>, scalar_prefetch = 0 : i64, scratch_operands = 0 : i64, tpu.core_type = #tpu.core_type<tc>, window_params = [{transform_indices = @transform_0, window_bounds = array<i64: 1, 16, 4, 16>}, {pipeline_mode = #tpu.pipeline_mode<synchronous>, transform_indices = @transform_1, window_bounds = array<i64: 3, 16, 32>}, {pipeline_mode = #tpu.pipeline_mode<synchronous>, transform_indices = @transform_2, window_bounds = array<i64: 3, 3, 8, 4>}, {pipeline_mode = #tpu.pipeline_mode<synchronous>, transform_indices = @transform_3, window_bounds = array<i64: 8, 1>}, {pipeline_mode = #tpu.pipeline_mode<synchronous>, transform_indices = @transform_4, window_bounds = array<i64: 3, 32, 64>}, {pipeline_mode = #tpu.pipeline_mode<synchronous>, transform_indices = @transform_5, window_bounds = array<i64: 3, 3, 8, 8>}, {pipeline_mode = #tpu.pipeline_mode<synchronous>, transform_indices = @transform_6, window_bounds = array<i64: 8, 1>}, {transform_indices = @transform_7, window_bounds = array<i64: 1, 64, 8, 64>}]} {
    %c0 = arith.constant 0 : index
    %c0_0 = arith.constant 0 : index
    %c0_1 = arith.constant 0 : index
    %c0_2 = arith.constant 0 : index
    %0 = vector.load %arg1[%c0, %c0_0, %c0_1, %c0_2] : memref<1x16x4x16xf32, #tpu.memory_space<vmem>>, vector<1x16x4x16xf32>
    %1 = vector.shape_cast %0 : vector<1x16x4x16xf32> to vector<16x4x16xf32>
    %cst = arith.constant 0.000000e+00 : f32
    %2 = vector.broadcast %cst : f32 to vector<32x8x32xf32>
    %c0_3 = arith.constant 0 : index
    %c0_4 = arith.constant 0 : index
    %c0_5 = arith.constant 0 : index
    %3 = vector.load %arg2[%c0_3, %c0_4, %c0_5] : memref<3x16x32xf32, #tpu.memory_space<vmem>>, vector<1x16x32xf32>
    %4 = vector.shape_cast %3 : vector<1x16x32xf32> to vector<16x32xf32>
    %cst_6 = arith.constant dense<0.000000e+00> : vector<16x4x32xf32>
    %5 = tpu.matmul %1, %4, %cst_6 {dimension_numbers = #tpu.dot_dimension_numbers<[2], [0], [0, 1], [1], [0, 0, 0, 1, 1, 1], [], []>} : vector<16x4x16xf32>, vector<16x32xf32>, vector<16x4x32xf32> -> vector<16x4x32xf32>
    %6 = vector.shape_cast %5 : vector<16x4x32xf32> to vector<16x1x4x32xf32>
    %7 = vector.shape_cast %5 : vector<16x4x32xf32> to vector<16x1x4x32xf32>
    %8 = tpu.concatenate %6, %7 in 1 : vector<16x1x4x32xf32>, vector<16x1x4x32xf32> -> vector<16x2x4x32xf32>
    %9 = vector.shape_cast %8 : vector<16x2x4x32xf32> to vector<32x4x32xf32>
    %cst_7 = arith.constant 0.000000e+00 : f32
    %10 = vector.broadcast %cst_7 : f32 to vector<1x4x32xf32>
    %11 = tpu.concatenate %10, %9, %10 in 0 : vector<1x4x32xf32>, vector<32x4x32xf32>, vector<1x4x32xf32> -> vector<34x4x32xf32>
    %c0_8 = arith.constant 0 : index
    %c0_9 = arith.constant 0 : index
    %c0_10 = arith.constant 0 : index
    %c0_11 = arith.constant 0 : index
    %12 = vector.load %arg3[%c0_8, %c0_9, %c0_10, %c0_11] : memref<3x3x8x4xf32, #tpu.memory_space<vmem>>, vector<1x1x8x4xf32>
    %13 = vector.shape_cast %12 : vector<1x1x8x4xf32> to vector<8x4xf32>
    %14 = vector.shape_cast %13 : vector<8x4xf32> to vector<1x8x4xf32>
    %15 = vector.shape_cast %14 : vector<1x8x4xf32> to vector<1x8x4xf32>
    %16 = vector.broadcast %15 : vector<1x8x4xf32> to vector<32x8x4xf32>
    %17 = vector.extract_strided_slice %11 {offsets = [0, 0, 0], sizes = [32, 4, 32], strides = [1, 1, 1]} : vector<34x4x32xf32> to vector<32x4x32xf32>
    %cst_12 = arith.constant dense<0.000000e+00> : vector<32x8x32xf32>
    %18 = tpu.matmul %16, %17, %cst_12 {dimension_numbers = #tpu.dot_dimension_numbers<[2], [1], [1], [2], [0, 0, 0, 1, 1, 2], [0], [0]>} : vector<32x8x4xf32>, vector<32x4x32xf32>, vector<32x8x32xf32> -> vector<32x8x32xf32>
    %19 = arith.addf %2, %18 : vector<32x8x32xf32>
    %c1 = arith.constant 1 : index
    %c0_13 = arith.constant 0 : index
    %c0_14 = arith.constant 0 : index
    %c0_15 = arith.constant 0 : index
    %20 = vector.load %arg3[%c1, %c0_13, %c0_14, %c0_15] : memref<3x3x8x4xf32, #tpu.memory_space<vmem>>, vector<1x1x8x4xf32>
    %21 = vector.shape_cast %20 : vector<1x1x8x4xf32> to vector<8x4xf32>
    %22 = vector.shape_cast %21 : vector<8x4xf32> to vector<1x8x4xf32>
    %23 = vector.shape_cast %22 : vector<1x8x4xf32> to vector<1x8x4xf32>
    %24 = vector.broadcast %23 : vector<1x8x4xf32> to vector<32x8x4xf32>
    %25 = vector.extract_strided_slice %11 {offsets = [1, 0, 0], sizes = [32, 4, 32], strides = [1, 1, 1]} : vector<34x4x32xf32> to vector<32x4x32xf32>
    %cst_16 = arith.constant dense<0.000000e+00> : vector<32x8x32xf32>
    %26 = tpu.matmul %24, %25, %cst_16 {dimension_numbers = #tpu.dot_dimension_numbers<[2], [1], [1], [2], [0, 0, 0, 1, 1, 2], [0], [0]>} : vector<32x8x4xf32>, vector<32x4x32xf32>, vector<32x8x32xf32> -> vector<32x8x32xf32>
    %27 = arith.addf %19, %26 : vector<32x8x32xf32>
    %c2 = arith.constant 2 : index
    %c0_17 = arith.constant 0 : index
    %c0_18 = arith.constant 0 : index
    %c0_19 = arith.constant 0 : index
    %28 = vector.load %arg3[%c2, %c0_17, %c0_18, %c0_19] : memref<3x3x8x4xf32, #tpu.memory_space<vmem>>, vector<1x1x8x4xf32>
    %29 = vector.shape_cast %28 : vector<1x1x8x4xf32> to vector<8x4xf32>
    %30 = vector.shape_cast %29 : vector<8x4xf32> to vector<1x8x4xf32>
    %31 = vector.shape_cast %30 : vector<1x8x4xf32> to vector<1x8x4xf32>
    %32 = vector.broadcast %31 : vector<1x8x4xf32> to vector<32x8x4xf32>
    %33 = vector.extract_strided_slice %11 {offsets = [2, 0, 0], sizes = [32, 4, 32], strides = [1, 1, 1]} : vector<34x4x32xf32> to vector<32x4x32xf32>
    %cst_20 = arith.constant dense<0.000000e+00> : vector<32x8x32xf32>
    %34 = tpu.matmul %32, %33, %cst_20 {dimension_numbers = #tpu.dot_dimension_numbers<[2], [1], [1], [2], [0, 0, 0, 1, 1, 2], [0], [0]>} : vector<32x8x4xf32>, vector<32x4x32xf32>, vector<32x8x32xf32> -> vector<32x8x32xf32>
    %35 = arith.addf %27, %34 : vector<32x8x32xf32>
    %c1_21 = arith.constant 1 : index
    %c0_22 = arith.constant 0 : index
    %c0_23 = arith.constant 0 : index
    %36 = vector.load %arg2[%c1_21, %c0_22, %c0_23] : memref<3x16x32xf32, #tpu.memory_space<vmem>>, vector<1x16x32xf32>
    %37 = vector.shape_cast %36 : vector<1x16x32xf32> to vector<16x32xf32>
    %cst_24 = arith.constant dense<0.000000e+00> : vector<16x4x32xf32>
    %38 = tpu.matmul %1, %37, %cst_24 {dimension_numbers = #tpu.dot_dimension_numbers<[2], [0], [0, 1], [1], [0, 0, 0, 1, 1, 1], [], []>} : vector<16x4x16xf32>, vector<16x32xf32>, vector<16x4x32xf32> -> vector<16x4x32xf32>
    %39 = vector.shape_cast %38 : vector<16x4x32xf32> to vector<16x1x4x32xf32>
    %40 = vector.shape_cast %38 : vector<16x4x32xf32> to vector<16x1x4x32xf32>
    %41 = tpu.concatenate %39, %40 in 1 : vector<16x1x4x32xf32>, vector<16x1x4x32xf32> -> vector<16x2x4x32xf32>
    %42 = vector.shape_cast %41 : vector<16x2x4x32xf32> to vector<32x4x32xf32>
    %cst_25 = arith.constant 0.000000e+00 : f32
    %43 = vector.broadcast %cst_25 : f32 to vector<1x4x32xf32>
    %44 = tpu.concatenate %43, %42, %43 in 0 : vector<1x4x32xf32>, vector<32x4x32xf32>, vector<1x4x32xf32> -> vector<34x4x32xf32>
    %c0_26 = arith.constant 0 : index
    %c1_27 = arith.constant 1 : index
    %c0_28 = arith.constant 0 : index
    %c0_29 = arith.constant 0 : index
    %45 = vector.load %arg3[%c0_26, %c1_27, %c0_28, %c0_29] : memref<3x3x8x4xf32, #tpu.memory_space<vmem>>, vector<1x1x8x4xf32>
    %46 = vector.shape_cast %45 : vector<1x1x8x4xf32> to vector<8x4xf32>
    %47 = vector.shape_cast %46 : vector<8x4xf32> to vector<1x8x4xf32>
    %48 = vector.shape_cast %47 : vector<1x8x4xf32> to vector<1x8x4xf32>
    %49 = vector.broadcast %48 : vector<1x8x4xf32> to vector<32x8x4xf32>
    %50 = vector.extract_strided_slice %44 {offsets = [0, 0, 0], sizes = [32, 4, 32], strides = [1, 1, 1]} : vector<34x4x32xf32> to vector<32x4x32xf32>
    %cst_30 = arith.constant dense<0.000000e+00> : vector<32x8x32xf32>
    %51 = tpu.matmul %49, %50, %cst_30 {dimension_numbers = #tpu.dot_dimension_numbers<[2], [1], [1], [2], [0, 0, 0, 1, 1, 2], [0], [0]>} : vector<32x8x4xf32>, vector<32x4x32xf32>, vector<32x8x32xf32> -> vector<32x8x32xf32>
    %52 = arith.addf %35, %51 : vector<32x8x32xf32>
    %c1_31 = arith.constant 1 : index
    %c1_32 = arith.constant 1 : index
    %c0_33 = arith.constant 0 : index
    %c0_34 = arith.constant 0 : index
    %53 = vector.load %arg3[%c1_31, %c1_32, %c0_33, %c0_34] : memref<3x3x8x4xf32, #tpu.memory_space<vmem>>, vector<1x1x8x4xf32>
    %54 = vector.shape_cast %53 : vector<1x1x8x4xf32> to vector<8x4xf32>
    %55 = vector.shape_cast %54 : vector<8x4xf32> to vector<1x8x4xf32>
    %56 = vector.shape_cast %55 : vector<1x8x4xf32> to vector<1x8x4xf32>
    %57 = vector.broadcast %56 : vector<1x8x4xf32> to vector<32x8x4xf32>
    %58 = vector.extract_strided_slice %44 {offsets = [1, 0, 0], sizes = [32, 4, 32], strides = [1, 1, 1]} : vector<34x4x32xf32> to vector<32x4x32xf32>
    %cst_35 = arith.constant dense<0.000000e+00> : vector<32x8x32xf32>
    %59 = tpu.matmul %57, %58, %cst_35 {dimension_numbers = #tpu.dot_dimension_numbers<[2], [1], [1], [2], [0, 0, 0, 1, 1, 2], [0], [0]>} : vector<32x8x4xf32>, vector<32x4x32xf32>, vector<32x8x32xf32> -> vector<32x8x32xf32>
    %60 = arith.addf %52, %59 : vector<32x8x32xf32>
    %c2_36 = arith.constant 2 : index
    %c1_37 = arith.constant 1 : index
    %c0_38 = arith.constant 0 : index
    %c0_39 = arith.constant 0 : index
    %61 = vector.load %arg3[%c2_36, %c1_37, %c0_38, %c0_39] : memref<3x3x8x4xf32, #tpu.memory_space<vmem>>, vector<1x1x8x4xf32>
    %62 = vector.shape_cast %61 : vector<1x1x8x4xf32> to vector<8x4xf32>
    %63 = vector.shape_cast %62 : vector<8x4xf32> to vector<1x8x4xf32>
    %64 = vector.shape_cast %63 : vector<1x8x4xf32> to vector<1x8x4xf32>
    %65 = vector.broadcast %64 : vector<1x8x4xf32> to vector<32x8x4xf32>
    %66 = vector.extract_strided_slice %44 {offsets = [2, 0, 0], sizes = [32, 4, 32], strides = [1, 1, 1]} : vector<34x4x32xf32> to vector<32x4x32xf32>
    %cst_40 = arith.constant dense<0.000000e+00> : vector<32x8x32xf32>
    %67 = tpu.matmul %65, %66, %cst_40 {dimension_numbers = #tpu.dot_dimension_numbers<[2], [1], [1], [2], [0, 0, 0, 1, 1, 2], [0], [0]>} : vector<32x8x4xf32>, vector<32x4x32xf32>, vector<32x8x32xf32> -> vector<32x8x32xf32>
    %68 = arith.addf %60, %67 : vector<32x8x32xf32>
    %c2_41 = arith.constant 2 : index
    %c0_42 = arith.constant 0 : index
    %c0_43 = arith.constant 0 : index
    %69 = vector.load %arg2[%c2_41, %c0_42, %c0_43] : memref<3x16x32xf32, #tpu.memory_space<vmem>>, vector<1x16x32xf32>
    %70 = vector.shape_cast %69 : vector<1x16x32xf32> to vector<16x32xf32>
    %cst_44 = arith.constant dense<0.000000e+00> : vector<16x4x32xf32>
    %71 = tpu.matmul %1, %70, %cst_44 {dimension_numbers = #tpu.dot_dimension_numbers<[2], [0], [0, 1], [1], [0, 0, 0, 1, 1, 1], [], []>} : vector<16x4x16xf32>, vector<16x32xf32>, vector<16x4x32xf32> -> vector<16x4x32xf32>
    %72 = vector.shape_cast %71 : vector<16x4x32xf32> to vector<16x1x4x32xf32>
    %73 = vector.shape_cast %71 : vector<16x4x32xf32> to vector<16x1x4x32xf32>
    %74 = tpu.concatenate %72, %73 in 1 : vector<16x1x4x32xf32>, vector<16x1x4x32xf32> -> vector<16x2x4x32xf32>
    %75 = vector.shape_cast %74 : vector<16x2x4x32xf32> to vector<32x4x32xf32>
    %cst_45 = arith.constant 0.000000e+00 : f32
    %76 = vector.broadcast %cst_45 : f32 to vector<1x4x32xf32>
    %77 = tpu.concatenate %76, %75, %76 in 0 : vector<1x4x32xf32>, vector<32x4x32xf32>, vector<1x4x32xf32> -> vector<34x4x32xf32>
    %c0_46 = arith.constant 0 : index
    %c2_47 = arith.constant 2 : index
    %c0_48 = arith.constant 0 : index
    %c0_49 = arith.constant 0 : index
    %78 = vector.load %arg3[%c0_46, %c2_47, %c0_48, %c0_49] : memref<3x3x8x4xf32, #tpu.memory_space<vmem>>, vector<1x1x8x4xf32>
    %79 = vector.shape_cast %78 : vector<1x1x8x4xf32> to vector<8x4xf32>
    %80 = vector.shape_cast %79 : vector<8x4xf32> to vector<1x8x4xf32>
    %81 = vector.shape_cast %80 : vector<1x8x4xf32> to vector<1x8x4xf32>
    %82 = vector.broadcast %81 : vector<1x8x4xf32> to vector<32x8x4xf32>
    %83 = vector.extract_strided_slice %77 {offsets = [0, 0, 0], sizes = [32, 4, 32], strides = [1, 1, 1]} : vector<34x4x32xf32> to vector<32x4x32xf32>
    %cst_50 = arith.constant dense<0.000000e+00> : vector<32x8x32xf32>
    %84 = tpu.matmul %82, %83, %cst_50 {dimension_numbers = #tpu.dot_dimension_numbers<[2], [1], [1], [2], [0, 0, 0, 1, 1, 2], [0], [0]>} : vector<32x8x4xf32>, vector<32x4x32xf32>, vector<32x8x32xf32> -> vector<32x8x32xf32>
    %85 = arith.addf %68, %84 : vector<32x8x32xf32>
    %c1_51 = arith.constant 1 : index
    %c2_52 = arith.constant 2 : index
    %c0_53 = arith.constant 0 : index
    %c0_54 = arith.constant 0 : index
    %86 = vector.load %arg3[%c1_51, %c2_52, %c0_53, %c0_54] : memref<3x3x8x4xf32, #tpu.memory_space<vmem>>, vector<1x1x8x4xf32>
    %87 = vector.shape_cast %86 : vector<1x1x8x4xf32> to vector<8x4xf32>
    %88 = vector.shape_cast %87 : vector<8x4xf32> to vector<1x8x4xf32>
    %89 = vector.shape_cast %88 : vector<1x8x4xf32> to vector<1x8x4xf32>
    %90 = vector.broadcast %89 : vector<1x8x4xf32> to vector<32x8x4xf32>
    %91 = vector.extract_strided_slice %77 {offsets = [1, 0, 0], sizes = [32, 4, 32], strides = [1, 1, 1]} : vector<34x4x32xf32> to vector<32x4x32xf32>
    %cst_55 = arith.constant dense<0.000000e+00> : vector<32x8x32xf32>
    %92 = tpu.matmul %90, %91, %cst_55 {dimension_numbers = #tpu.dot_dimension_numbers<[2], [1], [1], [2], [0, 0, 0, 1, 1, 2], [0], [0]>} : vector<32x8x4xf32>, vector<32x4x32xf32>, vector<32x8x32xf32> -> vector<32x8x32xf32>
    %93 = arith.addf %85, %92 : vector<32x8x32xf32>
    %c2_56 = arith.constant 2 : index
    %c2_57 = arith.constant 2 : index
    %c0_58 = arith.constant 0 : index
    %c0_59 = arith.constant 0 : index
    %94 = vector.load %arg3[%c2_56, %c2_57, %c0_58, %c0_59] : memref<3x3x8x4xf32, #tpu.memory_space<vmem>>, vector<1x1x8x4xf32>
    %95 = vector.shape_cast %94 : vector<1x1x8x4xf32> to vector<8x4xf32>
    %96 = vector.shape_cast %95 : vector<8x4xf32> to vector<1x8x4xf32>
    %97 = vector.shape_cast %96 : vector<1x8x4xf32> to vector<1x8x4xf32>
    %98 = vector.broadcast %97 : vector<1x8x4xf32> to vector<32x8x4xf32>
    %99 = vector.extract_strided_slice %77 {offsets = [2, 0, 0], sizes = [32, 4, 32], strides = [1, 1, 1]} : vector<34x4x32xf32> to vector<32x4x32xf32>
    %cst_60 = arith.constant dense<0.000000e+00> : vector<32x8x32xf32>
    %100 = tpu.matmul %98, %99, %cst_60 {dimension_numbers = #tpu.dot_dimension_numbers<[2], [1], [1], [2], [0, 0, 0, 1, 1, 2], [0], [0]>} : vector<32x8x4xf32>, vector<32x4x32xf32>, vector<32x8x32xf32> -> vector<32x8x32xf32>
    %101 = arith.addf %93, %100 : vector<32x8x32xf32>
    %c0_61 = arith.constant 0 : index
    %c0_62 = arith.constant 0 : index
    %102 = vector.load %arg4[%c0_61, %c0_62] : memref<8x1xf32, #tpu.memory_space<vmem>>, vector<8x1xf32>
    %103 = vector.shape_cast %102 : vector<8x1xf32> to vector<1x8x1xf32>
    %104 = vector.broadcast %103 : vector<1x8x1xf32> to vector<32x8x32xf32>
    %105 = arith.addf %101, %104 : vector<32x8x32xf32>
    %cst_63 = arith.constant 0.000000e+00 : f32
    %106 = vector.broadcast %cst_63 : f32 to vector<32x8x32xf32>
    %107 = arith.maximumf %105, %106 : vector<32x8x32xf32>
    %cst_64 = arith.constant 0.000000e+00 : f32
    %108 = vector.broadcast %cst_64 : f32 to vector<64x8x64xf32>
    %c0_65 = arith.constant 0 : index
    %c0_66 = arith.constant 0 : index
    %c0_67 = arith.constant 0 : index
    %109 = vector.load %arg5[%c0_65, %c0_66, %c0_67] : memref<3x32x64xf32, #tpu.memory_space<vmem>>, vector<1x32x64xf32>
    %110 = vector.shape_cast %109 : vector<1x32x64xf32> to vector<32x64xf32>
    %cst_68 = arith.constant dense<0.000000e+00> : vector<32x8x64xf32>
    %111 = tpu.matmul %107, %110, %cst_68 {dimension_numbers = #tpu.dot_dimension_numbers<[2], [0], [0, 1], [1], [0, 0, 0, 1, 1, 1], [], []>} : vector<32x8x32xf32>, vector<32x64xf32>, vector<32x8x64xf32> -> vector<32x8x64xf32>
    %112 = vector.shape_cast %111 : vector<32x8x64xf32> to vector<32x1x8x64xf32>
    %113 = vector.shape_cast %111 : vector<32x8x64xf32> to vector<32x1x8x64xf32>
    %114 = tpu.concatenate %112, %113 in 1 : vector<32x1x8x64xf32>, vector<32x1x8x64xf32> -> vector<32x2x8x64xf32>
    %115 = vector.shape_cast %114 : vector<32x2x8x64xf32> to vector<64x8x64xf32>
    %cst_69 = arith.constant 0.000000e+00 : f32
    %116 = vector.broadcast %cst_69 : f32 to vector<1x8x64xf32>
    %117 = tpu.concatenate %116, %115, %116 in 0 : vector<1x8x64xf32>, vector<64x8x64xf32>, vector<1x8x64xf32> -> vector<66x8x64xf32>
    %c0_70 = arith.constant 0 : index
    %c0_71 = arith.constant 0 : index
    %c0_72 = arith.constant 0 : index
    %c0_73 = arith.constant 0 : index
    %118 = vector.load %arg6[%c0_70, %c0_71, %c0_72, %c0_73] : memref<3x3x8x8xf32, #tpu.memory_space<vmem>>, vector<1x1x8x8xf32>
    %119 = vector.shape_cast %118 : vector<1x1x8x8xf32> to vector<8x8xf32>
    %120 = vector.shape_cast %119 : vector<8x8xf32> to vector<1x8x8xf32>
    %121 = vector.shape_cast %120 : vector<1x8x8xf32> to vector<1x8x8xf32>
    %122 = vector.broadcast %121 : vector<1x8x8xf32> to vector<64x8x8xf32>
    %123 = vector.extract_strided_slice %117 {offsets = [0, 0, 0], sizes = [64, 8, 64], strides = [1, 1, 1]} : vector<66x8x64xf32> to vector<64x8x64xf32>
    %cst_74 = arith.constant dense<0.000000e+00> : vector<64x8x64xf32>
    %124 = tpu.matmul %122, %123, %cst_74 {dimension_numbers = #tpu.dot_dimension_numbers<[2], [1], [1], [2], [0, 0, 0, 1, 1, 2], [0], [0]>} : vector<64x8x8xf32>, vector<64x8x64xf32>, vector<64x8x64xf32> -> vector<64x8x64xf32>
    %125 = arith.addf %108, %124 : vector<64x8x64xf32>
    %c1_75 = arith.constant 1 : index
    %c0_76 = arith.constant 0 : index
    %c0_77 = arith.constant 0 : index
    %c0_78 = arith.constant 0 : index
    %126 = vector.load %arg6[%c1_75, %c0_76, %c0_77, %c0_78] : memref<3x3x8x8xf32, #tpu.memory_space<vmem>>, vector<1x1x8x8xf32>
    %127 = vector.shape_cast %126 : vector<1x1x8x8xf32> to vector<8x8xf32>
    %128 = vector.shape_cast %127 : vector<8x8xf32> to vector<1x8x8xf32>
    %129 = vector.shape_cast %128 : vector<1x8x8xf32> to vector<1x8x8xf32>
    %130 = vector.broadcast %129 : vector<1x8x8xf32> to vector<64x8x8xf32>
    %131 = vector.extract_strided_slice %117 {offsets = [1, 0, 0], sizes = [64, 8, 64], strides = [1, 1, 1]} : vector<66x8x64xf32> to vector<64x8x64xf32>
    %cst_79 = arith.constant dense<0.000000e+00> : vector<64x8x64xf32>
    %132 = tpu.matmul %130, %131, %cst_79 {dimension_numbers = #tpu.dot_dimension_numbers<[2], [1], [1], [2], [0, 0, 0, 1, 1, 2], [0], [0]>} : vector<64x8x8xf32>, vector<64x8x64xf32>, vector<64x8x64xf32> -> vector<64x8x64xf32>
    %133 = arith.addf %125, %132 : vector<64x8x64xf32>
    %c2_80 = arith.constant 2 : index
    %c0_81 = arith.constant 0 : index
    %c0_82 = arith.constant 0 : index
    %c0_83 = arith.constant 0 : index
    %134 = vector.load %arg6[%c2_80, %c0_81, %c0_82, %c0_83] : memref<3x3x8x8xf32, #tpu.memory_space<vmem>>, vector<1x1x8x8xf32>
    %135 = vector.shape_cast %134 : vector<1x1x8x8xf32> to vector<8x8xf32>
    %136 = vector.shape_cast %135 : vector<8x8xf32> to vector<1x8x8xf32>
    %137 = vector.shape_cast %136 : vector<1x8x8xf32> to vector<1x8x8xf32>
    %138 = vector.broadcast %137 : vector<1x8x8xf32> to vector<64x8x8xf32>
    %139 = vector.extract_strided_slice %117 {offsets = [2, 0, 0], sizes = [64, 8, 64], strides = [1, 1, 1]} : vector<66x8x64xf32> to vector<64x8x64xf32>
    %cst_84 = arith.constant dense<0.000000e+00> : vector<64x8x64xf32>
    %140 = tpu.matmul %138, %139, %cst_84 {dimension_numbers = #tpu.dot_dimension_numbers<[2], [1], [1], [2], [0, 0, 0, 1, 1, 2], [0], [0]>} : vector<64x8x8xf32>, vector<64x8x64xf32>, vector<64x8x64xf32> -> vector<64x8x64xf32>
    %141 = arith.addf %133, %140 : vector<64x8x64xf32>
    %c1_85 = arith.constant 1 : index
    %c0_86 = arith.constant 0 : index
    %c0_87 = arith.constant 0 : index
    %142 = vector.load %arg5[%c1_85, %c0_86, %c0_87] : memref<3x32x64xf32, #tpu.memory_space<vmem>>, vector<1x32x64xf32>
    %143 = vector.shape_cast %142 : vector<1x32x64xf32> to vector<32x64xf32>
    %cst_88 = arith.constant dense<0.000000e+00> : vector<32x8x64xf32>
    %144 = tpu.matmul %107, %143, %cst_88 {dimension_numbers = #tpu.dot_dimension_numbers<[2], [0], [0, 1], [1], [0, 0, 0, 1, 1, 1], [], []>} : vector<32x8x32xf32>, vector<32x64xf32>, vector<32x8x64xf32> -> vector<32x8x64xf32>
    %145 = vector.shape_cast %144 : vector<32x8x64xf32> to vector<32x1x8x64xf32>
    %146 = vector.shape_cast %144 : vector<32x8x64xf32> to vector<32x1x8x64xf32>
    %147 = tpu.concatenate %145, %146 in 1 : vector<32x1x8x64xf32>, vector<32x1x8x64xf32> -> vector<32x2x8x64xf32>
    %148 = vector.shape_cast %147 : vector<32x2x8x64xf32> to vector<64x8x64xf32>
    %cst_89 = arith.constant 0.000000e+00 : f32
    %149 = vector.broadcast %cst_89 : f32 to vector<1x8x64xf32>
    %150 = tpu.concatenate %149, %148, %149 in 0 : vector<1x8x64xf32>, vector<64x8x64xf32>, vector<1x8x64xf32> -> vector<66x8x64xf32>
    %c0_90 = arith.constant 0 : index
    %c1_91 = arith.constant 1 : index
    %c0_92 = arith.constant 0 : index
    %c0_93 = arith.constant 0 : index
    %151 = vector.load %arg6[%c0_90, %c1_91, %c0_92, %c0_93] : memref<3x3x8x8xf32, #tpu.memory_space<vmem>>, vector<1x1x8x8xf32>
    %152 = vector.shape_cast %151 : vector<1x1x8x8xf32> to vector<8x8xf32>
    %153 = vector.shape_cast %152 : vector<8x8xf32> to vector<1x8x8xf32>
    %154 = vector.shape_cast %153 : vector<1x8x8xf32> to vector<1x8x8xf32>
    %155 = vector.broadcast %154 : vector<1x8x8xf32> to vector<64x8x8xf32>
    %156 = vector.extract_strided_slice %150 {offsets = [0, 0, 0], sizes = [64, 8, 64], strides = [1, 1, 1]} : vector<66x8x64xf32> to vector<64x8x64xf32>
    %cst_94 = arith.constant dense<0.000000e+00> : vector<64x8x64xf32>
    %157 = tpu.matmul %155, %156, %cst_94 {dimension_numbers = #tpu.dot_dimension_numbers<[2], [1], [1], [2], [0, 0, 0, 1, 1, 2], [0], [0]>} : vector<64x8x8xf32>, vector<64x8x64xf32>, vector<64x8x64xf32> -> vector<64x8x64xf32>
    %158 = arith.addf %141, %157 : vector<64x8x64xf32>
    %c1_95 = arith.constant 1 : index
    %c1_96 = arith.constant 1 : index
    %c0_97 = arith.constant 0 : index
    %c0_98 = arith.constant 0 : index
    %159 = vector.load %arg6[%c1_95, %c1_96, %c0_97, %c0_98] : memref<3x3x8x8xf32, #tpu.memory_space<vmem>>, vector<1x1x8x8xf32>
    %160 = vector.shape_cast %159 : vector<1x1x8x8xf32> to vector<8x8xf32>
    %161 = vector.shape_cast %160 : vector<8x8xf32> to vector<1x8x8xf32>
    %162 = vector.shape_cast %161 : vector<1x8x8xf32> to vector<1x8x8xf32>
    %163 = vector.broadcast %162 : vector<1x8x8xf32> to vector<64x8x8xf32>
    %164 = vector.extract_strided_slice %150 {offsets = [1, 0, 0], sizes = [64, 8, 64], strides = [1, 1, 1]} : vector<66x8x64xf32> to vector<64x8x64xf32>
    %cst_99 = arith.constant dense<0.000000e+00> : vector<64x8x64xf32>
    %165 = tpu.matmul %163, %164, %cst_99 {dimension_numbers = #tpu.dot_dimension_numbers<[2], [1], [1], [2], [0, 0, 0, 1, 1, 2], [0], [0]>} : vector<64x8x8xf32>, vector<64x8x64xf32>, vector<64x8x64xf32> -> vector<64x8x64xf32>
    %166 = arith.addf %158, %165 : vector<64x8x64xf32>
    %c2_100 = arith.constant 2 : index
    %c1_101 = arith.constant 1 : index
    %c0_102 = arith.constant 0 : index
    %c0_103 = arith.constant 0 : index
    %167 = vector.load %arg6[%c2_100, %c1_101, %c0_102, %c0_103] : memref<3x3x8x8xf32, #tpu.memory_space<vmem>>, vector<1x1x8x8xf32>
    %168 = vector.shape_cast %167 : vector<1x1x8x8xf32> to vector<8x8xf32>
    %169 = vector.shape_cast %168 : vector<8x8xf32> to vector<1x8x8xf32>
    %170 = vector.shape_cast %169 : vector<1x8x8xf32> to vector<1x8x8xf32>
    %171 = vector.broadcast %170 : vector<1x8x8xf32> to vector<64x8x8xf32>
    %172 = vector.extract_strided_slice %150 {offsets = [2, 0, 0], sizes = [64, 8, 64], strides = [1, 1, 1]} : vector<66x8x64xf32> to vector<64x8x64xf32>
    %cst_104 = arith.constant dense<0.000000e+00> : vector<64x8x64xf32>
    %173 = tpu.matmul %171, %172, %cst_104 {dimension_numbers = #tpu.dot_dimension_numbers<[2], [1], [1], [2], [0, 0, 0, 1, 1, 2], [0], [0]>} : vector<64x8x8xf32>, vector<64x8x64xf32>, vector<64x8x64xf32> -> vector<64x8x64xf32>
    %174 = arith.addf %166, %173 : vector<64x8x64xf32>
    %c2_105 = arith.constant 2 : index
    %c0_106 = arith.constant 0 : index
    %c0_107 = arith.constant 0 : index
    %175 = vector.load %arg5[%c2_105, %c0_106, %c0_107] : memref<3x32x64xf32, #tpu.memory_space<vmem>>, vector<1x32x64xf32>
    %176 = vector.shape_cast %175 : vector<1x32x64xf32> to vector<32x64xf32>
    %cst_108 = arith.constant dense<0.000000e+00> : vector<32x8x64xf32>
    %177 = tpu.matmul %107, %176, %cst_108 {dimension_numbers = #tpu.dot_dimension_numbers<[2], [0], [0, 1], [1], [0, 0, 0, 1, 1, 1], [], []>} : vector<32x8x32xf32>, vector<32x64xf32>, vector<32x8x64xf32> -> vector<32x8x64xf32>
    %178 = vector.shape_cast %177 : vector<32x8x64xf32> to vector<32x1x8x64xf32>
    %179 = vector.shape_cast %177 : vector<32x8x64xf32> to vector<32x1x8x64xf32>
    %180 = tpu.concatenate %178, %179 in 1 : vector<32x1x8x64xf32>, vector<32x1x8x64xf32> -> vector<32x2x8x64xf32>
    %181 = vector.shape_cast %180 : vector<32x2x8x64xf32> to vector<64x8x64xf32>
    %cst_109 = arith.constant 0.000000e+00 : f32
    %182 = vector.broadcast %cst_109 : f32 to vector<1x8x64xf32>
    %183 = tpu.concatenate %182, %181, %182 in 0 : vector<1x8x64xf32>, vector<64x8x64xf32>, vector<1x8x64xf32> -> vector<66x8x64xf32>
    %c0_110 = arith.constant 0 : index
    %c2_111 = arith.constant 2 : index
    %c0_112 = arith.constant 0 : index
    %c0_113 = arith.constant 0 : index
    %184 = vector.load %arg6[%c0_110, %c2_111, %c0_112, %c0_113] : memref<3x3x8x8xf32, #tpu.memory_space<vmem>>, vector<1x1x8x8xf32>
    %185 = vector.shape_cast %184 : vector<1x1x8x8xf32> to vector<8x8xf32>
    %186 = vector.shape_cast %185 : vector<8x8xf32> to vector<1x8x8xf32>
    %187 = vector.shape_cast %186 : vector<1x8x8xf32> to vector<1x8x8xf32>
    %188 = vector.broadcast %187 : vector<1x8x8xf32> to vector<64x8x8xf32>
    %189 = vector.extract_strided_slice %183 {offsets = [0, 0, 0], sizes = [64, 8, 64], strides = [1, 1, 1]} : vector<66x8x64xf32> to vector<64x8x64xf32>
    %cst_114 = arith.constant dense<0.000000e+00> : vector<64x8x64xf32>
    %190 = tpu.matmul %188, %189, %cst_114 {dimension_numbers = #tpu.dot_dimension_numbers<[2], [1], [1], [2], [0, 0, 0, 1, 1, 2], [0], [0]>} : vector<64x8x8xf32>, vector<64x8x64xf32>, vector<64x8x64xf32> -> vector<64x8x64xf32>
    %191 = arith.addf %174, %190 : vector<64x8x64xf32>
    %c1_115 = arith.constant 1 : index
    %c2_116 = arith.constant 2 : index
    %c0_117 = arith.constant 0 : index
    %c0_118 = arith.constant 0 : index
    %192 = vector.load %arg6[%c1_115, %c2_116, %c0_117, %c0_118] : memref<3x3x8x8xf32, #tpu.memory_space<vmem>>, vector<1x1x8x8xf32>
    %193 = vector.shape_cast %192 : vector<1x1x8x8xf32> to vector<8x8xf32>
    %194 = vector.shape_cast %193 : vector<8x8xf32> to vector<1x8x8xf32>
    %195 = vector.shape_cast %194 : vector<1x8x8xf32> to vector<1x8x8xf32>
    %196 = vector.broadcast %195 : vector<1x8x8xf32> to vector<64x8x8xf32>
    %197 = vector.extract_strided_slice %183 {offsets = [1, 0, 0], sizes = [64, 8, 64], strides = [1, 1, 1]} : vector<66x8x64xf32> to vector<64x8x64xf32>
    %cst_119 = arith.constant dense<0.000000e+00> : vector<64x8x64xf32>
    %198 = tpu.matmul %196, %197, %cst_119 {dimension_numbers = #tpu.dot_dimension_numbers<[2], [1], [1], [2], [0, 0, 0, 1, 1, 2], [0], [0]>} : vector<64x8x8xf32>, vector<64x8x64xf32>, vector<64x8x64xf32> -> vector<64x8x64xf32>
    %199 = arith.addf %191, %198 : vector<64x8x64xf32>
    %c2_120 = arith.constant 2 : index
    %c2_121 = arith.constant 2 : index
    %c0_122 = arith.constant 0 : index
    %c0_123 = arith.constant 0 : index
    %200 = vector.load %arg6[%c2_120, %c2_121, %c0_122, %c0_123] : memref<3x3x8x8xf32, #tpu.memory_space<vmem>>, vector<1x1x8x8xf32>
    %201 = vector.shape_cast %200 : vector<1x1x8x8xf32> to vector<8x8xf32>
    %202 = vector.shape_cast %201 : vector<8x8xf32> to vector<1x8x8xf32>
    %203 = vector.shape_cast %202 : vector<1x8x8xf32> to vector<1x8x8xf32>
    %204 = vector.broadcast %203 : vector<1x8x8xf32> to vector<64x8x8xf32>
    %205 = vector.extract_strided_slice %183 {offsets = [2, 0, 0], sizes = [64, 8, 64], strides = [1, 1, 1]} : vector<66x8x64xf32> to vector<64x8x64xf32>
    %cst_124 = arith.constant dense<0.000000e+00> : vector<64x8x64xf32>
    %206 = tpu.matmul %204, %205, %cst_124 {dimension_numbers = #tpu.dot_dimension_numbers<[2], [1], [1], [2], [0, 0, 0, 1, 1, 2], [0], [0]>} : vector<64x8x8xf32>, vector<64x8x64xf32>, vector<64x8x64xf32> -> vector<64x8x64xf32>
    %207 = arith.addf %199, %206 : vector<64x8x64xf32>
    %c0_125 = arith.constant 0 : index
    %c0_126 = arith.constant 0 : index
    %208 = vector.load %arg7[%c0_125, %c0_126] : memref<8x1xf32, #tpu.memory_space<vmem>>, vector<8x1xf32>
    %209 = vector.shape_cast %208 : vector<8x1xf32> to vector<1x8x1xf32>
    %210 = vector.broadcast %209 : vector<1x8x1xf32> to vector<64x8x64xf32>
    %211 = arith.addf %207, %210 : vector<64x8x64xf32>
    %cst_127 = arith.constant 0.000000e+00 : f32
    %212 = vector.broadcast %cst_127 : f32 to vector<64x8x64xf32>
    %213 = arith.maximumf %211, %212 : vector<64x8x64xf32>
    %c0_128 = arith.constant 0 : index
    %c0_129 = arith.constant 0 : index
    %c0_130 = arith.constant 0 : index
    %c0_131 = arith.constant 0 : index
    %214 = vector.load %arg8[%c0_128, %c0_129, %c0_130, %c0_131] : memref<1x64x8x64xf32, #tpu.memory_space<vmem>>, vector<1x64x8x64xf32>
    %215 = vector.shape_cast %214 : vector<1x64x8x64xf32> to vector<64x8x64xf32>
    %216 = vector.shape_cast %213 : vector<64x8x64xf32> to vector<1x64x8x64xf32>
    tpu.vector_store %arg8[%c0_128, %c0_129, %c0_130, %c0_131], %216 {strides = array<i32>} : memref<1x64x8x64xf32, #tpu.memory_space<vmem>>, vector<1x64x8x64xf32>,
    return
  }
  func.func @transform_0(%arg0: i32) -> (i32, i32, i32, i32) {
    %c0_i32 = arith.constant 0 : i32
    %c0_i32_0 = arith.constant 0 : i32
    %c0_i32_1 = arith.constant 0 : i32
    %c0_i32_2 = arith.constant 0 : i32
    return %arg0, %c0_i32, %c0_i32_0, %c0_i32_1 : i32, i32, i32, i32
  }
  func.func @transform_1(%arg0: i32) -> (i32, i32, i32) {
    %c0_i32 = arith.constant 0 : i32
    %c0_i32_0 = arith.constant 0 : i32
    %c0_i32_1 = arith.constant 0 : i32
    %c0_i32_2 = arith.constant 0 : i32
    return %c0_i32, %c0_i32_0, %c0_i32_1 : i32, i32, i32
  }
  func.func @transform_2(%arg0: i32) -> (i32, i32, i32, i32) {
    %c0_i32 = arith.constant 0 : i32
    %c0_i32_0 = arith.constant 0 : i32
    %c0_i32_1 = arith.constant 0 : i32
    %c0_i32_2 = arith.constant 0 : i32
    %c0_i32_3 = arith.constant 0 : i32
    return %c0_i32, %c0_i32_0, %c0_i32_1, %c0_i32_2 : i32, i32, i32, i32
  }
  func.func @transform_3(%arg0: i32) -> (i32, i32) {
    %c0_i32 = arith.constant 0 : i32
    %c0_i32_0 = arith.constant 0 : i32
    %c0_i32_1 = arith.constant 0 : i32
    return %c0_i32, %c0_i32_0 : i32, i32
  }
  func.func @transform_4(%arg0: i32) -> (i32, i32, i32) {
    %c0_i32 = arith.constant 0 : i32
    %c0_i32_0 = arith.constant 0 : i32
    %c0_i32_1 = arith.constant 0 : i32
    %c0_i32_2 = arith.constant 0 : i32
    return %c0_i32, %c0_i32_0, %c0_i32_1 : i32, i32, i32
  }
  func.func @transform_5(%arg0: i32) -> (i32, i32, i32, i32) {
    %c0_i32 = arith.constant 0 : i32
    %c0_i32_0 = arith.constant 0 : i32
    %c0_i32_1 = arith.constant 0 : i32
    %c0_i32_2 = arith.constant 0 : i32
    %c0_i32_3 = arith.constant 0 : i32
    return %c0_i32, %c0_i32_0, %c0_i32_1, %c0_i32_2 : i32, i32, i32, i32
  }
  func.func @transform_6(%arg0: i32) -> (i32, i32) {
    %c0_i32 = arith.constant 0 : i32
    %c0_i32_0 = arith.constant 0 : i32
    %c0_i32_1 = arith.constant 0 : i32
    return %c0_i32, %c0_i32_0 : i32, i32
  }
  func.func @transform_7(%arg0: i32) -> (i32, i32, i32, i32) {
    %c0_i32 = arith.constant 0 : i32
    %c0_i32_0 = arith.constant 0 : i32
    %c0_i32_1 = arith.constant 0 : i32
    %c0_i32_2 = arith.constant 0 : i32
    return %arg0, %c0_i32, %c0_i32_0, %c0_i32_1 : i32, i32, i32, i32
  }
}

</mosaic_0001>

<bundles_post_ra>
// kernel: tpu_custom_call.1
= control target key start
LH: loop header
LB: loop body
LE: loop exit
PB: predicated region body
PF: predicated region fallthrough
CT: control target
= control target key end

     0   :  { %s48325_s0 = inlined_call_operand.hbm [shape: f32[2,16,4,16], index: 0, kind: input, shape index: {}]   ;;  %s48326_s1 = inlined_call_operand.hbm [shape: f32[3,16,32], index: 1, kind: input, shape index: {}]   ;;  %s48327_s2 = inlined_call_operand.vmem [shape: f32[3,3,8,4], index: 2, kind: input, shape index: {}]   ;;  %s48328_s3 = inlined_call_operand.vmem [shape: f32[8,1], index: 3, kind: input, shape index: {}]   ;;  %s48329_s4 = inlined_call_operand.vmem [shape: f32[3,32,64], index: 4, kind: input, shape index: {}]   ;;  %s48330_s5 = inlined_call_operand.hbm [shape: f32[3,3,8,8], index: 5, kind: input, shape index: {}]   ;;  %s48331_s6 = inlined_call_operand.vmem [shape: f32[8,1], index: 6, kind: input, shape index: {}]   ;;  %s48332_s7 = inlined_call_operand.hbm [shape: f32[2,64,8,64], index: 7, kind: output, shape index: {}]  }
   0x1   :  { %48393 = sst [smem:[#allocation92_spill]] %s48326_s1 }
   0x2   :  { %12 = vsyncpa [#allocation3], 0 }
   0x3   :  { %14 = vsyncpa [#allocation3 + $0x1], 0 }
   0x4   :  { %15 = vsyncpa [#allocation6], 0 }
   0x5   :  { %16 = vsyncpa [#allocation4], 0 }
   0x6   :  { %18 = vsyncpa [#allocation4 + $0x1], 0  ;;  %s41964_s24 = smov 0   ;;  %s41966_s25 = smov 0  }
   0x7   :  { %s41968_s26 = smov 0   ;;  %s41970_s27 = smov 0  }
   0x8 LB: > { %s41985_s28 = sadd.s32 4294967295, %s41909_s27   ;;  %s37077_s29 = sadd.s32 4294967294, %s41909_s27   ;;  %s41909_s27 = sphi %s41970_s27, %s48801_s27   ;;  %s41905_s26 = sphi %s41968_s26, %s48800_s26   ;;  %s41901_s25 = sphi %s41966_s25, %s48799_s25   ;;  %s41897_s24 = sphi %s41964_s24, %s48798_s24  }
   0x9   : > { %p44_p0 = scmp.ne.s32.totalorder %s41901_s25, %s41897_s24  ;;  %p48333_p1 = scmp.eq.s32.totalorder %s41985_s28, 0 }
   0xa   : > { %p200_p3 = scmp.eq.s32.totalorder %s37077_s29, 1  ;;  %p37078_p5 = scmp.ge.s32.totalorder %s41909_s27, 1 }
   0xb   : > { %p41994_p4 = por %p48333_p1, %p44_p0  ;;  %p207_p7 = scmp.lt.s32.totalorder %s41909_s27, 3 }
   0xc   : > { %p41999_p6 = por %p200_p3, %p44_p0  ;;  %s41911_s10 = smov [#allocation5]  }
   0xd   : > { %s48394_s30 = scalar_select %p41994_p4, 1, 0 }
   0xe   : > { %s48395_s8 = scalar_select %p41999_p6, 1, 0 }
   0xf   : > { %p42004_p8 = pnand %p37078_p5, %p207_p7  ;;  %s219_s11 = sshll.u32 %s41911_s10, 4  ;;  %s220_s11 = int_to_ptr.vmem [resolvable:$true] %s219_s11 }
  0x10   : > { %s41912_s13 = smov [#allocation7]   ;;  %s41772_s15 = scalar_lea.vmem %s220_s11, 768 }
  0x11   : > { %s48396_s9 = scalar_select %p42004_p8, 1, 0 }
  0x12   : > { %p41678_p9 = pneg %p42004_p8  ;;  %s241_s14 = sshll.u32 %s41912_s13, 4  ;;  %s242_s14 = int_to_ptr.vmem [resolvable:$true] %s241_s14 }
  0x13   : > { %p41773_p13 = scmp.ne.s32.totalorder %s220_s11, %s41772_s15  ;;  %p41780_p5 = scmp.lt.s32.totalorder %s220_s11, %s220_s11 }
  0x14   : > { %p42013_p11 = pnand %p41678_p9, %p48333_p1  ;;  %p41781_p7 = scmp.lt.s32.totalorder %s41772_s15, %s41772_s15 }
  0x16   : > { %p41763_p12 = pneg %p42013_p11  ;;  %p41782_p10 = por %p41781_p7, %p41780_p5 }
  0x18   : > { %p41775_p0 = pnand %p41773_p13, %p41763_p12 }
  0x1a   : > { %p41776_p3 = pneg %p41775_p0 }
  0x1c   : > { %p41783_p9 = pnand %p41782_p10, %p41776_p3 }
  0x1e   : > { %41786 = shalt.err (!%p41783_p9)
}
  0x1f   : > { %s41913_s16 = smov 128   ;;  %s41914_s17 = smov 8  }
  0x20   : > { %s48398_s1 = sld [smem:[#allocation92_spill]]  ;;  %s41798_s20 = scalar_lea.vmem %s242_s14, 1152 }
  0x21   : > { %p41799_p1 = scmp.ne.s32.totalorder %s242_s14, %s41798_s20  ;;  %p41806_p2 = scmp.lt.s32.totalorder %s242_s14, %s242_s14 }
  0x22   : > { %p41807_p6 = scmp.lt.s32.totalorder %s41798_s20, %s41798_s20 }
  0x23   : > { %p41801_p13 = pnand %p41799_p1, %p41763_p12 }
  0x24   : > { %p41808_p5 = por %p41807_p6, %p41806_p2 }
  0x25   : > { %p41802_p0 = pneg %p41801_p13 }
  0x26   : > { %41681 = dma.hbm_to_vmem [thread:$0]  (!%p42013_p11), %s48398_s1, 768, %s220_s11, [#allocation6], %s41913_s16, %s41913_s16, %s41914_s17  }
  0x27   : > { %p41809_p10 = pnand %p41808_p5, %p41802_p0 }
  0x29   : > { %41812 = shalt.err (!%p41809_p10)
}
  0x2a   : > { %41684 = dma.hbm_to_vmem [thread:$0]  (!%p42013_p11), %s48330_s5, 1152, %s242_s14, [#allocation6], %s41913_s16, %s41913_s16, %s41914_s17  }
  0x2b   : > { %s42036_s23 = sadd.s32 1, %s41909_s27   ;;  %s31_s29 = sadd.s32 1, %s41905_s26 }
  0x2c   : > { %s28_s10 = ssub.s32 %s41909_s27, %s42036_s23  ;;  %p38_p1 = scmp.ne.s32.totalorder %s41905_s26, %s41901_s25 }
  0x2d   : > { %p29_p2 = scmp.eq.s32.totalorder %s28_s10, 0  ;;  %p39_p6 = scmp.eq.s32.totalorder %s41909_s27, 0 }
  0x2e   : > { %p48399_p12 = scmp.eq.s32.totalorder %s41985_s28, 1  ;;  %p41695_p7 = scmp.lt.s32.totalorder %s41909_s27, 2 }
  0x2f   : > { %s42052_s12 = scalar_select %p29_p2, %s41905_s26, %s31_s29  }
  0x30   : > { %p42046_p3 = por %p48399_p12, %p38_p1  ;;  %p40_p9 = por %p39_p6, %p38_p1 }
  0x31   : > { %s258_s13 = sand.u32 1, %s41905_s26   ;;  %s37880_s14 = sshll.u32 %s41909_s27, 10 }
  0x32   : > { %s48400_s11 = scalar_select %p42046_p3, 1, 0 }
  0x33   : > { %s37082_s15 = sshll.u32 %s258_s13, 6  ;;  %s42059_s18 = scalar_lea.hbm %s48325_s0, %s37880_s14 }
  0x34   : > { %s262_s19 = scalar_lea.vmem [#allocation2], %s37082_s15  ;;  %p42063_p11 = pnand %p41695_p7, %p40_p9 }
  0x35   : > { %s269_s20 = sshll.u32 %s262_s19, 4  ;;  %s42067_s22 = scalar_lea.sflag [#allocation3], %s258_s13  ;;  %s42061_s20 = int_to_ptr.vmem [resolvable:$true] %s269_s20 }
  0x36   : > { %s41813_s29 = scalar_lea.hbm %s42059_s18, 1024  ;;  %p41815_p0 = pneg %p42063_p11 }
  0x37   : > { %p41814_p13 = scmp.ne.s32.totalorder %s42059_s18, %s41813_s29  ;;  %s41818_s15 = scalar_lea.hbm %s48325_s0, 2048 }
  0x38   : > { %p41819_p1 = scmp.lt.s32.totalorder %s42059_s18, %s48325_s0  ;;  %p41820_p2 = scmp.lt.s32.totalorder %s41818_s15, %s41813_s29 }
  0x39   : > { %p41816_p5 = pnand %p41815_p0, %p41814_p13 }
  0x3a   : > { %p41821_p6 = por %p41820_p2, %p41819_p1 }
  0x3b   : > { %p41817_p10 = pneg %p41816_p5 }
  0x3d   : > { %p41822_p12 = pnand %p41821_p6, %p41817_p10 }
  0x3f   : > { %41825 = shalt.err (!%p41822_p12)
}
  0x40   : > { %s41826_s13 = scalar_lea.vmem %s42061_s20, 1024  ;;  %s41915_s19 = smov [#allocation2]  }
  0x41   : > { %p41827_p7 = scmp.ne.s32.totalorder %s42061_s20, %s41826_s13  ;;  %s41831_s1 = sshll.u32 %s41915_s19, 4  ;;  %s41832_s1 = int_to_ptr.vmem [resolvable:$false] %s41831_s1 }
  0x42   : > { %s41833_s10 = scalar_lea.vmem %s41832_s1, 2048  ;;  %p41834_p5 = scmp.lt.s32.totalorder %s42061_s20, %s41832_s1 }
  0x43   : > { %p41829_p9 = pnand %p41827_p7, %p41815_p0  ;;  %p41835_p3 = scmp.lt.s32.totalorder %s41833_s10, %s41826_s13 }
  0x45   : > { %p41830_p13 = pneg %p41829_p9  ;;  %p41836_p4 = por %p41835_p3, %p41834_p5 }
  0x47   : > { %p41837_p8 = pnand %p41836_p4, %p41830_p13 }
  0x49   : > { %41840 = shalt.err (!%p41837_p8)
}
  0x4a   : > { %s41916_s29 = smov 64   ;;  %s41917_s14 = smov 4  }
  0x4b   : > { %41688 = dma.hbm_to_vmem [thread:$0]  (!%p42063_p11), %s42059_s18, 1024, %s42061_s20, %s42067_s22, %s41916_s29, %s41916_s29, %s41917_s14  }
  0x4c   : > { %p48402_p0 = scmp.ne.s32.totalorder %s48396_s9, 0 }
  0x4e   : > { %281 = sbr.rel (%p48402_p0) target bundleno = 2681 (0xa79), region = 48 }
  0x53   : > { %s42091_s15 = sand.u32 1, %s41901_s25   ;;  %p48403_p4 = scmp.ne.s32.totalorder %s48394_s30, 0 }
  0x54   : > { %s37086_s1 = sshll.u32 %s42091_s15, 6  ;;  %s284_s16 = scalar_lea.sflag [#allocation3], %s42091_s15 }
  0x55   : > { %s42095_s17 = scalar_lea.vmem [#allocation2], %s37086_s1 }
  0x56   : > { %41884 = dma.done.wait (%p48403_p4), %s284_s16, 1024  }
  0x57   : > { %41886 = vsyncadd (%p48403_p4), %s284_s16, 4294966272  ;;  %p48404_p8 = scmp.eq.s32.totalorder %s41985_s28, 0 }
  0x59   : > { %41888 = dma.done.wait (%p48404_p8), [#allocation6], 1920   ;;  %p48405_p3 = pmov %p48404_p8 }
  0x5a   : > { %v343_v0 = vld [vmem:[#allocation5 + $0x8] sm:$0xff]  ;;  %v342_v1 = vld [vmem:[#allocation5] sm:$0xff]  ;;  %vm368_vm0 = vcmask 130048   ;;  %v42114_v4 = vld [vmem:[%s42095_s17 + $0x10] sm:$0xff]   ;;  %v48361_v10 = vmov 0.0   ;;  %vm41919_vm1 = vmmov 0  }
  0x5b   : > { %41890 = vsyncadd (%p48405_p3), [#allocation6], 4294965376  ;;  %39000 = vmatprep.subr.mxu0 %v343_v0  ;;  %v42106_v2 = vld [vmem:[%s42095_s17] sm:$0xff]   ;;  %v42109_v3 = vld [vmem:[%s42095_s17 + $0x8] sm:$0xff]   ;;  %39016 = vmatprep.subr.mxu1 %v48361_v10  ;;  %vm513_vm2 = vcmask 1043456   ;;  %vm509_vm3 = vcmask 31744  }
  0x5c   : > { %39001 = vmatpush3.msra.mxu0 %v343_v0  ;;  %39004 = vmatprep.mubr.msk.f32.mxu0 %vm368_vm0, %v42106_v2  ;;  %v42119_v5 = vld [vmem:[%s42095_s17 + $0x18] sm:$0xff]   ;;  %v42124_v6 = vld [vmem:[%s42095_s17 + $0x20] sm:$0xff]   ;;  %v42129_v7 = vld [vmem:[%s42095_s17 + $0x28] sm:$0xff]   ;;  %vm12747_vm4 = vcmask 261120   ;;  %vm13072_vm5 = vcmask 64512   ;;  %s37089_s21 = sshll.u32 %s42091_s15, 9 }
  0x5d   : > { %39002 = vmatprep.subr.mxu0 %v342_v1  ;;  %v42134_v8 = vld [vmem:[%s42095_s17 + $0x30] sm:$0xff]   ;;  %v42139_v9 = vld [vmem:[%s42095_s17 + $0x38] sm:$0xff]   ;;  %39018 = vmatprep.mubr.msk.f32.mxu1 %vm41919_vm1, %v48361_v10  ;;  %v42300_v28 = vld [vmem:[%s48327_s2] sm:$0xff]  ;;  %vm36906_vm6 = vcmask 523264   ;;  %s47968_s22 = scalar_lea.vmem [#allocation8], %s37089_s21  ;;  %s37881_s13 = sshll.u32 %s41985_s28, 13 }
  0x5e   : > { %39003 = vmatpush3.msra.mxu0 %v342_v1  ;;  %v42156_v12 = vld [vmem:[%s48327_s2 + $0x18] sm:$0xff]  ;;  %v42528_v29 = vld [vmem:[%s48327_s2 + $0x30] sm:$0xff]  ;;  %v42688_v32 = vld [vmem:[%s48327_s2 + $0x8] sm:$0xff]  ;;  %s36985_s19 = sshll.u32 %s47968_s22, 4  ;;  %s48276_s14 = scalar_lea.hbm %s48332_s7, %s37881_s13  ;;  %s48278_s19 = int_to_ptr.vmem [resolvable:$true] %s36985_s19 }
  0x5f   : > { %39005 = vmatmul.mubr.msk.f32.vlgmr.msra.gmra.mxu0 %vm368_vm0, %v42109_v3  ;;  %39041 = vmatprep.subr.mxu0 %v48361_v10  ;;  %v5141_v30 = vld [vmem:[#allocation5 + $0x18] sm:$0xff]  ;;  %v5140_v31 = vld [vmem:[#allocation5 + $0x10] sm:$0xff]  ;;  %s36972_s28 = scalar_lea.sflag [#allocation4], %s42091_s15  ;;  %s41841_s1 = scalar_lea.vmem %s48278_s19, 8192 }
  0x60   : > { %39007 = vmatprep.mubr.msk.f32.mxu0 %vm368_vm0, %v42114_v4  ;;  %p41842_p11 = scmp.ne.s32.totalorder %s48278_s19, %s41841_s1  ;;  %p48795_p10 = scmp.ne.s32.totalorder %s48400_s11, 0 }
  0x61   : > { %s41921_s16 = smov [#allocation8]  }
  0x62   : > { %p41843_p1 = pnand %p41842_p11, %p48795_p10  ;;  %s41845_s30 = sshll.u32 %s41921_s16, 4  ;;  %s41846_s30 = int_to_ptr.vmem [resolvable:$false] %s41845_s30 }
  0x63   : > { %39008 = vmatmul.mubr.msk.f32.gmra.mxu0 %vm368_vm0, %v42119_v5  ;;  %p41848_p6 = scmp.lt.s32.totalorder %s48278_s19, %s41846_s30 }
  0x64   : > { %39010 = vmatprep.mubr.msk.f32.mxu0 %vm368_vm0, %v42124_v6  ;;  %p41844_p2 = pneg %p41843_p1 }
  0x67   : > { %39011 = vmatmul.mubr.msk.f32.gmra.mxu0 %vm368_vm0, %v42129_v7 }
  0x68   : > { %39013 = vmatprep.mubr.msk.f32.mxu0 %vm368_vm0, %v42134_v8 }
  0x6b   : > { %39014 = vmatmul.mubr.msk.f32.gmra.mxu0 %vm368_vm0, %v42139_v9 }
  0x6c   : > { %39043 = vmatprep.mubr.msk.f32.mxu0 %vm41919_vm1, %v48361_v10 }
 0x11f   : > { %v42151_v11 = vpop.f32.mrf.mxu0 }
 0x120   : > { %v42201_v21 = vcombine.high %v42151_v11, %v42151_v11 }
 0x121   : > { %v42158_v13 = vpop.f32.mrf.mxu0 }
 0x122   : > { %v42162_v14 = vcombine.high %v42158_v13, %v42158_v13  ;;  %39017 = vmatpush3.msk.msra.mxu1 %vm513_vm2, %v42158_v13 }
 0x123   : > { %v42166_v15 = vpop.f32.mrf.mxu0  ;;  %39019 = vmatmul.mubr.msk.f32.vlgmr.msra.gmra.mxu1 %vm509_vm3, %v42156_v12  ;;  %39021 = vmatprep.subr.mxu1 %v48361_v10 }
 0x124   : > { %39022 = vmatpush3.msk.msra.mxu1 %vm513_vm2, %v42162_v14  ;;  %39023 = vmatprep.mubr.msk.f32.mxu1 %vm41919_vm1, %v48361_v10  ;;  %v42192_v19 = vcombine.high %v42166_v15, %v42166_v15 }
 0x125   : > { %v42175_v16 = vpop.f32.mrf.mxu0  ;;  %39026 = vmatprep.subr.mxu1 %v48361_v10 }
 0x126   : > { %v42180_v17 = vcombine.high %v42175_v16, %v42175_v16 }
 0x127   : > { %39024 = vmatmul.mubr.msk.f32.vlgmr.msra.gmra.mxu1 %vm509_vm3, %v42156_v12  ;;  %v42184_v18 = vpop.f32.mrf.mxu0 }
 0x128   : > { %39027 = vmatpush3.msk.msra.mxu1 %vm513_vm2, %v42151_v11  ;;  %39042 = vmatpush3.msk.msra.mxu0 %vm513_vm2, %v42180_v17  ;;  %v42232_v24 = vcombine.high %v42184_v18, %v42184_v18 }
 0x129   : > { %39044 = vmatmul.mubr.msk.f32.vlgmr.msra.gmra.mxu0 %vm509_vm3, %v42156_v12  ;;  %39051 = vmatprep.subr.mxu0 %v48361_v10  ;;  %v42197_v20 = vpop.f32.mrf.mxu0 }
 0x12a   : > { %39028 = vmatprep.mubr.msk.f32.mxu1 %vm41919_vm1, %v48361_v10  ;;  %39031 = vmatprep.subr.mxu1 %v48361_v10  ;;  %v42210_v22 = vcombine.high %v42197_v20, %v42197_v20 }
 0x12b   : > { %39052 = vmatpush3.msk.msra.mxu0 %vm513_vm2, %v42192_v19  ;;  %39029 = vmatmul.mubr.msk.f32.vlgmr.msra.gmra.mxu1 %vm509_vm3, %v42156_v12  ;;  %v42218_v23 = vpop.f32.mrf.mxu0 }
 0x12c   : > { %39032 = vmatpush3.msk.msra.mxu1 %vm513_vm2, %v42201_v21  ;;  %39053 = vmatprep.mubr.msk.f32.mxu0 %vm41919_vm1, %v48361_v10  ;;  %v42270_v27 = vcombine.high %v42218_v23, %v42218_v23 }
 0x12d   : > { %39054 = vmatmul.mubr.msk.f32.vlgmr.msra.gmra.mxu0 %vm509_vm3, %v42156_v12  ;;  %39061 = vmatprep.subr.mxu0 %v48361_v10  ;;  %v42238_v25 = vpop.f32.mrf.mxu0 }
 0x12e   : > { %39033 = vmatprep.mubr.msk.f32.mxu1 %vm41919_vm1, %v48361_v10  ;;  %39036 = vmatprep.subr.mxu1 %v48361_v10  ;;  %v42250_v26 = vcombine.high %v42238_v25, %v42238_v25 }
 0x12f   : > { %39062 = vmatpush3.msk.msra.mxu0 %vm513_vm2, %v42210_v22  ;;  %39034 = vmatmul.mubr.msk.f32.vlgmr.msra.gmra.mxu1 %vm509_vm3, %v42156_v12 }
 0x130   : > { %39037 = vmatpush3.msk.msra.mxu1 %vm513_vm2, %v42175_v16  ;;  %39063 = vmatprep.mubr.msk.f32.mxu0 %vm41919_vm1, %v48361_v10 }
 0x131   : > { %39071 = vmatprep.subr.mxu0 %v48361_v10  ;;  %39064 = vmatmul.mubr.msk.f32.vlgmr.msra.gmra.mxu0 %vm509_vm3, %v42156_v12 }
 0x132   : > { %39072 = vmatpush3.msk.msra.mxu0 %vm513_vm2, %v42232_v24  ;;  %39038 = vmatprep.mubr.msk.f32.mxu1 %vm41919_vm1, %v48361_v10 }
 0x133   : > { %39046 = vmatprep.subr.mxu1 %v48361_v10  ;;  %39039 = vmatmul.mubr.msk.f32.vlgmr.msra.gmra.mxu1 %vm509_vm3, %v42156_v12 }
 0x134   : > { %39047 = vmatpush3.msk.msra.mxu1 %vm513_vm2, %v42166_v15  ;;  %39073 = vmatprep.mubr.msk.f32.mxu0 %vm41919_vm1, %v48361_v10 }
 0x135   : > { %39074 = vmatmul.mubr.msk.f32.vlgmr.msra.gmra.mxu0 %vm509_vm3, %v42156_v12  ;;  %39081 = vmatprep.subr.mxu0 %v48361_v10 }
 0x136   : > { %39048 = vmatprep.mubr.msk.f32.mxu1 %vm41919_vm1, %v48361_v10  ;;  %39056 = vmatprep.subr.mxu1 %v48361_v10 }
 0x137   : > { %39082 = vmatpush3.msk.msra.mxu0 %vm513_vm2, %v42250_v26  ;;  %39049 = vmatmul.mubr.msk.f32.vlgmr.msra.gmra.mxu1 %vm509_vm3, %v42156_v12 }
 0x138   : > { %39057 = vmatpush3.msk.msra.mxu1 %vm513_vm2, %v42197_v20  ;;  %39083 = vmatprep.mubr.msk.f32.mxu0 %vm41919_vm1, %v48361_v10 }
 0x139   : > { %39091 = vmatprep.subr.mxu0 %v48361_v10  ;;  %39084 = vmatmul.mubr.msk.f32.vlgmr.msra.gmra.mxu0 %vm509_vm3, %v42156_v12 }
 0x13a   : > { %39092 = vmatpush3.msk.msra.mxu0 %vm513_vm2, %v42270_v27  ;;  %39058 = vmatprep.mubr.msk.f32.mxu1 %vm41919_vm1, %v48361_v10 }
 0x13b   : > { %39066 = vmatprep.subr.mxu1 %v48361_v10  ;;  %39059 = vmatmul.mubr.msk.f32.vlgmr.msra.gmra.mxu1 %vm509_vm3, %v42156_v12 }
 0x13c   : > { %39067 = vmatpush3.msk.msra.mxu1 %vm513_vm2, %v42184_v18  ;;  %39093 = vmatprep.mubr.msk.f32.mxu0 %vm41919_vm1, %v48361_v10 }
 0x13d   : > { %39101 = vmatprep.subr.mxu0 %v48361_v10  ;;  %39094 = vmatmul.mubr.msk.f32.vlgmr.msra.gmra.mxu0 %vm509_vm3, %v42156_v12 }
 0x13e   : > { %39102 = vmatpush3.msk.msra.mxu0 %vm513_vm2, %v42158_v13  ;;  %39068 = vmatprep.mubr.msk.f32.mxu1 %vm41919_vm1, %v48361_v10 }
 0x13f   : > { %39076 = vmatprep.subr.mxu1 %v48361_v10  ;;  %39069 = vmatmul.mubr.msk.f32.vlgmr.msra.gmra.mxu1 %vm509_vm3, %v42156_v12 }
 0x140   : > { %39077 = vmatpush3.msk.msra.mxu1 %vm513_vm2, %v42238_v25  ;;  %39103 = vmatprep.mubr.msk.f32.mxu0 %vm41919_vm1, %v48361_v10 }
 0x141   : > { %39111 = vmatprep.subr.mxu0 %v48361_v10  ;;  %39104 = vmatmul.mubr.msk.f32.vlgmr.msra.gmra.mxu0 %vm509_vm3, %v42300_v28 }
 0x142   : > { %39112 = vmatpush3.msk.msra.mxu0 %vm513_vm2, %v42162_v14  ;;  %39078 = vmatprep.mubr.msk.f32.mxu1 %vm41919_vm1, %v48361_v10 }
 0x143   : > { %39086 = vmatprep.subr.mxu1 %v48361_v10  ;;  %39079 = vmatmul.mubr.msk.f32.vlgmr.msra.gmra.mxu1 %vm509_vm3, %v42156_v12 }
 0x144   : > { %39087 = vmatpush3.msk.msra.mxu1 %vm513_vm2, %v42218_v23  ;;  %39113 = vmatprep.mubr.msk.f32.mxu0 %vm41919_vm1, %v48361_v10 }
 0x145   : > { %39121 = vmatprep.subr.mxu0 %v48361_v10  ;;  %39114 = vmatmul.mubr.msk.f32.vlgmr.msra.gmra.mxu0 %vm509_vm3, %v42300_v28 }
 0x146   : > { %39122 = vmatpush3.msk.msra.mxu0 %vm513_vm2, %v42151_v11  ;;  %39088 = vmatprep.mubr.msk.f32.mxu1 %vm41919_vm1, %v48361_v10 }
 0x147   : > { %39089 = vmatmul.mubr.msk.f32.vlgmr.msra.gmra.mxu1 %vm509_vm3, %v42156_v12  ;;  %39096 = vmatprep.subr.mxu1 %v48361_v10 }
 0x148   : > { %39123 = vmatprep.mubr.msk.f32.mxu0 %vm41919_vm1, %v48361_v10  ;;  %39131 = vmatprep.subr.mxu0 %v48361_v10 }
 0x149   : > { %39097 = vmatpush3.msra.mxu1 %v48361_v10  ;;  %39124 = vmatmul.mubr.msk.f32.vlgmr.msra.gmra.mxu0 %vm509_vm3, %v42300_v28 }
 0x14a   : > { %39132 = vmatpush3.msk.msra.mxu0 %vm513_vm2, %v42201_v21  ;;  %39098 = vmatprep.mubr.msk.f32.mxu1 %vm41919_vm1, %v48361_v10 }
 0x14b   : > { %39106 = vmatprep.subr.mxu1 %v48361_v10  ;;  %39099 = vmatmul.mubr.msk.f32.vlgmr.msra.gmra.mxu1 %vm509_vm3, %v42300_v28 }
 0x14c   : > { %39107 = vmatpush3.msk.msra.mxu1 %vm513_vm2, %v42158_v13  ;;  %39133 = vmatprep.mubr.msk.f32.mxu0 %vm41919_vm1, %v48361_v10 }
 0x14d   : > { %39141 = vmatprep.subr.mxu0 %v48361_v10  ;;  %39134 = vmatmul.mubr.msk.f32.vlgmr.msra.gmra.mxu0 %vm509_vm3, %v42300_v28 }
 0x14e   : > { %39142 = vmatpush3.msk.msra.mxu0 %vm513_vm2, %v42175_v16  ;;  %39108 = vmatprep.mubr.msk.f32.mxu1 %vm41919_vm1, %v48361_v10 }
 0x14f   : > { %39116 = vmatprep.subr.mxu1 %v48361_v10  ;;  %39109 = vmatmul.mubr.msk.f32.vlgmr.msra.gmra.mxu1 %vm509_vm3, %v42300_v28 }
 0x150   : > { %39117 = vmatpush3.msk.msra.mxu1 %vm513_vm2, %v42162_v14  ;;  %39143 = vmatprep.mubr.msk.f32.mxu0 %vm41919_vm1, %v48361_v10 }
 0x151   : > { %39151 = vmatprep.subr.mxu0 %v48361_v10  ;;  %39144 = vmatmul.mubr.msk.f32.vlgmr.msra.gmra.mxu0 %vm509_vm3, %v42300_v28 }
 0x152   : > { %39152 = vmatpush3.msk.msra.mxu0 %vm513_vm2, %v42180_v17  ;;  %39118 = vmatprep.mubr.msk.f32.mxu1 %vm41919_vm1, %v48361_v10 }
 0x153   : > { %39126 = vmatprep.subr.mxu1 %v48361_v10  ;;  %39119 = vmatmul.mubr.msk.f32.vlgmr.msra.gmra.mxu1 %vm509_vm3, %v42300_v28 }
 0x154   : > { %39127 = vmatpush3.msk.msra.mxu1 %vm513_vm2, %v42151_v11  ;;  %39153 = vmatprep.mubr.msk.f32.mxu0 %vm41919_vm1, %v48361_v10 }
 0x155   : > { %39161 = vmatprep.subr.mxu0 %v48361_v10  ;;  %39154 = vmatmul.mubr.msk.f32.vlgmr.msra.gmra.mxu0 %vm509_vm3, %v42300_v28 }
 0x156   : > { %39162 = vmatpush3.msk.msra.mxu0 %vm513_vm2, %v42166_v15  ;;  %39128 = vmatprep.mubr.msk.f32.mxu1 %vm41919_vm1, %v48361_v10 }
 0x157   : > { %39136 = vmatprep.subr.mxu1 %v48361_v10  ;;  %39129 = vmatmul.mubr.msk.f32.vlgmr.msra.gmra.mxu1 %vm509_vm3, %v42300_v28 }
 0x158   : > { %39137 = vmatpush3.msk.msra.mxu1 %vm513_vm2, %v42201_v21  ;;  %39163 = vmatprep.mubr.msk.f32.mxu0 %vm41919_vm1, %v48361_v10 }
 0x159   : > { %39171 = vmatprep.subr.mxu0 %v48361_v10  ;;  %39164 = vmatmul.mubr.msk.f32.vlgmr.msra.gmra.mxu0 %vm509_vm3, %v42300_v28 }
 0x15a   : > { %39172 = vmatpush3.msk.msra.mxu0 %vm513_vm2, %v42192_v19  ;;  %39138 = vmatprep.mubr.msk.f32.mxu1 %vm41919_vm1, %v48361_v10 }
 0x15b   : > { %39146 = vmatprep.subr.mxu1 %v48361_v10  ;;  %39139 = vmatmul.mubr.msk.f32.vlgmr.msra.gmra.mxu1 %vm509_vm3, %v42300_v28 }
 0x15c   : > { %39147 = vmatpush3.msk.msra.mxu1 %vm513_vm2, %v42175_v16  ;;  %39173 = vmatprep.mubr.msk.f32.mxu0 %vm41919_vm1, %v48361_v10 }
 0x15d   : > { %39181 = vmatprep.subr.mxu0 %v48361_v10  ;;  %39174 = vmatmul.mubr.msk.f32.vlgmr.msra.gmra.mxu0 %vm509_vm3, %v42300_v28 }
 0x15e   : > { %39182 = vmatpush3.msk.msra.mxu0 %vm513_vm2, %v42197_v20  ;;  %39148 = vmatprep.mubr.msk.f32.mxu1 %vm41919_vm1, %v48361_v10 }
 0x15f   : > { %39156 = vmatprep.subr.mxu1 %v48361_v10  ;;  %39149 = vmatmul.mubr.msk.f32.vlgmr.msra.gmra.mxu1 %vm509_vm3, %v42300_v28 }
 0x160   : > { %39157 = vmatpush3.msk.msra.mxu1 %vm513_vm2, %v42180_v17  ;;  %39183 = vmatprep.mubr.msk.f32.mxu0 %vm41919_vm1, %v48361_v10 }
 0x161   : > { %39191 = vmatprep.subr.mxu0 %v48361_v10  ;;  %39184 = vmatmul.mubr.msk.f32.vlgmr.msra.gmra.mxu0 %vm509_vm3, %v42300_v28 }
 0x162   : > { %39192 = vmatpush3.msk.msra.mxu0 %vm513_vm2, %v42210_v22  ;;  %39158 = vmatprep.mubr.msk.f32.mxu1 %vm41919_vm1, %v48361_v10 }
 0x163   : > { %39166 = vmatprep.subr.mxu1 %v48361_v10  ;;  %39159 = vmatmul.mubr.msk.f32.vlgmr.msra.gmra.mxu1 %vm509_vm3, %v42300_v28 }
 0x164   : > { %39167 = vmatpush3.msk.msra.mxu1 %vm513_vm2, %v42166_v15  ;;  %39193 = vmatprep.mubr.msk.f32.mxu0 %vm41919_vm1, %v48361_v10 }
 0x165   : > { %39201 = vmatprep.subr.mxu0 %v48361_v10  ;;  %39194 = vmatmul.mubr.msk.f32.vlgmr.msra.gmra.mxu0 %vm509_vm3, %v42300_v28 }
 0x166   : > { %39202 = vmatpush3.msk.msra.mxu0 %vm513_vm2, %v42184_v18  ;;  %39168 = vmatprep.mubr.msk.f32.mxu1 %vm41919_vm1, %v48361_v10 }
 0x167   : > { %39176 = vmatprep.subr.mxu1 %v48361_v10  ;;  %39169 = vmatmul.mubr.msk.f32.vlgmr.msra.gmra.mxu1 %vm509_vm3, %v42300_v28 }
 0x168   : > { %39177 = vmatpush3.msk.msra.mxu1 %vm513_vm2, %v42192_v19  ;;  %39203 = vmatprep.mubr.msk.f32.mxu0 %vm41919_vm1, %v48361_v10 }
 0x169   : > { %39211 = vmatprep.subr.mxu0 %v48361_v10  ;;  %39204 = vmatmul.mubr.msk.f32.vlgmr.msra.gmra.mxu0 %vm509_vm3, %v42300_v28 }
 0x16a   : > { %39212 = vmatpush3.msk.msra.mxu0 %vm513_vm2, %v42232_v24  ;;  %39178 = vmatprep.mubr.msk.f32.mxu1 %vm41919_vm1, %v48361_v10 }
 0x16b   : > { %39186 = vmatprep.subr.mxu1 %v48361_v10  ;;  %39179 = vmatmul.mubr.msk.f32.vlgmr.msra.gmra.mxu1 %vm509_vm3, %v42300_v28 }
 0x16c   : > { %39187 = vmatpush3.msk.msra.mxu1 %vm513_vm2, %v42197_v20  ;;  %39213 = vmatprep.mubr.msk.f32.mxu0 %vm41919_vm1, %v48361_v10 }
 0x16d   : > { %39221 = vmatprep.subr.mxu0 %v48361_v10  ;;  %39214 = vmatmul.mubr.msk.f32.vlgmr.msra.gmra.mxu0 %vm509_vm3, %v42300_v28 }
 0x16e   : > { %39222 = vmatpush3.msk.msra.mxu0 %vm513_vm2, %v42238_v25  ;;  %39188 = vmatprep.mubr.msk.f32.mxu1 %vm41919_vm1, %v48361_v10 }
 0x16f   : > { %39196 = vmatprep.subr.mxu1 %v48361_v10  ;;  %39189 = vmatmul.mubr.msk.f32.vlgmr.msra.gmra.mxu1 %vm509_vm3, %v42300_v28 }
 0x170   : > { %39197 = vmatpush3.msk.msra.mxu1 %vm513_vm2, %v42210_v22  ;;  %39223 = vmatprep.mubr.msk.f32.mxu0 %vm41919_vm1, %v48361_v10 }
 0x171   : > { %39231 = vmatprep.subr.mxu0 %v48361_v10  ;;  %39224 = vmatmul.mubr.msk.f32.vlgmr.msra.gmra.mxu0 %vm509_vm3, %v42300_v28 }
 0x172   : > { %39232 = vmatpush3.msk.msra.mxu0 %vm513_vm2, %v42250_v26  ;;  %39198 = vmatprep.mubr.msk.f32.mxu1 %vm41919_vm1, %v48361_v10 }
 0x173   : > { %39206 = vmatprep.subr.mxu1 %v48361_v10  ;;  %39199 = vmatmul.mubr.msk.f32.vlgmr.msra.gmra.mxu1 %vm509_vm3, %v42300_v28 }
 0x174   : > { %39207 = vmatpush3.msk.msra.mxu1 %vm513_vm2, %v42184_v18  ;;  %39233 = vmatprep.mubr.msk.f32.mxu0 %vm41919_vm1, %v48361_v10 }
 0x175   : > { %39241 = vmatprep.subr.mxu0 %v48361_v10  ;;  %39234 = vmatmul.mubr.msk.f32.vlgmr.msra.gmra.mxu0 %vm509_vm3, %v42300_v28 }
 0x176   : > { %39242 = vmatpush3.msk.msra.mxu0 %vm513_vm2, %v42218_v23  ;;  %39208 = vmatprep.mubr.msk.f32.mxu1 %vm41919_vm1, %v48361_v10 }
 0x177   : > { %39216 = vmatprep.subr.mxu1 %v48361_v10  ;;  %39209 = vmatmul.mubr.msk.f32.vlgmr.msra.gmra.mxu1 %vm509_vm3, %v42300_v28 }
 0x178   : > { %39217 = vmatpush3.msk.msra.mxu1 %vm513_vm2, %v42232_v24  ;;  %39243 = vmatprep.mubr.msk.f32.mxu0 %vm41919_vm1, %v48361_v10 }
 0x179   : > { %39251 = vmatprep.subr.mxu0 %v48361_v10  ;;  %39244 = vmatmul.mubr.msk.f32.vlgmr.msra.gmra.mxu0 %vm509_vm3, %v42300_v28 }
 0x17a   : > { %39252 = vmatpush3.msk.msra.mxu0 %vm513_vm2, %v42270_v27  ;;  %39218 = vmatprep.mubr.msk.f32.mxu1 %vm41919_vm1, %v48361_v10 }
 0x17b   : > { %39226 = vmatprep.subr.mxu1 %v48361_v10  ;;  %39219 = vmatmul.mubr.msk.f32.vlgmr.msra.gmra.mxu1 %vm509_vm3, %v42300_v28 }
 0x17c   : > { %39227 = vmatpush3.msk.msra.mxu1 %vm513_vm2, %v42238_v25  ;;  %39253 = vmatprep.mubr.msk.f32.mxu0 %vm41919_vm1, %v48361_v10 }
 0x17d   : > { %39261 = vmatprep.subr.mxu0 %v48361_v10  ;;  %39254 = vmatmul.mubr.msk.f32.vlgmr.msra.gmra.mxu0 %vm509_vm3, %v42300_v28 }
 0x17e   : > { %39262 = vmatpush3.msk.msra.mxu0 %vm513_vm2, %v42162_v14  ;;  %39228 = vmatprep.mubr.msk.f32.mxu1 %vm41919_vm1, %v48361_v10 }
 0x17f   : > { %39236 = vmatprep.subr.mxu1 %v48361_v10  ;;  %39229 = vmatmul.mubr.msk.f32.vlgmr.msra.gmra.mxu1 %vm509_vm3, %v42300_v28 }
 0x180   : > { %39237 = vmatpush3.msk.msra.mxu1 %vm513_vm2, %v42250_v26  ;;  %39263 = vmatprep.mubr.msk.f32.mxu0 %vm41919_vm1, %v48361_v10 }
 0x181   : > { %39271 = vmatprep.subr.mxu0 %v48361_v10  ;;  %39264 = vmatmul.mubr.msk.f32.vlgmr.msra.gmra.mxu0 %vm509_vm3, %v42528_v29 }
 0x182   : > { %39272 = vmatpush3.msk.msra.mxu0 %vm513_vm2, %v42201_v21  ;;  %39238 = vmatprep.mubr.msk.f32.mxu1 %vm41919_vm1, %v48361_v10 }
 0x183   : > { %39246 = vmatprep.subr.mxu1 %v48361_v10  ;;  %39239 = vmatmul.mubr.msk.f32.vlgmr.msra.gmra.mxu1 %vm509_vm3, %v42300_v28 }
 0x184   : > { %39247 = vmatpush3.msk.msra.mxu1 %vm513_vm2, %v42218_v23  ;;  %39273 = vmatprep.mubr.msk.f32.mxu0 %vm41919_vm1, %v48361_v10 }
 0x185   : > { %39281 = vmatprep.subr.mxu0 %v48361_v10  ;;  %39274 = vmatmul.mubr.msk.f32.vlgmr.msra.gmra.mxu0 %vm509_vm3, %v42528_v29 }
 0x186   : > { %39282 = vmatpush3.msk.msra.mxu0 %vm513_vm2, %v42180_v17  ;;  %39248 = vmatprep.mubr.msk.f32.mxu1 %vm41919_vm1, %v48361_v10 }
 0x187   : > { %39256 = vmatprep.subr.mxu1 %v48361_v10  ;;  %39249 = vmatmul.mubr.msk.f32.vlgmr.msra.gmra.mxu1 %vm509_vm3, %v42300_v28 }
 0x188   : > { %39257 = vmatpush3.msk.msra.mxu1 %vm513_vm2, %v42158_v13  ;;  %39283 = vmatprep.mubr.msk.f32.mxu0 %vm41919_vm1, %v48361_v10 }
 0x189   : > { %39291 = vmatprep.subr.mxu0 %v48361_v10  ;;  %39284 = vmatmul.mubr.msk.f32.vlgmr.msra.gmra.mxu0 %vm509_vm3, %v42528_v29 }
 0x18a   : > { %39292 = vmatpush3.msk.msra.mxu0 %vm513_vm2, %v42192_v19  ;;  %39258 = vmatprep.mubr.msk.f32.mxu1 %vm41919_vm1, %v48361_v10 }
 0x18b   : > { %39266 = vmatprep.subr.mxu1 %v48361_v10  ;;  %39259 = vmatmul.mubr.msk.f32.vlgmr.msra.gmra.mxu1 %vm509_vm3, %v42528_v29 }
 0x18c   : > { %39267 = vmatpush3.msk.msra.mxu1 %vm513_vm2, %v42151_v11  ;;  %39293 = vmatprep.mubr.msk.f32.mxu0 %vm41919_vm1, %v48361_v10 }
 0x18d   : > { %39301 = vmatprep.subr.mxu0 %v48361_v10  ;;  %39294 = vmatmul.mubr.msk.f32.vlgmr.msra.gmra.mxu0 %vm509_vm3, %v42528_v29 }
 0x18e   : > { %39302 = vmatpush3.msk.msra.mxu0 %vm513_vm2, %v42210_v22  ;;  %39268 = vmatprep.mubr.msk.f32.mxu1 %vm41919_vm1, %v48361_v10 }
 0x18f   : > { %39276 = vmatprep.subr.mxu1 %v48361_v10  ;;  %39269 = vmatmul.mubr.msk.f32.vlgmr.msra.gmra.mxu1 %vm509_vm3, %v42528_v29 }
 0x190   : > { %39277 = vmatpush3.msk.msra.mxu1 %vm513_vm2, %v42175_v16  ;;  %39303 = vmatprep.mubr.msk.f32.mxu0 %vm41919_vm1, %v48361_v10 }
 0x191   : > { %39311 = vmatprep.subr.mxu0 %v48361_v10  ;;  %39304 = vmatmul.mubr.msk.f32.vlgmr.msra.gmra.mxu0 %vm509_vm3, %v42528_v29 }
 0x192   : > { %39312 = vmatpush3.msk.msra.mxu0 %vm513_vm2, %v42232_v24  ;;  %39278 = vmatprep.mubr.msk.f32.mxu1 %vm41919_vm1, %v48361_v10 }
 0x193   : > { %39286 = vmatprep.subr.mxu1 %v48361_v10  ;;  %39279 = vmatmul.mubr.msk.f32.vlgmr.msra.gmra.mxu1 %vm509_vm3, %v42528_v29 }
 0x194   : > { %39287 = vmatpush3.msk.msra.mxu1 %vm513_vm2, %v42166_v15  ;;  %39313 = vmatprep.mubr.msk.f32.mxu0 %vm41919_vm1, %v48361_v10 }
 0x195   : > { %39321 = vmatprep.subr.mxu0 %v48361_v10  ;;  %39314 = vmatmul.mubr.msk.f32.vlgmr.msra.gmra.mxu0 %vm509_vm3, %v42528_v29 }
 0x196   : > { %39322 = vmatpush3.msk.msra.mxu0 %vm513_vm2, %v42250_v26  ;;  %39288 = vmatprep.mubr.msk.f32.mxu1 %vm41919_vm1, %v48361_v10 }
 0x197   : > { %39296 = vmatprep.subr.mxu1 %v48361_v10  ;;  %39289 = vmatmul.mubr.msk.f32.vlgmr.msra.gmra.mxu1 %vm509_vm3, %v42528_v29 }
 0x198   : > { %39297 = vmatpush3.msk.msra.mxu1 %vm513_vm2, %v42197_v20  ;;  %39323 = vmatprep.mubr.msk.f32.mxu0 %vm41919_vm1, %v48361_v10 }
 0x199   : > { %39331 = vmatprep.subr.mxu0 %v48361_v10  ;;  %39324 = vmatmul.mubr.msk.f32.vlgmr.msra.gmra.mxu0 %vm509_vm3, %v42528_v29 }
 0x19a   : > { %39332 = vmatpush3.msk.msra.mxu0 %vm513_vm2, %v42270_v27  ;;  %39298 = vmatprep.mubr.msk.f32.mxu1 %vm41919_vm1, %v48361_v10 }
 0x19b   : > { %39306 = vmatprep.subr.mxu1 %v48361_v10  ;;  %39299 = vmatmul.mubr.msk.f32.vlgmr.msra.gmra.mxu1 %vm509_vm3, %v42528_v29 }
 0x19c   : > { %39307 = vmatpush3.msk.msra.mxu1 %vm513_vm2, %v42184_v18  ;;  %39333 = vmatprep.mubr.msk.f32.mxu0 %vm41919_vm1, %v48361_v10 }
 0x19d   : > { %39334 = vmatmul.mubr.msk.f32.vlgmr.msra.gmra.mxu0 %vm509_vm3, %v42528_v29  ;;  %39341 = vmatprep.subr.mxu0 %v5141_v30 }
 0x19e   : > { %39308 = vmatprep.mubr.msk.f32.mxu1 %vm41919_vm1, %v48361_v10  ;;  %39316 = vmatprep.subr.mxu1 %v48361_v10 }
 0x19f   : > { %39342 = vmatpush3.msra.mxu0 %v5141_v30  ;;  %39309 = vmatmul.mubr.msk.f32.vlgmr.msra.gmra.mxu1 %vm509_vm3, %v42528_v29 }
 0x1a0   : > { %39317 = vmatpush3.msk.msra.mxu1 %vm513_vm2, %v42238_v25  ;;  %39343 = vmatprep.subr.mxu0 %v5140_v31 }
 0x1a1   : > { %39344 = vmatpush3.msra.mxu0 %v5140_v31  ;;  %39345 = vmatprep.mubr.msk.f32.mxu0 %vm368_vm0, %v42106_v2 }
 0x1a2   : > { %39346 = vmatmul.mubr.msk.f32.vlgmr.msra.gmra.mxu0 %vm368_vm0, %v42109_v3  ;;  %39318 = vmatprep.mubr.msk.f32.mxu1 %vm41919_vm1, %v48361_v10 }
 0x1a3   : > { %39326 = vmatprep.subr.mxu1 %v48361_v10  ;;  %39319 = vmatmul.mubr.msk.f32.vlgmr.msra.gmra.mxu1 %vm509_vm3, %v42528_v29 }
 0x1a4   : > { %39327 = vmatpush3.msk.msra.mxu1 %vm513_vm2, %v42218_v23  ;;  %39348 = vmatprep.mubr.msk.f32.mxu0 %vm368_vm0, %v42114_v4 }
 0x1a5   : > { %39328 = vmatprep.mubr.msk.f32.mxu1 %vm41919_vm1, %v48361_v10  ;;  %39336 = vmatprep.subr.mxu1 %v48361_v10 }
 0x1a6   : > { %39349 = vmatmul.mubr.msk.f32.gmra.mxu0 %vm368_vm0, %v42119_v5  ;;  %39377 = vmatprep.subr.mxu0 %v48361_v10 }
 0x1a7   : > { %39329 = vmatmul.mubr.msk.f32.vlgmr.msra.gmra.mxu1 %vm509_vm3, %v42528_v29  ;;  %39351 = vmatprep.mubr.msk.f32.mxu0 %vm368_vm0, %v42124_v6 }
 0x1a8   : > { %39337 = vmatpush3.msra.mxu1 %v48361_v10  ;;  %39338 = vmatprep.mubr.msk.f32.mxu1 %vm41919_vm1, %v48361_v10 }
 0x1a9   : > { %39357 = vmatprep.subr.mxu1 %v48361_v10 }
 0x1aa   : > { %39352 = vmatmul.mubr.msk.f32.gmra.mxu0 %vm368_vm0, %v42129_v7 }
 0x1ab   : > { %39339 = vmatmul.mubr.msk.f32.vlgmr.msra.gmra.mxu1 %vm509_vm3, %v42528_v29  ;;  %39354 = vmatprep.mubr.msk.f32.mxu0 %vm368_vm0, %v42134_v8 }
 0x1ac   : > { %39358 = vmatpush3.msra.mxu1 %v48361_v10  ;;  %39359 = vmatprep.mubr.msk.f32.mxu1 %vm41919_vm1, %v48361_v10 }
 0x1ad   : > { %39362 = vmatprep.subr.mxu1 %v48361_v10 }
 0x1ae   : > { %39355 = vmatmul.mubr.msk.f32.gmra.mxu0 %vm368_vm0, %v42139_v9 }
 0x1af   : > { %39379 = vmatprep.mubr.msk.f32.mxu0 %vm41919_vm1, %v48361_v10  ;;  %39360 = vmatmul.mubr.msk.f32.vlgmr.msra.gmra.mxu1 %vm509_vm3, %v42688_v32 }
 0x1b0   : > { %39364 = vmatprep.mubr.msk.f32.mxu1 %vm41919_vm1, %v48361_v10 }
 0x1e3   : > { %v582_v33 = vpop.f32.mrf.mxu1 }
 0x1e5   : > { %v39020_v34 = vpop.f32.mrf.mxu1 }
 0x1e7   : > { %v654_v35 = vpop.f32.mrf.mxu1 }
 0x1e9   : > { %v39025_v36 = vpop.f32.mrf.mxu1  ;;  %v42694_v37 = vpop.f32.mrf.mxu0 }
 0x1eb   : > { %v726_v38 = vpop.f32.mrf.mxu1  ;;  %v39045_v39 = vpop.f32.mrf.mxu0 }
 0x1ed   : > { %v39030_v40 = vpop.f32.mrf.mxu1  ;;  %v42696_v41 = vpop.f32.mrf.mxu0 }
 0x1ef   : > { %v798_v42 = vpop.f32.mrf.mxu1  ;;  %v39055_v43 = vpop.f32.mrf.mxu0 }
 0x1f1   : > { %v39035_v44 = vpop.f32.mrf.mxu1  ;;  %v42698_v45 = vpop.f32.mrf.mxu0 }
 0x1f3   : > { %v870_v46 = vpop.f32.mrf.mxu1  ;;  %v39065_v47 = vpop.f32.mrf.mxu0 }
 0x1f5   : > { %v39040_v48 = vpop.f32.mrf.mxu1  ;;  %v42700_v49 = vpop.f32.mrf.mxu0 }
 0x1f7   : > { %v1014_v50 = vpop.f32.mrf.mxu1  ;;  %v39075_v51 = vpop.f32.mrf.mxu0 }
 0x1f9   : > { %v39050_v52 = vpop.f32.mrf.mxu1  ;;  %v42702_v53 = vpop.f32.mrf.mxu0 }
 0x1fb   : > { %v42704_v54 = vpop.f32.mrf.mxu1  ;;  %v39085_v55 = vpop.f32.mrf.mxu0 }
 0x1fd   : > { %v39060_v56 = vpop.f32.mrf.mxu1  ;;  %v42706_v57 = vpop.f32.mrf.mxu0 }
 0x1ff   : > { %v42708_v58 = vpop.f32.mrf.mxu1  ;;  %v39095_v59 = vpop.f32.mrf.mxu0 }
 0x201   : > { %v39070_v60 = vpop.f32.mrf.mxu1  ;;  %v1808_v61 = vpop.f32.mrf.mxu0 }
 0x202   : > { %v42710_v62 = vadd.f32 %v1808_v61, %v582_v33 }
 0x203   : > { %v42712_v63 = vpop.f32.mrf.mxu1  ;;  %v39105_v0 = vpop.f32.mrf.mxu0 }
 0x205   : > { %v39080_v1 = vpop.f32.mrf.mxu1  ;;  %v1948_v2 = vpop.f32.mrf.mxu0 }
 0x206   : > { %v42714_v3 = vadd.f32 %v1948_v2, %v654_v35 }
 0x207   : > { %v42716_v4 = vpop.f32.mrf.mxu1  ;;  %v39115_v5 = vpop.f32.mrf.mxu0 }
 0x209   : > { %v39090_v6 = vpop.f32.mrf.mxu1  ;;  %v2088_v7 = vpop.f32.mrf.mxu0 }
 0x20a   : > { %v42718_v8 = vadd.f32 %v2088_v7, %v726_v38 }
 0x20b   : > { %v1738_v9 = vpop.f32.mrf.mxu1  ;;  %v39125_v11 = vpop.f32.mrf.mxu0 }
 0x20c   : > { %v42720_v12 = vadd.f32 %v1738_v9, %v582_v33 }
 0x20d   : > { %v39100_v13 = vpop.f32.mrf.mxu1  ;;  %v2228_v14 = vpop.f32.mrf.mxu0 }
 0x20e   : > { %v42722_v15 = vadd.f32 %v2228_v14, %v798_v42 }
 0x20f   : > { %v1878_v16 = vpop.f32.mrf.mxu1  ;;  %v39135_v17 = vpop.f32.mrf.mxu0 }
 0x210   : > { %v42724_v18 = vadd.f32 %v1878_v16, %v654_v35 }
 0x211   : > { %v39110_v19 = vpop.f32.mrf.mxu1  ;;  %v2368_v20 = vpop.f32.mrf.mxu0 }
 0x212   : > { %v42726_v21 = vadd.f32 %v2368_v20, %v870_v46 }
 0x213   : > { %v2018_v22 = vpop.f32.mrf.mxu1  ;;  %v39145_v23 = vpop.f32.mrf.mxu0 }
 0x214   : > { %v42728_v24 = vadd.f32 %v2018_v22, %v726_v38 }
 0x215   : > { %v39120_v25 = vpop.f32.mrf.mxu1  ;;  %v2508_v26 = vpop.f32.mrf.mxu0 }
 0x216   : > { %v42731_v27 = vadd.f32 %v2508_v26, %v42694_v37 }
 0x217   : > { %v2158_v28 = vpop.f32.mrf.mxu1  ;;  %v39155_v29 = vpop.f32.mrf.mxu0 }
 0x218   : > { %v42733_v30 = vadd.f32 %v2158_v28, %v798_v42 }
 0x219   : > { %v39130_v31 = vpop.f32.mrf.mxu1  ;;  %v2648_v33 = vpop.f32.mrf.mxu0 }
 0x21a   : > { %v42735_v34 = vadd.f32 %v2648_v33, %v1014_v50 }
 0x21b   : > { %v2298_v35 = vpop.f32.mrf.mxu1  ;;  %v39165_v36 = vpop.f32.mrf.mxu0 }
 0x21c   : > { %v42737_v39 = vadd.f32 %v2298_v35, %v870_v46 }
 0x21d   : > { %v39140_v40 = vpop.f32.mrf.mxu1  ;;  %v2788_v38 = vpop.f32.mrf.mxu0 }
 0x21e   : > { %v42740_v43 = vadd.f32 %v2788_v38, %v42696_v41 }
 0x21f   : > { %v2438_v44 = vpop.f32.mrf.mxu1  ;;  %v39175_v47 = vpop.f32.mrf.mxu0 }
 0x220   : > { %v2439_v48 = vadd.f32 %v2438_v44, %v42694_v37 }
 0x221   : > { %v39150_v51 = vpop.f32.mrf.mxu1  ;;  %v2928_v42 = vpop.f32.mrf.mxu0 }
 0x222   : > { %v42744_v52 = vadd.f32 %v2928_v42, %v42704_v54 }
 0x223   : > { %v2578_v55 = vpop.f32.mrf.mxu1  ;;  %v39185_v56 = vpop.f32.mrf.mxu0 }
 0x224   : > { %v42746_v59 = vadd.f32 %v2578_v55, %v1014_v50 }
 0x225   : > { %v39160_v46 = vpop.f32.mrf.mxu1  ;;  %v3068_v60 = vpop.f32.mrf.mxu0 }
 0x226   : > { %v42749_v61 = vadd.f32 %v3068_v60, %v42698_v45 }
 0x227   : > { %v2718_v0 = vpop.f32.mrf.mxu1  ;;  %v39195_v1 = vpop.f32.mrf.mxu0 }
 0x228   : > { %v2719_v2 = vadd.f32 %v2718_v0, %v42696_v41 }
 0x229   : > { %v39170_v5 = vpop.f32.mrf.mxu1  ;;  %v3208_v37 = vpop.f32.mrf.mxu0 }
 0x22a   : > { %v42753_v6 = vadd.f32 %v3208_v37, %v42708_v58 }
 0x22b   : > { %v2858_v7 = vpop.f32.mrf.mxu1  ;;  %v39205_v9 = vpop.f32.mrf.mxu0 }
 0x22c   : > { %v42756_v11 = vadd.f32 %v2858_v7, %v42704_v54 }
 0x22d   : > { %v39180_v50 = vpop.f32.mrf.mxu1  ;;  %v42758_v13 = vpop.f32.mrf.mxu0 }
 0x22f   : > { %v2998_v14 = vpop.f32.mrf.mxu1  ;;  %v39215_v16 = vpop.f32.mrf.mxu0 }
 0x230   : > { %v2999_v17 = vadd.f32 %v2998_v14, %v42698_v45 }
 0x231   : > { %v39190_v19 = vpop.f32.mrf.mxu1  ;;  %v3488_v20 = vpop.f32.mrf.mxu0 }
 0x232   : > { %v42762_v41 = vadd.f32 %v3488_v20, %v42712_v63 }
 0x233   : > { %v3138_v22 = vpop.f32.mrf.mxu1  ;;  %v39225_v23 = vpop.f32.mrf.mxu0 }
 0x234   : > { %v42765_v25 = vadd.f32 %v3138_v22, %v42708_v58 }
 0x235   : > { %v39200_v26 = vpop.f32.mrf.mxu1  ;;  %v42767_v54 = vpop.f32.mrf.mxu0 }
 0x237   : > { %v3278_v28 = vpop.f32.mrf.mxu1  ;;  %v39235_v29 = vpop.f32.mrf.mxu0 }
 0x239   : > { %v39210_v31 = vpop.f32.mrf.mxu1  ;;  %v3768_v33 = vpop.f32.mrf.mxu0 }
 0x23a   : > { %v42770_v35 = vadd.f32 %v3768_v33, %v42716_v4 }
 0x23b   : > { %v3418_v45 = vpop.f32.mrf.mxu1  ;;  %v39245_v36 = vpop.f32.mrf.mxu0 }
 0x23c   : > { %v42773_v40 = vadd.f32 %v3418_v45, %v42712_v63 }
 0x23d   : > { %v39220_v38 = vpop.f32.mrf.mxu1  ;;  %v42775_v44 = vpop.f32.mrf.mxu0 }
 0x23f   : > { %v3558_v58 = vpop.f32.mrf.mxu1  ;;  %v39255_v47 = vpop.f32.mrf.mxu0 }
 0x241   : > { %v39230_v51 = vpop.f32.mrf.mxu1  ;;  %v4053_v42 = vpop.f32.mrf.mxu0 }
 0x242   : > { %v42778_v55 = vadd.f32 %v4053_v42, %v42710_v62  ;;  %v42781_v56 = vadd.f32 %v4053_v42, %v42724_v18  ;;  %v3559_v42 = vadd.f32 %v3558_v58, %v42702_v53 }
 0x243   : > { %v3698_v46 = vpop.f32.mrf.mxu1  ;;  %v39265_v60 = vpop.f32.mrf.mxu0 }
 0x244   : > { %v42784_v0 = vadd.f32 %v3698_v46, %v42716_v4 }
 0x245   : > { %v39240_v63 = vpop.f32.mrf.mxu1  ;;  %v4193_v1 = vpop.f32.mrf.mxu0 }
 0x246   : > { %v42787_v5 = vadd.f32 %v4193_v1, %v42718_v8  ;;  %v42790_v37 = vadd.f32 %v4193_v1, %v42733_v30 }
 0x247   : > { %v3838_v7 = vpop.f32.mrf.mxu1  ;;  %v39275_v9 = vpop.f32.mrf.mxu0 }
 0x248   : > { %v3839_v9 = vadd.f32 %v3838_v7, %v42706_v57 }
 0x249   : > { %v39250_v62 = vpop.f32.mrf.mxu1  ;;  %v4333_v50 = vpop.f32.mrf.mxu0 }
 0x24a   : > { %v42793_v18 = vadd.f32 %v4333_v50, %v42726_v21  ;;  %v42795_v14 = vadd.f32 %v4333_v50, %v2439_v48 }
 0x24b   : > { %v3983_v16 = vpop.f32.mrf.mxu1  ;;  %v39285_v4 = vpop.f32.mrf.mxu0 }
 0x24c   : > { %v42798_v19 = vadd.f32 %v3983_v16, %v42720_v12 }
 0x24d   : > { %v39260_v20 = vpop.f32.mrf.mxu1  ;;  %v4473_v8 = vpop.f32.mrf.mxu0 }
 0x24e   : > { %v42801_v22 = vadd.f32 %v4473_v8, %v42735_v34  ;;  %v42803_v30 = vadd.f32 %v4473_v8, %v2719_v2  ;;  %v3279_v2 = vadd.f32 %v3278_v28, %v42700_v49 }
 0x24f   : > { %v4123_v23 = vpop.f32.mrf.mxu1  ;;  %v39295_v26 = vpop.f32.mrf.mxu0 }
 0x250   : > { %v42806_v29 = vadd.f32 %v4123_v23, %v42714_v3  ;;  %v42809_v21 = vadd.f32 %v4123_v23, %v42728_v24 }
 0x251   : > { %v39270_v48 = vpop.f32.mrf.mxu1  ;;  %v4613_v31 = vpop.f32.mrf.mxu0 }
 0x252   : > { %v42812_v12 = vadd.f32 %v4613_v31, %v42744_v52  ;;  %v42814_v33 = vadd.f32 %v4613_v31, %v2999_v17 }
 0x253   : > { %v4263_v45 = vpop.f32.mrf.mxu1  ;;  %v39305_v34 = vpop.f32.mrf.mxu0 }
 0x254   : > { %v42818_v36 = vadd.f32 %v4263_v45, %v42722_v15  ;;  %v42821_v3 = vadd.f32 %v4263_v45, %v42737_v39 }
 0x255   : > { %v39280_v38 = vpop.f32.mrf.mxu1  ;;  %v4753_v24 = vpop.f32.mrf.mxu0 }
 0x256   : > { %v42824_v47 = vadd.f32 %v4753_v24, %v42753_v6  ;;  %v42826_v51 = vadd.f32 %v4753_v24, %v3279_v2 }
 0x257   : > { %v4403_v52 = vpop.f32.mrf.mxu1  ;;  %v39315_v17 = vpop.f32.mrf.mxu0 }
 0x258   : > { %v42830_v46 = vadd.f32 %v4403_v52, %v42731_v27  ;;  %v42833_v15 = vadd.f32 %v4403_v52, %v42746_v59 }
 0x259   : > { %v39290_v28 = vpop.f32.mrf.mxu1  ;;  %v4893_v39 = vpop.f32.mrf.mxu0 }
 0x25a   : > { %v42836_v60 = vadd.f32 %v4893_v39, %v42762_v41  ;;  %v42838_v63 = vadd.f32 %v4893_v39, %v3559_v42 }
 0x25b   : > { %v4543_v6 = vpop.f32.mrf.mxu1  ;;  %v39325_v1 = vpop.f32.mrf.mxu0 }
 0x25c   : > { %v42842_v62 = vadd.f32 %v4543_v6, %v42740_v43  ;;  %v42845_v27 = vadd.f32 %v4543_v6, %v42756_v11  ;;  %v3349_v11 = vadd.f32 %v42758_v13, %v42700_v49  ;;  %v3629_v13 = vadd.f32 %v42767_v54, %v42702_v53 }
 0x25d   : > { %v39300_v58 = vpop.f32.mrf.mxu1  ;;  %v5033_v59 = vpop.f32.mrf.mxu0 }
 0x25e   : > { %v42848_v50 = vadd.f32 %v5033_v59, %v42770_v35  ;;  %v42850_v16 = vadd.f32 %v5033_v59, %v3839_v9  ;;  %v43027_v58 = vld [vmem:[%s48327_s2 + $0x20] sm:$0xff] }
 0x25f   : > { %v4683_v41 = vpop.f32.mrf.mxu1  ;;  %v39335_v4 = vpop.f32.mrf.mxu0 }
 0x260   : > { %v42853_v20 = vadd.f32 %v4683_v41, %v42749_v61  ;;  %v42856_v7 = vadd.f32 %v4683_v41, %v42765_v25 }
 0x261   : > { %v39310_v43 = vpop.f32.mrf.mxu1 }
 0x262   : > { %v42860_v8 = vpop.f32.mrf.mxu0  ;;  %v8907_v43 = vld [vmem:[#allocation5 + $0x20] sm:$0xff] }
 0x263   : > { %v42864_v35 = vcombine.high %v42860_v8, %v42860_v8  ;;  %v4823_v23 = vpop.f32.mrf.mxu1 }
 0x264   : > { %v42866_v26 = vadd.f32 %v4823_v23, %v3349_v11  ;;  %v42869_v48 = vadd.f32 %v4823_v23, %v42773_v40  ;;  %v42871_v61 = vpop.f32.mrf.mxu0  ;;  %v41751_v11 = vld [vmem:[%s42095_s17] sm:$0xff]   ;;  %v41754_v23 = vld [vmem:[%s42095_s17 + $0x18] sm:$0xff]  }
 0x265   : > { %v42875_v25 = vcombine.high %v42871_v61, %v42871_v61  ;;  %39363 = vmatpush3.msk.msra.mxu1 %vm513_vm2, %v42871_v61  ;;  %39378 = vmatpush3.msk.msra.mxu0 %vm513_vm2, %v42864_v35  ;;  %v39320_v49 = vpop.f32.mrf.mxu1 }
 0x266   : > { %v42883_v31 = vpop.f32.mrf.mxu0  ;;  %39365 = vmatmul.mubr.msk.f32.vlgmr.msra.gmra.mxu1 %vm509_vm3, %v42688_v32  ;;  %39367 = vmatprep.subr.mxu1 %v48361_v10  ;;  %v41756_v49 = vld [vmem:[%s42095_s17 + $0x28] sm:$0xff]  }
 0x267   : > { %39380 = vmatmul.mubr.msk.f32.vlgmr.msra.gmra.mxu0 %vm509_vm3, %v42688_v32  ;;  %39368 = vmatpush3.msk.msra.mxu1 %vm513_vm2, %v42875_v25  ;;  %v4963_v40 = vpop.f32.mrf.mxu1  ;;  %v42921_v52 = vcombine.high %v42883_v31, %v42883_v31 }
 0x268   : > { %v42892_v45 = vadd.f32 %v4963_v40, %v3629_v13  ;;  %v42895_v34 = vadd.f32 %v4963_v40, %v42784_v0  ;;  %v42897_v53 = vpop.f32.mrf.mxu0  ;;  %39369 = vmatprep.mubr.msk.f32.mxu1 %vm41919_vm1, %v48361_v10  ;;  %39372 = vmatprep.subr.mxu1 %v48361_v10  ;;  %v3909_v0 = vadd.f32 %v42775_v44, %v42706_v57  ;;  %v41757_v13 = vld [vmem:[%s42095_s17 + $0x30] sm:$0xff]  }
 0x269   : > { %v42904_v54 = vcombine.high %v42897_v53, %v42897_v53  ;;  %v39330_v2 = vpop.f32.mrf.mxu1  ;;  %39387 = vmatprep.subr.mxu0 %v48361_v10  ;;  %39389 = vmatprep.mubr.msk.f32.mxu0 %vm41919_vm1, %v48361_v10 }
 0x26a   : > { %39370 = vmatmul.mubr.msk.f32.vlgmr.msra.gmra.mxu1 %vm509_vm3, %v42688_v32  ;;  %v42913_v38 = vpop.f32.mrf.mxu0 }
 0x26b   : > { %39373 = vmatpush3.msk.msra.mxu1 %vm513_vm2, %v42860_v8  ;;  %39388 = vmatpush3.msk.msra.mxu0 %vm513_vm2, %v42904_v54  ;;  %v5103_v24 = vpop.f32.mrf.mxu1  ;;  %v42959_v39 = vcombine.high %v42913_v38, %v42913_v38 }
 0x26c   : > { %v42923_v17 = vadd.f32 %v5103_v24, %v3909_v0  ;;  %39390 = vmatmul.mubr.msk.f32.vlgmr.msra.gmra.mxu0 %vm509_vm3, %v42688_v32  ;;  %39397 = vmatprep.subr.mxu0 %v48361_v10  ;;  %v42928_v57 = vpop.f32.mrf.mxu0 }
 0x26d   : > { %39374 = vmatprep.mubr.msk.f32.mxu1 %vm41919_vm1, %v48361_v10  ;;  %39382 = vmatprep.subr.mxu1 %v48361_v10  ;;  %v39340_v44 = vpop.f32.mrf.mxu1  ;;  %v42937_v42 = vcombine.high %v42928_v57, %v42928_v57 }
 0x26e   : > { %39398 = vmatpush3.msk.msra.mxu0 %vm513_vm2, %v42921_v52  ;;  %39375 = vmatmul.mubr.msk.f32.vlgmr.msra.gmra.mxu1 %vm509_vm3, %v42688_v32  ;;  %v42945_v28 = vpop.f32.mrf.mxu0 }
 0x26f   : > { %39383 = vmatpush3.msk.msra.mxu1 %vm513_vm2, %v42897_v53  ;;  %39399 = vmatprep.mubr.msk.f32.mxu0 %vm41919_vm1, %v48361_v10  ;;  %v42997_v9 = vcombine.high %v42945_v28, %v42945_v28  ;;  %v5334_v59 = vpop.f32.mrf.mxu1 }
 0x270   : > { %39400 = vmatmul.mubr.msk.f32.vlgmr.msra.gmra.mxu0 %vm509_vm3, %v42688_v32  ;;  %39407 = vmatprep.subr.mxu0 %v48361_v10  ;;  %v42965_v6 = vpop.f32.mrf.mxu0  ;;  %v43154_v41 = vadd.f32 %v5334_v59, %v42798_v19  ;;  %v8908_v19 = vld [vmem:[#allocation5 + $0x28] sm:$0xff] }
 0x271   : > { %39384 = vmatprep.mubr.msk.f32.mxu1 %vm41919_vm1, %v48361_v10  ;;  %39392 = vmatprep.subr.mxu1 %v48361_v10  ;;  %v42977_v1 = vcombine.high %v42965_v6, %v42965_v6  ;;  %v39361_v4 = vpop.f32.mrf.mxu1 }
 0x272   : > { %39408 = vmatpush3.msk.msra.mxu0 %vm513_vm2, %v42937_v42  ;;  %39385 = vmatmul.mubr.msk.f32.vlgmr.msra.gmra.mxu1 %vm509_vm3, %v42688_v32 }
 0x273   : > { %39393 = vmatpush3.msk.msra.mxu1 %vm513_vm2, %v42883_v31  ;;  %39409 = vmatprep.mubr.msk.f32.mxu0 %vm41919_vm1, %v48361_v10 }
 0x274   : > { %39417 = vmatprep.subr.mxu0 %v48361_v10  ;;  %39410 = vmatmul.mubr.msk.f32.vlgmr.msra.gmra.mxu0 %vm509_vm3, %v42688_v32 }
 0x275   : > { %39418 = vmatpush3.msk.msra.mxu0 %vm513_vm2, %v42959_v39  ;;  %39394 = vmatprep.mubr.msk.f32.mxu1 %vm41919_vm1, %v48361_v10 }
 0x276   : > { %39402 = vmatprep.subr.mxu1 %v48361_v10  ;;  %39395 = vmatmul.mubr.msk.f32.vlgmr.msra.gmra.mxu1 %vm509_vm3, %v42688_v32 }
 0x277   : > { %39403 = vmatpush3.msk.msra.mxu1 %vm513_vm2, %v42928_v57  ;;  %39419 = vmatprep.mubr.msk.f32.mxu0 %vm41919_vm1, %v48361_v10 }
 0x278   : > { %39420 = vmatmul.mubr.msk.f32.vlgmr.msra.gmra.mxu0 %vm509_vm3, %v42688_v32  ;;  %39427 = vmatprep.subr.mxu0 %v48361_v10 }
 0x279   : > { %39404 = vmatprep.mubr.msk.f32.mxu1 %vm41919_vm1, %v48361_v10  ;;  %39412 = vmatprep.subr.mxu1 %v48361_v10 }
 0x27a   : > { %39428 = vmatpush3.msk.msra.mxu0 %vm513_vm2, %v42977_v1  ;;  %39405 = vmatmul.mubr.msk.f32.vlgmr.msra.gmra.mxu1 %vm509_vm3, %v42688_v32 }
 0x27b   : > { %39413 = vmatpush3.msk.msra.mxu1 %vm513_vm2, %v42913_v38  ;;  %39429 = vmatprep.mubr.msk.f32.mxu0 %vm41919_vm1, %v48361_v10 }
 0x27c   : > { %39437 = vmatprep.subr.mxu0 %v48361_v10  ;;  %39430 = vmatmul.mubr.msk.f32.vlgmr.msra.gmra.mxu0 %vm509_vm3, %v42688_v32 }
 0x27d   : > { %39438 = vmatpush3.msk.msra.mxu0 %vm513_vm2, %v42997_v9  ;;  %39414 = vmatprep.mubr.msk.f32.mxu1 %vm41919_vm1, %v48361_v10 }
 0x27e   : > { %39422 = vmatprep.subr.mxu1 %v48361_v10  ;;  %39415 = vmatmul.mubr.msk.f32.vlgmr.msra.gmra.mxu1 %vm509_vm3, %v42688_v32 }
 0x27f   : > { %39423 = vmatpush3.msk.msra.mxu1 %vm513_vm2, %v42965_v6  ;;  %39439 = vmatprep.mubr.msk.f32.mxu0 %vm41919_vm1, %v48361_v10 }
 0x280   : > { %39447 = vmatprep.subr.mxu0 %v48361_v10  ;;  %39440 = vmatmul.mubr.msk.f32.vlgmr.msra.gmra.mxu0 %vm509_vm3, %v42688_v32 }
 0x281   : > { %39448 = vmatpush3.msk.msra.mxu0 %vm513_vm2, %v42875_v25  ;;  %39424 = vmatprep.mubr.msk.f32.mxu1 %vm41919_vm1, %v48361_v10 }
 0x282   : > { %39432 = vmatprep.subr.mxu1 %v48361_v10  ;;  %39425 = vmatmul.mubr.msk.f32.vlgmr.msra.gmra.mxu1 %vm509_vm3, %v42688_v32 }
 0x283   : > { %39433 = vmatpush3.msk.msra.mxu1 %vm513_vm2, %v42945_v28  ;;  %39449 = vmatprep.mubr.msk.f32.mxu0 %vm41919_vm1, %v48361_v10 }
 0x284   : > { %39457 = vmatprep.subr.mxu0 %v48361_v10  ;;  %39450 = vmatmul.mubr.msk.f32.vlgmr.msra.gmra.mxu0 %vm509_vm3, %v43027_v58 }
 0x285   : > { %39458 = vmatpush3.msk.msra.mxu0 %vm513_vm2, %v42864_v35  ;;  %39434 = vmatprep.mubr.msk.f32.mxu1 %vm41919_vm1, %v48361_v10 }
 0x286   : > { %39442 = vmatprep.subr.mxu1 %v48361_v10  ;;  %39435 = vmatmul.mubr.msk.f32.vlgmr.msra.gmra.mxu1 %vm509_vm3, %v42688_v32  ;;  %v43144_v32 = vld [vmem:[%s48327_s2 + $0x38] sm:$0xff] }
 0x287   : > { %39443 = vmatpush3.msk.msra.mxu1 %vm513_vm2, %v42871_v61  ;;  %39459 = vmatprep.mubr.msk.f32.mxu0 %vm41919_vm1, %v48361_v10 }
 0x288   : > { %39467 = vmatprep.subr.mxu0 %v48361_v10  ;;  %39460 = vmatmul.mubr.msk.f32.vlgmr.msra.gmra.mxu0 %vm509_vm3, %v43027_v58 }
 0x289   : > { %39468 = vmatpush3.msk.msra.mxu0 %vm513_vm2, %v42904_v54  ;;  %39444 = vmatprep.mubr.msk.f32.mxu1 %vm41919_vm1, %v48361_v10 }
 0x28a   : > { %39452 = vmatprep.subr.mxu1 %v48361_v10  ;;  %39445 = vmatmul.mubr.msk.f32.vlgmr.msra.gmra.mxu1 %vm509_vm3, %v43027_v58 }
 0x28b   : > { %39453 = vmatpush3.msk.msra.mxu1 %vm513_vm2, %v42860_v8  ;;  %39469 = vmatprep.mubr.msk.f32.mxu0 %vm41919_vm1, %v48361_v10 }
 0x28c   : > { %39477 = vmatprep.subr.mxu0 %v48361_v10  ;;  %39470 = vmatmul.mubr.msk.f32.vlgmr.msra.gmra.mxu0 %vm509_vm3, %v43027_v58 }
 0x28d   : > { %39478 = vmatpush3.msk.msra.mxu0 %vm513_vm2, %v42921_v52  ;;  %39454 = vmatprep.mubr.msk.f32.mxu1 %vm41919_vm1, %v48361_v10 }
 0x28e   : > { %39462 = vmatprep.subr.mxu1 %v48361_v10  ;;  %39455 = vmatmul.mubr.msk.f32.vlgmr.msra.gmra.mxu1 %vm509_vm3, %v43027_v58 }
 0x28f   : > { %39463 = vmatpush3.msk.msra.mxu1 %vm513_vm2, %v42897_v53  ;;  %39479 = vmatprep.mubr.msk.f32.mxu0 %vm41919_vm1, %v48361_v10 }
 0x290   : > { %39487 = vmatprep.subr.mxu0 %v48361_v10  ;;  %39480 = vmatmul.mubr.msk.f32.vlgmr.msra.gmra.mxu0 %vm509_vm3, %v43027_v58 }
 0x291   : > { %39488 = vmatpush3.msk.msra.mxu0 %vm513_vm2, %v42937_v42  ;;  %39464 = vmatprep.mubr.msk.f32.mxu1 %vm41919_vm1, %v48361_v10 }
 0x292   : > { %39472 = vmatprep.subr.mxu1 %v48361_v10  ;;  %39465 = vmatmul.mubr.msk.f32.vlgmr.msra.gmra.mxu1 %vm509_vm3, %v43027_v58 }
 0x293   : > { %39473 = vmatpush3.msk.msra.mxu1 %vm513_vm2, %v42883_v31  ;;  %39489 = vmatprep.mubr.msk.f32.mxu0 %vm41919_vm1, %v48361_v10 }
 0x294   : > { %39497 = vmatprep.subr.mxu0 %v48361_v10  ;;  %39490 = vmatmul.mubr.msk.f32.vlgmr.msra.gmra.mxu0 %vm509_vm3, %v43027_v58 }
 0x295   : > { %39498 = vmatpush3.msk.msra.mxu0 %vm513_vm2, %v42959_v39  ;;  %39474 = vmatprep.mubr.msk.f32.mxu1 %vm41919_vm1, %v48361_v10 }
 0x296   : > { %39482 = vmatprep.subr.mxu1 %v48361_v10  ;;  %39475 = vmatmul.mubr.msk.f32.vlgmr.msra.gmra.mxu1 %vm509_vm3, %v43027_v58 }
 0x297   : > { %39483 = vmatpush3.msk.msra.mxu1 %vm513_vm2, %v42928_v57  ;;  %39499 = vmatprep.mubr.msk.f32.mxu0 %vm41919_vm1, %v48361_v10 }
 0x298   : > { %39507 = vmatprep.subr.mxu0 %v48361_v10  ;;  %39500 = vmatmul.mubr.msk.f32.vlgmr.msra.gmra.mxu0 %vm509_vm3, %v43027_v58 }
 0x299   : > { %39508 = vmatpush3.msk.msra.mxu0 %vm513_vm2, %v42977_v1  ;;  %39484 = vmatprep.mubr.msk.f32.mxu1 %vm41919_vm1, %v48361_v10 }
 0x29a   : > { %39492 = vmatprep.subr.mxu1 %v48361_v10  ;;  %39485 = vmatmul.mubr.msk.f32.vlgmr.msra.gmra.mxu1 %vm509_vm3, %v43027_v58 }
 0x29b   : > { %39493 = vmatpush3.msk.msra.mxu1 %vm513_vm2, %v42913_v38  ;;  %39509 = vmatprep.mubr.msk.f32.mxu0 %vm41919_vm1, %v48361_v10 }
 0x29c   : > { %39517 = vmatprep.subr.mxu0 %v48361_v10  ;;  %39510 = vmatmul.mubr.msk.f32.vlgmr.msra.gmra.mxu0 %vm509_vm3, %v43027_v58 }
 0x29d   : > { %39518 = vmatpush3.msk.msra.mxu0 %vm513_vm2, %v42997_v9  ;;  %39494 = vmatprep.mubr.msk.f32.mxu1 %vm41919_vm1, %v48361_v10 }
 0x29e   : > { %39502 = vmatprep.subr.mxu1 %v48361_v10  ;;  %39495 = vmatmul.mubr.msk.f32.vlgmr.msra.gmra.mxu1 %vm509_vm3, %v43027_v58 }
 0x29f   : > { %39503 = vmatpush3.msk.msra.mxu1 %vm513_vm2, %v42965_v6  ;;  %39519 = vmatprep.mubr.msk.f32.mxu0 %vm41919_vm1, %v48361_v10 }
 0x2a0   : > { %39527 = vmatprep.subr.mxu0 %v48361_v10  ;;  %39520 = vmatmul.mubr.msk.f32.vlgmr.msra.gmra.mxu0 %vm509_vm3, %v43027_v58 }
 0x2a1   : > { %39528 = vmatpush3.msk.msra.mxu0 %vm513_vm2, %v42875_v25  ;;  %39504 = vmatprep.mubr.msk.f32.mxu1 %vm41919_vm1, %v48361_v10  ;;  %v43291_v25 = vld [vmem:[%s48327_s2 + $0x10] sm:$0xff] }
 0x2a2   : > { %39512 = vmatprep.subr.mxu1 %v48361_v10  ;;  %39505 = vmatmul.mubr.msk.f32.vlgmr.msra.gmra.mxu1 %vm509_vm3, %v43027_v58 }
 0x2a3   : > { %39513 = vmatpush3.msk.msra.mxu1 %vm513_vm2, %v42945_v28  ;;  %39529 = vmatprep.mubr.msk.f32.mxu0 %vm41919_vm1, %v48361_v10 }
 0x2a4   : > { %39537 = vmatprep.subr.mxu0 %v48361_v10  ;;  %39530 = vmatmul.mubr.msk.f32.vlgmr.msra.gmra.mxu0 %vm509_vm3, %v43144_v32 }
 0x2a5   : > { %39538 = vmatpush3.msk.msra.mxu0 %vm513_vm2, %v42864_v35  ;;  %39514 = vmatprep.mubr.msk.f32.mxu1 %vm41919_vm1, %v48361_v10  ;;  %v41753_v35 = vld [vmem:[%s42095_s17 + $0x10] sm:$0xff]  }
 0x2a6   : > { %39522 = vmatprep.subr.mxu1 %v48361_v10  ;;  %39515 = vmatmul.mubr.msk.f32.vlgmr.msra.gmra.mxu1 %vm509_vm3, %v43027_v58 }
 0x2a7   : > { %39523 = vmatpush3.msk.msra.mxu1 %vm513_vm2, %v42871_v61  ;;  %39539 = vmatprep.mubr.msk.f32.mxu0 %vm41919_vm1, %v48361_v10  ;;  %v41755_v61 = vld [vmem:[%s42095_s17 + $0x20] sm:$0xff]  }
 0x2a8   : > { %39547 = vmatprep.subr.mxu0 %v48361_v10  ;;  %39540 = vmatmul.mubr.msk.f32.vlgmr.msra.gmra.mxu0 %vm509_vm3, %v43144_v32 }
 0x2a9   : > { %39548 = vmatpush3.msk.msra.mxu0 %vm513_vm2, %v42904_v54  ;;  %39524 = vmatprep.mubr.msk.f32.mxu1 %vm41919_vm1, %v48361_v10 }
 0x2aa   : > { %39532 = vmatprep.subr.mxu1 %v48361_v10  ;;  %39525 = vmatmul.mubr.msk.f32.vlgmr.msra.gmra.mxu1 %vm509_vm3, %v43144_v32 }
 0x2ab   : > { %39533 = vmatpush3.msk.msra.mxu1 %vm513_vm2, %v42860_v8  ;;  %39549 = vmatprep.mubr.msk.f32.mxu0 %vm41919_vm1, %v48361_v10  ;;  %v41752_v8 = vld [vmem:[%s42095_s17 + $0x8] sm:$0xff]  }
 0x2ac   : > { %39557 = vmatprep.subr.mxu0 %v48361_v10  ;;  %39550 = vmatmul.mubr.msk.f32.vlgmr.msra.gmra.mxu0 %vm509_vm3, %v43144_v32 }
 0x2ad   : > { %39558 = vmatpush3.msk.msra.mxu0 %vm513_vm2, %v42921_v52  ;;  %39534 = vmatprep.mubr.msk.f32.mxu1 %vm41919_vm1, %v48361_v10 }
 0x2ae   : > { %39542 = vmatprep.subr.mxu1 %v48361_v10  ;;  %39535 = vmatmul.mubr.msk.f32.vlgmr.msra.gmra.mxu1 %vm509_vm3, %v43144_v32 }
 0x2af   : > { %39543 = vmatpush3.msk.msra.mxu1 %vm513_vm2, %v42897_v53  ;;  %39559 = vmatprep.mubr.msk.f32.mxu0 %vm41919_vm1, %v48361_v10 }
 0x2b0   : > { %39567 = vmatprep.subr.mxu0 %v48361_v10  ;;  %39560 = vmatmul.mubr.msk.f32.vlgmr.msra.gmra.mxu0 %vm509_vm3, %v43144_v32 }
 0x2b1   : > { %39568 = vmatpush3.msk.msra.mxu0 %vm513_vm2, %v42937_v42  ;;  %39544 = vmatprep.mubr.msk.f32.mxu1 %vm41919_vm1, %v48361_v10 }
 0x2b2   : > { %39552 = vmatprep.subr.mxu1 %v48361_v10  ;;  %39545 = vmatmul.mubr.msk.f32.vlgmr.msra.gmra.mxu1 %vm509_vm3, %v43144_v32 }
 0x2b3   : > { %39553 = vmatpush3.msk.msra.mxu1 %vm513_vm2, %v42883_v31  ;;  %39569 = vmatprep.mubr.msk.f32.mxu0 %vm41919_vm1, %v48361_v10  ;;  %v41758_v31 = vld [vmem:[%s42095_s17 + $0x38] sm:$0xff]   ;;  %s41847_s17 = scalar_lea.vmem %s41846_s30, 16384 }
 0x2b4   : > { %39577 = vmatprep.subr.mxu0 %v48361_v10  ;;  %39570 = vmatmul.mubr.msk.f32.vlgmr.msra.gmra.mxu0 %vm509_vm3, %v43144_v32  ;;  %p41849_p12 = scmp.lt.s32.totalorder %s41847_s17, %s41841_s1 }
 0x2b5   : > { %39578 = vmatpush3.msk.msra.mxu0 %vm513_vm2, %v42959_v39  ;;  %39554 = vmatprep.mubr.msk.f32.mxu1 %vm41919_vm1, %v48361_v10 }
 0x2b6   : > { %39562 = vmatprep.subr.mxu1 %v48361_v10  ;;  %39555 = vmatmul.mubr.msk.f32.vlgmr.msra.gmra.mxu1 %vm509_vm3, %v43144_v32  ;;  %p41850_p7 = por %p41849_p12, %p41848_p6 }
 0x2b7   : > { %39563 = vmatpush3.msk.msra.mxu1 %vm513_vm2, %v42928_v57  ;;  %39579 = vmatprep.mubr.msk.f32.mxu0 %vm41919_vm1, %v48361_v10 }
 0x2b8   : > { %39587 = vmatprep.subr.mxu0 %v48361_v10  ;;  %39580 = vmatmul.mubr.msk.f32.vlgmr.msra.gmra.mxu0 %vm509_vm3, %v43144_v32  ;;  %p41851_p9 = pnand %p41850_p7, %p41844_p2 }
 0x2b9   : > { %39588 = vmatpush3.msk.msra.mxu0 %vm513_vm2, %v42977_v1  ;;  %39564 = vmatprep.mubr.msk.f32.mxu1 %vm41919_vm1, %v48361_v10 }
 0x2ba   : > { %39572 = vmatprep.subr.mxu1 %v48361_v10  ;;  %39565 = vmatmul.mubr.msk.f32.vlgmr.msra.gmra.mxu1 %vm509_vm3, %v43144_v32 }
 0x2bb   : > { %39573 = vmatpush3.msk.msra.mxu1 %vm513_vm2, %v42913_v38  ;;  %39589 = vmatprep.mubr.msk.f32.mxu0 %vm41919_vm1, %v48361_v10 }
 0x2bc   : > { %39597 = vmatprep.subr.mxu0 %v48361_v10  ;;  %39590 = vmatmul.mubr.msk.f32.vlgmr.msra.gmra.mxu0 %vm509_vm3, %v43144_v32 }
 0x2bd   : > { %39598 = vmatpush3.msk.msra.mxu0 %vm513_vm2, %v42997_v9  ;;  %39574 = vmatprep.mubr.msk.f32.mxu1 %vm41919_vm1, %v48361_v10 }
 0x2be   : > { %39582 = vmatprep.subr.mxu1 %v48361_v10  ;;  %39575 = vmatmul.mubr.msk.f32.vlgmr.msra.gmra.mxu1 %vm509_vm3, %v43144_v32 }
 0x2bf   : > { %39583 = vmatpush3.msk.msra.mxu1 %vm513_vm2, %v42965_v6  ;;  %39599 = vmatprep.mubr.msk.f32.mxu0 %vm41919_vm1, %v48361_v10 }
 0x2c0   : > { %39600 = vmatmul.mubr.msk.f32.vlgmr.msra.gmra.mxu0 %vm509_vm3, %v43144_v32  ;;  %39607 = vmatprep.subr.mxu0 %v8908_v19 }
 0x2c1   : > { %39584 = vmatprep.mubr.msk.f32.mxu1 %vm41919_vm1, %v48361_v10  ;;  %39592 = vmatprep.subr.mxu1 %v48361_v10 }
 0x2c2   : > { %39608 = vmatpush3.msra.mxu0 %v8908_v19  ;;  %39585 = vmatmul.mubr.msk.f32.vlgmr.msra.gmra.mxu1 %vm509_vm3, %v43144_v32 }
 0x2c3   : > { %39593 = vmatpush3.msk.msra.mxu1 %vm513_vm2, %v42945_v28  ;;  %39609 = vmatprep.subr.mxu0 %v8907_v43 }
 0x2c4   : > { %39610 = vmatpush3.msra.mxu0 %v8907_v43  ;;  %39611 = vmatprep.mubr.msk.f32.mxu0 %vm368_vm0, %v41751_v11 }
 0x2c5   : > { %39612 = vmatmul.mubr.msk.f32.vlgmr.msra.gmra.mxu0 %vm368_vm0, %v41752_v8  ;;  %39594 = vmatprep.mubr.msk.f32.mxu1 %vm41919_vm1, %v48361_v10 }
 0x2c6   : > { %39595 = vmatmul.mubr.msk.f32.vlgmr.msra.gmra.mxu1 %vm509_vm3, %v43144_v32  ;;  %39614 = vmatprep.mubr.msk.f32.mxu0 %vm368_vm0, %v41753_v35 }
 0x2c7   : > { %39602 = vmatprep.subr.mxu1 %v48361_v10  ;;  %39604 = vmatprep.mubr.msk.f32.mxu1 %vm41919_vm1, %v48361_v10 }
 0x2c8   : > { %39603 = vmatpush3.msra.mxu1 %v48361_v10  ;;  %39643 = vmatprep.subr.mxu0 %v48361_v10 }
 0x2c9   : > { %39615 = vmatmul.mubr.msk.f32.gmra.mxu0 %vm368_vm0, %v41754_v23  ;;  %39623 = vmatprep.subr.mxu1 %v48361_v10 }
 0x2ca   : > { %39605 = vmatmul.mubr.msk.f32.vlgmr.msra.gmra.mxu1 %vm509_vm3, %v43144_v32  ;;  %39617 = vmatprep.mubr.msk.f32.mxu0 %vm368_vm0, %v41755_v61 }
 0x2cb   : > { %39624 = vmatpush3.msra.mxu1 %v48361_v10  ;;  %39625 = vmatprep.mubr.msk.f32.mxu1 %vm41919_vm1, %v48361_v10 }
 0x2cc   : > { %39628 = vmatprep.subr.mxu1 %v48361_v10 }
 0x2cd   : > { %39618 = vmatmul.mubr.msk.f32.gmra.mxu0 %vm368_vm0, %v41756_v49 }
 0x2ce   : > { %39626 = vmatmul.mubr.msk.f32.vlgmr.msra.gmra.mxu1 %vm509_vm3, %v43291_v25  ;;  %39620 = vmatprep.mubr.msk.f32.mxu0 %vm368_vm0, %v41757_v13 }
 0x2cf   : > { %39630 = vmatprep.mubr.msk.f32.mxu1 %vm41919_vm1, %v48361_v10 }
 0x2d1   : > { %39621 = vmatmul.mubr.msk.f32.gmra.mxu0 %vm368_vm0, %v41758_v31 }
 0x2d2   : > { %39645 = vmatprep.mubr.msk.f32.mxu0 %vm41919_vm1, %v48361_v10 }
 0x326   : > { %v5406_v40 = vpop.f32.mrf.mxu1 }
 0x327   : > { %v43307_v53 = vadd.f32 %v5406_v40, %v42778_v55  ;;  %v6492_v54 = vadd.f32 %v5406_v40, %v42781_v56  ;;  %v5622_v2 = vpop.f32.mrf.mxu0 }
 0x328   : > { %v43311_v0 = vadd.f32 %v5622_v2, %v42818_v36  ;;  %v43314_v38 = vadd.f32 %v5622_v2, %v42821_v3  ;;  %v39366_v24 = vpop.f32.mrf.mxu1 }
 0x329   : > { %v39381_v52 = vpop.f32.mrf.mxu0 }
 0x32a   : > { %v5478_v57 = vpop.f32.mrf.mxu1 }
 0x32b   : > { %v6493_v44 = vadd.f32 %v5478_v57, %v42806_v29  ;;  %v43318_v42 = vadd.f32 %v5478_v57, %v42809_v21 }
 0x32c   : > { %v39371_v28 = vpop.f32.mrf.mxu1  ;;  %v5766_v55 = vpop.f32.mrf.mxu0 }
 0x32d   : > { %v43321_v39 = vadd.f32 %v5766_v55, %v42830_v46  ;;  %v43324_v56 = vadd.f32 %v5766_v55, %v42833_v15 }
 0x32e   : > { %v5550_v36 = vpop.f32.mrf.mxu1  ;;  %v39391_v6 = vpop.f32.mrf.mxu0 }
 0x32f   : > { %v43327_v3 = vadd.f32 %v5550_v36, %v42787_v5  ;;  %v6496_v1 = vadd.f32 %v5550_v36, %v42790_v37 }
 0x330   : > { %v39376_v9 = vpop.f32.mrf.mxu1  ;;  %v5910_v29 = vpop.f32.mrf.mxu0 }
 0x331   : > { %v43331_v21 = vadd.f32 %v5910_v29, %v42842_v62  ;;  %v43334_v58 = vadd.f32 %v5910_v29, %v42845_v27 }
 0x332   : > { %v5694_v46 = vpop.f32.mrf.mxu1  ;;  %v39401_v32 = vpop.f32.mrf.mxu0 }
 0x333   : > { %v43337_v15 = vadd.f32 %v5694_v46, %v42793_v18  ;;  %v6500_v59 = vadd.f32 %v5694_v46, %v42795_v14 }
 0x334   : > { %v39386_v4 = vpop.f32.mrf.mxu1  ;;  %v6054_v5 = vpop.f32.mrf.mxu0 }
 0x335   : > { %v43341_v19 = vadd.f32 %v6054_v5, %v42853_v20  ;;  %v43344_v37 = vadd.f32 %v6054_v5, %v42856_v7 }
 0x336   : > { %v5838_v62 = vpop.f32.mrf.mxu1  ;;  %v39411_v43 = vpop.f32.mrf.mxu0 }
 0x337   : > { %v43347_v27 = vadd.f32 %v5838_v62, %v42801_v22  ;;  %v6504_v11 = vadd.f32 %v5838_v62, %v42803_v30 }
 0x338   : > { %v39396_v8 = vpop.f32.mrf.mxu1  ;;  %v6198_v18 = vpop.f32.mrf.mxu0 }
 0x339   : > { %v43351_v35 = vadd.f32 %v6198_v18, %v42866_v26  ;;  %v43354_v14 = vadd.f32 %v6198_v18, %v42869_v48 }
 0x33a   : > { %v5982_v20 = vpop.f32.mrf.mxu1  ;;  %v39421_v23 = vpop.f32.mrf.mxu0 }
 0x33b   : > { %v43357_v7 = vadd.f32 %v5982_v20, %v42812_v12  ;;  %v6508_v61 = vadd.f32 %v5982_v20, %v42814_v33 }
 0x33c   : > { %v39406_v49 = vpop.f32.mrf.mxu1  ;;  %v6342_v22 = vpop.f32.mrf.mxu0 }
 0x33d   : > { %v43361_v13 = vadd.f32 %v6342_v22, %v42892_v45  ;;  %v43364_v30 = vadd.f32 %v6342_v22, %v42895_v34 }
 0x33e   : > { %v6126_v26 = vpop.f32.mrf.mxu1  ;;  %v39431_v31 = vpop.f32.mrf.mxu0 }
 0x33f   : > { %v43367_v48 = vadd.f32 %v6126_v26, %v42824_v47  ;;  %v6512_v40 = vadd.f32 %v6126_v26, %v42826_v51 }
 0x340   : > { %v39416_v2 = vpop.f32.mrf.mxu1  ;;  %v6486_v12 = vpop.f32.mrf.mxu0 }
 0x341   : > { %v43371_v24 = vadd.f32 %v6486_v12, %v42923_v17 }
 0x342   : > { %v6270_v33 = vpop.f32.mrf.mxu1  ;;  %v39441_v52 = vpop.f32.mrf.mxu0 }
 0x343   : > { %v43374_v45 = vadd.f32 %v6270_v33, %v42836_v60  ;;  %v6516_v34 = vadd.f32 %v6270_v33, %v42838_v63 }
 0x344   : > { %v39426_v57 = vpop.f32.mrf.mxu1  ;;  %v6663_v28 = vpop.f32.mrf.mxu0 }
 0x345   : > { %v43377_v55 = vadd.f32 %v6663_v28, %v6492_v54  ;;  %v43379_v47 = vadd.f32 %v6663_v28, %v6493_v44 }
 0x346   : > { %v6414_v36 = vpop.f32.mrf.mxu1  ;;  %v39451_v51 = vpop.f32.mrf.mxu0 }
 0x347   : > { %v43382_v6 = vadd.f32 %v6414_v36, %v42848_v50  ;;  %v6520_v17 = vadd.f32 %v6414_v36, %v42850_v16 }
 0x348   : > { %v39436_v9 = vpop.f32.mrf.mxu1  ;;  %v6803_v29 = vpop.f32.mrf.mxu0 }
 0x349   : > { %v43385_v46 = vadd.f32 %v6803_v29, %v6496_v1  ;;  %v43388_v60 = vadd.f32 %v6803_v29, %v43311_v0 }
 0x34a   : > { %v6593_v63 = vpop.f32.mrf.mxu1  ;;  %v39461_v32 = vpop.f32.mrf.mxu0 }
 0x34b   : > { %v43391_v54 = vadd.f32 %v6593_v63, %v43154_v41  ;;  %v7648_v44 = vadd.f32 %v6593_v63, %v43307_v53 }
 0x34c   : > { %v39446_v4 = vpop.f32.mrf.mxu1  ;;  %v6943_v5 = vpop.f32.mrf.mxu0 }
 0x34d   : > { %v43394_v50 = vadd.f32 %v6943_v5, %v6500_v59  ;;  %v43397_v16 = vadd.f32 %v6943_v5, %v43321_v39 }
 0x34e   : > { %v6733_v62 = vpop.f32.mrf.mxu1  ;;  %v39471_v1 = vpop.f32.mrf.mxu0 }
 0x34f   : > { %v43400_v43 = vadd.f32 %v6733_v62, %v43318_v42  ;;  %v7652_v0 = vadd.f32 %v6733_v62, %v43327_v3 }
 0x350   : > { %v39456_v8 = vpop.f32.mrf.mxu1  ;;  %v7083_v18 = vpop.f32.mrf.mxu0 }
 0x351   : > { %v43403_v41 = vadd.f32 %v7083_v18, %v6504_v11  ;;  %v43406_v53 = vadd.f32 %v7083_v18, %v43331_v21 }
 0x352   : > { %v6873_v20 = vpop.f32.mrf.mxu1  ;;  %v39481_v59 = vpop.f32.mrf.mxu0 }
 0x353   : > { %v43409_v23 = vadd.f32 %v6873_v20, %v43314_v38  ;;  %v7656_v39 = vadd.f32 %v6873_v20, %v43337_v15 }
 0x354   : > { %v39466_v49 = vpop.f32.mrf.mxu1  ;;  %v7223_v22 = vpop.f32.mrf.mxu0 }
 0x355   : > { %v43412_v42 = vadd.f32 %v7223_v22, %v6508_v61  ;;  %v43415_v3 = vadd.f32 %v7223_v22, %v43341_v19 }
 0x356   : > { %v7013_v26 = vpop.f32.mrf.mxu1  ;;  %v39491_v11 = vpop.f32.mrf.mxu0 }
 0x357   : > { %v43418_v31 = vadd.f32 %v7013_v26, %v43324_v56  ;;  %v7660_v21 = vadd.f32 %v7013_v26, %v43347_v27 }
 0x358   : > { %v39476_v2 = vpop.f32.mrf.mxu1  ;;  %v7363_v12 = vpop.f32.mrf.mxu0 }
 0x359   : > { %v43421_v38 = vadd.f32 %v7363_v12, %v6512_v40  ;;  %v43424_v15 = vadd.f32 %v7363_v12, %v43351_v35 }
 0x35a   : > { %v7153_v33 = vpop.f32.mrf.mxu1  ;;  %v39501_v61 = vpop.f32.mrf.mxu0 }
 0x35b   : > { %v43427_v52 = vadd.f32 %v7153_v33, %v43334_v58  ;;  %v7664_v19 = vadd.f32 %v7153_v33, %v43357_v7 }
 0x35c   : > { %v39486_v57 = vpop.f32.mrf.mxu1  ;;  %v7503_v28 = vpop.f32.mrf.mxu0 }
 0x35d   : > { %v43430_v56 = vadd.f32 %v7503_v28, %v6516_v34  ;;  %v43433_v27 = vadd.f32 %v7503_v28, %v43361_v13 }
 0x35e   : > { %v7293_v36 = vpop.f32.mrf.mxu1  ;;  %v39511_v40 = vpop.f32.mrf.mxu0 }
 0x35f   : > { %v43436_v51 = vadd.f32 %v7293_v36, %v43344_v37  ;;  %v7668_v35 = vadd.f32 %v7293_v36, %v43367_v48 }
 0x360   : > { %v39496_v9 = vpop.f32.mrf.mxu1  ;;  %v7643_v29 = vpop.f32.mrf.mxu0 }
 0x361   : > { %v43439_v58 = vadd.f32 %v7643_v29, %v6520_v17  ;;  %v43442_v7 = vadd.f32 %v7643_v29, %v43371_v24 }
 0x362   : > { %v7433_v63 = vpop.f32.mrf.mxu1  ;;  %v39521_v34 = vpop.f32.mrf.mxu0 }
 0x363   : > { %v43445_v32 = vadd.f32 %v7433_v63, %v43354_v14  ;;  %v7672_v13 = vadd.f32 %v7433_v63, %v43374_v45 }
 0x364   : > { %v39506_v4 = vpop.f32.mrf.mxu1  ;;  %v7820_v5 = vpop.f32.mrf.mxu0 }
 0x365   : > { %v43448_v37 = vadd.f32 %v7820_v5, %v7648_v44  ;;  %v43451_v48 = vadd.f32 %v7820_v5, %v43377_v55 }
 0x366   : > { %v7573_v62 = vpop.f32.mrf.mxu1  ;;  %v39531_v17 = vpop.f32.mrf.mxu0 }
 0x367   : > { %v43454_v1 = vadd.f32 %v7573_v62, %v43364_v30  ;;  %v7676_v24 = vadd.f32 %v7573_v62, %v43382_v6  ;;  %v12673_v6 = vld [vmem:[%s48328_s3] sm:$0xff] }
 0x368   : > { %v39516_v8 = vpop.f32.mrf.mxu1  ;;  %v7960_v18 = vpop.f32.mrf.mxu0 }
 0x369   : > { %v43457_v14 = vadd.f32 %v7960_v18, %v7652_v0  ;;  %v43460_v45 = vadd.f32 %v7960_v18, %v43385_v46  ;;  %v41920_v46 = vmov 0  }
 0x36a   : > { %v7750_v20 = vpop.f32.mrf.mxu1  ;;  %v39541_v44 = vpop.f32.mrf.mxu0  ;;  %41742 = vset.pattern.permute.xlu0 %v41920_v46 }
 0x36b   : > { %v43463_v59 = vadd.f32 %v7750_v20, %v43391_v54  ;;  %12676 = vperm.xlu0 %41742, %v12673_v6  }
 0x36c   : > { %v39526_v55 = vpop.f32.mrf.mxu1  ;;  %v8100_v49 = vpop.f32.mrf.mxu0 }
 0x36d   : > { %v43465_v22 = vadd.f32 %v8100_v49, %v7656_v39  ;;  %v43468_v30 = vadd.f32 %v8100_v49, %v43394_v50  ;;  %v36772_v50 = vld [vmem:[%s48331_s6] sm:$0xff] }
 0x36e   : > { %v7890_v0 = vpop.f32.mrf.mxu1  ;;  %v39551_v26 = vpop.f32.mrf.mxu0 }
 0x36f   : > { %v43474_v11 = vadd.f32 %v7890_v0, %v43379_v47  ;;  %v43477_v54 = vadd.f32 %v7890_v0, %v43400_v43  ;;  %36775 = vperm.xlu0 %41742, %v36772_v50  }
 0x370   : > { %v39536_v39 = vpop.f32.mrf.mxu1  ;;  %v8240_v2 = vpop.f32.mrf.mxu0 }
 0x371   : > { %v43482_v12 = vadd.f32 %v8240_v2, %v7660_v21  ;;  %v43485_v33 = vadd.f32 %v8240_v2, %v43403_v41 }
 0x372   : > { %v8030_v61 = vpop.f32.mrf.mxu1  ;;  %v39561_v57 = vpop.f32.mrf.mxu0 }
 0x373   : > { %v43488_v47 = vadd.f32 %v8030_v61, %v43388_v60  ;;  %v43491_v43 = vadd.f32 %v8030_v61, %v43409_v23 }
 0x374   : > { %v39546_v28 = vpop.f32.mrf.mxu1  ;;  %v8380_v36 = vpop.f32.mrf.mxu0 }
 0x375   : > { %v43493_v40 = vadd.f32 %v8380_v36, %v7664_v19  ;;  %v43496_v9 = vadd.f32 %v8380_v36, %v43412_v42 }
 0x376   : > { %v8170_v21 = vpop.f32.mrf.mxu1  ;;  %v39571_v29 = vpop.f32.mrf.mxu0 }
 0x377   : > { %v43499_v41 = vadd.f32 %v8170_v21, %v43397_v16  ;;  %v43502_v63 = vadd.f32 %v8170_v21, %v43418_v31 }
 0x378   : > { %v39556_v60 = vpop.f32.mrf.mxu1  ;;  %v8520_v34 = vpop.f32.mrf.mxu0 }
 0x379   : > { %v43504_v23 = vadd.f32 %v8520_v34, %v7668_v35  ;;  %v43507_v4 = vadd.f32 %v8520_v34, %v43421_v38 }
 0x37a   : > { %v8310_v19 = vpop.f32.mrf.mxu1  ;;  %v39581_v5 = vpop.f32.mrf.mxu0 }
 0x37b   : > { %v43510_v42 = vadd.f32 %v8310_v19, %v43406_v53  ;;  %v43513_v62 = vadd.f32 %v8310_v19, %v43427_v52 }
 0x37c   : > { %v39566_v16 = vpop.f32.mrf.mxu1  ;;  %v8660_v17 = vpop.f32.mrf.mxu0 }
 0x37d   : > { %v43515_v8 = vadd.f32 %v8660_v17, %v7672_v13  ;;  %v43518_v31 = vadd.f32 %v8660_v17, %v43430_v56  ;;  %v43700_v17 = vld [vmem:[%s48327_s2 + $0x28] sm:$0xff] }
 0x37e   : > { %v8450_v35 = vpop.f32.mrf.mxu1  ;;  %v39591_v18 = vpop.f32.mrf.mxu0 }
 0x37f   : > { %v43521_v38 = vadd.f32 %v8450_v35, %v43415_v3  ;;  %v43524_v20 = vadd.f32 %v8450_v35, %v43436_v51  ;;  %v12746_v35 = vld [vmem:[%s48329_s4 + $0x18] sm:$0xff]  ;;  %v12745_v18 = vld [vmem:[%s48329_s4 + $0x10] sm:$0xff] }
 0x380   : > { %v39576_v53 = vpop.f32.mrf.mxu1  ;;  %v8800_v44 = vpop.f32.mrf.mxu0 }
 0x381   : > { %v43526_v55 = vadd.f32 %v8800_v44, %v7676_v24  ;;  %v43529_v52 = vadd.f32 %v8800_v44, %v43439_v58  ;;  %v12744_v53 = vld [vmem:[%s48329_s4 + $0x8] sm:$0xff]  ;;  %v12743_v44 = vld [vmem:[%s48329_s4] sm:$0xff] }
 0x382   : > { %v8590_v13 = vpop.f32.mrf.mxu1  ;;  %v39601_v49 = vpop.f32.mrf.mxu0 }
 0x383   : > { %v43532_v56 = vadd.f32 %v8590_v13, %v43424_v15  ;;  %v43535_v6 = vadd.f32 %v8590_v13, %v43445_v32 }
 0x384   : > { %v39586_v3 = vpop.f32.mrf.mxu1 }
 0x385   : > { %v43537_v0 = vpop.f32.mrf.mxu0 }
 0x386   : > { %v43541_v51 = vcombine.high %v43537_v0, %v43537_v0  ;;  %v8730_v24 = vpop.f32.mrf.mxu1 }
 0x387   : > { %v43544_v26 = vadd.f32 %v8730_v24, %v43433_v27  ;;  %v43547_v58 = vadd.f32 %v8730_v24, %v43454_v1  ;;  %v43549_v46 = vpop.f32.mrf.mxu0 }
 0x388   : > { %v43553_v15 = vcombine.high %v43549_v46, %v43549_v46  ;;  %39629 = vmatpush3.msk.msra.mxu1 %vm513_vm2, %v43549_v46  ;;  %39644 = vmatpush3.msk.msra.mxu0 %vm513_vm2, %v43541_v51  ;;  %v39596_v32 = vpop.f32.mrf.mxu1 }
 0x389   : > { %v43559_v39 = vpop.f32.mrf.mxu0  ;;  %39631 = vmatmul.mubr.msk.f32.vlgmr.msra.gmra.mxu1 %vm509_vm3, %v43291_v25  ;;  %39633 = vmatprep.subr.mxu1 %v48361_v10 }
 0x38a   : > { %39646 = vmatmul.mubr.msk.f32.vlgmr.msra.gmra.mxu0 %vm509_vm3, %v43291_v25  ;;  %39634 = vmatpush3.msk.msra.mxu1 %vm513_vm2, %v43553_v15  ;;  %v8870_v27 = vpop.f32.mrf.mxu1 }
 0x38b   : > { %v43569_v1 = vadd.f32 %v8870_v27, %v43442_v7  ;;  %v43571_v2 = vpop.f32.mrf.mxu0  ;;  %39635 = vmatprep.mubr.msk.f32.mxu1 %vm41919_vm1, %v48361_v10  ;;  %39638 = vmatprep.subr.mxu1 %v48361_v10  ;;  %v43585_v7 = vcombine.high %v43559_v39, %v43559_v39 }
 0x38c   : > { %v43578_v50 = vcombine.high %v43571_v2, %v43571_v2  ;;  %v39606_v61 = vpop.f32.mrf.mxu1  ;;  %39653 = vmatprep.subr.mxu0 %v48361_v10  ;;  %39655 = vmatprep.mubr.msk.f32.mxu0 %vm41919_vm1, %v48361_v10 }
 0x38d   : > { %39636 = vmatmul.mubr.msk.f32.vlgmr.msra.gmra.mxu1 %vm509_vm3, %v43291_v25  ;;  %v43589_v57 = vpop.f32.mrf.mxu0 }
 0x38e   : > { %39639 = vmatpush3.msk.msra.mxu1 %vm513_vm2, %v43537_v0  ;;  %39654 = vmatpush3.msk.msra.mxu0 %vm513_vm2, %v43578_v50  ;;  %v9101_v28 = vpop.f32.mrf.mxu1  ;;  %v43628_v34 = vcombine.high %v43589_v57, %v43589_v57 }
 0x38f   : > { %v43596_v36 = vadd.f32 %v9101_v28, %v43463_v59  ;;  %39656 = vmatmul.mubr.msk.f32.vlgmr.msra.gmra.mxu0 %vm509_vm3, %v43291_v25  ;;  %39640 = vmatprep.mubr.msk.f32.mxu1 %vm41919_vm1, %v48361_v10  ;;  %v43602_v21 = vpop.f32.mrf.mxu0 }
 0x390   : > { %39648 = vmatprep.subr.mxu1 %v48361_v10  ;;  %39663 = vmatprep.subr.mxu0 %v48361_v10  ;;  %v39627_v29 = vpop.f32.mrf.mxu1  ;;  %v43612_v59 = vcombine.high %v43602_v21, %v43602_v21 }
 0x391   : > { %39641 = vmatmul.mubr.msk.f32.vlgmr.msra.gmra.mxu1 %vm509_vm3, %v43291_v25  ;;  %39664 = vmatpush3.msk.msra.mxu0 %vm513_vm2, %v43585_v7  ;;  %v43618_v60 = vpop.f32.mrf.mxu0 }
 0x392   : > { %39649 = vmatpush3.msk.msra.mxu1 %vm513_vm2, %v43571_v2  ;;  %39665 = vmatprep.mubr.msk.f32.mxu0 %vm41919_vm1, %v48361_v10  ;;  %v43666_v16 = vcombine.high %v43618_v60, %v43618_v60 }
 0x393   : > { %39666 = vmatmul.mubr.msk.f32.vlgmr.msra.gmra.mxu0 %vm509_vm3, %v43291_v25  ;;  %39650 = vmatprep.mubr.msk.f32.mxu1 %vm41919_vm1, %v48361_v10  ;;  %v43638_v19 = vpop.f32.mrf.mxu0 }
 0x394   : > { %39658 = vmatprep.subr.mxu1 %v48361_v10  ;;  %39673 = vmatprep.subr.mxu0 %v48361_v10  ;;  %v43652_v5 = vcombine.high %v43638_v19, %v43638_v19 }
 0x395   : > { %39651 = vmatmul.mubr.msk.f32.vlgmr.msra.gmra.mxu1 %vm509_vm3, %v43291_v25  ;;  %39674 = vmatpush3.msk.msra.mxu0 %vm513_vm2, %v43612_v59 }
 0x396   : > { %39659 = vmatpush3.msk.msra.mxu1 %vm513_vm2, %v43559_v39  ;;  %39675 = vmatprep.mubr.msk.f32.mxu0 %vm41919_vm1, %v48361_v10 }
 0x397   : > { %39676 = vmatmul.mubr.msk.f32.vlgmr.msra.gmra.mxu0 %vm509_vm3, %v43291_v25  ;;  %39660 = vmatprep.mubr.msk.f32.mxu1 %vm41919_vm1, %v48361_v10 }
 0x398   : > { %39668 = vmatprep.subr.mxu1 %v48361_v10  ;;  %39683 = vmatprep.subr.mxu0 %v48361_v10 }
 0x399   : > { %39661 = vmatmul.mubr.msk.f32.vlgmr.msra.gmra.mxu1 %vm509_vm3, %v43291_v25  ;;  %39684 = vmatpush3.msk.msra.mxu0 %vm513_vm2, %v43628_v34 }
 0x39a   : > { %39669 = vmatpush3.msk.msra.mxu1 %vm513_vm2, %v43602_v21  ;;  %39685 = vmatprep.mubr.msk.f32.mxu0 %vm41919_vm1, %v48361_v10 }
 0x39b   : > { %39686 = vmatmul.mubr.msk.f32.vlgmr.msra.gmra.mxu0 %vm509_vm3, %v43291_v25  ;;  %39670 = vmatprep.mubr.msk.f32.mxu1 %vm41919_vm1, %v48361_v10 }
 0x39c   : > { %39678 = vmatprep.subr.mxu1 %v48361_v10  ;;  %39693 = vmatprep.subr.mxu0 %v48361_v10 }
 0x39d   : > { %39671 = vmatmul.mubr.msk.f32.vlgmr.msra.gmra.mxu1 %vm509_vm3, %v43291_v25  ;;  %39694 = vmatpush3.msk.msra.mxu0 %vm513_vm2, %v43652_v5 }
 0x39e   : > { %39679 = vmatpush3.msk.msra.mxu1 %vm513_vm2, %v43589_v57  ;;  %39695 = vmatprep.mubr.msk.f32.mxu0 %vm41919_vm1, %v48361_v10 }
 0x39f   : > { %39696 = vmatmul.mubr.msk.f32.vlgmr.msra.gmra.mxu0 %vm509_vm3, %v43291_v25  ;;  %39680 = vmatprep.mubr.msk.f32.mxu1 %vm41919_vm1, %v48361_v10 }
 0x3a0   : > { %39688 = vmatprep.subr.mxu1 %v48361_v10  ;;  %39703 = vmatprep.subr.mxu0 %v48361_v10 }
 0x3a1   : > { %39681 = vmatmul.mubr.msk.f32.vlgmr.msra.gmra.mxu1 %vm509_vm3, %v43291_v25  ;;  %39704 = vmatpush3.msk.msra.mxu0 %vm513_vm2, %v43666_v16 }
 0x3a2   : > { %39689 = vmatpush3.msk.msra.mxu1 %vm513_vm2, %v43638_v19  ;;  %39705 = vmatprep.mubr.msk.f32.mxu0 %vm41919_vm1, %v48361_v10 }
 0x3a3   : > { %39713 = vmatprep.subr.mxu0 %v48361_v10  ;;  %39706 = vmatmul.mubr.msk.f32.vlgmr.msra.gmra.mxu0 %vm509_vm3, %v43291_v25 }
 0x3a4   : > { %39714 = vmatpush3.msk.msra.mxu0 %vm513_vm2, %v43553_v15  ;;  %39690 = vmatprep.mubr.msk.f32.mxu1 %vm41919_vm1, %v48361_v10 }
 0x3a5   : > { %39698 = vmatprep.subr.mxu1 %v48361_v10  ;;  %39691 = vmatmul.mubr.msk.f32.vlgmr.msra.gmra.mxu1 %vm509_vm3, %v43291_v25 }
 0x3a6   : > { %39699 = vmatpush3.msk.msra.mxu1 %vm513_vm2, %v43618_v60  ;;  %39715 = vmatprep.mubr.msk.f32.mxu0 %vm41919_vm1, %v48361_v10 }
 0x3a7   : > { %39723 = vmatprep.subr.mxu0 %v48361_v10  ;;  %39716 = vmatmul.mubr.msk.f32.vlgmr.msra.gmra.mxu0 %vm509_vm3, %v43700_v17 }
 0x3a8   : > { %39724 = vmatpush3.msk.msra.mxu0 %vm513_vm2, %v43541_v51  ;;  %39700 = vmatprep.mubr.msk.f32.mxu1 %vm41919_vm1, %v48361_v10 }
 0x3a9   : > { %39708 = vmatprep.subr.mxu1 %v48361_v10  ;;  %39701 = vmatmul.mubr.msk.f32.vlgmr.msra.gmra.mxu1 %vm509_vm3, %v43291_v25  ;;  %v43817_v25 = vld [vmem:[%s48327_s2 + $0x40] sm:$0xff] }
 0x3aa   : > { %39709 = vmatpush3.msk.msra.mxu1 %vm513_vm2, %v43549_v46  ;;  %39725 = vmatprep.mubr.msk.f32.mxu0 %vm41919_vm1, %v48361_v10 }
 0x3ab   : > { %39733 = vmatprep.subr.mxu0 %v48361_v10  ;;  %39726 = vmatmul.mubr.msk.f32.vlgmr.msra.gmra.mxu0 %vm509_vm3, %v43700_v17 }
 0x3ac   : > { %39734 = vmatpush3.msk.msra.mxu0 %vm513_vm2, %v43578_v50  ;;  %39710 = vmatprep.mubr.msk.f32.mxu1 %vm41919_vm1, %v48361_v10 }
 0x3ad   : > { %39718 = vmatprep.subr.mxu1 %v48361_v10  ;;  %39711 = vmatmul.mubr.msk.f32.vlgmr.msra.gmra.mxu1 %vm509_vm3, %v43700_v17 }
 0x3ae   : > { %39719 = vmatpush3.msk.msra.mxu1 %vm513_vm2, %v43537_v0  ;;  %39735 = vmatprep.mubr.msk.f32.mxu0 %vm41919_vm1, %v48361_v10 }
 0x3af   : > { %39743 = vmatprep.subr.mxu0 %v48361_v10  ;;  %39736 = vmatmul.mubr.msk.f32.vlgmr.msra.gmra.mxu0 %vm509_vm3, %v43700_v17 }
 0x3b0   : > { %39744 = vmatpush3.msk.msra.mxu0 %vm513_vm2, %v43585_v7  ;;  %39720 = vmatprep.mubr.msk.f32.mxu1 %vm41919_vm1, %v48361_v10 }
 0x3b1   : > { %39728 = vmatprep.subr.mxu1 %v48361_v10  ;;  %39721 = vmatmul.mubr.msk.f32.vlgmr.msra.gmra.mxu1 %vm509_vm3, %v43700_v17 }
 0x3b2   : > { %39729 = vmatpush3.msk.msra.mxu1 %vm513_vm2, %v43571_v2  ;;  %39745 = vmatprep.mubr.msk.f32.mxu0 %vm41919_vm1, %v48361_v10 }
 0x3b3   : > { %39753 = vmatprep.subr.mxu0 %v48361_v10  ;;  %39746 = vmatmul.mubr.msk.f32.vlgmr.msra.gmra.mxu0 %vm509_vm3, %v43700_v17 }
 0x3b4   : > { %39754 = vmatpush3.msk.msra.mxu0 %vm513_vm2, %v43612_v59  ;;  %39730 = vmatprep.mubr.msk.f32.mxu1 %vm41919_vm1, %v48361_v10 }
 0x3b5   : > { %39738 = vmatprep.subr.mxu1 %v48361_v10  ;;  %39731 = vmatmul.mubr.msk.f32.vlgmr.msra.gmra.mxu1 %vm509_vm3, %v43700_v17 }
 0x3b6   : > { %39739 = vmatpush3.msk.msra.mxu1 %vm513_vm2, %v43559_v39  ;;  %39755 = vmatprep.mubr.msk.f32.mxu0 %vm41919_vm1, %v48361_v10 }
 0x3b7   : > { %39763 = vmatprep.subr.mxu0 %v48361_v10  ;;  %39756 = vmatmul.mubr.msk.f32.vlgmr.msra.gmra.mxu0 %vm509_vm3, %v43700_v17 }
 0x3b8   : > { %39764 = vmatpush3.msk.msra.mxu0 %vm513_vm2, %v43628_v34  ;;  %39740 = vmatprep.mubr.msk.f32.mxu1 %vm41919_vm1, %v48361_v10 }
 0x3b9   : > { %39748 = vmatprep.subr.mxu1 %v48361_v10  ;;  %39741 = vmatmul.mubr.msk.f32.vlgmr.msra.gmra.mxu1 %vm509_vm3, %v43700_v17 }
 0x3ba   : > { %39749 = vmatpush3.msk.msra.mxu1 %vm513_vm2, %v43602_v21  ;;  %39765 = vmatprep.mubr.msk.f32.mxu0 %vm41919_vm1, %v48361_v10 }
 0x3bb   : > { %39773 = vmatprep.subr.mxu0 %v48361_v10  ;;  %39766 = vmatmul.mubr.msk.f32.vlgmr.msra.gmra.mxu0 %vm509_vm3, %v43700_v17 }
 0x3bc   : > { %39774 = vmatpush3.msk.msra.mxu0 %vm513_vm2, %v43652_v5  ;;  %39750 = vmatprep.mubr.msk.f32.mxu1 %vm41919_vm1, %v48361_v10 }
 0x3bd   : > { %39758 = vmatprep.subr.mxu1 %v48361_v10  ;;  %39751 = vmatmul.mubr.msk.f32.vlgmr.msra.gmra.mxu1 %vm509_vm3, %v43700_v17 }
 0x3be   : > { %39759 = vmatpush3.msk.msra.mxu1 %vm513_vm2, %v43589_v57  ;;  %39775 = vmatprep.mubr.msk.f32.mxu0 %vm41919_vm1, %v48361_v10 }
 0x3bf   : > { %39783 = vmatprep.subr.mxu0 %v48361_v10  ;;  %39776 = vmatmul.mubr.msk.f32.vlgmr.msra.gmra.mxu0 %vm509_vm3, %v43700_v17 }
 0x3c0   : > { %39784 = vmatpush3.msk.msra.mxu0 %vm513_vm2, %v43666_v16  ;;  %39760 = vmatprep.mubr.msk.f32.mxu1 %vm41919_vm1, %v48361_v10 }
 0x3c1   : > { %39768 = vmatprep.subr.mxu1 %v48361_v10  ;;  %39761 = vmatmul.mubr.msk.f32.vlgmr.msra.gmra.mxu1 %vm509_vm3, %v43700_v17 }
 0x3c2   : > { %39769 = vmatpush3.msk.msra.mxu1 %vm513_vm2, %v43638_v19  ;;  %39785 = vmatprep.mubr.msk.f32.mxu0 %vm41919_vm1, %v48361_v10 }
 0x3c3   : > { %39793 = vmatprep.subr.mxu0 %v48361_v10  ;;  %39786 = vmatmul.mubr.msk.f32.vlgmr.msra.gmra.mxu0 %vm509_vm3, %v43700_v17 }
 0x3c4   : > { %39794 = vmatpush3.msk.msra.mxu0 %vm513_vm2, %v43553_v15  ;;  %39770 = vmatprep.mubr.msk.f32.mxu1 %vm41919_vm1, %v48361_v10 }
 0x3c5   : > { %39778 = vmatprep.subr.mxu1 %v48361_v10  ;;  %39771 = vmatmul.mubr.msk.f32.vlgmr.msra.gmra.mxu1 %vm509_vm3, %v43700_v17 }
 0x3c6   : > { %39779 = vmatpush3.msk.msra.mxu1 %vm513_vm2, %v43618_v60  ;;  %39795 = vmatprep.mubr.msk.f32.mxu0 %vm41919_vm1, %v48361_v10 }
 0x3c7   : > { %39803 = vmatprep.subr.mxu0 %v48361_v10  ;;  %39796 = vmatmul.mubr.msk.f32.vlgmr.msra.gmra.mxu0 %vm509_vm3, %v43817_v25 }
 0x3c8   : > { %39804 = vmatpush3.msk.msra.mxu0 %vm513_vm2, %v43541_v51  ;;  %39780 = vmatprep.mubr.msk.f32.mxu1 %vm41919_vm1, %v48361_v10 }
 0x3c9   : > { %39788 = vmatprep.subr.mxu1 %v48361_v10  ;;  %39781 = vmatmul.mubr.msk.f32.vlgmr.msra.gmra.mxu1 %vm509_vm3, %v43700_v17 }
 0x3ca   : > { %39789 = vmatpush3.msk.msra.mxu1 %vm513_vm2, %v43549_v46  ;;  %39805 = vmatprep.mubr.msk.f32.mxu0 %vm41919_vm1, %v48361_v10 }
 0x3cb   : > { %39813 = vmatprep.subr.mxu0 %v48361_v10  ;;  %39806 = vmatmul.mubr.msk.f32.vlgmr.msra.gmra.mxu0 %vm509_vm3, %v43817_v25 }
 0x3cc   : > { %39814 = vmatpush3.msk.msra.mxu0 %vm513_vm2, %v43578_v50  ;;  %39790 = vmatprep.mubr.msk.f32.mxu1 %vm41919_vm1, %v48361_v10 }
 0x3cd   : > { %39798 = vmatprep.subr.mxu1 %v48361_v10  ;;  %39791 = vmatmul.mubr.msk.f32.vlgmr.msra.gmra.mxu1 %vm509_vm3, %v43817_v25 }
 0x3ce   : > { %39799 = vmatpush3.msk.msra.mxu1 %vm513_vm2, %v43537_v0  ;;  %39815 = vmatprep.mubr.msk.f32.mxu0 %vm41919_vm1, %v48361_v10 }
 0x3cf   : > { %39823 = vmatprep.subr.mxu0 %v48361_v10  ;;  %39816 = vmatmul.mubr.msk.f32.vlgmr.msra.gmra.mxu0 %vm509_vm3, %v43817_v25 }
 0x3d0   : > { %39824 = vmatpush3.msk.msra.mxu0 %vm513_vm2, %v43585_v7  ;;  %39800 = vmatprep.mubr.msk.f32.mxu1 %vm41919_vm1, %v48361_v10 }
 0x3d1   : > { %39808 = vmatprep.subr.mxu1 %v48361_v10  ;;  %39801 = vmatmul.mubr.msk.f32.vlgmr.msra.gmra.mxu1 %vm509_vm3, %v43817_v25 }
 0x3d2   : > { %39809 = vmatpush3.msk.msra.mxu1 %vm513_vm2, %v43571_v2  ;;  %39825 = vmatprep.mubr.msk.f32.mxu0 %vm41919_vm1, %v48361_v10 }
 0x3d3   : > { %39833 = vmatprep.subr.mxu0 %v48361_v10  ;;  %39826 = vmatmul.mubr.msk.f32.vlgmr.msra.gmra.mxu0 %vm509_vm3, %v43817_v25 }
 0x3d4   : > { %39834 = vmatpush3.msk.msra.mxu0 %vm513_vm2, %v43612_v59  ;;  %39810 = vmatprep.mubr.msk.f32.mxu1 %vm41919_vm1, %v48361_v10 }
 0x3d5   : > { %39818 = vmatprep.subr.mxu1 %v48361_v10  ;;  %39811 = vmatmul.mubr.msk.f32.vlgmr.msra.gmra.mxu1 %vm509_vm3, %v43817_v25 }
 0x3d6   : > { %39819 = vmatpush3.msk.msra.mxu1 %vm513_vm2, %v43559_v39  ;;  %39835 = vmatprep.mubr.msk.f32.mxu0 %vm41919_vm1, %v48361_v10 }
 0x3d7   : > { %39843 = vmatprep.subr.mxu0 %v48361_v10  ;;  %39836 = vmatmul.mubr.msk.f32.vlgmr.msra.gmra.mxu0 %vm509_vm3, %v43817_v25 }
 0x3d8   : > { %39844 = vmatpush3.msk.msra.mxu0 %vm513_vm2, %v43628_v34  ;;  %39820 = vmatprep.mubr.msk.f32.mxu1 %vm41919_vm1, %v48361_v10 }
 0x3d9   : > { %39828 = vmatprep.subr.mxu1 %v48361_v10  ;;  %39821 = vmatmul.mubr.msk.f32.vlgmr.msra.gmra.mxu1 %vm509_vm3, %v43817_v25 }
 0x3da   : > { %39829 = vmatpush3.msk.msra.mxu1 %vm513_vm2, %v43602_v21  ;;  %39845 = vmatprep.mubr.msk.f32.mxu0 %vm41919_vm1, %v48361_v10 }
 0x3db   : > { %39853 = vmatprep.subr.mxu0 %v48361_v10  ;;  %39846 = vmatmul.mubr.msk.f32.vlgmr.msra.gmra.mxu0 %vm509_vm3, %v43817_v25 }
 0x3dc   : > { %39854 = vmatpush3.msk.msra.mxu0 %vm513_vm2, %v43652_v5  ;;  %39830 = vmatprep.mubr.msk.f32.mxu1 %vm41919_vm1, %v48361_v10 }
 0x3dd   : > { %39838 = vmatprep.subr.mxu1 %v48361_v10  ;;  %39831 = vmatmul.mubr.msk.f32.vlgmr.msra.gmra.mxu1 %vm509_vm3, %v43817_v25 }
 0x3de   : > { %39839 = vmatpush3.msk.msra.mxu1 %vm513_vm2, %v43589_v57  ;;  %39855 = vmatprep.mubr.msk.f32.mxu0 %vm41919_vm1, %v48361_v10 }
 0x3df   : > { %39863 = vmatprep.subr.mxu0 %v48361_v10  ;;  %39856 = vmatmul.mubr.msk.f32.vlgmr.msra.gmra.mxu0 %vm509_vm3, %v43817_v25 }
 0x3e0   : > { %39864 = vmatpush3.msk.msra.mxu0 %vm513_vm2, %v43666_v16  ;;  %39840 = vmatprep.mubr.msk.f32.mxu1 %vm41919_vm1, %v48361_v10 }
 0x3e1   : > { %39848 = vmatprep.subr.mxu1 %v48361_v10  ;;  %39841 = vmatmul.mubr.msk.f32.vlgmr.msra.gmra.mxu1 %vm509_vm3, %v43817_v25 }
 0x3e2   : > { %39849 = vmatpush3.msk.msra.mxu1 %vm513_vm2, %v43638_v19  ;;  %39865 = vmatprep.mubr.msk.f32.mxu0 %vm41919_vm1, %v48361_v10 }
 0x3e3   : > { %39866 = vmatmul.mubr.msk.f32.vlgmr.msra.gmra.mxu0 %vm509_vm3, %v43817_v25  ;;  %39850 = vmatprep.mubr.msk.f32.mxu1 %vm41919_vm1, %v48361_v10 }
 0x3e4   : > { %39858 = vmatprep.subr.mxu1 %v48361_v10  ;;  %39873 = vmatprep.subr.mxu0 %v12746_v35 }
 0x3e5   : > { %39851 = vmatmul.mubr.msk.f32.vlgmr.msra.gmra.mxu1 %vm509_vm3, %v43817_v25  ;;  %39874 = vmatpush3.msra.mxu0 %v12746_v35 }
 0x3e6   : > { %39859 = vmatpush3.msk.msra.mxu1 %vm513_vm2, %v43618_v60  ;;  %39860 = vmatprep.mubr.msk.f32.mxu1 %vm41919_vm1, %v48361_v10 }
 0x3e7   : > { %39868 = vmatprep.subr.mxu1 %v48361_v10  ;;  %39875 = vmatprep.subr.mxu0 %v12745_v18 }
 0x3e8   : > { %39876 = vmatpush3.msra.mxu0 %v12745_v18 }
 0x3e9   : > { %39861 = vmatmul.mubr.msk.f32.vlgmr.msra.gmra.mxu1 %vm509_vm3, %v43817_v25  ;;  %39877 = vmatprep.subr.mxu0 %v12744_v53 }
 0x3ea   : > { %39869 = vmatpush3.msra.mxu1 %v48361_v10  ;;  %39870 = vmatprep.mubr.msk.f32.mxu1 %vm41919_vm1, %v48361_v10 }
 0x3eb   : > { %39929 = vmatprep.subr.mxu1 %v48361_v10  ;;  %39878 = vmatpush3.msra.mxu0 %v12744_v53 }
 0x3ec   : > { %39879 = vmatprep.subr.mxu0 %v12743_v44 }
 0x3ed   : > { %39871 = vmatmul.mubr.msk.f32.vlgmr.msra.gmra.mxu1 %vm509_vm3, %v43817_v25  ;;  %39880 = vmatpush3.msra.mxu0 %v12743_v44 }
 0x3ee   : > { %39931 = vmatprep.mubr.msk.f32.mxu1 %vm41919_vm1, %v48361_v10  ;;  %40014 = vmatprep.subr.mxu0 %v48361_v10 }
 0x449   : > { %v9173_v13 = vpop.f32.mrf.mxu1 }
 0x44a   : > { %v43960_v49 = vadd.f32 %v9173_v13, %v43448_v37  ;;  %v43963_v3 = vadd.f32 %v9173_v13, %v43451_v48  ;;  %v9389_v0 = vpop.f32.mrf.mxu0 }
 0x44b   : > { %v43966_v51 = vadd.f32 %v9389_v0, %v43488_v47  ;;  %v43969_v24 = vadd.f32 %v9389_v0, %v43491_v43  ;;  %v39632_v46 = vpop.f32.mrf.mxu1 }
 0x44c   : > { %v39647_v15 = vpop.f32.mrf.mxu0 }
 0x44d   : > { %v9245_v32 = vpop.f32.mrf.mxu1 }
 0x44e   : > { %v43972_v39 = vadd.f32 %v9245_v32, %v43474_v11  ;;  %v43975_v27 = vadd.f32 %v9245_v32, %v43477_v54 }
 0x44f   : > { %v39637_v37 = vpop.f32.mrf.mxu1  ;;  %v9533_v2 = vpop.f32.mrf.mxu0 }
 0x450   : > { %v43978_v48 = vadd.f32 %v9533_v2, %v43499_v41  ;;  %v43981_v47 = vadd.f32 %v9533_v2, %v43502_v63 }
 0x451   : > { %v9317_v50 = vpop.f32.mrf.mxu1  ;;  %v39657_v43 = vpop.f32.mrf.mxu0 }
 0x452   : > { %v43984_v61 = vadd.f32 %v9317_v50, %v43457_v14  ;;  %v43987_v7 = vadd.f32 %v9317_v50, %v43460_v45 }
 0x453   : > { %v39642_v11 = vpop.f32.mrf.mxu1  ;;  %v9677_v57 = vpop.f32.mrf.mxu0 }
 0x454   : > { %v43990_v54 = vadd.f32 %v9677_v57, %v43510_v42  ;;  %v43993_v28 = vadd.f32 %v9677_v57, %v43513_v62 }
 0x455   : > { %v9461_v41 = vpop.f32.mrf.mxu1  ;;  %v39667_v21 = vpop.f32.mrf.mxu0 }
 0x456   : > { %v43996_v63 = vadd.f32 %v9461_v41, %v43465_v22  ;;  %v43999_v29 = vadd.f32 %v9461_v41, %v43468_v30 }
 0x457   : > { %v39652_v14 = vpop.f32.mrf.mxu1  ;;  %v9821_v59 = vpop.f32.mrf.mxu0 }
 0x458   : > { %v44002_v45 = vadd.f32 %v9821_v59, %v43521_v38  ;;  %v44005_v60 = vadd.f32 %v9821_v59, %v43524_v20 }
 0x459   : > { %v9605_v42 = vpop.f32.mrf.mxu1  ;;  %v39677_v34 = vpop.f32.mrf.mxu0 }
 0x45a   : > { %v44008_v62 = vadd.f32 %v9605_v42, %v43482_v12  ;;  %v44011_v19 = vadd.f32 %v9605_v42, %v43485_v33 }
 0x45b   : > { %v39662_v22 = vpop.f32.mrf.mxu1  ;;  %v9965_v5 = vpop.f32.mrf.mxu0 }
 0x45c   : > { %v44014_v30 = vadd.f32 %v9965_v5, %v43532_v56  ;;  %v44017_v16 = vadd.f32 %v9965_v5, %v43535_v6 }
 0x45d   : > { %v9749_v38 = vpop.f32.mrf.mxu1  ;;  %v39687_v17 = vpop.f32.mrf.mxu0 }
 0x45e   : > { %v44020_v20 = vadd.f32 %v9749_v38, %v43493_v40  ;;  %v44023_v25 = vadd.f32 %v9749_v38, %v43496_v9 }
 0x45f   : > { %v39672_v12 = vpop.f32.mrf.mxu1  ;;  %v10109_v35 = vpop.f32.mrf.mxu0 }
 0x460   : > { %v10284_v33 = vadd.f32 %v10109_v35, %v43544_v26  ;;  %v44027_v18 = vadd.f32 %v10109_v35, %v43547_v58 }
 0x461   : > { %v9893_v56 = vpop.f32.mrf.mxu1  ;;  %v39697_v53 = vpop.f32.mrf.mxu0 }
 0x462   : > { %v44030_v6 = vadd.f32 %v9893_v56, %v43504_v23  ;;  %v44033_v44 = vadd.f32 %v9893_v56, %v43507_v4 }
 0x463   : > { %v39682_v40 = vpop.f32.mrf.mxu1  ;;  %v10253_v13 = vpop.f32.mrf.mxu0 }
 0x464   : > { %v10288_v9 = vadd.f32 %v10253_v13, %v43569_v1 }
 0x465   : > { %v10037_v0 = vpop.f32.mrf.mxu1  ;;  %v39707_v46 = vpop.f32.mrf.mxu0 }
 0x466   : > { %v44037_v15 = vadd.f32 %v10037_v0, %v43515_v8  ;;  %v44040_v26 = vadd.f32 %v10037_v0, %v43518_v31 }
 0x467   : > { %v39692_v58 = vpop.f32.mrf.mxu1  ;;  %v10430_v32 = vpop.f32.mrf.mxu0 }
 0x469   : > { %v10181_v37 = vpop.f32.mrf.mxu1  ;;  %v39717_v23 = vpop.f32.mrf.mxu0 }
 0x46a   : > { %v44043_v2 = vadd.f32 %v10181_v37, %v43526_v55  ;;  %v10287_v4 = vadd.f32 %v10181_v37, %v43529_v52 }
 0x46b   : > { %v39702_v50 = vpop.f32.mrf.mxu1  ;;  %v44046_v43 = vpop.f32.mrf.mxu0 }
 0x46d   : > { %v10360_v1 = vpop.f32.mrf.mxu1  ;;  %v39727_v11 = vpop.f32.mrf.mxu0 }
 0x46f   : > { %v39712_v57 = vpop.f32.mrf.mxu1  ;;  %v44048_v8 = vpop.f32.mrf.mxu0 }
 0x471   : > { %v10500_v41 = vpop.f32.mrf.mxu1  ;;  %v39737_v31 = vpop.f32.mrf.mxu0 }
 0x472   : > { %v11415_v31 = vadd.f32 %v10360_v1, %v43960_v49 }
 0x473   : > { %v39722_v21 = vpop.f32.mrf.mxu1  ;;  %v44050_v14 = vpop.f32.mrf.mxu0 }
 0x475   : > { %v44052_v59 = vpop.f32.mrf.mxu1  ;;  %v39747_v42 = vpop.f32.mrf.mxu0 }
 0x476   : > { %v11416_v42 = vadd.f32 %v10430_v32, %v43963_v3 }
 0x477   : > { %v39732_v55 = vpop.f32.mrf.mxu1  ;;  %v44054_v34 = vpop.f32.mrf.mxu0 }
 0x479   : > { %v44056_v52 = vpop.f32.mrf.mxu1  ;;  %v39757_v22 = vpop.f32.mrf.mxu0 }
 0x47b   : > { %v39742_v5 = vpop.f32.mrf.mxu1  ;;  %v44058_v38 = vpop.f32.mrf.mxu0 }
 0x47d   : > { %v44060_v17 = vpop.f32.mrf.mxu1  ;;  %v39767_v12 = vpop.f32.mrf.mxu0 }
 0x47f   : > { %v39752_v35 = vpop.f32.mrf.mxu1  ;;  %v44062_v56 = vpop.f32.mrf.mxu0 }
 0x480   : > { %v44065_v53 = vadd.f32 %v44062_v56, %v10284_v33 }
 0x481   : > { %v44067_v40 = vpop.f32.mrf.mxu1  ;;  %v39777_v13 = vpop.f32.mrf.mxu0 }
 0x483   : > { %v39762_v0 = vpop.f32.mrf.mxu1  ;;  %v11410_v46 = vpop.f32.mrf.mxu0 }
 0x484   : > { %v44069_v58 = vadd.f32 %v11410_v46, %v10287_v4  ;;  %v44071_v37 = vadd.f32 %v11410_v46, %v10288_v9  ;;  %v11414_v4 = vadd.f32 %v10360_v1, %v43596_v36  ;;  %v44080_v9 = vpop.permute.xlu0 %12676  ;;  %v11419_v36 = vadd.f32 %v10500_v41, %v43984_v61 }
 0x485   : > { %v44073_v23 = vpop.f32.mrf.mxu1  ;;  %v39787_v50 = vpop.f32.mrf.mxu0 }
 0x487   : > { %v39772_v11 = vpop.f32.mrf.mxu1  ;;  %v11587_v57 = vpop.f32.mrf.mxu0 }
 0x488   : > { %v12642_v55 = vadd.f32 %v11587_v57, %v11415_v31  ;;  %v12643_v12 = vadd.f32 %v11587_v57, %v11416_v42  ;;  %v11417_v11 = vadd.f32 %v10430_v32, %v43972_v39  ;;  %v11420_v42 = vadd.f32 %v44046_v43, %v43987_v7 }
 0x489   : > { %v44076_v21 = vpop.f32.mrf.mxu1  ;;  %v39797_v33 = vpop.f32.mrf.mxu0  ;;  %v11421_v7 = vadd.f32 %v44046_v43, %v43966_v51 }
 0x48a   : > { %v12680_v49 = vadd.f32 %v44080_v9, %v12642_v55  ;;  %v11418_v33 = vadd.f32 %v10500_v41, %v43975_v27  ;;  %v12681_v31 = vadd.f32 %v44080_v9, %v12643_v12 }
 0x48b   : > { %v39782_v22 = vpop.f32.mrf.mxu1  ;;  %v11727_v5 = vpop.f32.mrf.mxu0 }
 0x48c   : > { %v44092_v27 = vmax.f32 %v12680_v49, 0.0  ;;  %v44098_v41 = vmax.f32 %v12681_v31, 0.0 }
 0x48d   : > { %v11517_v35 = vpop.f32.mrf.mxu1  ;;  %v39807_v13 = vpop.f32.mrf.mxu0 }
 0x48e   : > { %v12641_v0 = vadd.f32 %v11517_v35, %v11414_v4  ;;  %v12646_v35 = vadd.f32 %v11727_v5, %v11419_v36  ;;  %48407 = vst [vmem:[#allocation13_spill] sm:$0xff] %v44092_v27  ;;  %v12647_v13 = vadd.f32 %v11727_v5, %v11420_v42  ;;  %48408 = vst [vmem:[#allocation14_spill] sm:$0xff] %v44098_v41 }
 0x48f   : > { %v39792_v46 = vpop.f32.mrf.mxu1  ;;  %v11867_v50 = vpop.f32.mrf.mxu0  ;;  %v11422_v5 = vadd.f32 %v44052_v59, %v43969_v24  ;;  %v11424_v42 = vadd.f32 %v44048_v8, %v43999_v29 }
 0x490   : > { %v12679_v3 = vadd.f32 %v44080_v9, %v12641_v0  ;;  %v12685_v51 = vadd.f32 %v44080_v9, %v12647_v13 }
 0x491   : > { %v11657_v1 = vpop.f32.mrf.mxu1  ;;  %v39817_v57 = vpop.f32.mrf.mxu0 }
 0x492   : > { %v44090_v22 = vmax.f32 %v12679_v3, 0.0  ;;  %v12644_v4 = vadd.f32 %v11657_v1, %v11417_v11  ;;  %v12645_v55 = vadd.f32 %v11657_v1, %v11418_v33  ;;  %v12684_v11 = vadd.f32 %v44080_v9, %v12646_v35 }
 0x493   : > { %v39802_v39 = vpop.f32.mrf.mxu1  ;;  %v12007_v32 = vpop.f32.mrf.mxu0  ;;  %v11423_v1 = vadd.f32 %v44052_v59, %v43996_v63  ;;  %v44129_v63 = vmax.f32 %v12685_v51, 0.0  ;;  %v12651_v59 = vadd.f32 %v11867_v50, %v11424_v42  ;;  %v11427_v51 = vadd.f32 %v44056_v52, %v44008_v62 }
 0x494   : > { %48406 = vst [vmem:[#allocation12_spill] sm:$0xff] %v44090_v22  ;;  %v12682_v12 = vadd.f32 %v44080_v9, %v12644_v4  ;;  %v12683_v61 = vadd.f32 %v44080_v9, %v12645_v55  ;;  %39881 = vmatprep.mubr.msk.f32.mxu0 %vm12747_vm4, %v44090_v22  ;;  %v44124_v4 = vmax.f32 %v12684_v11, 0.0 }
 0x495   : > { %v11797_v0 = vpop.f32.mrf.mxu1  ;;  %v39827_v46 = vpop.f32.mrf.mxu0  ;;  %39882 = vmatmul.mubr.msk.f32.vlgmr.msra.gmra.mxu0 %vm12747_vm4, %v44092_v27  ;;  %v12650_v55 = vadd.f32 %v11867_v50, %v11423_v1  ;;  %48412 = vst [vmem:[#allocation18_spill] sm:$0xff] %v44129_v63  ;;  %v11428_v1 = vadd.f32 %v44050_v14, %v44011_v19  ;;  %v12654_v42 = vadd.f32 %v12007_v32, %v11427_v51 }
 0x496   : > { %v44106_v49 = vmax.f32 %v12682_v12, 0.0  ;;  %39884 = vmatprep.mubr.msk.f32.mxu0 %vm12747_vm4, %v44098_v41  ;;  %v12648_v33 = vadd.f32 %v11797_v0, %v11421_v7  ;;  %v44114_v43 = vmax.f32 %v12683_v61, 0.0  ;;  %v12649_v36 = vadd.f32 %v11797_v0, %v11422_v5  ;;  %48411 = vst [vmem:[#allocation17_spill] sm:$0xff] %v44124_v4 }
 0x497   : > { %v39812_v3 = vpop.f32.mrf.mxu1  ;;  %v44111_v31 = vpop.f32.mrf.mxu0  ;;  %v11425_v61 = vadd.f32 %v44048_v8, %v43978_v48  ;;  %v11426_v0 = vadd.f32 %v44056_v52, %v43981_v47  ;;  %v12688_v46 = vadd.f32 %v44080_v9, %v12650_v55  ;;  %v12689_v48 = vadd.f32 %v44080_v9, %v12651_v59 }
 0x498   : > { %48409 = vst [vmem:[#allocation15_spill] sm:$0xff] %v44106_v49  ;;  %48410 = vst [vmem:[#allocation16_spill] sm:$0xff] %v44114_v43  ;;  %v12686_v35 = vadd.f32 %v44080_v9, %v12648_v33  ;;  %v12687_v12 = vadd.f32 %v44080_v9, %v12649_v36  ;;  %v12655_v52 = vadd.f32 %v12007_v32, %v11428_v1 }
 0x499   : > { %v11937_v24 = vpop.f32.mrf.mxu1  ;;  %v39837_v57 = vpop.f32.mrf.mxu0  ;;  %39885 = vmatmul.mubr.msk.f32.gmra.mxu0 %vm12747_vm4, %v44106_v49  ;;  %v44161_v62 = vmax.f32 %v12689_v48, 0.0  ;;  %v11429_v59 = vadd.f32 %v44050_v14, %v43990_v54 }
 0x49a   : > { %39887 = vmatprep.mubr.msk.f32.mxu0 %vm12747_vm4, %v44114_v43  ;;  %v44141_v5 = vmax.f32 %v12686_v35, 0.0  ;;  %v12652_v50 = vadd.f32 %v11937_v24, %v11425_v61  ;;  %v44146_v8 = vmax.f32 %v12687_v12, 0.0  ;;  %v12653_v3 = vadd.f32 %v11937_v24, %v11426_v0 }
 0x49b   : > { %v39822_v39 = vpop.f32.mrf.mxu1  ;;  %v44127_v13 = vpop.f32.mrf.mxu0  ;;  %v44156_v57 = vmax.f32 %v12688_v46, 0.0  ;;  %48416 = vst [vmem:[#allocation22_spill] sm:$0xff] %v44161_v62  ;;  %v11430_v61 = vadd.f32 %v44060_v17, %v43993_v28  ;;  %v11432_v28 = vadd.f32 %v44054_v34, %v44023_v25 }
 0x49c   : > { %48413 = vst [vmem:[#allocation19_spill] sm:$0xff] %v44141_v5  ;;  %48414 = vst [vmem:[#allocation20_spill] sm:$0xff] %v44146_v8  ;;  %v12690_v55 = vadd.f32 %v44080_v9, %v12652_v50  ;;  %v12691_v39 = vadd.f32 %v44080_v9, %v12653_v3  ;;  %v12693_v50 = vadd.f32 %v44080_v9, %v12655_v52 }
 0x49d   : > { %v12077_v29 = vpop.f32.mrf.mxu1  ;;  %v39847_v7 = vpop.f32.mrf.mxu0  ;;  %39888 = vmatmul.mubr.msk.f32.gmra.mxu0 %vm12747_vm4, %v44124_v4  ;;  %48415 = vst [vmem:[#allocation21_spill] sm:$0xff] %v44156_v57 }
 0x49e   : > { %39890 = vmatprep.mubr.msk.f32.mxu0 %vm12747_vm4, %v44129_v63  ;;  %v12692_v7 = vadd.f32 %v44080_v9, %v12654_v42  ;;  %v44173_v0 = vmax.f32 %v12690_v55, 0.0  ;;  %v12656_v32 = vadd.f32 %v12077_v29, %v11429_v59  ;;  %v44176_v54 = vmax.f32 %v12691_v39, 0.0 }
 0x49f   : > { %v39832_v11 = vpop.f32.mrf.mxu1  ;;  %v44143_v33 = vpop.f32.mrf.mxu0  ;;  %v12657_v14 = vadd.f32 %v12077_v29, %v11430_v61  ;;  %v44190_v1 = vmax.f32 %v12693_v50, 0.0  ;;  %v11433_v42 = vadd.f32 %v44054_v34, %v44002_v45  ;;  %v11434_v55 = vadd.f32 %v44067_v40, %v44005_v60 }
 0x4a0   : > { %48417 = vst [vmem:[#allocation23_spill] sm:$0xff] %v44173_v0  ;;  %48418 = vst [vmem:[#allocation24_spill] sm:$0xff] %v44176_v54  ;;  %v11431_v11 = vadd.f32 %v44060_v17, %v44020_v20  ;;  %v44186_v3 = vmax.f32 %v12692_v7, 0.0  ;;  %v12659_v20 = vadd.f32 %v44111_v31, %v11432_v28  ;;  %v11436_v60 = vadd.f32 %v44058_v38, %v44033_v44 }
 0x4a1   : > { %v12217_v47 = vpop.f32.mrf.mxu1  ;;  %v39857_v36 = vpop.f32.mrf.mxu0  ;;  %39891 = vmatmul.mubr.msk.f32.gmra.mxu0 %vm12747_vm4, %v44141_v5  ;;  %48420 = vst [vmem:[#allocation26_spill] sm:$0xff] %v44190_v1  ;;  %v12695_v17 = vadd.f32 %v44080_v9, %v12657_v14  ;;  %v11438_v44 = vadd.f32 %v44073_v23, %v44017_v16  ;;  %v11440_v16 = vadd.f32 %v44062_v56, %v44040_v26 }
 0x4a2   : > { %39893 = vmatprep.mubr.msk.f32.mxu0 %vm12747_vm4, %v44146_v8  ;;  %48419 = vst [vmem:[#allocation25_spill] sm:$0xff] %v44186_v3  ;;  %v12658_v51 = vadd.f32 %v44111_v31, %v11431_v11  ;;  %v12694_v36 = vadd.f32 %v44080_v9, %v12656_v32  ;;  %v12660_v31 = vadd.f32 %v12217_v47, %v11433_v42 }
 0x4a3   : > { %v39842_v24 = vpop.f32.mrf.mxu1  ;;  %v44159_v35 = vpop.f32.mrf.mxu0  ;;  %v12697_v59 = vadd.f32 %v44080_v9, %v12659_v20  ;;  %v44208_v45 = vmax.f32 %v12695_v17, 0.0  ;;  %v12661_v34 = vadd.f32 %v12217_v47, %v11434_v55  ;;  %v12663_v47 = vadd.f32 %v44127_v13, %v11436_v60 }
 0x4a4   : > { %v12696_v24 = vadd.f32 %v44080_v9, %v12658_v51  ;;  %v44205_v52 = vmax.f32 %v12694_v36, 0.0  ;;  %v12698_v32 = vadd.f32 %v44080_v9, %v12660_v31  ;;  %v11442_v26 = vadd.f32 %v44076_v21, %v44027_v18 }
 0x4a5   : > { %v12357_v19 = vpop.f32.mrf.mxu1  ;;  %39894 = vmatmul.mubr.msk.f32.gmra.mxu0 %vm12747_vm4, %v44156_v57  ;;  %v39867_v12 = vpop.f32.mrf.mxu0  ;;  %48422 = vst [vmem:[#allocation28_spill] sm:$0xff] %v44208_v45 }
 0x4a6   : > { %39896 = vmatprep.mubr.msk.f32.mxu0 %vm12747_vm4, %v44161_v62  ;;  %48421 = vst [vmem:[#allocation27_spill] sm:$0xff] %v44205_v52  ;;  %v11435_v12 = vadd.f32 %v44067_v40, %v44030_v6  ;;  %v44218_v61 = vmax.f32 %v12696_v24, 0.0  ;;  %v12699_v6 = vadd.f32 %v44080_v9, %v12661_v34  ;;  %v11437_v40 = vadd.f32 %v44058_v38, %v44014_v30 }
 0x4a7   : > { %v39852_v46 = vpop.f32.mrf.mxu1  ;;  %v44235_v14 = vmax.f32 %v12698_v32, 0.0  ;;  %v12665_v51 = vadd.f32 %v12357_v19, %v11438_v44  ;;  %v11439_v30 = vadd.f32 %v44073_v23, %v44037_v15  ;;  %v11443_v24 = vadd.f32 %v44076_v21, %v44043_v2  ;;  %v44317_v32 = vld [vmem:[#allocation7 + $0x18] sm:$0xff] }
 0x4a8   : > { %48423 = vst [vmem:[#allocation29_spill] sm:$0xff] %v44218_v61  ;;  %v12662_v7 = vadd.f32 %v44127_v13, %v11435_v12  ;;  %v44222_v46 = vmax.f32 %v12697_v59, 0.0  ;;  %v12664_v11 = vadd.f32 %v12357_v19, %v11437_v40  ;;  %v12701_v13 = vadd.f32 %v44080_v9, %v12663_v47 }
 0x4a9   : > { %v12497_v48 = vpop.f32.mrf.mxu1  ;;  %39897 = vmatmul.mubr.msk.f32.gmra.mxu0 %vm12747_vm4, %v44173_v0  ;;  %48425 = vst [vmem:[#allocation31_spill] sm:$0xff] %v44235_v14  ;;  %v44238_v28 = vmax.f32 %v12699_v6, 0.0  ;;  %v12666_v36 = vadd.f32 %v44143_v33, %v11439_v30  ;;  %v12667_v19 = vadd.f32 %v44143_v33, %v11440_v16  ;;  %v12703_v15 = vadd.f32 %v44080_v9, %v12665_v51 }
 0x4aa   : > { %39899 = vmatprep.mubr.msk.f32.mxu0 %vm12747_vm4, %v44176_v54  ;;  %48424 = vst [vmem:[#allocation30_spill] sm:$0xff] %v44222_v46  ;;  %v12700_v50 = vadd.f32 %v44080_v9, %v12662_v7  ;;  %v44252_v20 = vmax.f32 %v12701_v13, 0.0  ;;  %v12668_v17 = vadd.f32 %v12497_v48, %v44065_v53  ;;  %v12669_v55 = vadd.f32 %v12497_v48, %v11442_v26 }
 0x4ab   : > { %v39862_v29 = vpop.f32.mrf.mxu1  ;;  %48426 = vst [vmem:[#allocation32_spill] sm:$0xff] %v44238_v28  ;;  %v12704_v56 = vadd.f32 %v44080_v9, %v12666_v36  ;;  %v12705_v42 = vadd.f32 %v44080_v9, %v12667_v19  ;;  %v44267_v33 = vmax.f32 %v12703_v15, 0.0  ;;  %v12670_v31 = vadd.f32 %v44159_v35, %v11443_v24 }
 0x4ac   : > { %v44248_v38 = vmax.f32 %v12700_v50, 0.0  ;;  %v12702_v29 = vadd.f32 %v44080_v9, %v12664_v11  ;;  %48428 = vst [vmem:[#allocation34_spill] sm:$0xff] %v44252_v20  ;;  %v12706_v53 = vadd.f32 %v44080_v9, %v12668_v17  ;;  %v12671_v48 = vadd.f32 %v44159_v35, %v44069_v58 }
 0x4ad   : > { %v44196_v25 = vpop.f32.mrf.mxu1  ;;  %39900 = vmatmul.mubr.msk.f32.gmra.mxu0 %vm12747_vm4, %v44186_v3  ;;  %48430 = vst [vmem:[#allocation36_spill] sm:$0xff] %v44267_v33  ;;  %v44275_v18 = vmax.f32 %v12704_v56, 0.0  ;;  %v12707_v59 = vadd.f32 %v44080_v9, %v12669_v55  ;;  %v12708_v2 = vadd.f32 %v44080_v9, %v12670_v31 }
 0x4ae   : > { %39902 = vmatprep.mubr.msk.f32.mxu0 %vm12747_vm4, %v44190_v1  ;;  %48427 = vst [vmem:[#allocation33_spill] sm:$0xff] %v44248_v38  ;;  %v44263_v23 = vmax.f32 %v12702_v29, 0.0  ;;  %v44289_v21 = vmax.f32 %v12706_v53, 0.0  ;;  %v12672_v34 = vadd.f32 %v44196_v25, %v44071_v37  ;;  %v12709_v12 = vadd.f32 %v44080_v9, %v12671_v48 }
 0x4af   : > { %v39872_v39 = vpop.f32.mrf.mxu1  ;;  %48431 = vst [vmem:[#allocation37_spill] sm:$0xff] %v44275_v18  ;;  %v44294_v60 = vmax.f32 %v12707_v59, 0.0  ;;  %v44300_v58 = vmax.f32 %v12708_v2, 0.0 }
 0x4b0   : > { %48429 = vst [vmem:[#allocation35_spill] sm:$0xff] %v44263_v23  ;;  %v44279_v39 = vmax.f32 %v12705_v42, 0.0  ;;  %48433 = vst [vmem:[#allocation39_spill] sm:$0xff] %v44289_v21  ;;  %v12710_v35 = vadd.f32 %v44080_v9, %v12672_v34  ;;  %v44303_v7 = vmax.f32 %v12709_v12, 0.0 }
 0x4b1   : > { %39903 = vmatmul.mubr.msk.f32.gmra.mxu0 %vm12747_vm4, %v44205_v52  ;;  %48434 = vst [vmem:[#allocation40_spill] sm:$0xff] %v44294_v60  ;;  %48435 = vst [vmem:[#allocation41_spill] sm:$0xff] %v44300_v58 }
 0x4b2   : > { %39905 = vmatprep.mubr.msk.f32.mxu0 %vm12747_vm4, %v44208_v45  ;;  %48432 = vst [vmem:[#allocation38_spill] sm:$0xff] %v44279_v39  ;;  %48436 = vst [vmem:[#allocation42_spill] sm:$0xff] %v44303_v7  ;;  %v44309_v37 = vmax.f32 %v12710_v35, 0.0 }
 0x4b4   : > { %48437 = vst [vmem:[#allocation43_spill] sm:$0xff] %v44309_v37 }
 0x4b5   : > { %39906 = vmatmul.mubr.msk.f32.gmra.mxu0 %vm12747_vm4, %v44218_v61 }
 0x4b6   : > { %39908 = vmatprep.mubr.msk.f32.mxu0 %vm12747_vm4, %v44222_v46 }
 0x4b9   : > { %39909 = vmatmul.mubr.msk.f32.gmra.mxu0 %vm12747_vm4, %v44235_v14 }
 0x4ba   : > { %39911 = vmatprep.mubr.msk.f32.mxu0 %vm12747_vm4, %v44238_v28 }
 0x4bd   : > { %39912 = vmatmul.mubr.msk.f32.gmra.mxu0 %vm12747_vm4, %v44248_v38 }
 0x4be   : > { %39914 = vmatprep.mubr.msk.f32.mxu0 %vm12747_vm4, %v44252_v20 }
 0x4c1   : > { %39915 = vmatmul.mubr.msk.f32.gmra.mxu0 %vm12747_vm4, %v44263_v23 }
 0x4c2   : > { %39917 = vmatprep.mubr.msk.f32.mxu0 %vm12747_vm4, %v44267_v33 }
 0x4c5   : > { %39918 = vmatmul.mubr.msk.f32.gmra.mxu0 %vm12747_vm4, %v44275_v18 }
 0x4c6   : > { %39920 = vmatprep.mubr.msk.f32.mxu0 %vm12747_vm4, %v44279_v39 }
 0x4c9   : > { %39921 = vmatmul.mubr.msk.f32.gmra.mxu0 %vm12747_vm4, %v44289_v21 }
 0x4ca   : > { %39923 = vmatprep.mubr.msk.f32.mxu0 %vm12747_vm4, %v44294_v60 }
 0x4cd   : > { %39924 = vmatmul.mubr.msk.f32.gmra.mxu0 %vm12747_vm4, %v44300_v58 }
 0x4ce   : > { %39926 = vmatprep.mubr.msk.f32.mxu0 %vm12747_vm4, %v44303_v7  ;;  %v44517_v7 = vld [vmem:[#allocation7] sm:$0xff] }
 0x4d1   : > { %39927 = vmatmul.mubr.msk.f32.gmra.mxu0 %vm12747_vm4, %v44309_v37 }
 0x4d2   : > { %40016 = vmatprep.mubr.msk.f32.mxu0 %vm41919_vm1, %v48361_v10 }
 0x555   : > { %v44315_v25 = vpop.f32.mrf.mxu0 }
 0x557   : > { %v44319_v9 = vpop.f32.mrf.mxu0 }
 0x558   : > { %39930 = vmatpush3.msra.mxu1 %v44319_v9 }
 0x559   : > { %v44322_v47 = vpop.f32.mrf.mxu0  ;;  %39932 = vmatmul.mubr.msk.f32.vlgmr.msra.gmra.mxu1 %vm13072_vm5, %v44317_v32  ;;  %39934 = vmatprep.subr.mxu1 %v48361_v10 }
 0x55a   : > { %39935 = vmatpush3.msra.mxu1 %v44315_v25  ;;  %39936 = vmatprep.mubr.msk.f32.mxu1 %vm41919_vm1, %v48361_v10 }
 0x55b   : > { %v44330_v6 = vpop.f32.mrf.mxu0  ;;  %39939 = vmatprep.subr.mxu1 %v48361_v10 }
 0x55d   : > { %v44333_v40 = vpop.f32.mrf.mxu0  ;;  %39937 = vmatmul.mubr.msk.f32.vlgmr.msra.gmra.mxu1 %vm13072_vm5, %v44317_v32 }
 0x55e   : > { %39940 = vmatpush3.msra.mxu1 %v44330_v6  ;;  %39941 = vmatprep.mubr.msk.f32.mxu1 %vm41919_vm1, %v48361_v10 }
 0x55f   : > { %v44340_v44 = vpop.f32.mrf.mxu0  ;;  %39944 = vmatprep.subr.mxu1 %v48361_v10 }
 0x561   : > { %v44343_v50 = vpop.f32.mrf.mxu0  ;;  %39942 = vmatmul.mubr.msk.f32.vlgmr.msra.gmra.mxu1 %vm13072_vm5, %v44317_v32 }
 0x562   : > { %39945 = vmatpush3.msra.mxu1 %v44322_v47  ;;  %39946 = vmatprep.mubr.msk.f32.mxu1 %vm41919_vm1, %v48361_v10 }
 0x563   : > { %v44350_v11 = vpop.f32.mrf.mxu0  ;;  %39949 = vmatprep.subr.mxu1 %v48361_v10 }
 0x565   : > { %v44353_v13 = vpop.f32.mrf.mxu0  ;;  %39947 = vmatmul.mubr.msk.f32.vlgmr.msra.gmra.mxu1 %vm13072_vm5, %v44317_v32 }
 0x566   : > { %39950 = vmatpush3.msra.mxu1 %v44340_v44  ;;  %39951 = vmatprep.mubr.msk.f32.mxu1 %vm41919_vm1, %v48361_v10 }
 0x567   : > { %v44360_v51 = vpop.f32.mrf.mxu0  ;;  %39954 = vmatprep.subr.mxu1 %v48361_v10 }
 0x569   : > { %v44363_v30 = vpop.f32.mrf.mxu0  ;;  %39952 = vmatmul.mubr.msk.f32.vlgmr.msra.gmra.mxu1 %vm13072_vm5, %v44317_v32 }
 0x56a   : > { %39955 = vmatpush3.msra.mxu1 %v44333_v40  ;;  %39956 = vmatprep.mubr.msk.f32.mxu1 %vm41919_vm1, %v48361_v10 }
 0x56b   : > { %v44370_v16 = vpop.f32.mrf.mxu0  ;;  %39959 = vmatprep.subr.mxu1 %v48361_v10 }
 0x56d   : > { %v44373_v36 = vpop.f32.mrf.mxu0  ;;  %39957 = vmatmul.mubr.msk.f32.vlgmr.msra.gmra.mxu1 %vm13072_vm5, %v44317_v32 }
 0x56e   : > { %39960 = vmatpush3.msra.mxu1 %v44350_v11  ;;  %39961 = vmatprep.mubr.msk.f32.mxu1 %vm41919_vm1, %v48361_v10 }
 0x56f   : > { %v44380_v29 = vpop.f32.mrf.mxu0  ;;  %39964 = vmatprep.subr.mxu1 %v48361_v10 }
 0x571   : > { %v44383_v19 = vpop.f32.mrf.mxu0  ;;  %39962 = vmatmul.mubr.msk.f32.vlgmr.msra.gmra.mxu1 %vm13072_vm5, %v44317_v32 }
 0x572   : > { %39965 = vmatpush3.msra.mxu1 %v44343_v50  ;;  %39966 = vmatprep.mubr.msk.f32.mxu1 %vm41919_vm1, %v48361_v10 }
 0x573   : > { %v44390_v15 = vpop.f32.mrf.mxu0  ;;  %39969 = vmatprep.subr.mxu1 %v48361_v10 }
 0x575   : > { %v44393_v26 = vpop.f32.mrf.mxu0  ;;  %39967 = vmatmul.mubr.msk.f32.vlgmr.msra.gmra.mxu1 %vm13072_vm5, %v44317_v32 }
 0x576   : > { %39970 = vmatpush3.msra.mxu1 %v44360_v51  ;;  %40015 = vmatpush3.msra.mxu0 %v44393_v26 }
 0x577   : > { %v44399_v56 = vpop.f32.mrf.mxu0  ;;  %40017 = vmatmul.mubr.msk.f32.vlgmr.msra.gmra.mxu0 %vm13072_vm5, %v44317_v32  ;;  %39971 = vmatprep.mubr.msk.f32.mxu1 %vm41919_vm1, %v48361_v10 }
 0x578   : > { %39974 = vmatprep.subr.mxu1 %v48361_v10  ;;  %40024 = vmatprep.subr.mxu0 %v48361_v10 }
 0x579   : > { %v44407_v17 = vpop.f32.mrf.mxu0  ;;  %39972 = vmatmul.mubr.msk.f32.vlgmr.msra.gmra.mxu1 %vm13072_vm5, %v44317_v32  ;;  %40026 = vmatprep.mubr.msk.f32.mxu0 %vm41919_vm1, %v48361_v10 }
 0x57a   : > { %39975 = vmatpush3.msra.mxu1 %v44353_v13  ;;  %40025 = vmatpush3.msra.mxu0 %v44407_v17 }
 0x57b   : > { %v44415_v42 = vpop.f32.mrf.mxu0  ;;  %40027 = vmatmul.mubr.msk.f32.vlgmr.msra.gmra.mxu0 %vm13072_vm5, %v44317_v32  ;;  %39976 = vmatprep.mubr.msk.f32.mxu1 %vm41919_vm1, %v48361_v10 }
 0x57c   : > { %39979 = vmatprep.subr.mxu1 %v48361_v10  ;;  %40034 = vmatprep.subr.mxu0 %v48361_v10 }
 0x57d   : > { %v44423_v55 = vpop.f32.mrf.mxu0  ;;  %39977 = vmatmul.mubr.msk.f32.vlgmr.msra.gmra.mxu1 %vm13072_vm5, %v44317_v32  ;;  %40036 = vmatprep.mubr.msk.f32.mxu0 %vm41919_vm1, %v48361_v10 }
 0x57e   : > { %39980 = vmatpush3.msra.mxu1 %v44370_v16  ;;  %40035 = vmatpush3.msra.mxu0 %v44423_v55 }
 0x57f   : > { %v44431_v24 = vpop.f32.mrf.mxu0  ;;  %40037 = vmatmul.mubr.msk.f32.vlgmr.msra.gmra.mxu0 %vm13072_vm5, %v44317_v32  ;;  %39981 = vmatprep.mubr.msk.f32.mxu1 %vm41919_vm1, %v48361_v10 }
 0x580   : > { %39984 = vmatprep.subr.mxu1 %v48361_v10  ;;  %40044 = vmatprep.subr.mxu0 %v48361_v10 }
 0x581   : > { %v44439_v31 = vpop.f32.mrf.mxu0  ;;  %39982 = vmatmul.mubr.msk.f32.vlgmr.msra.gmra.mxu1 %vm13072_vm5, %v44317_v32  ;;  %40046 = vmatprep.mubr.msk.f32.mxu0 %vm41919_vm1, %v48361_v10 }
 0x582   : > { %39985 = vmatpush3.msra.mxu1 %v44363_v30  ;;  %40045 = vmatpush3.msra.mxu0 %v44439_v31 }
 0x583   : > { %v44447_v53 = vpop.f32.mrf.mxu0  ;;  %40047 = vmatmul.mubr.msk.f32.vlgmr.msra.gmra.mxu0 %vm13072_vm5, %v44317_v32  ;;  %39986 = vmatprep.mubr.msk.f32.mxu1 %vm41919_vm1, %v48361_v10 }
 0x584   : > { %39989 = vmatprep.subr.mxu1 %v48361_v10  ;;  %40054 = vmatprep.subr.mxu0 %v48361_v10 }
 0x585   : > { %v44455_v48 = vpop.f32.mrf.mxu0  ;;  %39987 = vmatmul.mubr.msk.f32.vlgmr.msra.gmra.mxu1 %vm13072_vm5, %v44317_v32  ;;  %40056 = vmatprep.mubr.msk.f32.mxu0 %vm41919_vm1, %v48361_v10 }
 0x586   : > { %39990 = vmatpush3.msra.mxu1 %v44380_v29  ;;  %40055 = vmatpush3.msra.mxu0 %v44455_v48 }
 0x587   : > { %v44463_v59 = vpop.f32.mrf.mxu0  ;;  %40057 = vmatmul.mubr.msk.f32.vlgmr.msra.gmra.mxu0 %vm13072_vm5, %v44317_v32  ;;  %39991 = vmatprep.mubr.msk.f32.mxu1 %vm41919_vm1, %v48361_v10 }
 0x588   : > { %39994 = vmatprep.subr.mxu1 %v48361_v10  ;;  %40064 = vmatprep.subr.mxu0 %v48361_v10 }
 0x589   : > { %v44471_v2 = vpop.f32.mrf.mxu0  ;;  %39992 = vmatmul.mubr.msk.f32.vlgmr.msra.gmra.mxu1 %vm13072_vm5, %v44317_v32  ;;  %40066 = vmatprep.mubr.msk.f32.mxu0 %vm41919_vm1, %v48361_v10 }
 0x58a   : > { %39995 = vmatpush3.msra.mxu1 %v44373_v36  ;;  %40065 = vmatpush3.msra.mxu0 %v44471_v2 }
 0x58b   : > { %v44479_v34 = vpop.f32.mrf.mxu0  ;;  %40067 = vmatmul.mubr.msk.f32.vlgmr.msra.gmra.mxu0 %vm13072_vm5, %v44317_v32  ;;  %39996 = vmatprep.mubr.msk.f32.mxu1 %vm41919_vm1, %v48361_v10 }
 0x58c   : > { %39999 = vmatprep.subr.mxu1 %v48361_v10  ;;  %40074 = vmatprep.subr.mxu0 %v48361_v10 }
 0x58d   : > { %v44487_v12 = vpop.f32.mrf.mxu0  ;;  %39997 = vmatmul.mubr.msk.f32.vlgmr.msra.gmra.mxu1 %vm13072_vm5, %v44317_v32  ;;  %40076 = vmatprep.mubr.msk.f32.mxu0 %vm41919_vm1, %v48361_v10 }
 0x58e   : > { %40000 = vmatpush3.msra.mxu1 %v44390_v15  ;;  %40075 = vmatpush3.msra.mxu0 %v44487_v12 }
 0x58f   : > { %v44495_v35 = vpop.f32.mrf.mxu0  ;;  %40077 = vmatmul.mubr.msk.f32.vlgmr.msra.gmra.mxu0 %vm13072_vm5, %v44317_v32  ;;  %40001 = vmatprep.mubr.msk.f32.mxu1 %vm41919_vm1, %v48361_v10 }
 0x590   : > { %40004 = vmatprep.subr.mxu1 %v48361_v10  ;;  %40084 = vmatprep.subr.mxu0 %v48361_v10 }
 0x591   : > { %v44503_v37 = vpop.f32.mrf.mxu0  ;;  %40002 = vmatmul.mubr.msk.f32.vlgmr.msra.gmra.mxu1 %vm13072_vm5, %v44317_v32  ;;  %40086 = vmatprep.mubr.msk.f32.mxu0 %vm41919_vm1, %v48361_v10 }
 0x592   : > { %40005 = vmatpush3.msra.mxu1 %v44383_v19  ;;  %40085 = vmatpush3.msra.mxu0 %v44503_v37 }
 0x593   : > { %40087 = vmatmul.mubr.msk.f32.vlgmr.msra.gmra.mxu0 %vm13072_vm5, %v44317_v32  ;;  %40094 = vmatprep.subr.mxu0 %v48361_v10  ;;  %v44603_v58 = vpop.f32.mrf.mxu0 }
 0x594   : > { %40006 = vmatprep.mubr.msk.f32.mxu1 %vm41919_vm1, %v48361_v10  ;;  %40009 = vmatprep.subr.mxu1 %v48361_v10 }
 0x595   : > { %40095 = vmatpush3.msra.mxu0 %v44319_v9  ;;  %40007 = vmatmul.mubr.msk.f32.vlgmr.msra.gmra.mxu1 %vm13072_vm5, %v44317_v32 }
 0x596   : > { %40010 = vmatpush3.msra.mxu1 %v44399_v56  ;;  %40096 = vmatprep.mubr.msk.f32.mxu0 %vm41919_vm1, %v48361_v10 }
 0x597   : > { %40104 = vmatprep.subr.mxu0 %v48361_v10  ;;  %40097 = vmatmul.mubr.msk.f32.vlgmr.msra.gmra.mxu0 %vm13072_vm5, %v44517_v7 }
 0x598   : > { %40105 = vmatpush3.msra.mxu0 %v44315_v25  ;;  %40011 = vmatprep.mubr.msk.f32.mxu1 %vm41919_vm1, %v48361_v10 }
 0x599   : > { %40019 = vmatprep.subr.mxu1 %v48361_v10  ;;  %40012 = vmatmul.mubr.msk.f32.vlgmr.msra.gmra.mxu1 %vm13072_vm5, %v44317_v32 }
 0x59a   : > { %40020 = vmatpush3.msra.mxu1 %v44415_v42  ;;  %40106 = vmatprep.mubr.msk.f32.mxu0 %vm41919_vm1, %v48361_v10 }
 0x59b   : > { %40114 = vmatprep.subr.mxu0 %v48361_v10  ;;  %40107 = vmatmul.mubr.msk.f32.vlgmr.msra.gmra.mxu0 %vm13072_vm5, %v44517_v7 }
 0x59c   : > { %40115 = vmatpush3.msra.mxu0 %v44330_v6  ;;  %40021 = vmatprep.mubr.msk.f32.mxu1 %vm41919_vm1, %v48361_v10 }
 0x59d   : > { %40029 = vmatprep.subr.mxu1 %v48361_v10  ;;  %40022 = vmatmul.mubr.msk.f32.vlgmr.msra.gmra.mxu1 %vm13072_vm5, %v44317_v32 }
 0x59e   : > { %40030 = vmatpush3.msra.mxu1 %v44431_v24  ;;  %40116 = vmatprep.mubr.msk.f32.mxu0 %vm41919_vm1, %v48361_v10 }
 0x59f   : > { %40124 = vmatprep.subr.mxu0 %v48361_v10  ;;  %40117 = vmatmul.mubr.msk.f32.vlgmr.msra.gmra.mxu0 %vm13072_vm5, %v44517_v7 }
 0x5a0   : > { %40125 = vmatpush3.msra.mxu0 %v44322_v47  ;;  %40031 = vmatprep.mubr.msk.f32.mxu1 %vm41919_vm1, %v48361_v10 }
 0x5a1   : > { %40039 = vmatprep.subr.mxu1 %v48361_v10  ;;  %40032 = vmatmul.mubr.msk.f32.vlgmr.msra.gmra.mxu1 %vm13072_vm5, %v44317_v32 }
 0x5a2   : > { %40040 = vmatpush3.msra.mxu1 %v44447_v53  ;;  %40126 = vmatprep.mubr.msk.f32.mxu0 %vm41919_vm1, %v48361_v10 }
 0x5a3   : > { %40134 = vmatprep.subr.mxu0 %v48361_v10  ;;  %40127 = vmatmul.mubr.msk.f32.vlgmr.msra.gmra.mxu0 %vm13072_vm5, %v44517_v7 }
 0x5a4   : > { %40135 = vmatpush3.msra.mxu0 %v44340_v44  ;;  %40041 = vmatprep.mubr.msk.f32.mxu1 %vm41919_vm1, %v48361_v10 }
 0x5a5   : > { %40049 = vmatprep.subr.mxu1 %v48361_v10  ;;  %40042 = vmatmul.mubr.msk.f32.vlgmr.msra.gmra.mxu1 %vm13072_vm5, %v44317_v32 }
 0x5a6   : > { %40050 = vmatpush3.msra.mxu1 %v44463_v59  ;;  %40136 = vmatprep.mubr.msk.f32.mxu0 %vm41919_vm1, %v48361_v10 }
 0x5a7   : > { %40144 = vmatprep.subr.mxu0 %v48361_v10  ;;  %40137 = vmatmul.mubr.msk.f32.vlgmr.msra.gmra.mxu0 %vm13072_vm5, %v44517_v7 }
 0x5a8   : > { %40145 = vmatpush3.msra.mxu0 %v44333_v40  ;;  %40051 = vmatprep.mubr.msk.f32.mxu1 %vm41919_vm1, %v48361_v10 }
 0x5a9   : > { %40059 = vmatprep.subr.mxu1 %v48361_v10  ;;  %40052 = vmatmul.mubr.msk.f32.vlgmr.msra.gmra.mxu1 %vm13072_vm5, %v44317_v32 }
 0x5aa   : > { %40060 = vmatpush3.msra.mxu1 %v44479_v34  ;;  %40146 = vmatprep.mubr.msk.f32.mxu0 %vm41919_vm1, %v48361_v10 }
 0x5ab   : > { %40154 = vmatprep.subr.mxu0 %v48361_v10  ;;  %40147 = vmatmul.mubr.msk.f32.vlgmr.msra.gmra.mxu0 %vm13072_vm5, %v44517_v7 }
 0x5ac   : > { %40155 = vmatpush3.msra.mxu0 %v44350_v11  ;;  %40061 = vmatprep.mubr.msk.f32.mxu1 %vm41919_vm1, %v48361_v10 }
 0x5ad   : > { %40069 = vmatprep.subr.mxu1 %v48361_v10  ;;  %40062 = vmatmul.mubr.msk.f32.vlgmr.msra.gmra.mxu1 %vm13072_vm5, %v44317_v32 }
 0x5ae   : > { %40070 = vmatpush3.msra.mxu1 %v44495_v35  ;;  %40156 = vmatprep.mubr.msk.f32.mxu0 %vm41919_vm1, %v48361_v10 }
 0x5af   : > { %40164 = vmatprep.subr.mxu0 %v48361_v10  ;;  %40157 = vmatmul.mubr.msk.f32.vlgmr.msra.gmra.mxu0 %vm13072_vm5, %v44517_v7 }
 0x5b0   : > { %40165 = vmatpush3.msra.mxu0 %v44343_v50  ;;  %40071 = vmatprep.mubr.msk.f32.mxu1 %vm41919_vm1, %v48361_v10 }
 0x5b1   : > { %40079 = vmatprep.subr.mxu1 %v48361_v10  ;;  %40072 = vmatmul.mubr.msk.f32.vlgmr.msra.gmra.mxu1 %vm13072_vm5, %v44317_v32 }
 0x5b2   : > { %40080 = vmatpush3.msra.mxu1 %v44603_v58  ;;  %40166 = vmatprep.mubr.msk.f32.mxu0 %vm41919_vm1, %v48361_v10 }
 0x5b3   : > { %40174 = vmatprep.subr.mxu0 %v48361_v10  ;;  %40167 = vmatmul.mubr.msk.f32.vlgmr.msra.gmra.mxu0 %vm13072_vm5, %v44517_v7 }
 0x5b4   : > { %40175 = vmatpush3.msra.mxu0 %v44360_v51  ;;  %40081 = vmatprep.mubr.msk.f32.mxu1 %vm41919_vm1, %v48361_v10 }
 0x5b5   : > { %40082 = vmatmul.mubr.msk.f32.vlgmr.msra.gmra.mxu1 %vm13072_vm5, %v44317_v32  ;;  %40089 = vmatprep.subr.mxu1 %v48361_v10  ;;  %v44905_v32 = vld [vmem:[#allocation7 + $0x30] sm:$0xff] }
 0x5b6   : > { %40176 = vmatprep.mubr.msk.f32.mxu0 %vm41919_vm1, %v48361_v10  ;;  %40184 = vmatprep.subr.mxu0 %v48361_v10 }
 0x5b7   : > { %40090 = vmatpush3.msra.mxu1 %v48361_v10  ;;  %40177 = vmatmul.mubr.msk.f32.vlgmr.msra.gmra.mxu0 %vm13072_vm5, %v44517_v7 }
 0x5b8   : > { %40185 = vmatpush3.msra.mxu0 %v44353_v13  ;;  %40091 = vmatprep.mubr.msk.f32.mxu1 %vm41919_vm1, %v48361_v10 }
 0x5b9   : > { %40099 = vmatprep.subr.mxu1 %v48361_v10  ;;  %40092 = vmatmul.mubr.msk.f32.vlgmr.msra.gmra.mxu1 %vm13072_vm5, %v44517_v7 }
 0x5ba   : > { %40100 = vmatpush3.msra.mxu1 %v44319_v9  ;;  %40186 = vmatprep.mubr.msk.f32.mxu0 %vm41919_vm1, %v48361_v10 }
 0x5bb   : > { %40194 = vmatprep.subr.mxu0 %v48361_v10  ;;  %40187 = vmatmul.mubr.msk.f32.vlgmr.msra.gmra.mxu0 %vm13072_vm5, %v44517_v7 }
 0x5bc   : > { %40195 = vmatpush3.msra.mxu0 %v44370_v16  ;;  %40101 = vmatprep.mubr.msk.f32.mxu1 %vm41919_vm1, %v48361_v10 }
 0x5bd   : > { %40109 = vmatprep.subr.mxu1 %v48361_v10  ;;  %40102 = vmatmul.mubr.msk.f32.vlgmr.msra.gmra.mxu1 %vm13072_vm5, %v44517_v7 }
 0x5be   : > { %40110 = vmatpush3.msra.mxu1 %v44315_v25  ;;  %40196 = vmatprep.mubr.msk.f32.mxu0 %vm41919_vm1, %v48361_v10 }
 0x5bf   : > { %40204 = vmatprep.subr.mxu0 %v48361_v10  ;;  %40197 = vmatmul.mubr.msk.f32.vlgmr.msra.gmra.mxu0 %vm13072_vm5, %v44517_v7 }
 0x5c0   : > { %40205 = vmatpush3.msra.mxu0 %v44363_v30  ;;  %40111 = vmatprep.mubr.msk.f32.mxu1 %vm41919_vm1, %v48361_v10 }
 0x5c1   : > { %40119 = vmatprep.subr.mxu1 %v48361_v10  ;;  %40112 = vmatmul.mubr.msk.f32.vlgmr.msra.gmra.mxu1 %vm13072_vm5, %v44517_v7 }
 0x5c2   : > { %40120 = vmatpush3.msra.mxu1 %v44330_v6  ;;  %40206 = vmatprep.mubr.msk.f32.mxu0 %vm41919_vm1, %v48361_v10 }
 0x5c3   : > { %40214 = vmatprep.subr.mxu0 %v48361_v10  ;;  %40207 = vmatmul.mubr.msk.f32.vlgmr.msra.gmra.mxu0 %vm13072_vm5, %v44517_v7 }
 0x5c4   : > { %40215 = vmatpush3.msra.mxu0 %v44380_v29  ;;  %40121 = vmatprep.mubr.msk.f32.mxu1 %vm41919_vm1, %v48361_v10 }
 0x5c5   : > { %40129 = vmatprep.subr.mxu1 %v48361_v10  ;;  %40122 = vmatmul.mubr.msk.f32.vlgmr.msra.gmra.mxu1 %vm13072_vm5, %v44517_v7 }
 0x5c6   : > { %40130 = vmatpush3.msra.mxu1 %v44322_v47  ;;  %40216 = vmatprep.mubr.msk.f32.mxu0 %vm41919_vm1, %v48361_v10 }
 0x5c7   : > { %40224 = vmatprep.subr.mxu0 %v48361_v10  ;;  %40217 = vmatmul.mubr.msk.f32.vlgmr.msra.gmra.mxu0 %vm13072_vm5, %v44517_v7 }
 0x5c8   : > { %40225 = vmatpush3.msra.mxu0 %v44373_v36  ;;  %40131 = vmatprep.mubr.msk.f32.mxu1 %vm41919_vm1, %v48361_v10 }
 0x5c9   : > { %40139 = vmatprep.subr.mxu1 %v48361_v10  ;;  %40132 = vmatmul.mubr.msk.f32.vlgmr.msra.gmra.mxu1 %vm13072_vm5, %v44517_v7 }
 0x5ca   : > { %40140 = vmatpush3.msra.mxu1 %v44340_v44  ;;  %40226 = vmatprep.mubr.msk.f32.mxu0 %vm41919_vm1, %v48361_v10 }
 0x5cb   : > { %40234 = vmatprep.subr.mxu0 %v48361_v10  ;;  %40227 = vmatmul.mubr.msk.f32.vlgmr.msra.gmra.mxu0 %vm13072_vm5, %v44517_v7 }
 0x5cc   : > { %40235 = vmatpush3.msra.mxu0 %v44390_v15  ;;  %40141 = vmatprep.mubr.msk.f32.mxu1 %vm41919_vm1, %v48361_v10 }
 0x5cd   : > { %40149 = vmatprep.subr.mxu1 %v48361_v10  ;;  %40142 = vmatmul.mubr.msk.f32.vlgmr.msra.gmra.mxu1 %vm13072_vm5, %v44517_v7 }
 0x5ce   : > { %40150 = vmatpush3.msra.mxu1 %v44333_v40  ;;  %40236 = vmatprep.mubr.msk.f32.mxu0 %vm41919_vm1, %v48361_v10 }
 0x5cf   : > { %40244 = vmatprep.subr.mxu0 %v48361_v10  ;;  %40237 = vmatmul.mubr.msk.f32.vlgmr.msra.gmra.mxu0 %vm13072_vm5, %v44517_v7 }
 0x5d0   : > { %40245 = vmatpush3.msra.mxu0 %v44383_v19  ;;  %40151 = vmatprep.mubr.msk.f32.mxu1 %vm41919_vm1, %v48361_v10 }
 0x5d1   : > { %40159 = vmatprep.subr.mxu1 %v48361_v10  ;;  %40152 = vmatmul.mubr.msk.f32.vlgmr.msra.gmra.mxu1 %vm13072_vm5, %v44517_v7 }
 0x5d2   : > { %40160 = vmatpush3.msra.mxu1 %v44350_v11  ;;  %40246 = vmatprep.mubr.msk.f32.mxu0 %vm41919_vm1, %v48361_v10 }
 0x5d3   : > { %40254 = vmatprep.subr.mxu0 %v48361_v10  ;;  %40247 = vmatmul.mubr.msk.f32.vlgmr.msra.gmra.mxu0 %vm13072_vm5, %v44517_v7 }
 0x5d4   : > { %40255 = vmatpush3.msra.mxu0 %v44399_v56  ;;  %40161 = vmatprep.mubr.msk.f32.mxu1 %vm41919_vm1, %v48361_v10 }
 0x5d5   : > { %40169 = vmatprep.subr.mxu1 %v48361_v10  ;;  %40162 = vmatmul.mubr.msk.f32.vlgmr.msra.gmra.mxu1 %vm13072_vm5, %v44517_v7 }
 0x5d6   : > { %40170 = vmatpush3.msra.mxu1 %v44343_v50  ;;  %40256 = vmatprep.mubr.msk.f32.mxu0 %vm41919_vm1, %v48361_v10 }
 0x5d7   : > { %40264 = vmatprep.subr.mxu0 %v48361_v10  ;;  %40257 = vmatmul.mubr.msk.f32.vlgmr.msra.gmra.mxu0 %vm13072_vm5, %v44517_v7 }
 0x5d8   : > { %40265 = vmatpush3.msra.mxu0 %v44393_v26  ;;  %40171 = vmatprep.mubr.msk.f32.mxu1 %vm41919_vm1, %v48361_v10 }
 0x5d9   : > { %40179 = vmatprep.subr.mxu1 %v48361_v10  ;;  %40172 = vmatmul.mubr.msk.f32.vlgmr.msra.gmra.mxu1 %vm13072_vm5, %v44517_v7 }
 0x5da   : > { %40180 = vmatpush3.msra.mxu1 %v44360_v51  ;;  %40266 = vmatprep.mubr.msk.f32.mxu0 %vm41919_vm1, %v48361_v10 }
 0x5db   : > { %40274 = vmatprep.subr.mxu0 %v48361_v10  ;;  %40267 = vmatmul.mubr.msk.f32.vlgmr.msra.gmra.mxu0 %vm13072_vm5, %v44517_v7 }
 0x5dc   : > { %40275 = vmatpush3.msra.mxu0 %v44415_v42  ;;  %40181 = vmatprep.mubr.msk.f32.mxu1 %vm41919_vm1, %v48361_v10 }
 0x5dd   : > { %40189 = vmatprep.subr.mxu1 %v48361_v10  ;;  %40182 = vmatmul.mubr.msk.f32.vlgmr.msra.gmra.mxu1 %vm13072_vm5, %v44517_v7 }
 0x5de   : > { %40190 = vmatpush3.msra.mxu1 %v44353_v13  ;;  %40276 = vmatprep.mubr.msk.f32.mxu0 %vm41919_vm1, %v48361_v10 }
 0x5df   : > { %40284 = vmatprep.subr.mxu0 %v48361_v10  ;;  %40277 = vmatmul.mubr.msk.f32.vlgmr.msra.gmra.mxu0 %vm13072_vm5, %v44517_v7 }
 0x5e0   : > { %40285 = vmatpush3.msra.mxu0 %v44407_v17  ;;  %40191 = vmatprep.mubr.msk.f32.mxu1 %vm41919_vm1, %v48361_v10 }
 0x5e1   : > { %40199 = vmatprep.subr.mxu1 %v48361_v10  ;;  %40192 = vmatmul.mubr.msk.f32.vlgmr.msra.gmra.mxu1 %vm13072_vm5, %v44517_v7 }
 0x5e2   : > { %40200 = vmatpush3.msra.mxu1 %v44370_v16  ;;  %40286 = vmatprep.mubr.msk.f32.mxu0 %vm41919_vm1, %v48361_v10 }
 0x5e3   : > { %40294 = vmatprep.subr.mxu0 %v48361_v10  ;;  %40287 = vmatmul.mubr.msk.f32.vlgmr.msra.gmra.mxu0 %vm13072_vm5, %v44517_v7 }
 0x5e4   : > { %40295 = vmatpush3.msra.mxu0 %v44431_v24  ;;  %40201 = vmatprep.mubr.msk.f32.mxu1 %vm41919_vm1, %v48361_v10 }
 0x5e5   : > { %40209 = vmatprep.subr.mxu1 %v48361_v10  ;;  %40202 = vmatmul.mubr.msk.f32.vlgmr.msra.gmra.mxu1 %vm13072_vm5, %v44517_v7 }
 0x5e6   : > { %40210 = vmatpush3.msra.mxu1 %v44363_v30  ;;  %40296 = vmatprep.mubr.msk.f32.mxu0 %vm41919_vm1, %v48361_v10 }
 0x5e7   : > { %40304 = vmatprep.subr.mxu0 %v48361_v10  ;;  %40297 = vmatmul.mubr.msk.f32.vlgmr.msra.gmra.mxu0 %vm13072_vm5, %v44517_v7 }
 0x5e8   : > { %40305 = vmatpush3.msra.mxu0 %v44423_v55  ;;  %40211 = vmatprep.mubr.msk.f32.mxu1 %vm41919_vm1, %v48361_v10 }
 0x5e9   : > { %40219 = vmatprep.subr.mxu1 %v48361_v10  ;;  %40212 = vmatmul.mubr.msk.f32.vlgmr.msra.gmra.mxu1 %vm13072_vm5, %v44517_v7 }
 0x5ea   : > { %40220 = vmatpush3.msra.mxu1 %v44380_v29  ;;  %40306 = vmatprep.mubr.msk.f32.mxu0 %vm41919_vm1, %v48361_v10 }
 0x5eb   : > { %40314 = vmatprep.subr.mxu0 %v48361_v10  ;;  %40307 = vmatmul.mubr.msk.f32.vlgmr.msra.gmra.mxu0 %vm13072_vm5, %v44517_v7 }
 0x5ec   : > { %40315 = vmatpush3.msra.mxu0 %v44447_v53  ;;  %40221 = vmatprep.mubr.msk.f32.mxu1 %vm41919_vm1, %v48361_v10 }
 0x5ed   : > { %40229 = vmatprep.subr.mxu1 %v48361_v10  ;;  %40222 = vmatmul.mubr.msk.f32.vlgmr.msra.gmra.mxu1 %vm13072_vm5, %v44517_v7 }
 0x5ee   : > { %40230 = vmatpush3.msra.mxu1 %v44373_v36  ;;  %40316 = vmatprep.mubr.msk.f32.mxu0 %vm41919_vm1, %v48361_v10 }
 0x5ef   : > { %40324 = vmatprep.subr.mxu0 %v48361_v10  ;;  %40317 = vmatmul.mubr.msk.f32.vlgmr.msra.gmra.mxu0 %vm13072_vm5, %v44517_v7 }
 0x5f0   : > { %40325 = vmatpush3.msra.mxu0 %v44439_v31  ;;  %40231 = vmatprep.mubr.msk.f32.mxu1 %vm41919_vm1, %v48361_v10 }
 0x5f1   : > { %40239 = vmatprep.subr.mxu1 %v48361_v10  ;;  %40232 = vmatmul.mubr.msk.f32.vlgmr.msra.gmra.mxu1 %vm13072_vm5, %v44517_v7 }
 0x5f2   : > { %40240 = vmatpush3.msra.mxu1 %v44390_v15  ;;  %40326 = vmatprep.mubr.msk.f32.mxu0 %vm41919_vm1, %v48361_v10 }
 0x5f3   : > { %40334 = vmatprep.subr.mxu0 %v48361_v10  ;;  %40327 = vmatmul.mubr.msk.f32.vlgmr.msra.gmra.mxu0 %vm13072_vm5, %v44517_v7 }
 0x5f4   : > { %40335 = vmatpush3.msra.mxu0 %v44463_v59  ;;  %40241 = vmatprep.mubr.msk.f32.mxu1 %vm41919_vm1, %v48361_v10 }
 0x5f5   : > { %40249 = vmatprep.subr.mxu1 %v48361_v10  ;;  %40242 = vmatmul.mubr.msk.f32.vlgmr.msra.gmra.mxu1 %vm13072_vm5, %v44517_v7 }
 0x5f6   : > { %40250 = vmatpush3.msra.mxu1 %v44383_v19  ;;  %40336 = vmatprep.mubr.msk.f32.mxu0 %vm41919_vm1, %v48361_v10 }
 0x5f7   : > { %40344 = vmatprep.subr.mxu0 %v48361_v10  ;;  %40337 = vmatmul.mubr.msk.f32.vlgmr.msra.gmra.mxu0 %vm13072_vm5, %v44517_v7 }
 0x5f8   : > { %40345 = vmatpush3.msra.mxu0 %v44455_v48  ;;  %40251 = vmatprep.mubr.msk.f32.mxu1 %vm41919_vm1, %v48361_v10 }
 0x5f9   : > { %40259 = vmatprep.subr.mxu1 %v48361_v10  ;;  %40252 = vmatmul.mubr.msk.f32.vlgmr.msra.gmra.mxu1 %vm13072_vm5, %v44517_v7 }
 0x5fa   : > { %40260 = vmatpush3.msra.mxu1 %v44399_v56  ;;  %40346 = vmatprep.mubr.msk.f32.mxu0 %vm41919_vm1, %v48361_v10 }
 0x5fb   : > { %40354 = vmatprep.subr.mxu0 %v48361_v10  ;;  %40347 = vmatmul.mubr.msk.f32.vlgmr.msra.gmra.mxu0 %vm13072_vm5, %v44517_v7 }
 0x5fc   : > { %40355 = vmatpush3.msra.mxu0 %v44479_v34  ;;  %40261 = vmatprep.mubr.msk.f32.mxu1 %vm41919_vm1, %v48361_v10 }
 0x5fd   : > { %40269 = vmatprep.subr.mxu1 %v48361_v10  ;;  %40262 = vmatmul.mubr.msk.f32.vlgmr.msra.gmra.mxu1 %vm13072_vm5, %v44517_v7 }
 0x5fe   : > { %40270 = vmatpush3.msra.mxu1 %v44393_v26  ;;  %40356 = vmatprep.mubr.msk.f32.mxu0 %vm41919_vm1, %v48361_v10 }
 0x5ff   : > { %40364 = vmatprep.subr.mxu0 %v48361_v10  ;;  %40357 = vmatmul.mubr.msk.f32.vlgmr.msra.gmra.mxu0 %vm13072_vm5, %v44517_v7 }
 0x600   : > { %40365 = vmatpush3.msra.mxu0 %v44471_v2  ;;  %40271 = vmatprep.mubr.msk.f32.mxu1 %vm41919_vm1, %v48361_v10 }
 0x601   : > { %40279 = vmatprep.subr.mxu1 %v48361_v10  ;;  %40272 = vmatmul.mubr.msk.f32.vlgmr.msra.gmra.mxu1 %vm13072_vm5, %v44517_v7 }
 0x602   : > { %40280 = vmatpush3.msra.mxu1 %v44415_v42  ;;  %40366 = vmatprep.mubr.msk.f32.mxu0 %vm41919_vm1, %v48361_v10 }
 0x603   : > { %40374 = vmatprep.subr.mxu0 %v48361_v10  ;;  %40367 = vmatmul.mubr.msk.f32.vlgmr.msra.gmra.mxu0 %vm13072_vm5, %v44517_v7 }
 0x604   : > { %40375 = vmatpush3.msra.mxu0 %v44495_v35  ;;  %40281 = vmatprep.mubr.msk.f32.mxu1 %vm41919_vm1, %v48361_v10 }
 0x605   : > { %40289 = vmatprep.subr.mxu1 %v48361_v10  ;;  %40282 = vmatmul.mubr.msk.f32.vlgmr.msra.gmra.mxu1 %vm13072_vm5, %v44517_v7 }
 0x606   : > { %40290 = vmatpush3.msra.mxu1 %v44407_v17  ;;  %40376 = vmatprep.mubr.msk.f32.mxu0 %vm41919_vm1, %v48361_v10 }
 0x607   : > { %40384 = vmatprep.subr.mxu0 %v48361_v10  ;;  %40377 = vmatmul.mubr.msk.f32.vlgmr.msra.gmra.mxu0 %vm13072_vm5, %v44517_v7 }
 0x608   : > { %40385 = vmatpush3.msra.mxu0 %v44487_v12  ;;  %40291 = vmatprep.mubr.msk.f32.mxu1 %vm41919_vm1, %v48361_v10 }
 0x609   : > { %40299 = vmatprep.subr.mxu1 %v48361_v10  ;;  %40292 = vmatmul.mubr.msk.f32.vlgmr.msra.gmra.mxu1 %vm13072_vm5, %v44517_v7 }
 0x60a   : > { %40300 = vmatpush3.msra.mxu1 %v44431_v24  ;;  %40386 = vmatprep.mubr.msk.f32.mxu0 %vm41919_vm1, %v48361_v10 }
 0x60b   : > { %40394 = vmatprep.subr.mxu0 %v48361_v10  ;;  %40387 = vmatmul.mubr.msk.f32.vlgmr.msra.gmra.mxu0 %vm13072_vm5, %v44517_v7 }
 0x60c   : > { %40395 = vmatpush3.msra.mxu0 %v44603_v58  ;;  %40301 = vmatprep.mubr.msk.f32.mxu1 %vm41919_vm1, %v48361_v10 }
 0x60d   : > { %40309 = vmatprep.subr.mxu1 %v48361_v10  ;;  %40302 = vmatmul.mubr.msk.f32.vlgmr.msra.gmra.mxu1 %vm13072_vm5, %v44517_v7 }
 0x60e   : > { %40310 = vmatpush3.msra.mxu1 %v44423_v55  ;;  %40396 = vmatprep.mubr.msk.f32.mxu0 %vm41919_vm1, %v48361_v10 }
 0x60f   : > { %40404 = vmatprep.subr.mxu0 %v48361_v10  ;;  %40397 = vmatmul.mubr.msk.f32.vlgmr.msra.gmra.mxu0 %vm13072_vm5, %v44517_v7 }
 0x610   : > { %40405 = vmatpush3.msra.mxu0 %v44503_v37  ;;  %40311 = vmatprep.mubr.msk.f32.mxu1 %vm41919_vm1, %v48361_v10 }
 0x611   : > { %40319 = vmatprep.subr.mxu1 %v48361_v10  ;;  %40312 = vmatmul.mubr.msk.f32.vlgmr.msra.gmra.mxu1 %vm13072_vm5, %v44517_v7 }
 0x612   : > { %40320 = vmatpush3.msra.mxu1 %v44447_v53  ;;  %40406 = vmatprep.mubr.msk.f32.mxu0 %vm41919_vm1, %v48361_v10 }
 0x613   : > { %40414 = vmatprep.subr.mxu0 %v48361_v10  ;;  %40407 = vmatmul.mubr.msk.f32.vlgmr.msra.gmra.mxu0 %vm13072_vm5, %v44517_v7 }
 0x614   : > { %40415 = vmatpush3.msra.mxu0 %v44315_v25  ;;  %40321 = vmatprep.mubr.msk.f32.mxu1 %vm41919_vm1, %v48361_v10 }
 0x615   : > { %40329 = vmatprep.subr.mxu1 %v48361_v10  ;;  %40322 = vmatmul.mubr.msk.f32.vlgmr.msra.gmra.mxu1 %vm13072_vm5, %v44517_v7 }
 0x616   : > { %40330 = vmatpush3.msra.mxu1 %v44439_v31  ;;  %40416 = vmatprep.mubr.msk.f32.mxu0 %vm41919_vm1, %v48361_v10 }
 0x617   : > { %40424 = vmatprep.subr.mxu0 %v48361_v10  ;;  %40417 = vmatmul.mubr.msk.f32.vlgmr.msra.gmra.mxu0 %vm13072_vm5, %v44905_v32 }
 0x618   : > { %40425 = vmatpush3.msra.mxu0 %v44322_v47  ;;  %40331 = vmatprep.mubr.msk.f32.mxu1 %vm41919_vm1, %v48361_v10 }
 0x619   : > { %40339 = vmatprep.subr.mxu1 %v48361_v10  ;;  %v44920_v25 = vpop.f32.mrf.mxu1  ;;  %40332 = vmatmul.mubr.msk.f32.vlgmr.msra.gmra.mxu1 %vm13072_vm5, %v44517_v7 }
 0x61a   : > { %40340 = vmatpush3.msra.mxu1 %v44463_v59  ;;  %40426 = vmatprep.mubr.msk.f32.mxu0 %vm41919_vm1, %v48361_v10 }
 0x61b   : > { %40434 = vmatprep.subr.mxu0 %v48361_v10  ;;  %v39933_v60 = vpop.f32.mrf.mxu1  ;;  %40427 = vmatmul.mubr.msk.f32.vlgmr.msra.gmra.mxu0 %vm13072_vm5, %v44905_v32 }
 0x61c   : > { %40435 = vmatpush3.msra.mxu0 %v44333_v40  ;;  %40341 = vmatprep.mubr.msk.f32.mxu1 %vm41919_vm1, %v48361_v10 }
 0x61d   : > { %40349 = vmatprep.subr.mxu1 %v48361_v10  ;;  %v44934_v47 = vpop.f32.mrf.mxu1  ;;  %40342 = vmatmul.mubr.msk.f32.vlgmr.msra.gmra.mxu1 %vm13072_vm5, %v44517_v7 }
 0x61e   : > { %40350 = vmatpush3.msra.mxu1 %v44455_v48  ;;  %40436 = vmatprep.mubr.msk.f32.mxu0 %vm41919_vm1, %v48361_v10 }
 0x61f   : > { %40444 = vmatprep.subr.mxu0 %v48361_v10  ;;  %v39938_v60 = vpop.f32.mrf.mxu1  ;;  %40437 = vmatmul.mubr.msk.f32.vlgmr.msra.gmra.mxu0 %vm13072_vm5, %v44905_v32 }
 0x620   : > { %40445 = vmatpush3.msra.mxu0 %v44343_v50  ;;  %40351 = vmatprep.mubr.msk.f32.mxu1 %vm41919_vm1, %v48361_v10 }
 0x621   : > { %40359 = vmatprep.subr.mxu1 %v48361_v10  ;;  %v44948_v40 = vpop.f32.mrf.mxu1  ;;  %40352 = vmatmul.mubr.msk.f32.vlgmr.msra.gmra.mxu1 %vm13072_vm5, %v44517_v7 }
 0x622   : > { %40360 = vmatpush3.msra.mxu1 %v44479_v34  ;;  %40446 = vmatprep.mubr.msk.f32.mxu0 %vm41919_vm1, %v48361_v10 }
 0x623   : > { %40454 = vmatprep.subr.mxu0 %v48361_v10  ;;  %v39943_v60 = vpop.f32.mrf.mxu1  ;;  %40447 = vmatmul.mubr.msk.f32.vlgmr.msra.gmra.mxu0 %vm13072_vm5, %v44905_v32 }
 0x624   : > { %40455 = vmatpush3.msra.mxu0 %v44353_v13  ;;  %40361 = vmatprep.mubr.msk.f32.mxu1 %vm41919_vm1, %v48361_v10 }
 0x625   : > { %40369 = vmatprep.subr.mxu1 %v48361_v10  ;;  %v44962_v50 = vpop.f32.mrf.mxu1  ;;  %40362 = vmatmul.mubr.msk.f32.vlgmr.msra.gmra.mxu1 %vm13072_vm5, %v44517_v7 }
 0x626   : > { %40370 = vmatpush3.msra.mxu1 %v44471_v2  ;;  %40456 = vmatprep.mubr.msk.f32.mxu0 %vm41919_vm1, %v48361_v10 }
 0x627   : > { %40464 = vmatprep.subr.mxu0 %v48361_v10  ;;  %v39948_v60 = vpop.f32.mrf.mxu1  ;;  %40457 = vmatmul.mubr.msk.f32.vlgmr.msra.gmra.mxu0 %vm13072_vm5, %v44905_v32 }
 0x628   : > { %40465 = vmatpush3.msra.mxu0 %v44363_v30  ;;  %40371 = vmatprep.mubr.msk.f32.mxu1 %vm41919_vm1, %v48361_v10 }
 0x629   : > { %40379 = vmatprep.subr.mxu1 %v48361_v10  ;;  %v44976_v13 = vpop.f32.mrf.mxu1  ;;  %40372 = vmatmul.mubr.msk.f32.vlgmr.msra.gmra.mxu1 %vm13072_vm5, %v44517_v7 }
 0x62a   : > { %40380 = vmatpush3.msra.mxu1 %v44495_v35  ;;  %40466 = vmatprep.mubr.msk.f32.mxu0 %vm41919_vm1, %v48361_v10 }
 0x62b   : > { %40474 = vmatprep.subr.mxu0 %v48361_v10  ;;  %v39953_v60 = vpop.f32.mrf.mxu1  ;;  %40467 = vmatmul.mubr.msk.f32.vlgmr.msra.gmra.mxu0 %vm13072_vm5, %v44905_v32 }
 0x62c   : > { %40475 = vmatpush3.msra.mxu0 %v44373_v36  ;;  %40381 = vmatprep.mubr.msk.f32.mxu1 %vm41919_vm1, %v48361_v10 }
 0x62d   : > { %40389 = vmatprep.subr.mxu1 %v48361_v10  ;;  %v44990_v30 = vpop.f32.mrf.mxu1  ;;  %40382 = vmatmul.mubr.msk.f32.vlgmr.msra.gmra.mxu1 %vm13072_vm5, %v44517_v7 }
 0x62e   : > { %40390 = vmatpush3.msra.mxu1 %v44487_v12  ;;  %40476 = vmatprep.mubr.msk.f32.mxu0 %vm41919_vm1, %v48361_v10 }
 0x62f   : > { %40484 = vmatprep.subr.mxu0 %v48361_v10  ;;  %v39958_v60 = vpop.f32.mrf.mxu1  ;;  %40477 = vmatmul.mubr.msk.f32.vlgmr.msra.gmra.mxu0 %vm13072_vm5, %v44905_v32 }
 0x630   : > { %40485 = vmatpush3.msra.mxu0 %v44383_v19  ;;  %40391 = vmatprep.mubr.msk.f32.mxu1 %vm41919_vm1, %v48361_v10 }
 0x631   : > { %40399 = vmatprep.subr.mxu1 %v48361_v10  ;;  %v45004_v36 = vpop.f32.mrf.mxu1  ;;  %40392 = vmatmul.mubr.msk.f32.vlgmr.msra.gmra.mxu1 %vm13072_vm5, %v44517_v7 }
 0x632   : > { %48438 = vst [vmem:[#allocation44_spill] sm:$0xff] %v45004_v36  ;;  %40400 = vmatpush3.msra.mxu1 %v44603_v58  ;;  %40486 = vmatprep.mubr.msk.f32.mxu0 %vm41919_vm1, %v48361_v10 }
 0x633   : > { %40494 = vmatprep.subr.mxu0 %v48361_v10  ;;  %v39963_v60 = vpop.f32.mrf.mxu1  ;;  %40487 = vmatmul.mubr.msk.f32.vlgmr.msra.gmra.mxu0 %vm13072_vm5, %v44905_v32 }
 0x634   : > { %40495 = vmatpush3.msra.mxu0 %v44393_v26  ;;  %40401 = vmatprep.mubr.msk.f32.mxu1 %vm41919_vm1, %v48361_v10 }
 0x635   : > { %40409 = vmatprep.subr.mxu1 %v48361_v10  ;;  %v45018_v19 = vpop.f32.mrf.mxu1  ;;  %40402 = vmatmul.mubr.msk.f32.vlgmr.msra.gmra.mxu1 %vm13072_vm5, %v44517_v7 }
 0x636   : > { %40410 = vmatpush3.msra.mxu1 %v44319_v9  ;;  %40496 = vmatprep.mubr.msk.f32.mxu0 %vm41919_vm1, %v48361_v10 }
 0x637   : > { %40504 = vmatprep.subr.mxu0 %v48361_v10  ;;  %v39968_v60 = vpop.f32.mrf.mxu1  ;;  %v45026_v36 = vpop.f32.mrf.mxu0  ;;  %40497 = vmatmul.mubr.msk.f32.vlgmr.msra.gmra.mxu0 %vm13072_vm5, %v44905_v32 }
 0x638   : > { %40505 = vmatpush3.msra.mxu0 %v44407_v17  ;;  %40411 = vmatprep.mubr.msk.f32.mxu1 %vm41919_vm1, %v48361_v10 }
 0x639   : > { %40419 = vmatprep.subr.mxu1 %v48361_v10  ;;  %v45034_v7 = vpop.f32.mrf.mxu1  ;;  %v40018_v9 = vpop.f32.mrf.mxu0  ;;  %40412 = vmatmul.mubr.msk.f32.vlgmr.msra.gmra.mxu1 %vm13072_vm5, %v44905_v32 }
 0x63a   : > { %40420 = vmatpush3.msra.mxu1 %v44330_v6  ;;  %40506 = vmatprep.mubr.msk.f32.mxu0 %vm41919_vm1, %v48361_v10 }
 0x63b   : > { %40514 = vmatprep.subr.mxu0 %v48361_v10  ;;  %v39973_v26 = vpop.f32.mrf.mxu1  ;;  %v45042_v17 = vpop.f32.mrf.mxu0  ;;  %40507 = vmatmul.mubr.msk.f32.vlgmr.msra.gmra.mxu0 %vm13072_vm5, %v44905_v32 }
 0x63c   : > { %40515 = vmatpush3.msra.mxu0 %v44423_v55  ;;  %40421 = vmatprep.mubr.msk.f32.mxu1 %vm41919_vm1, %v48361_v10 }
 0x63d   : > { %40429 = vmatprep.subr.mxu1 %v48361_v10  ;;  %v45050_v60 = vpop.f32.mrf.mxu1  ;;  %v40028_v6 = vpop.f32.mrf.mxu0  ;;  %40422 = vmatmul.mubr.msk.f32.vlgmr.msra.gmra.mxu1 %vm13072_vm5, %v44905_v32 }
 0x63e   : > { %40430 = vmatpush3.msra.mxu1 %v44340_v44  ;;  %40516 = vmatprep.mubr.msk.f32.mxu0 %vm41919_vm1, %v48361_v10 }
 0x63f   : > { %40524 = vmatprep.subr.mxu0 %v48361_v10  ;;  %v39978_v9 = vpop.f32.mrf.mxu1  ;;  %v45058_v55 = vpop.f32.mrf.mxu0  ;;  %40517 = vmatmul.mubr.msk.f32.vlgmr.msra.gmra.mxu0 %vm13072_vm5, %v44905_v32 }
 0x640   : > { %40525 = vmatpush3.msra.mxu0 %v44439_v31  ;;  %40431 = vmatprep.mubr.msk.f32.mxu1 %vm41919_vm1, %v48361_v10 }
 0x641   : > { %40439 = vmatprep.subr.mxu1 %v48361_v10  ;;  %v45066_v26 = vpop.f32.mrf.mxu1  ;;  %v40038_v44 = vpop.f32.mrf.mxu0  ;;  %40432 = vmatmul.mubr.msk.f32.vlgmr.msra.gmra.mxu1 %vm13072_vm5, %v44905_v32 }
 0x642   : > { %40440 = vmatpush3.msra.mxu1 %v44350_v11  ;;  %40526 = vmatprep.mubr.msk.f32.mxu0 %vm41919_vm1, %v48361_v10 }
 0x643   : > { %40534 = vmatprep.subr.mxu0 %v48361_v10  ;;  %v39983_v6 = vpop.f32.mrf.mxu1  ;;  %v45074_v31 = vpop.f32.mrf.mxu0  ;;  %40527 = vmatmul.mubr.msk.f32.vlgmr.msra.gmra.mxu0 %vm13072_vm5, %v44905_v32 }
 0x644   : > { %40535 = vmatpush3.msra.mxu0 %v44455_v48  ;;  %40441 = vmatprep.mubr.msk.f32.mxu1 %vm41919_vm1, %v48361_v10 }
 0x645   : > { %40449 = vmatprep.subr.mxu1 %v48361_v10  ;;  %v45082_v9 = vpop.f32.mrf.mxu1  ;;  %v40048_v11 = vpop.f32.mrf.mxu0  ;;  %40442 = vmatmul.mubr.msk.f32.vlgmr.msra.gmra.mxu1 %vm13072_vm5, %v44905_v32 }
 0x646   : > { %40450 = vmatpush3.msra.mxu1 %v44360_v51  ;;  %40536 = vmatprep.mubr.msk.f32.mxu0 %vm41919_vm1, %v48361_v10 }
 0x647   : > { %40544 = vmatprep.subr.mxu0 %v48361_v10  ;;  %v39988_v44 = vpop.f32.mrf.mxu1  ;;  %v45090_v48 = vpop.f32.mrf.mxu0  ;;  %40537 = vmatmul.mubr.msk.f32.vlgmr.msra.gmra.mxu0 %vm13072_vm5, %v44905_v32 }
 0x648   : > { %48439 = vst [vmem:[#allocation45_spill] sm:$0xff] %v45090_v48  ;;  %40545 = vmatpush3.msra.mxu0 %v44471_v2  ;;  %40451 = vmatprep.mubr.msk.f32.mxu1 %vm41919_vm1, %v48361_v10 }
 0x649   : > { %40459 = vmatprep.subr.mxu1 %v48361_v10  ;;  %v45098_v6 = vpop.f32.mrf.mxu1  ;;  %v40058_v51 = vpop.f32.mrf.mxu0  ;;  %40452 = vmatmul.mubr.msk.f32.vlgmr.msra.gmra.mxu1 %vm13072_vm5, %v44905_v32 }
 0x64a   : > { %40460 = vmatpush3.msra.mxu1 %v44370_v16  ;;  %40546 = vmatprep.mubr.msk.f32.mxu0 %vm41919_vm1, %v48361_v10 }
 0x64b   : > { %40554 = vmatprep.subr.mxu0 %v48361_v10  ;;  %v39993_v11 = vpop.f32.mrf.mxu1  ;;  %v45106_v2 = vpop.f32.mrf.mxu0  ;;  %40547 = vmatmul.mubr.msk.f32.vlgmr.msra.gmra.mxu0 %vm13072_vm5, %v44905_v32 }
 0x64c   : > { %48440 = vst [vmem:[#allocation46_spill] sm:$0xff] %v45106_v2  ;;  %40555 = vmatpush3.msra.mxu0 %v44487_v12  ;;  %40461 = vmatprep.mubr.msk.f32.mxu1 %vm41919_vm1, %v48361_v10  ;;  %v37608_v2 = vld [vmem:[%s48329_s4 + $0x28] sm:$0xff] }
 0x64d   : > { %40469 = vmatprep.subr.mxu1 %v48361_v10  ;;  %v45114_v44 = vpop.f32.mrf.mxu1  ;;  %v40068_v16 = vpop.f32.mrf.mxu0  ;;  %40462 = vmatmul.mubr.msk.f32.vlgmr.msra.gmra.mxu1 %vm13072_vm5, %v44905_v32 }
 0x64e   : > { %40470 = vmatpush3.msra.mxu1 %v44380_v29  ;;  %40556 = vmatprep.mubr.msk.f32.mxu0 %vm41919_vm1, %v48361_v10  ;;  %v37610_v29 = vld [vmem:[%s48329_s4 + $0x38] sm:$0xff] }
 0x64f   : > { %40564 = vmatprep.subr.mxu0 %v48361_v10  ;;  %v39998_v51 = vpop.f32.mrf.mxu1  ;;  %v45122_v12 = vpop.f32.mrf.mxu0  ;;  %40557 = vmatmul.mubr.msk.f32.vlgmr.msra.gmra.mxu0 %vm13072_vm5, %v44905_v32 }
 0x650   : > { %48441 = vst [vmem:[#allocation47_spill] sm:$0xff] %v45122_v12  ;;  %40565 = vmatpush3.msra.mxu0 %v44503_v37  ;;  %40471 = vmatprep.mubr.msk.f32.mxu1 %vm41919_vm1, %v48361_v10  ;;  %v37609_v37 = vld [vmem:[%s48329_s4 + $0x30] sm:$0xff] }
 0x651   : > { %40479 = vmatprep.subr.mxu1 %v48361_v10  ;;  %v45133_v11 = vpop.f32.mrf.mxu1  ;;  %v40078_v16 = vpop.f32.mrf.mxu0  ;;  %40472 = vmatmul.mubr.msk.f32.vlgmr.msra.gmra.mxu1 %vm13072_vm5, %v44905_v32 }
 0x652   : > { %40480 = vmatpush3.msra.mxu1 %v44390_v15  ;;  %40566 = vmatprep.mubr.msk.f32.mxu0 %vm41919_vm1, %v48361_v10 }
 0x653   : > { %40574 = vmatprep.subr.mxu0 %v37610_v29  ;;  %v40003_v51 = vpop.f32.mrf.mxu1  ;;  %v45143_v12 = vpop.f32.mrf.mxu0  ;;  %40567 = vmatmul.mubr.msk.f32.vlgmr.msra.gmra.mxu0 %vm13072_vm5, %v44905_v32 }
 0x654   : > { %48442 = vst [vmem:[#allocation48_spill] sm:$0xff] %v45143_v12  ;;  %40575 = vmatpush3.msra.mxu0 %v37610_v29  ;;  %40481 = vmatprep.mubr.msk.f32.mxu1 %vm41919_vm1, %v48361_v10 }
 0x655   : > { %40489 = vmatprep.subr.mxu1 %v48361_v10  ;;  %40576 = vmatprep.subr.mxu0 %v37609_v37  ;;  %v45150_v15 = vpop.f32.mrf.mxu1  ;;  %v40088_v16 = vpop.f32.mrf.mxu0 }
 0x656   : > { %40582 = vmatprep.mubr.msk.f32.mxu0 %vm12747_vm4, %v44090_v22  ;;  %40482 = vmatmul.mubr.msk.f32.vlgmr.msra.gmra.mxu1 %vm13072_vm5, %v44905_v32  ;;  %v37607_v16 = vld [vmem:[%s48329_s4 + $0x20] sm:$0xff] }
 0x657   : > { %40490 = vmatpush3.msra.mxu1 %v44399_v56  ;;  %40577 = vmatpush3.msra.mxu0 %v37609_v37  ;;  %v40008_v29 = vpop.f32.mrf.mxu1  ;;  %v45160_v51 = vpop.f32.mrf.mxu0 }
 0x658   : > { %40578 = vmatprep.subr.mxu0 %v37608_v2  ;;  %40491 = vmatprep.mubr.msk.f32.mxu1 %vm41919_vm1, %v48361_v10 }
 0x659   : > { %40579 = vmatpush3.msra.mxu0 %v37608_v2  ;;  %40499 = vmatprep.subr.mxu1 %v48361_v10  ;;  %v45168_v22 = vpop.f32.mrf.mxu1  ;;  %v40098_v12 = vpop.f32.mrf.mxu0 }
 0x65a   : > { %40580 = vmatprep.subr.mxu0 %v37607_v16  ;;  %40492 = vmatmul.mubr.msk.f32.vlgmr.msra.gmra.mxu1 %vm13072_vm5, %v44905_v32 }
 0x65b   : > { %40500 = vmatpush3.msra.mxu1 %v44415_v42  ;;  %40581 = vmatpush3.msra.mxu0 %v37607_v16  ;;  %v40013_v56 = vpop.f32.mrf.mxu1  ;;  %v45173_v37 = vpop.f32.mrf.mxu0 }
 0x65c   : > { %40583 = vmatmul.mubr.msk.f32.vlgmr.msra.gmra.mxu0 %vm12747_vm4, %v44092_v27  ;;  %40501 = vmatprep.mubr.msk.f32.mxu1 %vm41919_vm1, %v48361_v10 }
 0x65d   : > { %40585 = vmatprep.mubr.msk.f32.mxu0 %vm12747_vm4, %v44098_v41  ;;  %40509 = vmatprep.subr.mxu1 %v48361_v10  ;;  %v45182_v2 = vpop.f32.mrf.mxu1  ;;  %v40108_v12 = vpop.f32.mrf.mxu0 }
 0x65e   : > { %40502 = vmatmul.mubr.msk.f32.vlgmr.msra.gmra.mxu1 %vm13072_vm5, %v44905_v32  ;;  %40715 = vmatprep.subr.mxu0 %v48361_v10 }
 0x65f   : > { %40510 = vmatpush3.msra.mxu1 %v44431_v24  ;;  %v40023_v42 = vpop.f32.mrf.mxu1  ;;  %v45188_v29 = vpop.f32.mrf.mxu0  ;;  %40511 = vmatprep.mubr.msk.f32.mxu1 %vm41919_vm1, %v48361_v10 }
 0x660   : > { %40586 = vmatmul.mubr.msk.f32.gmra.mxu0 %vm12747_vm4, %v44106_v49  ;;  %40519 = vmatprep.subr.mxu1 %v48361_v10  ;;  %v48458_v49 = vld [vmem:[#allocation43_spill] sm:$0xff] }
 0x661   : > { %40588 = vmatprep.mubr.msk.f32.mxu0 %vm12747_vm4, %v44114_v43  ;;  %v45197_v16 = vpop.f32.mrf.mxu1  ;;  %v40118_v56 = vpop.f32.mrf.mxu0 }
 0x662   : > { %40512 = vmatmul.mubr.msk.f32.vlgmr.msra.gmra.mxu1 %vm13072_vm5, %v44905_v32 }
 0x663   : > { %40520 = vmatpush3.msra.mxu1 %v44447_v53  ;;  %v40033_v24 = vpop.f32.mrf.mxu1  ;;  %v45202_v12 = vpop.f32.mrf.mxu0  ;;  %40521 = vmatprep.mubr.msk.f32.mxu1 %vm41919_vm1, %v48361_v10 }
 0x664   : > { %40589 = vmatmul.mubr.msk.f32.gmra.mxu0 %vm12747_vm4, %v44124_v4  ;;  %40529 = vmatprep.subr.mxu1 %v48361_v10  ;;  %v48456_v4 = vld [vmem:[#allocation41_spill] sm:$0xff] }
 0x665   : > { %40591 = vmatprep.mubr.msk.f32.mxu0 %vm12747_vm4, %v44129_v63  ;;  %v45211_v42 = vpop.f32.mrf.mxu1  ;;  %v40128_v56 = vpop.f32.mrf.mxu0 }
 0x666   : > { %40522 = vmatmul.mubr.msk.f32.vlgmr.msra.gmra.mxu1 %vm13072_vm5, %v44905_v32 }
 0x667   : > { %40530 = vmatpush3.msra.mxu1 %v44463_v59  ;;  %v40043_v53 = vpop.f32.mrf.mxu1  ;;  %v45216_v24 = vpop.f32.mrf.mxu0  ;;  %40531 = vmatprep.mubr.msk.f32.mxu1 %vm41919_vm1, %v48361_v10 }
 0x668   : > { %40592 = vmatmul.mubr.msk.f32.gmra.mxu0 %vm12747_vm4, %v44141_v5  ;;  %40539 = vmatprep.subr.mxu1 %v48361_v10 }
 0x669   : > { %40594 = vmatprep.mubr.msk.f32.mxu0 %vm12747_vm4, %v44146_v8  ;;  %v45225_v56 = vpop.f32.mrf.mxu1  ;;  %v40138_v63 = vpop.f32.mrf.mxu0 }
 0x66a   : > { %48443 = vst [vmem:[#allocation49_spill] sm:$0xff] %v45225_v56  ;;  %40532 = vmatmul.mubr.msk.f32.vlgmr.msra.gmra.mxu1 %vm13072_vm5, %v44905_v32 }
 0x66b   : > { %40540 = vmatpush3.msra.mxu1 %v44479_v34  ;;  %v40053_v59 = vpop.f32.mrf.mxu1  ;;  %v45230_v53 = vpop.f32.mrf.mxu0  ;;  %40541 = vmatprep.mubr.msk.f32.mxu1 %vm41919_vm1, %v48361_v10 }
 0x66c   : > { %48444 = vst [vmem:[#allocation50_spill] sm:$0xff] %v45230_v53  ;;  %40595 = vmatmul.mubr.msk.f32.gmra.mxu0 %vm12747_vm4, %v44156_v57  ;;  %40549 = vmatprep.subr.mxu1 %v48361_v10 }
 0x66d   : > { %40597 = vmatprep.mubr.msk.f32.mxu0 %vm12747_vm4, %v44161_v62  ;;  %v45239_v63 = vpop.f32.mrf.mxu1  ;;  %v40148_v8 = vpop.f32.mrf.mxu0 }
 0x66e   : > { %48445 = vst [vmem:[#allocation51_spill] sm:$0xff] %v45239_v63  ;;  %40542 = vmatmul.mubr.msk.f32.vlgmr.msra.gmra.mxu1 %vm13072_vm5, %v44905_v32 }
 0x66f   : > { %40550 = vmatpush3.msra.mxu1 %v44495_v35  ;;  %v40063_v34 = vpop.f32.mrf.mxu1  ;;  %v45244_v59 = vpop.f32.mrf.mxu0  ;;  %40551 = vmatprep.mubr.msk.f32.mxu1 %vm41919_vm1, %v48361_v10 }
 0x670   : > { %40598 = vmatmul.mubr.msk.f32.gmra.mxu0 %vm12747_vm4, %v44173_v0  ;;  %40559 = vmatprep.subr.mxu1 %v48361_v10 }
 0x671   : > { %40600 = vmatprep.mubr.msk.f32.mxu0 %vm12747_vm4, %v44176_v54  ;;  %v45253_v8 = vpop.f32.mrf.mxu1  ;;  %v40158_v62 = vpop.f32.mrf.mxu0 }
 0x672   : > { %48446 = vst [vmem:[#allocation52_spill] sm:$0xff] %v45253_v8  ;;  %40552 = vmatmul.mubr.msk.f32.vlgmr.msra.gmra.mxu1 %vm13072_vm5, %v44905_v32 }
 0x673   : > { %40560 = vmatpush3.msra.mxu1 %v44603_v58  ;;  %v40073_v35 = vpop.f32.mrf.mxu1  ;;  %v45258_v34 = vpop.f32.mrf.mxu0  ;;  %40561 = vmatprep.mubr.msk.f32.mxu1 %vm41919_vm1, %v48361_v10 }
 0x674   : > { %48447 = vst [vmem:[#allocation53_spill] sm:$0xff] %v45258_v34  ;;  %40601 = vmatmul.mubr.msk.f32.gmra.mxu0 %vm12747_vm4, %v44186_v3  ;;  %40569 = vmatprep.subr.mxu1 %v48361_v10 }
 0x675   : > { %40603 = vmatprep.mubr.msk.f32.mxu0 %vm12747_vm4, %v44190_v1  ;;  %v45267_v62 = vpop.f32.mrf.mxu1  ;;  %v40168_v54 = vpop.f32.mrf.mxu0 }
 0x676   : > { %48448 = vst [vmem:[#allocation54_spill] sm:$0xff] %v45267_v62  ;;  %40562 = vmatmul.mubr.msk.f32.vlgmr.msra.gmra.mxu1 %vm13072_vm5, %v44905_v32 }
 0x677   : > { %v40083_v58 = vpop.f32.mrf.mxu1  ;;  %v45271_v35 = vpop.f32.mrf.mxu0  ;;  %40570 = vmatpush3.msra.mxu1 %v48361_v10  ;;  %40571 = vmatprep.mubr.msk.f32.mxu1 %vm41919_vm1, %v48361_v10 }
 0x678   : > { %40604 = vmatmul.mubr.msk.f32.gmra.mxu0 %vm12747_vm4, %v44205_v52  ;;  %40630 = vmatprep.subr.mxu1 %v48361_v10  ;;  %v45290_v52 = vld [vmem:[#allocation7 + $0x8] sm:$0xff] }
 0x679   : > { %40606 = vmatprep.mubr.msk.f32.mxu0 %vm12747_vm4, %v44208_v45  ;;  %v45281_v54 = vpop.f32.mrf.mxu1  ;;  %v40178_v1 = vpop.f32.mrf.mxu0  ;;  %48450 = vst [vmem:[#allocation56_spill] sm:$0xff] %v45290_v52 }
 0x67a   : > { %40572 = vmatmul.mubr.msk.f32.vlgmr.msra.gmra.mxu1 %vm13072_vm5, %v44905_v32 }
 0x67b   : > { %v40093_v58 = vpop.f32.mrf.mxu1  ;;  %v45285_v3 = vpop.f32.mrf.mxu0  ;;  %40631 = vmatpush3.msra.mxu1 %v48361_v10  ;;  %40632 = vmatprep.mubr.msk.f32.mxu1 %vm41919_vm1, %v48361_v10 }
 0x67c   : > { %48449 = vst [vmem:[#allocation55_spill] sm:$0xff] %v45285_v3  ;;  %40607 = vmatmul.mubr.msk.f32.gmra.mxu0 %vm12747_vm4, %v44218_v61  ;;  %40635 = vmatprep.subr.mxu1 %v48361_v10 }
 0x67d   : > { %40609 = vmatprep.mubr.msk.f32.mxu0 %vm12747_vm4, %v44222_v46  ;;  %v45297_v1 = vpop.f32.mrf.mxu1  ;;  %v40188_v32 = vpop.f32.mrf.mxu0 }
 0x67e   : > { %40633 = vmatmul.mubr.msk.f32.vlgmr.msra.gmra.mxu1 %vm13072_vm5, %v45290_v52 }
 0x67f   : > { %v40103_v58 = vpop.f32.mrf.mxu1  ;;  %v45301_v45 = vpop.f32.mrf.mxu0  ;;  %40637 = vmatprep.mubr.msk.f32.mxu1 %vm41919_vm1, %v48361_v10 }
 0x680   : > { %40610 = vmatmul.mubr.msk.f32.gmra.mxu0 %vm12747_vm4, %v44235_v14 }
 0x681   : > { %40612 = vmatprep.mubr.msk.f32.mxu0 %vm12747_vm4, %v44238_v28  ;;  %v45309_v61 = vpop.f32.mrf.mxu1  ;;  %v40198_v46 = vpop.f32.mrf.mxu0 }
 0x683   : > { %v40113_v0 = vpop.f32.mrf.mxu1  ;;  %v45311_v32 = vpop.f32.mrf.mxu0 }
 0x684   : > { %48451 = vst [vmem:[#allocation57_spill] sm:$0xff] %v45311_v32  ;;  %40613 = vmatmul.mubr.msk.f32.gmra.mxu0 %vm12747_vm4, %v44248_v38 }
 0x685   : > { %40615 = vmatprep.mubr.msk.f32.mxu0 %vm12747_vm4, %v44252_v20  ;;  %v45317_v58 = vpop.f32.mrf.mxu1  ;;  %v40208_v10 = vpop.f32.mrf.mxu0 }
 0x687   : > { %v40123_v57 = vpop.f32.mrf.mxu1  ;;  %v45319_v14 = vpop.f32.mrf.mxu0 }
 0x688   : > { %40616 = vmatmul.mubr.msk.f32.gmra.mxu0 %vm12747_vm4, %v44263_v23 }
 0x689   : > { %40618 = vmatprep.mubr.msk.f32.mxu0 %vm12747_vm4, %v44267_v33  ;;  %v45325_v0 = vpop.f32.mrf.mxu1  ;;  %v40218_v46 = vpop.f32.mrf.mxu0  ;;  %v48453_v33 = vld [vmem:[#allocation40_spill] sm:$0xff] }
 0x68b   : > { %v40133_v28 = vpop.f32.mrf.mxu1  ;;  %v45327_v38 = vpop.f32.mrf.mxu0 }
 0x68c   : > { %48452 = vst [vmem:[#allocation58_spill] sm:$0xff] %v45327_v38  ;;  %40619 = vmatmul.mubr.msk.f32.gmra.mxu0 %vm12747_vm4, %v44275_v18 }
 0x68d   : > { %40621 = vmatprep.mubr.msk.f32.mxu0 %vm12747_vm4, %v44279_v39  ;;  %v45333_v10 = vpop.f32.mrf.mxu1  ;;  %v40228_v57 = vpop.f32.mrf.mxu0  ;;  %v48457_v39 = vld [vmem:[#allocation42_spill] sm:$0xff] }
 0x68f   : > { %v40143_v20 = vpop.f32.mrf.mxu1  ;;  %v45335_v23 = vpop.f32.mrf.mxu0 }
 0x690   : > { %40622 = vmatmul.mubr.msk.f32.gmra.mxu0 %vm12747_vm4, %v44289_v21 }
 0x691   : > { %40624 = vmatprep.mubr.msk.f32.mxu0 %vm12747_vm4, %v48453_v33  ;;  %v45341_v28 = vpop.f32.mrf.mxu1  ;;  %v40238_v46 = vpop.f32.mrf.mxu0 }
 0x692   : > { %48454 = vst [vmem:[#allocation59_spill] sm:$0xff] %v45341_v28  ;;  %v48460_v46 = vmov 0.0  }
 0x693   : > { %v40153_v5 = vpop.f32.mrf.mxu1  ;;  %v45343_v18 = vpop.f32.mrf.mxu0 }
 0x694   : > { %48455 = vst [vmem:[#allocation60_spill] sm:$0xff] %v45343_v18  ;;  %40625 = vmatmul.mubr.msk.f32.gmra.mxu0 %vm12747_vm4, %v48456_v4 }
 0x695   : > { %40627 = vmatprep.mubr.msk.f32.mxu0 %vm12747_vm4, %v48457_v39  ;;  %v45349_v20 = vpop.f32.mrf.mxu1  ;;  %v40248_v57 = vpop.f32.mrf.mxu0 }
 0x697   : > { %v40163_v43 = vpop.f32.mrf.mxu1  ;;  %v45351_v21 = vpop.f32.mrf.mxu0 }
 0x698   : > { %40628 = vmatmul.mubr.msk.f32.gmra.mxu0 %vm12747_vm4, %v48458_v49 }
 0x699   : > { %v45355_v33 = vpop.f32.mrf.mxu1  ;;  %v40258_v5 = vpop.f32.mrf.mxu0  ;;  %40717 = vmatprep.mubr.msk.f32.mxu0 %vm41919_vm1, %v48460_v46 }
 0x69a   : > { %48459 = vst [vmem:[#allocation61_spill] sm:$0xff] %v45355_v33 }
 0x69b   : > { %v40173_v41 = vpop.f32.mrf.mxu1  ;;  %v45359_v4 = vpop.f32.mrf.mxu0 }
 0x69c   : > { %48461 = vst [vmem:[#allocation62_spill] sm:$0xff] %v45359_v4 }
 0x69d   : > { %v45361_v27 = vpop.f32.mrf.mxu1  ;;  %v40268_v39 = vpop.f32.mrf.mxu0 }
 0x69f   : > { %v40183_v52 = vpop.f32.mrf.mxu1  ;;  %v45363_v57 = vpop.f32.mrf.mxu0 }
 0x6a1   : > { %v45365_v43 = vpop.f32.mrf.mxu1  ;;  %v40278_v18 = vpop.f32.mrf.mxu0 }
 0x6a2   : > { %48462 = vst [vmem:[#allocation63_spill] sm:$0xff] %v45365_v43 }
 0x6a3   : > { %v40193_v38 = vpop.f32.mrf.mxu1  ;;  %v45367_v49 = vpop.f32.mrf.mxu0 }
 0x6a4   : > { %48463 = vst [vmem:[#allocation64_spill] sm:$0xff] %v45367_v49 }
 0x6a5   : > { %v45369_v62 = vpop.f32.mrf.mxu1  ;;  %v40288_v5 = vpop.f32.mrf.mxu0 }
 0x6a7   : > { %v40203_v32 = vpop.f32.mrf.mxu1  ;;  %v45371_v46 = vpop.f32.mrf.mxu0 }
 0x6a9   : > { %v45373_v41 = vpop.f32.mrf.mxu1  ;;  %v40298_v4 = vpop.f32.mrf.mxu0 }
 0x6aa   : > { %48464 = vst [vmem:[#allocation65_spill] sm:$0xff] %v45373_v41 }
 0x6ab   : > { %v40213_v8 = vpop.f32.mrf.mxu1  ;;  %v45375_v39 = vpop.f32.mrf.mxu0 }
 0x6ac   : > { %48465 = vst [vmem:[#allocation66_spill] sm:$0xff] %v45375_v39 }
 0x6ad   : > { %v45377_v52 = vpop.f32.mrf.mxu1  ;;  %v40308_v3 = vpop.f32.mrf.mxu0 }
 0x6af   : > { %v40223_v43 = vpop.f32.mrf.mxu1  ;;  %v45379_v18 = vpop.f32.mrf.mxu0 }
 0x6b1   : > { %v45381_v38 = vpop.f32.mrf.mxu1  ;;  %v40318_v49 = vpop.f32.mrf.mxu0 }
 0x6b2   : > { %48466 = vst [vmem:[#allocation67_spill] sm:$0xff] %v45381_v38 }
 0x6b3   : > { %v40233_v63 = vpop.f32.mrf.mxu1  ;;  %v45383_v5 = vpop.f32.mrf.mxu0 }
 0x6b4   : > { %48467 = vst [vmem:[#allocation68_spill] sm:$0xff] %v45383_v5 }
 0x6b5   : > { %v45385_v32 = vpop.f32.mrf.mxu1  ;;  %v40328_v33 = vpop.f32.mrf.mxu0 }
 0x6b7   : > { %v40243_v41 = vpop.f32.mrf.mxu1  ;;  %v45387_v4 = vpop.f32.mrf.mxu0 }
 0x6b8   : > { %48468 = vst [vmem:[#allocation69_spill] sm:$0xff] %v45387_v4 }
 0x6b9   : > { %v45389_v8 = vpop.f32.mrf.mxu1  ;;  %v40338_v39 = vpop.f32.mrf.mxu0 }
 0x6ba   : > { %48469 = vst [vmem:[#allocation70_spill] sm:$0xff] %v45389_v8 }
 0x6bb   : > { %v40253_v34 = vpop.f32.mrf.mxu1  ;;  %v45391_v3 = vpop.f32.mrf.mxu0 }
 0x6bc   : > { %48470 = vst [vmem:[#allocation71_spill] sm:$0xff] %v45391_v3 }
 0x6bd   : > { %v45393_v43 = vpop.f32.mrf.mxu1  ;;  %v40348_v48 = vpop.f32.mrf.mxu0 }
 0x6bf   : > { %v40263_v38 = vpop.f32.mrf.mxu1  ;;  %v45395_v49 = vpop.f32.mrf.mxu0 }
 0x6c0   : > { %48471 = vst [vmem:[#allocation72_spill] sm:$0xff] %v45395_v49 }
 0x6c1   : > { %v45397_v63 = vpop.f32.mrf.mxu1  ;;  %v40358_v5 = vpop.f32.mrf.mxu0 }
 0x6c2   : > { %48472 = vst [vmem:[#allocation73_spill] sm:$0xff] %v45397_v63 }
 0x6c3   : > { %v40273_v56 = vpop.f32.mrf.mxu1  ;;  %v45399_v33 = vpop.f32.mrf.mxu0 }
 0x6c4   : > { %48473 = vst [vmem:[#allocation74_spill] sm:$0xff] %v45399_v33 }
 0x6c5   : > { %v45401_v41 = vpop.f32.mrf.mxu1  ;;  %v40368_v4 = vpop.f32.mrf.mxu0 }
 0x6c7   : > { %v40283_v8 = vpop.f32.mrf.mxu1  ;;  %v45403_v39 = vpop.f32.mrf.mxu0 }
 0x6c8   : > { %48474 = vst [vmem:[#allocation75_spill] sm:$0xff] %v45403_v39 }
 0x6c9   : > { %v45405_v34 = vpop.f32.mrf.mxu1  ;;  %v40378_v3 = vpop.f32.mrf.mxu0 }
 0x6ca   : > { %48475 = vst [vmem:[#allocation76_spill] sm:$0xff] %v45405_v34  ;;  %v15526_v3 = vadd.f32 %v45297_v1, %v44934_v47 }
 0x6cb   : > { %v40293_v28 = vpop.f32.mrf.mxu1  ;;  %v45407_v48 = vpop.f32.mrf.mxu0 }
 0x6cc   : > { %48476 = vst [vmem:[#allocation77_spill] sm:$0xff] %v45407_v48  ;;  %v15456_v28 = vadd.f32 %v45160_v51, %v44920_v25 }
 0x6cd   : > { %v45409_v38 = vpop.f32.mrf.mxu1  ;;  %v40388_v49 = vpop.f32.mrf.mxu0 }
 0x6cf   : > { %v40303_v63 = vpop.f32.mrf.mxu1  ;;  %v45411_v5 = vpop.f32.mrf.mxu0 }
 0x6d0   : > { %48477 = vst [vmem:[#allocation78_spill] sm:$0xff] %v45411_v5 }
 0x6d1   : > { %v45413_v56 = vpop.f32.mrf.mxu1  ;;  %v40398_v33 = vpop.f32.mrf.mxu0 }
 0x6d2   : > { %48478 = vst [vmem:[#allocation79_spill] sm:$0xff] %v45413_v56  ;;  %v15736_v33 = vadd.f32 %v45188_v29, %v44948_v40 }
 0x6d3   : > { %v40313_v53 = vpop.f32.mrf.mxu1  ;;  %v45415_v4 = vpop.f32.mrf.mxu0 }
 0x6d4   : > { %48479 = vst [vmem:[#allocation80_spill] sm:$0xff] %v45415_v4 }
 0x6d5   : > { %v45417_v8 = vpop.f32.mrf.mxu1  ;;  %v40408_v39 = vpop.f32.mrf.mxu0 }
 0x6d6   : > { %v15806_v39 = vadd.f32 %v45317_v58, %v44962_v50 }
 0x6d7   : > { %v40323_v48 = vpop.f32.mrf.mxu1  ;;  %v19940_v49 = vpop.f32.mrf.mxu0 }
 0x6d8   : > { %v45423_v63 = vadd.f32 %v19940_v49, %v15456_v28  ;;  %v45425_v34 = vadd.f32 %v19940_v49, %v15526_v3  ;;  %v16016_v3 = vadd.f32 %v45216_v24, %v44976_v13  ;;  %v16086_v49 = vadd.f32 %v45333_v10, %v44990_v30 }
 0x6d9   : > { %v45427_v56 = vpop.f32.mrf.mxu1  ;;  %v40418_v53 = vpop.f32.mrf.mxu0 }
 0x6da   : > { %48480 = vst [vmem:[#allocation81_spill] sm:$0xff] %v45425_v34 }
 0x6db   : > { %v40333_v4 = vpop.f32.mrf.mxu1  ;;  %v20080_v51 = vpop.f32.mrf.mxu0 }
 0x6dc   : > { %v45433_v5 = vadd.f32 %v20080_v51, %v15736_v33  ;;  %v45435_v1 = vadd.f32 %v20080_v51, %v15806_v39  ;;  %v48484_v39 = vld [vmem:[#allocation44_spill] sm:$0xff] }
 0x6dd   : > { %v45437_v48 = vpop.f32.mrf.mxu1  ;;  %v40428_v28 = vpop.f32.mrf.mxu0  ;;  %v16296_v51 = vadd.f32 %v45244_v59, %v48484_v39 }
 0x6de   : > { %48481 = vst [vmem:[#allocation82_spill] sm:$0xff] %v45433_v5  ;;  %48482 = vst [vmem:[#allocation83_spill] sm:$0xff] %v45435_v1  ;;  %v16366_v28 = vadd.f32 %v45349_v20, %v45018_v19 }
 0x6df   : > { %v40343_v53 = vpop.f32.mrf.mxu1  ;;  %v20220_v29 = vpop.f32.mrf.mxu0 }
 0x6e0   : > { %v45443_v34 = vadd.f32 %v20220_v29, %v16016_v3  ;;  %v45445_v58 = vadd.f32 %v20220_v29, %v16086_v49  ;;  %v16576_v49 = vadd.f32 %v45271_v35, %v45034_v7  ;;  %v16646_v29 = vadd.f32 %v45361_v27, %v45050_v60 }
 0x6e1   : > { %v45447_v4 = vpop.f32.mrf.mxu1  ;;  %v40438_v33 = vpop.f32.mrf.mxu0 }
 0x6e2   : > { %48483 = vst [vmem:[#allocation84_spill] sm:$0xff] %v45445_v58 }
 0x6e3   : > { %v40353_v1 = vpop.f32.mrf.mxu1  ;;  %v20360_v24 = vpop.f32.mrf.mxu0 }
 0x6e4   : > { %v45453_v5 = vadd.f32 %v20360_v24, %v16296_v51  ;;  %v45455_v10 = vadd.f32 %v20360_v24, %v16366_v28  ;;  %v16856_v28 = vadd.f32 %v45301_v45, %v45066_v26  ;;  %v16926_v24 = vadd.f32 %v45369_v62, %v45082_v9 }
 0x6e5   : > { %v45457_v53 = vpop.f32.mrf.mxu1  ;;  %v40448_v3 = vpop.f32.mrf.mxu0  ;;  %v17486_v62 = vadd.f32 %v45385_v32, %v45150_v15  ;;  %v17696_v32 = vadd.f32 %v45351_v21, %v45168_v22  ;;  %v18046_v21 = vadd.f32 %v45401_v41, %v45042_v17  ;;  %v18326_v41 = vadd.f32 %v45409_v38, %v45058_v55 }
 0x6e6   : > { %48485 = vst [vmem:[#allocation44_spill] sm:$0xff] %v45455_v10  ;;  %v18536_v38 = vadd.f32 %v45379_v18, %v45211_v42 }
 0x6e7   : > { %v40363_v33 = vpop.f32.mrf.mxu1  ;;  %v20500_v59 = vpop.f32.mrf.mxu0 }
 0x6e8   : > { %v45463_v58 = vadd.f32 %v20500_v59, %v16576_v49  ;;  %v45465_v20 = vadd.f32 %v20500_v59, %v16646_v29  ;;  %v17136_v29 = vadd.f32 %v45319_v14, %v45098_v6  ;;  %v17206_v59 = vadd.f32 %v45377_v52, %v45114_v44 }
 0x6e9   : > { %v45467_v1 = vpop.f32.mrf.mxu1  ;;  %v40458_v51 = vpop.f32.mrf.mxu0 }
 0x6ea   : > { %48486 = vst [vmem:[#allocation85_spill] sm:$0xff] %v45465_v20 }
 0x6eb   : > { %v40373_v3 = vpop.f32.mrf.mxu1  ;;  %v20640_v35 = vpop.f32.mrf.mxu0 }
 0x6ec   : > { %v45473_v10 = vadd.f32 %v20640_v35, %v16856_v28  ;;  %v45475_v27 = vadd.f32 %v20640_v35, %v16926_v24 }
 0x6ed   : > { %v45477_v33 = vpop.f32.mrf.mxu1  ;;  %v40468_v49 = vpop.f32.mrf.mxu0 }
 0x6ee   : > { %48487 = vst [vmem:[#allocation86_spill] sm:$0xff] %v45473_v10  ;;  %48488 = vst [vmem:[#allocation87_spill] sm:$0xff] %v45475_v27  ;;  %v17416_v49 = vadd.f32 %v45335_v23, %v45133_v11  ;;  %v15386_v23 = vadd.f32 %v45281_v54, %v44920_v25  ;;  %v15666_v25 = vadd.f32 %v45309_v61, %v44948_v40 }
 0x6ef   : > { %v40383_v51 = vpop.f32.mrf.mxu1  ;;  %v20780_v45 = vpop.f32.mrf.mxu0  ;;  %v15876_v61 = vadd.f32 %v45202_v12, %v44962_v50  ;;  %v15946_v40 = vadd.f32 %v45325_v0, %v44976_v13  ;;  %v48493_v13 = vld [vmem:[#allocation50_spill] sm:$0xff] }
 0x6f0   : > { %v45485_v3 = vadd.f32 %v20780_v45, %v17136_v29  ;;  %v45487_v28 = vadd.f32 %v20780_v45, %v17206_v59  ;;  %v17766_v29 = vadd.f32 %v45393_v43, %v45026_v36  ;;  %v16156_v0 = vadd.f32 %v48493_v13, %v44990_v30 }
 0x6f1   : > { %v45489_v24 = vpop.f32.mrf.mxu1  ;;  %v40478_v35 = vpop.f32.mrf.mxu0 }
 0x6f2   : > { %48489 = vst [vmem:[#allocation88_spill] sm:$0xff] %v45485_v3  ;;  %48490 = vst [vmem:[#allocation89_spill] sm:$0xff] %v45487_v28  ;;  %v48506_v28 = vld [vmem:[#allocation46_spill] sm:$0xff]  ;;  %v48513_v3 = vld [vmem:[#allocation47_spill] sm:$0xff] }
 0x6f3   : > { %v40393_v27 = vpop.f32.mrf.mxu1  ;;  %v20920_v14 = vpop.f32.mrf.mxu0 }
 0x6f4   : > { %v45493_v10 = vadd.f32 %v20920_v14, %v17416_v49  ;;  %v45495_v52 = vadd.f32 %v20920_v14, %v17486_v62 }
 0x6f5   : > { %v45497_v51 = vpop.f32.mrf.mxu1  ;;  %v40488_v20 = vpop.f32.mrf.mxu0 }
 0x6f6   : > { %48491 = vst [vmem:[#allocation90_spill] sm:$0xff] %v45493_v10  ;;  %48492 = vst [vmem:[#allocation91_spill] sm:$0xff] %v45495_v52  ;;  %v17976_v20 = vadd.f32 %v45363_v57, %v45182_v2  ;;  %v15596_v52 = vadd.f32 %v45173_v37, %v44934_v47  ;;  %v18256_v57 = vadd.f32 %v45371_v46, %v45197_v16  ;;  %v48504_v10 = vld [vmem:[#allocation51_spill] sm:$0xff] }
 0x6f7   : > { %v40403_v59 = vpop.f32.mrf.mxu1  ;;  %v21060_v45 = vpop.f32.mrf.mxu0 }
 0x6f8   : > { %v45505_v27 = vadd.f32 %v21060_v45, %v17696_v32  ;;  %v45507_v35 = vadd.f32 %v21060_v45, %v17766_v29 }
 0x6f9   : > { %v19870_v62 = vpop.f32.mrf.mxu1  ;;  %v40498_v49 = vpop.f32.mrf.mxu0 }
 0x6fa   : > { %v45513_v14 = vadd.f32 %v19870_v62, %v15386_v23 }
 0x6fb   : > { %v40413_v43 = vpop.f32.mrf.mxu1  ;;  %v21200_v59 = vpop.f32.mrf.mxu0 }
 0x6fc   : > { %v45519_v54 = vadd.f32 %v21200_v59, %v17976_v20  ;;  %v45521_v32 = vadd.f32 %v21200_v59, %v18046_v21 }
 0x6fd   : > { %v20010_v29 = vpop.f32.mrf.mxu1  ;;  %v40508_v45 = vpop.f32.mrf.mxu0 }
 0x6fe   : > { %v45527_v23 = vadd.f32 %v20010_v29, %v15596_v52  ;;  %v45529_v62 = vadd.f32 %v20010_v29, %v15666_v25  ;;  %v18606_v52 = vadd.f32 %v45417_v8, %v45074_v31  ;;  %v48494_v25 = vld [vmem:[#allocation59_spill] sm:$0xff]  ;;  %v48498_v8 = vld [vmem:[#allocation69_spill] sm:$0xff] }
 0x6ff   : > { %v40423_v47 = vpop.f32.mrf.mxu1  ;;  %v21340_v37 = vpop.f32.mrf.mxu0  ;;  %v16226_v29 = vadd.f32 %v48494_v25, %v48484_v39  ;;  %v48500_v39 = vld [vmem:[#allocation53_spill] sm:$0xff] }
 0x700   : > { %v45535_v49 = vadd.f32 %v21340_v37, %v18256_v57  ;;  %v45537_v20 = vadd.f32 %v21340_v37, %v18326_v41  ;;  %v48497_v47 = vld [vmem:[#allocation49_spill] sm:$0xff] }
 0x701   : > { %v20150_v46 = vpop.f32.mrf.mxu1  ;;  %v40518_v21 = vpop.f32.mrf.mxu0  ;;  %v18816_v37 = vadd.f32 %v48498_v8, %v48497_v47 }
 0x702   : > { %v45543_v43 = vadd.f32 %v20150_v46, %v15876_v61  ;;  %v45545_v59 = vadd.f32 %v20150_v46, %v15946_v40  ;;  %v48499_v61 = vld [vmem:[#allocation45_spill] sm:$0xff] }
 0x703   : > { %v40433_v50 = vpop.f32.mrf.mxu1  ;;  %v21480_v12 = vpop.f32.mrf.mxu0  ;;  %v18886_v40 = vadd.f32 %v45437_v48, %v48499_v61  ;;  %v48505_v48 = vld [vmem:[#allocation72_spill] sm:$0xff] }
 0x704   : > { %v45551_v45 = vadd.f32 %v21480_v12, %v18536_v38  ;;  %v45553_v57 = vadd.f32 %v21480_v12, %v18606_v52  ;;  %v16436_v38 = vadd.f32 %v48500_v39, %v45018_v19  ;;  %v48501_v52 = vld [vmem:[#allocation61_spill] sm:$0xff] }
 0x705   : > { %v20290_v18 = vpop.f32.mrf.mxu1  ;;  %v40528_v41 = vpop.f32.mrf.mxu0  ;;  %v16506_v12 = vadd.f32 %v48501_v52, %v45034_v7  ;;  %v48507_v7 = vld [vmem:[#allocation55_spill] sm:$0xff] }
 0x706   : > { %48495 = vst [vmem:[#allocation50_spill] sm:$0xff] %v45551_v45  ;;  %48496 = vst [vmem:[#allocation59_spill] sm:$0xff] %v45553_v57  ;;  %v45559_v46 = vadd.f32 %v20290_v18, %v16156_v0  ;;  %v45561_v21 = vadd.f32 %v20290_v18, %v16226_v29  ;;  %v19096_v0 = vadd.f32 %v48505_v48, %v48504_v10  ;;  %v48519_v57 = vld [vmem:[#allocation48_spill] sm:$0xff] }
 0x707   : > { %v40443_v30 = vpop.f32.mrf.mxu1  ;;  %v21620_v50 = vpop.f32.mrf.mxu0  ;;  %v19166_v29 = vadd.f32 %v45457_v53, %v48506_v28  ;;  %v48512_v53 = vld [vmem:[#allocation75_spill] sm:$0xff] }
 0x708   : > { %v45567_v13 = vadd.f32 %v21620_v50, %v18816_v37  ;;  %v45569_v25 = vadd.f32 %v21620_v50, %v18886_v40  ;;  %v16716_v37 = vadd.f32 %v48507_v7, %v45050_v60  ;;  %v48508_v40 = vld [vmem:[#allocation63_spill] sm:$0xff] }
 0x709   : > { %v20430_v41 = vpop.f32.mrf.mxu1  ;;  %v40538_v8 = vpop.f32.mrf.mxu0  ;;  %v16786_v50 = vadd.f32 %v48508_v40, %v45066_v26  ;;  %v48514_v26 = vld [vmem:[#allocation57_spill] sm:$0xff] }
 0x70a   : > { %48502 = vst [vmem:[#allocation49_spill] sm:$0xff] %v45567_v13  ;;  %48503 = vst [vmem:[#allocation69_spill] sm:$0xff] %v45569_v25  ;;  %v45575_v18 = vadd.f32 %v20430_v41, %v16436_v38  ;;  %v45577_v30 = vadd.f32 %v20430_v41, %v16506_v12  ;;  %v48511_v13 = vld [vmem:[#allocation52_spill] sm:$0xff]  ;;  %v19446_v12 = vadd.f32 %v45477_v33, %v48513_v3  ;;  %v48518_v33 = vld [vmem:[#allocation78_spill] sm:$0xff] }
 0x70b   : > { %v40453_v19 = vpop.f32.mrf.mxu1  ;;  %v21760_v39 = vpop.f32.mrf.mxu0  ;;  %v19376_v38 = vadd.f32 %v48512_v53, %v48511_v13 }
 0x70c   : > { %v45583_v52 = vadd.f32 %v21760_v39, %v19096_v0  ;;  %v45585_v8 = vadd.f32 %v21760_v39, %v19166_v29  ;;  %v16996_v0 = vadd.f32 %v48514_v26, %v45082_v9  ;;  %v48515_v29 = vld [vmem:[#allocation65_spill] sm:$0xff] }
 0x70d   : > { %v20570_v48 = vpop.f32.mrf.mxu1  ;;  %v40548_v25 = vpop.f32.mrf.mxu0  ;;  %v17066_v39 = vadd.f32 %v48515_v29, %v45098_v6 }
 0x70e   : > { %48509 = vst [vmem:[#allocation45_spill] sm:$0xff] %v45583_v52  ;;  %48510 = vst [vmem:[#allocation53_spill] sm:$0xff] %v45585_v8  ;;  %v45591_v41 = vadd.f32 %v20570_v48, %v16716_v37  ;;  %v45593_v19 = vadd.f32 %v20570_v48, %v16786_v50  ;;  %v48517_v52 = vld [vmem:[#allocation54_spill] sm:$0xff]  ;;  %v19726_v50 = vadd.f32 %v45497_v51, %v48519_v57 }
 0x70f   : > { %v40463_v60 = vpop.f32.mrf.mxu1  ;;  %v21900_v7 = vpop.f32.mrf.mxu0  ;;  %v19656_v37 = vadd.f32 %v48518_v33, %v48517_v52 }
 0x710   : > { %v45599_v40 = vadd.f32 %v21900_v7, %v19376_v38  ;;  %v45601_v25 = vadd.f32 %v21900_v7, %v19446_v12  ;;  %v48521_v38 = vld [vmem:[#allocation58_spill] sm:$0xff] }
 0x711   : > { %v20710_v53 = vpop.f32.mrf.mxu1  ;;  %v40558_v8 = vpop.f32.mrf.mxu0  ;;  %v17276_v12 = vadd.f32 %v48521_v38, %v45114_v44 }
 0x712   : > { %48516 = vst [vmem:[#allocation61_spill] sm:$0xff] %v45601_v25  ;;  %v45607_v48 = vadd.f32 %v20710_v53, %v16996_v0  ;;  %v45609_v60 = vadd.f32 %v20710_v53, %v17066_v39  ;;  %v48522_v8 = vld [vmem:[#allocation67_spill] sm:$0xff]  ;;  %v48523_v39 = vld [vmem:[#allocation60_spill] sm:$0xff] }
 0x713   : > { %v40473_v9 = vpop.f32.mrf.mxu1  ;;  %v22040_v26 = vpop.f32.mrf.mxu0  ;;  %v17346_v7 = vadd.f32 %v48522_v8, %v45133_v11  ;;  %v17556_v53 = vadd.f32 %v48523_v39, %v45150_v15 }
 0x714   : > { %v45611_v45 = vadd.f32 %v22040_v26, %v19656_v37  ;;  %v45613_v6 = vadd.f32 %v22040_v26, %v19726_v50  ;;  %v48524_v37 = vld [vmem:[#allocation70_spill] sm:$0xff] }
 0x715   : > { %v40568_v29 = vpop.f32.mrf.mxu0  ;;  %v17626_v50 = vadd.f32 %v48524_v37, %v45168_v22  ;;  %v48530_v37 = vmov 0.0  }
 0x716   : > { %48520 = vst [vmem:[#allocation51_spill] sm:$0xff] %v45613_v6  ;;  %v20850_v33 = vpop.f32.mrf.mxu1  ;;  %v41759_v6 = vld [vmem:[#allocation7 + $0x8] sm:$0xff] }
 0x717   : > { %v45619_v25 = vadd.f32 %v20850_v33, %v17276_v12  ;;  %v45621_v51 = vadd.f32 %v20850_v33, %v17346_v7  ;;  %v48525_v12 = vld [vmem:[#allocation62_spill] sm:$0xff]  ;;  %v48526_v7 = vld [vmem:[#allocation73_spill] sm:$0xff] }
 0x718   : > { %v40483_v0 = vpop.f32.mrf.mxu1  ;;  %v17836_v8 = vadd.f32 %v48525_v12, %v45026_v36  ;;  %v17906_v29 = vadd.f32 %v48526_v7, %v45182_v2 }
 0x71a   : > { %v20990_v9 = vpop.f32.mrf.mxu1 }
 0x71b   : > { %v45627_v26 = vadd.f32 %v20990_v9, %v17556_v53  ;;  %v45629_v44 = vadd.f32 %v20990_v9, %v17626_v50  ;;  %v48529_v53 = vld [vmem:[#allocation56_spill] sm:$0xff] }
 0x71c   : > { %v45631_v38 = vpop.f32.mrf.mxu0  ;;  %v40493_v11 = vpop.f32.mrf.mxu1  ;;  %v48531_v50 = vld [vmem:[#allocation64_spill] sm:$0xff] }
 0x71d   : > { %v18116_v2 = vadd.f32 %v48531_v50, %v45042_v17  ;;  %v48532_v9 = vld [vmem:[#allocation76_spill] sm:$0xff]  ;;  %v48536_v50 = vld [vmem:[#allocation79_spill] sm:$0xff] }
 0x71e   : > { %v45637_v33 = vpop.f32.mrf.mxu0  ;;  %v21130_v15 = vpop.f32.mrf.mxu1  ;;  %v18186_v11 = vadd.f32 %v48532_v9, %v45197_v16  ;;  %v48535_v16 = vld [vmem:[#allocation66_spill] sm:$0xff]  ;;  %v18466_v9 = vadd.f32 %v48536_v50, %v45211_v42  ;;  %v48539_v42 = vld [vmem:[#allocation68_spill] sm:$0xff]  ;;  %v18746_v50 = vadd.f32 %v45427_v56, %v48497_v47  ;;  %v48542_v56 = vld [vmem:[#allocation71_spill] sm:$0xff] }
 0x71f   : > { %v45639_v0 = vadd.f32 %v21130_v15, %v17836_v8  ;;  %v45641_v22 = vadd.f32 %v21130_v15, %v17906_v29  ;;  %40636 = vmatpush3.msra.mxu1 %v45637_v33  ;;  %v18956_v47 = vadd.f32 %v48542_v56, %v48499_v61  ;;  %v19306_v56 = vadd.f32 %v45467_v1, %v48511_v13 }
 0x720   : > { %v45644_v39 = vpop.f32.mrf.mxu0  ;;  %40638 = vmatmul.mubr.msk.f32.vlgmr.msra.gmra.mxu1 %vm13072_vm5, %v48529_v53  ;;  %40640 = vmatprep.subr.mxu1 %v48530_v37  ;;  %v40503_v36 = vpop.f32.mrf.mxu1 }
 0x721   : > { %48527 = vst [vmem:[#allocation72_spill] sm:$0xff] %v45639_v0  ;;  %48528 = vst [vmem:[#allocation46_spill] sm:$0xff] %v45641_v22  ;;  %40641 = vmatpush3.msra.mxu1 %v45631_v38  ;;  %40642 = vmatprep.mubr.msk.f32.mxu1 %vm41919_vm1, %v48530_v37  ;;  %v18396_v36 = vadd.f32 %v48535_v16, %v45058_v55  ;;  %v18676_v16 = vadd.f32 %v48539_v42, %v45074_v31  ;;  %v45902_v0 = vld [vmem:[#allocation7 + $0x20] sm:$0xff] }
 0x722   : > { %v45656_v12 = vpop.f32.mrf.mxu0  ;;  %v21270_v8 = vpop.f32.mrf.mxu1  ;;  %40645 = vmatprep.subr.mxu1 %v48530_v37  ;;  %v19026_v42 = vadd.f32 %v45447_v4, %v48504_v10  ;;  %v48545_v10 = vld [vmem:[#allocation74_spill] sm:$0xff] }
 0x723   : > { %v45659_v7 = vadd.f32 %v21270_v8, %v18116_v2  ;;  %v45661_v29 = vadd.f32 %v21270_v8, %v18186_v11  ;;  %v19236_v61 = vadd.f32 %v48545_v10, %v48506_v28  ;;  %v48548_v28 = vld [vmem:[#allocation77_spill] sm:$0xff]  ;;  %v19586_v10 = vadd.f32 %v45489_v24, %v48517_v52  ;;  %v48551_v24 = vld [vmem:[#allocation80_spill] sm:$0xff] }
 0x724   : > { %v45663_v15 = vpop.f32.mrf.mxu0  ;;  %40643 = vmatmul.mubr.msk.f32.vlgmr.msra.gmra.mxu1 %vm13072_vm5, %v48529_v53  ;;  %v40513_v17 = vpop.f32.mrf.mxu1  ;;  %v19516_v13 = vadd.f32 %v48548_v28, %v48513_v3  ;;  %v19796_v52 = vadd.f32 %v48551_v24, %v48519_v57 }
 0x725   : > { %48533 = vst [vmem:[#allocation55_spill] sm:$0xff] %v45659_v7  ;;  %48534 = vst [vmem:[#allocation63_spill] sm:$0xff] %v45661_v29  ;;  %40646 = vmatpush3.msra.mxu1 %v45656_v12  ;;  %40647 = vmatprep.mubr.msk.f32.mxu1 %vm41919_vm1, %v48530_v37 }
 0x726   : > { %v45674_v2 = vpop.f32.mrf.mxu0  ;;  %v21410_v11 = vpop.f32.mrf.mxu1  ;;  %40650 = vmatprep.subr.mxu1 %v48530_v37 }
 0x727   : > { %v45677_v8 = vadd.f32 %v21410_v11, %v18396_v36  ;;  %v45679_v29 = vadd.f32 %v21410_v11, %v18466_v9 }
 0x728   : > { %v45681_v17 = vpop.f32.mrf.mxu0  ;;  %40648 = vmatmul.mubr.msk.f32.vlgmr.msra.gmra.mxu1 %vm13072_vm5, %v48529_v53  ;;  %v40523_v55 = vpop.f32.mrf.mxu1 }
 0x729   : > { %48537 = vst [vmem:[#allocation52_spill] sm:$0xff] %v45677_v8  ;;  %48538 = vst [vmem:[#allocation75_spill] sm:$0xff] %v45679_v29  ;;  %40651 = vmatpush3.msra.mxu1 %v45644_v39  ;;  %40652 = vmatprep.mubr.msk.f32.mxu1 %vm41919_vm1, %v48530_v37 }
 0x72a   : > { %v45692_v36 = vpop.f32.mrf.mxu0  ;;  %v21550_v9 = vpop.f32.mrf.mxu1  ;;  %40655 = vmatprep.subr.mxu1 %v48530_v37 }
 0x72b   : > { %v45695_v11 = vadd.f32 %v21550_v9, %v18676_v16  ;;  %v45697_v29 = vadd.f32 %v21550_v9, %v18746_v50 }
 0x72c   : > { %v45699_v55 = vpop.f32.mrf.mxu0  ;;  %40653 = vmatmul.mubr.msk.f32.vlgmr.msra.gmra.mxu1 %vm13072_vm5, %v48529_v53  ;;  %v40533_v31 = vpop.f32.mrf.mxu1 }
 0x72d   : > { %48540 = vst [vmem:[#allocation47_spill] sm:$0xff] %v45695_v11  ;;  %48541 = vst [vmem:[#allocation57_spill] sm:$0xff] %v45697_v29  ;;  %40656 = vmatpush3.msra.mxu1 %v45674_v2  ;;  %40657 = vmatprep.mubr.msk.f32.mxu1 %vm41919_vm1, %v48530_v37 }
 0x72e   : > { %v45710_v16 = vpop.f32.mrf.mxu0  ;;  %v21690_v50 = vpop.f32.mrf.mxu1  ;;  %40660 = vmatprep.subr.mxu1 %v48530_v37 }
 0x72f   : > { %v45713_v9 = vadd.f32 %v21690_v50, %v18956_v47  ;;  %v45715_v29 = vadd.f32 %v21690_v50, %v19026_v42 }
 0x730   : > { %v45717_v31 = vpop.f32.mrf.mxu0  ;;  %40658 = vmatmul.mubr.msk.f32.vlgmr.msra.gmra.mxu1 %vm13072_vm5, %v48529_v53  ;;  %v40543_v4 = vpop.f32.mrf.mxu1 }
 0x731   : > { %48543 = vst [vmem:[#allocation65_spill] sm:$0xff] %v45713_v9  ;;  %48544 = vst [vmem:[#allocation54_spill] sm:$0xff] %v45715_v29  ;;  %40661 = vmatpush3.msra.mxu1 %v45663_v15  ;;  %40662 = vmatprep.mubr.msk.f32.mxu1 %vm41919_vm1, %v48530_v37 }
 0x732   : > { %v45728_v47 = vpop.f32.mrf.mxu0  ;;  %v21830_v42 = vpop.f32.mrf.mxu1  ;;  %40665 = vmatprep.subr.mxu1 %v48530_v37 }
 0x733   : > { %v45731_v50 = vadd.f32 %v21830_v42, %v19236_v61  ;;  %v45733_v29 = vadd.f32 %v21830_v42, %v19306_v56 }
 0x734   : > { %v45735_v4 = vpop.f32.mrf.mxu0  ;;  %40663 = vmatmul.mubr.msk.f32.vlgmr.msra.gmra.mxu1 %vm13072_vm5, %v48529_v53  ;;  %v40553_v1 = vpop.f32.mrf.mxu1 }
 0x735   : > { %48546 = vst [vmem:[#allocation78_spill] sm:$0xff] %v45731_v50  ;;  %48547 = vst [vmem:[#allocation48_spill] sm:$0xff] %v45733_v29  ;;  %40666 = vmatpush3.msra.mxu1 %v45692_v36  ;;  %40667 = vmatprep.mubr.msk.f32.mxu1 %vm41919_vm1, %v48530_v37 }
 0x736   : > { %v45746_v61 = vpop.f32.mrf.mxu0  ;;  %v21970_v56 = vpop.f32.mrf.mxu1  ;;  %40670 = vmatprep.subr.mxu1 %v48530_v37 }
 0x737   : > { %v45749_v42 = vadd.f32 %v21970_v56, %v19516_v13  ;;  %v45751_v29 = vadd.f32 %v21970_v56, %v19586_v10 }
 0x738   : > { %v45753_v1 = vpop.f32.mrf.mxu0  ;;  %40668 = vmatmul.mubr.msk.f32.vlgmr.msra.gmra.mxu1 %vm13072_vm5, %v48529_v53  ;;  %v40563_v3 = vpop.f32.mrf.mxu1 }
 0x739   : > { %48549 = vst [vmem:[#allocation58_spill] sm:$0xff] %v45749_v42  ;;  %48550 = vst [vmem:[#allocation67_spill] sm:$0xff] %v45751_v29  ;;  %40671 = vmatpush3.msra.mxu1 %v45681_v17  ;;  %40672 = vmatprep.mubr.msk.f32.mxu1 %vm41919_vm1, %v48530_v37 }
 0x73a   : > { %v45762_v28 = vpop.f32.mrf.mxu0  ;;  %v22110_v13 = vpop.f32.mrf.mxu1  ;;  %40675 = vmatprep.subr.mxu1 %v48530_v37 }
 0x73b   : > { %v45765_v10 = vadd.f32 %v22110_v13, %v19796_v52 }
 0x73c   : > { %v45767_v56 = vpop.f32.mrf.mxu0  ;;  %40673 = vmatmul.mubr.msk.f32.vlgmr.msra.gmra.mxu1 %vm13072_vm5, %v48529_v53  ;;  %v40573_v3 = vpop.f32.mrf.mxu1 }
 0x73d   : > { %48552 = vst [vmem:[#allocation60_spill] sm:$0xff] %v45765_v10  ;;  %40676 = vmatpush3.msra.mxu1 %v45710_v16  ;;  %40677 = vmatprep.mubr.msk.f32.mxu1 %vm41919_vm1, %v48530_v37 }
 0x73e   : > { %v45774_v57 = vpop.f32.mrf.mxu0  ;;  %v22479_v24 = vpop.f32.mrf.mxu1  ;;  %40680 = vmatprep.subr.mxu1 %v48530_v37 }
 0x73f   : > { %v45778_v29 = vadd.f32 %v22479_v24, %v45513_v14  ;;  %40716 = vmatpush3.msra.mxu0 %v45774_v57 }
 0x740   : > { %v45781_v52 = vpop.f32.mrf.mxu0  ;;  %40678 = vmatmul.mubr.msk.f32.vlgmr.msra.gmra.mxu1 %vm13072_vm5, %v48529_v53  ;;  %40718 = vmatmul.mubr.msk.f32.vlgmr.msra.gmra.mxu0 %vm13072_vm5, %v48529_v53  ;;  %v40634_v13 = vpop.f32.mrf.mxu1 }
 0x741   : > { %48553 = vst [vmem:[#allocation70_spill] sm:$0xff] %v45778_v29  ;;  %40681 = vmatpush3.msra.mxu1 %v45699_v55  ;;  %40725 = vmatprep.subr.mxu0 %v48530_v37 }
 0x742   : > { %v45789_v3 = vpop.f32.mrf.mxu0  ;;  %40682 = vmatprep.mubr.msk.f32.mxu1 %vm41919_vm1, %v48530_v37  ;;  %40685 = vmatprep.subr.mxu1 %v48530_v37 }
 0x743   : > { %40726 = vmatpush3.msra.mxu0 %v45789_v3  ;;  %40727 = vmatprep.mubr.msk.f32.mxu0 %vm41919_vm1, %v48530_v37 }
 0x744   : > { %v45797_v14 = vpop.f32.mrf.mxu0  ;;  %40683 = vmatmul.mubr.msk.f32.vlgmr.msra.gmra.mxu1 %vm13072_vm5, %v48529_v53  ;;  %40728 = vmatmul.mubr.msk.f32.vlgmr.msra.gmra.mxu0 %vm13072_vm5, %v48529_v53 }
 0x745   : > { %40686 = vmatpush3.msra.mxu1 %v45728_v47  ;;  %40735 = vmatprep.subr.mxu0 %v48530_v37 }
 0x746   : > { %v45805_v24 = vpop.f32.mrf.mxu0  ;;  %40687 = vmatprep.mubr.msk.f32.mxu1 %vm41919_vm1, %v48530_v37  ;;  %40690 = vmatprep.subr.mxu1 %v48530_v37 }
 0x747   : > { %40736 = vmatpush3.msra.mxu0 %v45805_v24  ;;  %40737 = vmatprep.mubr.msk.f32.mxu0 %vm41919_vm1, %v48530_v37 }
 0x748   : > { %v45813_v13 = vpop.f32.mrf.mxu0  ;;  %40688 = vmatmul.mubr.msk.f32.vlgmr.msra.gmra.mxu1 %vm13072_vm5, %v48529_v53  ;;  %40738 = vmatmul.mubr.msk.f32.vlgmr.msra.gmra.mxu0 %vm13072_vm5, %v48529_v53 }
 0x749   : > { %40691 = vmatpush3.msra.mxu1 %v45717_v31  ;;  %40745 = vmatprep.subr.mxu0 %v48530_v37 }
 0x74a   : > { %v45821_v10 = vpop.f32.mrf.mxu0  ;;  %40692 = vmatprep.mubr.msk.f32.mxu1 %vm41919_vm1, %v48530_v37  ;;  %40695 = vmatprep.subr.mxu1 %v48530_v37 }
 0x74b   : > { %40746 = vmatpush3.msra.mxu0 %v45821_v10  ;;  %40747 = vmatprep.mubr.msk.f32.mxu0 %vm41919_vm1, %v48530_v37 }
 0x74c   : > { %v45829_v42 = vpop.f32.mrf.mxu0  ;;  %40693 = vmatmul.mubr.msk.f32.vlgmr.msra.gmra.mxu1 %vm13072_vm5, %v48529_v53  ;;  %40748 = vmatmul.mubr.msk.f32.vlgmr.msra.gmra.mxu0 %vm13072_vm5, %v48529_v53 }
 0x74d   : > { %40696 = vmatpush3.msra.mxu1 %v45746_v61  ;;  %40755 = vmatprep.subr.mxu0 %v48530_v37 }
 0x74e   : > { %v45837_v50 = vpop.f32.mrf.mxu0  ;;  %40697 = vmatprep.mubr.msk.f32.mxu1 %vm41919_vm1, %v48530_v37  ;;  %40700 = vmatprep.subr.mxu1 %v48530_v37 }
 0x74f   : > { %40756 = vmatpush3.msra.mxu0 %v45837_v50  ;;  %40757 = vmatprep.mubr.msk.f32.mxu0 %vm41919_vm1, %v48530_v37 }
 0x750   : > { %v45845_v9 = vpop.f32.mrf.mxu0  ;;  %40698 = vmatmul.mubr.msk.f32.vlgmr.msra.gmra.mxu1 %vm13072_vm5, %v48529_v53  ;;  %40758 = vmatmul.mubr.msk.f32.vlgmr.msra.gmra.mxu0 %vm13072_vm5, %v48529_v53 }
 0x751   : > { %40701 = vmatpush3.msra.mxu1 %v45735_v4  ;;  %40765 = vmatprep.subr.mxu0 %v48530_v37 }
 0x752   : > { %v45853_v11 = vpop.f32.mrf.mxu0  ;;  %40702 = vmatprep.mubr.msk.f32.mxu1 %vm41919_vm1, %v48530_v37  ;;  %40705 = vmatprep.subr.mxu1 %v48530_v37 }
 0x753   : > { %40766 = vmatpush3.msra.mxu0 %v45853_v11  ;;  %40767 = vmatprep.mubr.msk.f32.mxu0 %vm41919_vm1, %v48530_v37 }
 0x754   : > { %v45861_v8 = vpop.f32.mrf.mxu0  ;;  %40703 = vmatmul.mubr.msk.f32.vlgmr.msra.gmra.mxu1 %vm13072_vm5, %v48529_v53  ;;  %40768 = vmatmul.mubr.msk.f32.vlgmr.msra.gmra.mxu0 %vm13072_vm5, %v48529_v53 }
 0x755   : > { %40706 = vmatpush3.msra.mxu1 %v45762_v28  ;;  %40775 = vmatprep.subr.mxu0 %v48530_v37 }
 0x756   : > { %v45869_v7 = vpop.f32.mrf.mxu0  ;;  %40707 = vmatprep.mubr.msk.f32.mxu1 %vm41919_vm1, %v48530_v37  ;;  %40710 = vmatprep.subr.mxu1 %v48530_v37 }
 0x757   : > { %40776 = vmatpush3.msra.mxu0 %v45869_v7  ;;  %40777 = vmatprep.mubr.msk.f32.mxu0 %vm41919_vm1, %v48530_v37 }
 0x758   : > { %v45877_v29 = vpop.f32.mrf.mxu0  ;;  %40708 = vmatmul.mubr.msk.f32.vlgmr.msra.gmra.mxu1 %vm13072_vm5, %v48529_v53  ;;  %40778 = vmatmul.mubr.msk.f32.vlgmr.msra.gmra.mxu0 %vm13072_vm5, %v48529_v53 }
 0x759   : > { %40711 = vmatpush3.msra.mxu1 %v45753_v1  ;;  %40785 = vmatprep.subr.mxu0 %v48530_v37 }
 0x75a   : > { %v45885_v22 = vpop.f32.mrf.mxu0  ;;  %40712 = vmatprep.mubr.msk.f32.mxu1 %vm41919_vm1, %v48530_v37  ;;  %40720 = vmatprep.subr.mxu1 %v48530_v37 }
 0x75b   : > { %40786 = vmatpush3.msra.mxu0 %v45885_v22  ;;  %40787 = vmatprep.mubr.msk.f32.mxu0 %vm41919_vm1, %v48530_v37 }
 0x75c   : > { %40713 = vmatmul.mubr.msk.f32.vlgmr.msra.gmra.mxu1 %vm13072_vm5, %v48529_v53  ;;  %40788 = vmatmul.mubr.msk.f32.vlgmr.msra.gmra.mxu0 %vm13072_vm5, %v48529_v53 }
 0x75d   : > { %40721 = vmatpush3.msra.mxu1 %v45767_v56  ;;  %40795 = vmatprep.subr.mxu0 %v48530_v37 }
 0x75e   : > { %40796 = vmatpush3.msra.mxu0 %v45637_v33  ;;  %40722 = vmatprep.mubr.msk.f32.mxu1 %vm41919_vm1, %v48530_v37 }
 0x75f   : > { %40730 = vmatprep.subr.mxu1 %v48530_v37  ;;  %40797 = vmatprep.mubr.msk.f32.mxu0 %vm41919_vm1, %v48530_v37 }
 0x760   : > { %40805 = vmatprep.subr.mxu0 %v48530_v37  ;;  %40723 = vmatmul.mubr.msk.f32.vlgmr.msra.gmra.mxu1 %vm13072_vm5, %v48529_v53 }
 0x761   : > { %40731 = vmatpush3.msra.mxu1 %v45781_v52  ;;  %40798 = vmatmul.mubr.msk.f32.vlgmr.msra.gmra.mxu0 %vm13072_vm5, %v45902_v0 }
 0x762   : > { %40806 = vmatpush3.msra.mxu0 %v45656_v12  ;;  %40732 = vmatprep.mubr.msk.f32.mxu1 %vm41919_vm1, %v48530_v37 }
 0x763   : > { %40740 = vmatprep.subr.mxu1 %v48530_v37  ;;  %40807 = vmatprep.mubr.msk.f32.mxu0 %vm41919_vm1, %v48530_v37 }
 0x764   : > { %40815 = vmatprep.subr.mxu0 %v48530_v37  ;;  %40733 = vmatmul.mubr.msk.f32.vlgmr.msra.gmra.mxu1 %vm13072_vm5, %v48529_v53 }
 0x765   : > { %40741 = vmatpush3.msra.mxu1 %v45797_v14  ;;  %40808 = vmatmul.mubr.msk.f32.vlgmr.msra.gmra.mxu0 %vm13072_vm5, %v45902_v0 }
 0x766   : > { %40816 = vmatpush3.msra.mxu0 %v45674_v2  ;;  %40742 = vmatprep.mubr.msk.f32.mxu1 %vm41919_vm1, %v48530_v37 }
 0x767   : > { %40750 = vmatprep.subr.mxu1 %v48530_v37  ;;  %40817 = vmatprep.mubr.msk.f32.mxu0 %vm41919_vm1, %v48530_v37 }
 0x768   : > { %40825 = vmatprep.subr.mxu0 %v48530_v37  ;;  %40743 = vmatmul.mubr.msk.f32.vlgmr.msra.gmra.mxu1 %vm13072_vm5, %v48529_v53 }
 0x769   : > { %40751 = vmatpush3.msra.mxu1 %v45813_v13  ;;  %40818 = vmatmul.mubr.msk.f32.vlgmr.msra.gmra.mxu0 %vm13072_vm5, %v45902_v0 }
 0x76a   : > { %40826 = vmatpush3.msra.mxu0 %v45692_v36  ;;  %40752 = vmatprep.mubr.msk.f32.mxu1 %vm41919_vm1, %v48530_v37 }
 0x76b   : > { %40760 = vmatprep.subr.mxu1 %v48530_v37  ;;  %40827 = vmatprep.mubr.msk.f32.mxu0 %vm41919_vm1, %v48530_v37 }
 0x76c   : > { %40835 = vmatprep.subr.mxu0 %v48530_v37  ;;  %40753 = vmatmul.mubr.msk.f32.vlgmr.msra.gmra.mxu1 %vm13072_vm5, %v48529_v53 }
 0x76d   : > { %40761 = vmatpush3.msra.mxu1 %v45829_v42  ;;  %40828 = vmatmul.mubr.msk.f32.vlgmr.msra.gmra.mxu0 %vm13072_vm5, %v45902_v0 }
 0x76e   : > { %40836 = vmatpush3.msra.mxu0 %v45710_v16  ;;  %40762 = vmatprep.mubr.msk.f32.mxu1 %vm41919_vm1, %v48530_v37 }
 0x76f   : > { %40770 = vmatprep.subr.mxu1 %v48530_v37  ;;  %40837 = vmatprep.mubr.msk.f32.mxu0 %vm41919_vm1, %v48530_v37 }
 0x770   : > { %40845 = vmatprep.subr.mxu0 %v48530_v37  ;;  %40763 = vmatmul.mubr.msk.f32.vlgmr.msra.gmra.mxu1 %vm13072_vm5, %v48529_v53 }
 0x771   : > { %40771 = vmatpush3.msra.mxu1 %v45845_v9  ;;  %40838 = vmatmul.mubr.msk.f32.vlgmr.msra.gmra.mxu0 %vm13072_vm5, %v45902_v0 }
 0x772   : > { %40846 = vmatpush3.msra.mxu0 %v45728_v47  ;;  %40772 = vmatprep.mubr.msk.f32.mxu1 %vm41919_vm1, %v48530_v37 }
 0x773   : > { %40780 = vmatprep.subr.mxu1 %v48530_v37  ;;  %40847 = vmatprep.mubr.msk.f32.mxu0 %vm41919_vm1, %v48530_v37 }
 0x774   : > { %40855 = vmatprep.subr.mxu0 %v48530_v37  ;;  %40773 = vmatmul.mubr.msk.f32.vlgmr.msra.gmra.mxu1 %vm13072_vm5, %v48529_v53 }
 0x775   : > { %40781 = vmatpush3.msra.mxu1 %v45861_v8  ;;  %40848 = vmatmul.mubr.msk.f32.vlgmr.msra.gmra.mxu0 %vm13072_vm5, %v45902_v0 }
 0x776   : > { %40856 = vmatpush3.msra.mxu0 %v45746_v61  ;;  %40782 = vmatprep.mubr.msk.f32.mxu1 %vm41919_vm1, %v48530_v37 }
 0x777   : > { %40790 = vmatprep.subr.mxu1 %v48530_v37  ;;  %40857 = vmatprep.mubr.msk.f32.mxu0 %vm41919_vm1, %v48530_v37 }
 0x778   : > { %40865 = vmatprep.subr.mxu0 %v48530_v37  ;;  %40783 = vmatmul.mubr.msk.f32.vlgmr.msra.gmra.mxu1 %vm13072_vm5, %v48529_v53  ;;  %v46307_v53 = vld [vmem:[#allocation7 + $0x10] sm:$0xff] }
 0x779   : > { %40791 = vmatpush3.msra.mxu1 %v45877_v29  ;;  %40858 = vmatmul.mubr.msk.f32.vlgmr.msra.gmra.mxu0 %vm13072_vm5, %v45902_v0  ;;  %48555 = vst [vmem:[#allocation62_spill] sm:$0xff] %v46307_v53 }
 0x77a   : > { %40866 = vmatpush3.msra.mxu0 %v45762_v28  ;;  %40792 = vmatprep.mubr.msk.f32.mxu1 %vm41919_vm1, %v48530_v37 }
 0x77b   : > { %40800 = vmatprep.subr.mxu1 %v48530_v37  ;;  %40867 = vmatprep.mubr.msk.f32.mxu0 %vm41919_vm1, %v48530_v37 }
 0x77c   : > { %40875 = vmatprep.subr.mxu0 %v48530_v37  ;;  %40793 = vmatmul.mubr.msk.f32.vlgmr.msra.gmra.mxu1 %vm13072_vm5, %v41759_v6  ;;  %v46095_v6 = vld [vmem:[#allocation7 + $0x38] sm:$0xff] }
 0x77d   : > { %40801 = vmatpush3.msra.mxu1 %v45631_v38  ;;  %40868 = vmatmul.mubr.msk.f32.vlgmr.msra.gmra.mxu0 %vm13072_vm5, %v45902_v0 }
 0x77e   : > { %40876 = vmatpush3.msra.mxu0 %v45774_v57  ;;  %40802 = vmatprep.mubr.msk.f32.mxu1 %vm41919_vm1, %v48530_v37 }
 0x77f   : > { %40810 = vmatprep.subr.mxu1 %v48530_v37  ;;  %40877 = vmatprep.mubr.msk.f32.mxu0 %vm41919_vm1, %v48530_v37 }
 0x780   : > { %40885 = vmatprep.subr.mxu0 %v48530_v37  ;;  %40803 = vmatmul.mubr.msk.f32.vlgmr.msra.gmra.mxu1 %vm13072_vm5, %v45902_v0 }
 0x781   : > { %40811 = vmatpush3.msra.mxu1 %v45644_v39  ;;  %40878 = vmatmul.mubr.msk.f32.vlgmr.msra.gmra.mxu0 %vm13072_vm5, %v45902_v0 }
 0x782   : > { %40886 = vmatpush3.msra.mxu0 %v45789_v3  ;;  %40812 = vmatprep.mubr.msk.f32.mxu1 %vm41919_vm1, %v48530_v37 }
 0x783   : > { %40820 = vmatprep.subr.mxu1 %v48530_v37  ;;  %40887 = vmatprep.mubr.msk.f32.mxu0 %vm41919_vm1, %v48530_v37 }
 0x784   : > { %40895 = vmatprep.subr.mxu0 %v48530_v37  ;;  %40813 = vmatmul.mubr.msk.f32.vlgmr.msra.gmra.mxu1 %vm13072_vm5, %v45902_v0 }
 0x785   : > { %40821 = vmatpush3.msra.mxu1 %v45663_v15  ;;  %40888 = vmatmul.mubr.msk.f32.vlgmr.msra.gmra.mxu0 %vm13072_vm5, %v45902_v0 }
 0x786   : > { %40896 = vmatpush3.msra.mxu0 %v45805_v24  ;;  %40822 = vmatprep.mubr.msk.f32.mxu1 %vm41919_vm1, %v48530_v37 }
 0x787   : > { %40830 = vmatprep.subr.mxu1 %v48530_v37  ;;  %40897 = vmatprep.mubr.msk.f32.mxu0 %vm41919_vm1, %v48530_v37 }
 0x788   : > { %40905 = vmatprep.subr.mxu0 %v48530_v37  ;;  %40823 = vmatmul.mubr.msk.f32.vlgmr.msra.gmra.mxu1 %vm13072_vm5, %v45902_v0 }
 0x789   : > { %40831 = vmatpush3.msra.mxu1 %v45681_v17  ;;  %40898 = vmatmul.mubr.msk.f32.vlgmr.msra.gmra.mxu0 %vm13072_vm5, %v45902_v0 }
 0x78a   : > { %40906 = vmatpush3.msra.mxu0 %v45821_v10  ;;  %40832 = vmatprep.mubr.msk.f32.mxu1 %vm41919_vm1, %v48530_v37 }
 0x78b   : > { %40840 = vmatprep.subr.mxu1 %v48530_v37  ;;  %40907 = vmatprep.mubr.msk.f32.mxu0 %vm41919_vm1, %v48530_v37 }
 0x78c   : > { %40915 = vmatprep.subr.mxu0 %v48530_v37  ;;  %40833 = vmatmul.mubr.msk.f32.vlgmr.msra.gmra.mxu1 %vm13072_vm5, %v45902_v0 }
 0x78d   : > { %40841 = vmatpush3.msra.mxu1 %v45699_v55  ;;  %40908 = vmatmul.mubr.msk.f32.vlgmr.msra.gmra.mxu0 %vm13072_vm5, %v45902_v0 }
 0x78e   : > { %40916 = vmatpush3.msra.mxu0 %v45837_v50  ;;  %40842 = vmatprep.mubr.msk.f32.mxu1 %vm41919_vm1, %v48530_v37 }
 0x78f   : > { %40850 = vmatprep.subr.mxu1 %v48530_v37  ;;  %40917 = vmatprep.mubr.msk.f32.mxu0 %vm41919_vm1, %v48530_v37 }
 0x790   : > { %40925 = vmatprep.subr.mxu0 %v48530_v37  ;;  %40843 = vmatmul.mubr.msk.f32.vlgmr.msra.gmra.mxu1 %vm13072_vm5, %v45902_v0 }
 0x791   : > { %40851 = vmatpush3.msra.mxu1 %v45717_v31  ;;  %40918 = vmatmul.mubr.msk.f32.vlgmr.msra.gmra.mxu0 %vm13072_vm5, %v45902_v0 }
 0x792   : > { %40926 = vmatpush3.msra.mxu0 %v45853_v11  ;;  %40852 = vmatprep.mubr.msk.f32.mxu1 %vm41919_vm1, %v48530_v37 }
 0x793   : > { %40860 = vmatprep.subr.mxu1 %v48530_v37  ;;  %40927 = vmatprep.mubr.msk.f32.mxu0 %vm41919_vm1, %v48530_v37 }
 0x794   : > { %40935 = vmatprep.subr.mxu0 %v48530_v37  ;;  %40853 = vmatmul.mubr.msk.f32.vlgmr.msra.gmra.mxu1 %vm13072_vm5, %v45902_v0 }
 0x795   : > { %40861 = vmatpush3.msra.mxu1 %v45735_v4  ;;  %40928 = vmatmul.mubr.msk.f32.vlgmr.msra.gmra.mxu0 %vm13072_vm5, %v45902_v0 }
 0x796   : > { %40936 = vmatpush3.msra.mxu0 %v45869_v7  ;;  %40862 = vmatprep.mubr.msk.f32.mxu1 %vm41919_vm1, %v48530_v37 }
 0x797   : > { %40870 = vmatprep.subr.mxu1 %v48530_v37  ;;  %40937 = vmatprep.mubr.msk.f32.mxu0 %vm41919_vm1, %v48530_v37 }
 0x798   : > { %40945 = vmatprep.subr.mxu0 %v48530_v37  ;;  %40863 = vmatmul.mubr.msk.f32.vlgmr.msra.gmra.mxu1 %vm13072_vm5, %v45902_v0 }
 0x799   : > { %40871 = vmatpush3.msra.mxu1 %v45753_v1  ;;  %40938 = vmatmul.mubr.msk.f32.vlgmr.msra.gmra.mxu0 %vm13072_vm5, %v45902_v0 }
 0x79a   : > { %40946 = vmatpush3.msra.mxu0 %v45885_v22  ;;  %40872 = vmatprep.mubr.msk.f32.mxu1 %vm41919_vm1, %v48530_v37 }
 0x79b   : > { %40880 = vmatprep.subr.mxu1 %v48530_v37  ;;  %40947 = vmatprep.mubr.msk.f32.mxu0 %vm41919_vm1, %v48530_v37 }
 0x79c   : > { %40955 = vmatprep.subr.mxu0 %v48530_v37  ;;  %40873 = vmatmul.mubr.msk.f32.vlgmr.msra.gmra.mxu1 %vm13072_vm5, %v45902_v0 }
 0x79d   : > { %40881 = vmatpush3.msra.mxu1 %v45767_v56  ;;  %40948 = vmatmul.mubr.msk.f32.vlgmr.msra.gmra.mxu0 %vm13072_vm5, %v45902_v0 }
 0x79e   : > { %40956 = vmatpush3.msra.mxu0 %v45637_v33  ;;  %40882 = vmatprep.mubr.msk.f32.mxu1 %vm41919_vm1, %v48530_v37 }
 0x79f   : > { %40890 = vmatprep.subr.mxu1 %v48530_v37  ;;  %40957 = vmatprep.mubr.msk.f32.mxu0 %vm41919_vm1, %v48530_v37 }
 0x7a0   : > { %40965 = vmatprep.subr.mxu0 %v48530_v37  ;;  %40883 = vmatmul.mubr.msk.f32.vlgmr.msra.gmra.mxu1 %vm13072_vm5, %v45902_v0 }
 0x7a1   : > { %40891 = vmatpush3.msra.mxu1 %v45781_v52  ;;  %40958 = vmatmul.mubr.msk.f32.vlgmr.msra.gmra.mxu0 %vm13072_vm5, %v46095_v6 }
 0x7a2   : > { %40966 = vmatpush3.msra.mxu0 %v45656_v12  ;;  %40892 = vmatprep.mubr.msk.f32.mxu1 %vm41919_vm1, %v48530_v37 }
 0x7a3   : > { %40900 = vmatprep.subr.mxu1 %v48530_v37  ;;  %40967 = vmatprep.mubr.msk.f32.mxu0 %vm41919_vm1, %v48530_v37 }
 0x7a4   : > { %40975 = vmatprep.subr.mxu0 %v48530_v37  ;;  %40893 = vmatmul.mubr.msk.f32.vlgmr.msra.gmra.mxu1 %vm13072_vm5, %v45902_v0 }
 0x7a5   : > { %40901 = vmatpush3.msra.mxu1 %v45797_v14  ;;  %40968 = vmatmul.mubr.msk.f32.vlgmr.msra.gmra.mxu0 %vm13072_vm5, %v46095_v6 }
 0x7a6   : > { %40976 = vmatpush3.msra.mxu0 %v45674_v2  ;;  %40902 = vmatprep.mubr.msk.f32.mxu1 %vm41919_vm1, %v48530_v37 }
 0x7a7   : > { %40910 = vmatprep.subr.mxu1 %v48530_v37  ;;  %40977 = vmatprep.mubr.msk.f32.mxu0 %vm41919_vm1, %v48530_v37 }
 0x7a8   : > { %40985 = vmatprep.subr.mxu0 %v48530_v37  ;;  %40903 = vmatmul.mubr.msk.f32.vlgmr.msra.gmra.mxu1 %vm13072_vm5, %v45902_v0 }
 0x7a9   : > { %40911 = vmatpush3.msra.mxu1 %v45813_v13  ;;  %40978 = vmatmul.mubr.msk.f32.vlgmr.msra.gmra.mxu0 %vm13072_vm5, %v46095_v6 }
 0x7aa   : > { %40986 = vmatpush3.msra.mxu0 %v45692_v36  ;;  %40912 = vmatprep.mubr.msk.f32.mxu1 %vm41919_vm1, %v48530_v37 }
 0x7ab   : > { %40920 = vmatprep.subr.mxu1 %v48530_v37  ;;  %40987 = vmatprep.mubr.msk.f32.mxu0 %vm41919_vm1, %v48530_v37 }
 0x7ac   : > { %40995 = vmatprep.subr.mxu0 %v48530_v37  ;;  %40913 = vmatmul.mubr.msk.f32.vlgmr.msra.gmra.mxu1 %vm13072_vm5, %v45902_v0 }
 0x7ad   : > { %40921 = vmatpush3.msra.mxu1 %v45829_v42  ;;  %40988 = vmatmul.mubr.msk.f32.vlgmr.msra.gmra.mxu0 %vm13072_vm5, %v46095_v6 }
 0x7ae   : > { %40996 = vmatpush3.msra.mxu0 %v45710_v16  ;;  %40922 = vmatprep.mubr.msk.f32.mxu1 %vm41919_vm1, %v48530_v37 }
 0x7af   : > { %40930 = vmatprep.subr.mxu1 %v48530_v37  ;;  %40997 = vmatprep.mubr.msk.f32.mxu0 %vm41919_vm1, %v48530_v37 }
 0x7b0   : > { %41005 = vmatprep.subr.mxu0 %v48530_v37  ;;  %40923 = vmatmul.mubr.msk.f32.vlgmr.msra.gmra.mxu1 %vm13072_vm5, %v45902_v0 }
 0x7b1   : > { %40931 = vmatpush3.msra.mxu1 %v45845_v9  ;;  %40998 = vmatmul.mubr.msk.f32.vlgmr.msra.gmra.mxu0 %vm13072_vm5, %v46095_v6 }
 0x7b2   : > { %41006 = vmatpush3.msra.mxu0 %v45728_v47  ;;  %40932 = vmatprep.mubr.msk.f32.mxu1 %vm41919_vm1, %v48530_v37 }
 0x7b3   : > { %40940 = vmatprep.subr.mxu1 %v48530_v37  ;;  %41007 = vmatprep.mubr.msk.f32.mxu0 %vm41919_vm1, %v48530_v37 }
 0x7b4   : > { %41015 = vmatprep.subr.mxu0 %v48530_v37  ;;  %40933 = vmatmul.mubr.msk.f32.vlgmr.msra.gmra.mxu1 %vm13072_vm5, %v45902_v0 }
 0x7b5   : > { %40941 = vmatpush3.msra.mxu1 %v45861_v8  ;;  %41008 = vmatmul.mubr.msk.f32.vlgmr.msra.gmra.mxu0 %vm13072_vm5, %v46095_v6 }
 0x7b6   : > { %41016 = vmatpush3.msra.mxu0 %v45746_v61  ;;  %40942 = vmatprep.mubr.msk.f32.mxu1 %vm41919_vm1, %v48530_v37 }
 0x7b7   : > { %40950 = vmatprep.subr.mxu1 %v48530_v37  ;;  %41017 = vmatprep.mubr.msk.f32.mxu0 %vm41919_vm1, %v48530_v37 }
 0x7b8   : > { %41025 = vmatprep.subr.mxu0 %v48530_v37  ;;  %40943 = vmatmul.mubr.msk.f32.vlgmr.msra.gmra.mxu1 %vm13072_vm5, %v45902_v0 }
 0x7b9   : > { %40951 = vmatpush3.msra.mxu1 %v45877_v29  ;;  %41018 = vmatmul.mubr.msk.f32.vlgmr.msra.gmra.mxu0 %vm13072_vm5, %v46095_v6 }
 0x7ba   : > { %41026 = vmatpush3.msra.mxu0 %v45762_v28  ;;  %40952 = vmatprep.mubr.msk.f32.mxu1 %vm41919_vm1, %v48530_v37  ;;  %v37744_v28 = vld [vmem:[%s48329_s4 + $0x58] sm:$0xff] }
 0x7bb   : > { %40960 = vmatprep.subr.mxu1 %v48530_v37  ;;  %41027 = vmatprep.mubr.msk.f32.mxu0 %vm41919_vm1, %v48530_v37 }
 0x7bc   : > { %41035 = vmatprep.subr.mxu0 %v48530_v37  ;;  %40953 = vmatmul.mubr.msk.f32.vlgmr.msra.gmra.mxu1 %vm13072_vm5, %v45902_v0  ;;  %v48554_v0 = vld [vmem:[#allocation81_spill] sm:$0xff] }
 0x7bd   : > { %40961 = vmatpush3.msra.mxu1 %v45631_v38  ;;  %41028 = vmatmul.mubr.msk.f32.vlgmr.msra.gmra.mxu0 %vm13072_vm5, %v46095_v6 }
 0x7be   : > { %41036 = vmatpush3.msra.mxu0 %v45774_v57  ;;  %40962 = vmatprep.mubr.msk.f32.mxu1 %vm41919_vm1, %v48530_v37  ;;  %v37743_v57 = vld [vmem:[%s48329_s4 + $0x50] sm:$0xff] }
 0x7bf   : > { %40970 = vmatprep.subr.mxu1 %v48530_v37  ;;  %41037 = vmatprep.mubr.msk.f32.mxu0 %vm41919_vm1, %v48530_v37 }
 0x7c0   : > { %41045 = vmatprep.subr.mxu0 %v48530_v37  ;;  %40963 = vmatmul.mubr.msk.f32.vlgmr.msra.gmra.mxu1 %vm13072_vm5, %v46095_v6 }
 0x7c1   : > { %40971 = vmatpush3.msra.mxu1 %v45644_v39  ;;  %41038 = vmatmul.mubr.msk.f32.vlgmr.msra.gmra.mxu0 %vm13072_vm5, %v46095_v6 }
 0x7c2   : > { %41046 = vmatpush3.msra.mxu0 %v45789_v3  ;;  %40972 = vmatprep.mubr.msk.f32.mxu1 %vm41919_vm1, %v48530_v37 }
 0x7c3   : > { %40980 = vmatprep.subr.mxu1 %v48530_v37  ;;  %41047 = vmatprep.mubr.msk.f32.mxu0 %vm41919_vm1, %v48530_v37 }
 0x7c4   : > { %41055 = vmatprep.subr.mxu0 %v48530_v37  ;;  %40973 = vmatmul.mubr.msk.f32.vlgmr.msra.gmra.mxu1 %vm13072_vm5, %v46095_v6 }
 0x7c5   : > { %40981 = vmatpush3.msra.mxu1 %v45663_v15  ;;  %41048 = vmatmul.mubr.msk.f32.vlgmr.msra.gmra.mxu0 %vm13072_vm5, %v46095_v6 }
 0x7c6   : > { %41056 = vmatpush3.msra.mxu0 %v45805_v24  ;;  %40982 = vmatprep.mubr.msk.f32.mxu1 %vm41919_vm1, %v48530_v37 }
 0x7c7   : > { %40990 = vmatprep.subr.mxu1 %v48530_v37  ;;  %41057 = vmatprep.mubr.msk.f32.mxu0 %vm41919_vm1, %v48530_v37 }
 0x7c8   : > { %41065 = vmatprep.subr.mxu0 %v48530_v37  ;;  %40983 = vmatmul.mubr.msk.f32.vlgmr.msra.gmra.mxu1 %vm13072_vm5, %v46095_v6 }
 0x7c9   : > { %40991 = vmatpush3.msra.mxu1 %v45681_v17  ;;  %41058 = vmatmul.mubr.msk.f32.vlgmr.msra.gmra.mxu0 %vm13072_vm5, %v46095_v6  ;;  %v48557_v17 = vld [vmem:[#allocation83_spill] sm:$0xff] }
 0x7ca   : > { %41066 = vmatpush3.msra.mxu0 %v45821_v10  ;;  %40992 = vmatprep.mubr.msk.f32.mxu1 %vm41919_vm1, %v48530_v37 }
 0x7cb   : > { %41000 = vmatprep.subr.mxu1 %v48530_v37  ;;  %41067 = vmatprep.mubr.msk.f32.mxu0 %vm41919_vm1, %v48530_v37 }
 0x7cc   : > { %41075 = vmatprep.subr.mxu0 %v48530_v37  ;;  %40993 = vmatmul.mubr.msk.f32.vlgmr.msra.gmra.mxu1 %vm13072_vm5, %v46095_v6 }
 0x7cd   : > { %41001 = vmatpush3.msra.mxu1 %v45699_v55  ;;  %41068 = vmatmul.mubr.msk.f32.vlgmr.msra.gmra.mxu0 %vm13072_vm5, %v46095_v6 }
 0x7ce   : > { %41076 = vmatpush3.msra.mxu0 %v45837_v50  ;;  %41002 = vmatprep.mubr.msk.f32.mxu1 %vm41919_vm1, %v48530_v37 }
 0x7cf   : > { %41010 = vmatprep.subr.mxu1 %v48530_v37  ;;  %41077 = vmatprep.mubr.msk.f32.mxu0 %vm41919_vm1, %v48530_v37 }
 0x7d0   : > { %41085 = vmatprep.subr.mxu0 %v48530_v37  ;;  %41003 = vmatmul.mubr.msk.f32.vlgmr.msra.gmra.mxu1 %vm13072_vm5, %v46095_v6 }
 0x7d1   : > { %41011 = vmatpush3.msra.mxu1 %v45717_v31  ;;  %41078 = vmatmul.mubr.msk.f32.vlgmr.msra.gmra.mxu0 %vm13072_vm5, %v46095_v6 }
 0x7d2   : > { %41086 = vmatpush3.msra.mxu0 %v45853_v11  ;;  %41012 = vmatprep.mubr.msk.f32.mxu1 %vm41919_vm1, %v48530_v37 }
 0x7d3   : > { %41020 = vmatprep.subr.mxu1 %v48530_v37  ;;  %41087 = vmatprep.mubr.msk.f32.mxu0 %vm41919_vm1, %v48530_v37 }
 0x7d4   : > { %41095 = vmatprep.subr.mxu0 %v48530_v37  ;;  %41013 = vmatmul.mubr.msk.f32.vlgmr.msra.gmra.mxu1 %vm13072_vm5, %v46095_v6 }
 0x7d5   : > { %41021 = vmatpush3.msra.mxu1 %v45735_v4  ;;  %41088 = vmatmul.mubr.msk.f32.vlgmr.msra.gmra.mxu0 %vm13072_vm5, %v46095_v6 }
 0x7d6   : > { %41096 = vmatpush3.msra.mxu0 %v45869_v7  ;;  %41022 = vmatprep.mubr.msk.f32.mxu1 %vm41919_vm1, %v48530_v37 }
 0x7d7   : > { %41030 = vmatprep.subr.mxu1 %v48530_v37  ;;  %41097 = vmatprep.mubr.msk.f32.mxu0 %vm41919_vm1, %v48530_v37 }
 0x7d8   : > { %41105 = vmatprep.subr.mxu0 %v48530_v37  ;;  %41023 = vmatmul.mubr.msk.f32.vlgmr.msra.gmra.mxu1 %vm13072_vm5, %v46095_v6 }
 0x7d9   : > { %41031 = vmatpush3.msra.mxu1 %v45753_v1  ;;  %41098 = vmatmul.mubr.msk.f32.vlgmr.msra.gmra.mxu0 %vm13072_vm5, %v46095_v6 }
 0x7da   : > { %41106 = vmatpush3.msra.mxu0 %v45885_v22  ;;  %41032 = vmatprep.mubr.msk.f32.mxu1 %vm41919_vm1, %v48530_v37 }
 0x7db   : > { %41040 = vmatprep.subr.mxu1 %v48530_v37  ;;  %41107 = vmatprep.mubr.msk.f32.mxu0 %vm41919_vm1, %v48530_v37 }
 0x7dc   : > { %41033 = vmatmul.mubr.msk.f32.vlgmr.msra.gmra.mxu1 %vm13072_vm5, %v46095_v6  ;;  %41115 = vmatprep.subr.mxu0 %v48530_v37 }
 0x7dd   : > { %41041 = vmatpush3.msra.mxu1 %v45767_v56  ;;  %41108 = vmatmul.mubr.msk.f32.vlgmr.msra.gmra.mxu0 %vm13072_vm5, %v46095_v6 }
 0x7de   : > { %41042 = vmatprep.mubr.msk.f32.mxu1 %vm41919_vm1, %v48530_v37  ;;  %41050 = vmatprep.subr.mxu1 %v48530_v37 }
 0x7df   : > { %41116 = vmatpush3.msra.mxu0 %v48530_v37  ;;  %41117 = vmatprep.mubr.msk.f32.mxu0 %vm41919_vm1, %v48530_v37 }
 0x7e0   : > { %v22549_v38 = vpop.f32.mrf.mxu1  ;;  %41043 = vmatmul.mubr.msk.f32.vlgmr.msra.gmra.mxu1 %vm13072_vm5, %v46095_v6  ;;  %41176 = vmatprep.subr.mxu0 %v48530_v37 }
 0x7e1   : > { %v46296_v33 = vadd.f32 %v22549_v38, %v45423_v63  ;;  %v46299_v22 = vadd.f32 %v22549_v38, %v48554_v0  ;;  %41051 = vmatpush3.msra.mxu1 %v45781_v52  ;;  %41118 = vmatmul.mubr.msk.f32.vlgmr.msra.gmra.mxu0 %vm13072_vm5, %v46095_v6  ;;  %v48561_v38 = vld [vmem:[#allocation85_spill] sm:$0xff] }
 0x7e2   : > { %v40639_v39 = vpop.f32.mrf.mxu1  ;;  %41052 = vmatprep.mubr.msk.f32.mxu1 %vm41919_vm1, %v48530_v37  ;;  %41060 = vmatprep.subr.mxu1 %v48530_v37 }
 0x7e3   : > { %41177 = vmatpush3.msra.mxu0 %v48530_v37  ;;  %41178 = vmatprep.mubr.msk.f32.mxu0 %vm41919_vm1, %v48530_v37 }
 0x7e4   : > { %v22619_v63 = vpop.f32.mrf.mxu1  ;;  %41053 = vmatmul.mubr.msk.f32.vlgmr.msra.gmra.mxu1 %vm13072_vm5, %v46095_v6  ;;  %41181 = vmatprep.subr.mxu0 %v48530_v37 }
 0x7e5   : > { %v46316_v12 = vadd.f32 %v22619_v63, %v45527_v23  ;;  %v46319_v7 = vadd.f32 %v22619_v63, %v45529_v62  ;;  %41061 = vmatpush3.msra.mxu1 %v45797_v14  ;;  %41179 = vmatmul.mubr.msk.f32.vlgmr.msra.gmra.mxu0 %vm13072_vm5, %v46307_v53  ;;  %v48556_v23 = vld [vmem:[#allocation82_spill] sm:$0xff] }
 0x7e6   : > { %v40644_v15 = vpop.f32.mrf.mxu1  ;;  %41062 = vmatprep.mubr.msk.f32.mxu1 %vm41919_vm1, %v48530_v37  ;;  %41070 = vmatprep.subr.mxu1 %v48530_v37  ;;  %v37742_v14 = vld [vmem:[%s48329_s4 + $0x48] sm:$0xff] }
 0x7e7   : > { %41183 = vmatprep.mubr.msk.f32.mxu0 %vm41919_vm1, %v48530_v37 }
 0x7e8   : > { %v22689_v2 = vpop.f32.mrf.mxu1  ;;  %41063 = vmatmul.mubr.msk.f32.vlgmr.msra.gmra.mxu1 %vm13072_vm5, %v46095_v6 }
 0x7e9   : > { %v46332_v62 = vadd.f32 %v22689_v2, %v48556_v23  ;;  %v46335_v36 = vadd.f32 %v22689_v2, %v48557_v17  ;;  %41071 = vmatpush3.msra.mxu1 %v45813_v13  ;;  %41072 = vmatprep.mubr.msk.f32.mxu1 %vm41919_vm1, %v48530_v37  ;;  %v37741_v13 = vld [vmem:[%s48329_s4 + $0x40] sm:$0xff] }
 0x7ea   : > { %v40649_v11 = vpop.f32.mrf.mxu1  ;;  %41080 = vmatprep.subr.mxu1 %v48530_v37  ;;  %v48562_v23 = vld [vmem:[#allocation13_spill] sm:$0xff] }
 0x7ec   : > { %v22759_v55 = vpop.f32.mrf.mxu1  ;;  %41073 = vmatmul.mubr.msk.f32.vlgmr.msra.gmra.mxu1 %vm13072_vm5, %v46095_v6 }
 0x7ed   : > { %v46344_v16 = vadd.f32 %v22759_v55, %v45543_v43  ;;  %v46347_v31 = vadd.f32 %v22759_v55, %v45545_v59  ;;  %41081 = vmatpush3.msra.mxu1 %v45829_v42  ;;  %41082 = vmatprep.mubr.msk.f32.mxu1 %vm41919_vm1, %v48530_v37  ;;  %v48558_v43 = vld [vmem:[#allocation84_spill] sm:$0xff] }
 0x7ee   : > { %v40654_v47 = vpop.f32.mrf.mxu1  ;;  %41090 = vmatprep.subr.mxu1 %v48530_v37 }
 0x7ef   : > { %v48563_v47 = vld [vmem:[#allocation14_spill] sm:$0xff] }
 0x7f0   : > { %v22829_v50 = vpop.f32.mrf.mxu1  ;;  %41083 = vmatmul.mubr.msk.f32.vlgmr.msra.gmra.mxu1 %vm13072_vm5, %v46095_v6 }
 0x7f1   : > { %v46356_v4 = vadd.f32 %v22829_v50, %v45443_v34  ;;  %v46359_v61 = vadd.f32 %v22829_v50, %v48558_v43  ;;  %41091 = vmatpush3.msra.mxu1 %v45845_v9  ;;  %41092 = vmatprep.mubr.msk.f32.mxu1 %vm41919_vm1, %v48530_v37 }
 0x7f2   : > { %v40659_v59 = vpop.f32.mrf.mxu1  ;;  %41100 = vmatprep.subr.mxu1 %v48530_v37 }
 0x7f3   : > { %v48564_v59 = vld [vmem:[#allocation15_spill] sm:$0xff] }
 0x7f4   : > { %v22899_v42 = vpop.f32.mrf.mxu1  ;;  %41093 = vmatmul.mubr.msk.f32.vlgmr.msra.gmra.mxu1 %vm13072_vm5, %v46095_v6 }
 0x7f5   : > { %v46368_v1 = vadd.f32 %v22899_v42, %v45559_v46  ;;  %v46371_v34 = vadd.f32 %v22899_v42, %v45561_v21  ;;  %41101 = vmatpush3.msra.mxu1 %v45861_v8  ;;  %41102 = vmatprep.mubr.msk.f32.mxu1 %vm41919_vm1, %v48530_v37  ;;  %v48559_v21 = vld [vmem:[#allocation44_spill] sm:$0xff] }
 0x7f6   : > { %v40664_v9 = vpop.f32.mrf.mxu1  ;;  %41110 = vmatprep.subr.mxu1 %v48530_v37 }
 0x7f7   : > { %v48565_v9 = vld [vmem:[#allocation86_spill] sm:$0xff] }
 0x7f8   : > { %v22969_v10 = vpop.f32.mrf.mxu1  ;;  %41103 = vmatmul.mubr.msk.f32.vlgmr.msra.gmra.mxu1 %vm13072_vm5, %v46095_v6 }
 0x7f9   : > { %v46383_v46 = vadd.f32 %v22969_v10, %v45453_v5  ;;  %v46386_v56 = vadd.f32 %v22969_v10, %v48559_v21  ;;  %41111 = vmatpush3.msra.mxu1 %v45877_v29  ;;  %41112 = vmatprep.mubr.msk.f32.mxu1 %vm41919_vm1, %v48530_v37  ;;  %v48560_v29 = vld [vmem:[#allocation12_spill] sm:$0xff] }
 0x7fa   : > { %v40669_v8 = vpop.f32.mrf.mxu1  ;;  %41120 = vmatprep.subr.mxu1 %v37744_v28  ;;  %v48567_v21 = vld [vmem:[#allocation16_spill] sm:$0xff] }
 0x7fc   : > { %v23039_v52 = vpop.f32.mrf.mxu1  ;;  %41113 = vmatmul.mubr.msk.f32.vlgmr.msra.gmra.mxu1 %vm13072_vm5, %v46095_v6 }
 0x7fd   : > { %v46397_v5 = vadd.f32 %v23039_v52, %v45575_v18  ;;  %v46400_v3 = vadd.f32 %v23039_v52, %v45577_v30  ;;  %41121 = vmatpush3.msra.mxu1 %v37744_v28  ;;  %41128 = vmatprep.mubr.msk.f32.mxu1 %vm12747_vm4, %v48560_v29  ;;  %v48568_v52 = vld [vmem:[#allocation17_spill] sm:$0xff] }
 0x7fe   : > { %41122 = vmatprep.subr.mxu1 %v37743_v57  ;;  %v40674_v24 = vpop.f32.mrf.mxu1 }
 0x7ff   : > { %41123 = vmatpush3.msra.mxu1 %v37743_v57 }
 0x800   : > { %41124 = vmatprep.subr.mxu1 %v37742_v14  ;;  %v23109_v18 = vpop.f32.mrf.mxu1  ;;  %v23669_v6 = vpop.f32.mrf.mxu0 }
 0x801   : > { %v46411_v30 = vadd.f32 %v23109_v18, %v45463_v58  ;;  %v46414_v0 = vadd.f32 %v23109_v18, %v48561_v38  ;;  %v46417_v39 = vadd.f32 %v23669_v6, %v45505_v27  ;;  %v46420_v63 = vadd.f32 %v23669_v6, %v45507_v35  ;;  %41125 = vmatpush3.msra.mxu1 %v37742_v14  ;;  %v48571_v38 = vld [vmem:[#allocation18_spill] sm:$0xff] }
 0x802   : > { %41126 = vmatprep.subr.mxu1 %v37741_v13  ;;  %v40679_v15 = vpop.f32.mrf.mxu1  ;;  %v40719_v2 = vpop.f32.mrf.mxu0 }
 0x803   : > { %41127 = vmatpush3.msra.mxu1 %v37741_v13 }
 0x804   : > { %41129 = vmatmul.mubr.msk.f32.vlgmr.msra.gmra.mxu1 %vm12747_vm4, %v48562_v23  ;;  %v23179_v17 = vpop.f32.mrf.mxu1  ;;  %v23809_v58 = vpop.f32.mrf.mxu0  ;;  %41261 = vmatprep.subr.mxu1 %v48530_v37  ;;  %v48572_v23 = vld [vmem:[#allocation19_spill] sm:$0xff] }
 0x805   : > { %v46426_v11 = vadd.f32 %v23179_v17, %v45591_v41  ;;  %v46429_v27 = vadd.f32 %v23179_v17, %v45593_v19  ;;  %v46432_v35 = vadd.f32 %v23809_v58, %v45519_v54  ;;  %v46435_v55 = vadd.f32 %v23809_v58, %v45521_v32  ;;  %41131 = vmatprep.mubr.msk.f32.mxu1 %vm12747_vm4, %v48563_v47  ;;  %v48566_v19 = vld [vmem:[#allocation87_spill] sm:$0xff]  ;;  %v48573_v58 = vld [vmem:[#allocation88_spill] sm:$0xff] }
 0x806   : > { %v40684_v50 = vpop.f32.mrf.mxu1  ;;  %v40729_v43 = vpop.f32.mrf.mxu0 }
 0x807   : > { %v48575_v43 = vld [vmem:[#allocation49_spill] sm:$0xff] }
 0x808   : > { %41132 = vmatmul.mubr.msk.f32.gmra.mxu1 %vm12747_vm4, %v48564_v59  ;;  %v23249_v42 = vpop.f32.mrf.mxu1  ;;  %v23949_v41 = vpop.f32.mrf.mxu0 }
 0x809   : > { %v46442_v28 = vadd.f32 %v23249_v42, %v48565_v9  ;;  %v46445_v10 = vadd.f32 %v23249_v42, %v48566_v19  ;;  %v46448_v54 = vadd.f32 %v23949_v41, %v45535_v49  ;;  %v46451_v32 = vadd.f32 %v23949_v41, %v45537_v20  ;;  %41134 = vmatprep.mubr.msk.f32.mxu1 %vm12747_vm4, %v48567_v21  ;;  %v48569_v49 = vld [vmem:[#allocation50_spill] sm:$0xff]  ;;  %v48570_v20 = vld [vmem:[#allocation59_spill] sm:$0xff]  ;;  %v48576_v42 = vld [vmem:[#allocation69_spill] sm:$0xff] }
 0x80a   : > { %v40689_v8 = vpop.f32.mrf.mxu1  ;;  %v40739_v57 = vpop.f32.mrf.mxu0  ;;  %v48578_v9 = vld [vmem:[#allocation20_spill] sm:$0xff] }
 0x80b   : > { %v48579_v8 = vld [vmem:[#allocation21_spill] sm:$0xff] }
 0x80c   : > { %41135 = vmatmul.mubr.msk.f32.gmra.mxu1 %vm12747_vm4, %v48568_v52  ;;  %v23319_v29 = vpop.f32.mrf.mxu1  ;;  %v24089_v14 = vpop.f32.mrf.mxu0 }
 0x80d   : > { %v46458_v24 = vadd.f32 %v23319_v29, %v45607_v48  ;;  %v46461_v13 = vadd.f32 %v23319_v29, %v45609_v60  ;;  %v46464_v18 = vadd.f32 %v24089_v14, %v48569_v49  ;;  %v46467_v6 = vadd.f32 %v24089_v14, %v48570_v20  ;;  %41137 = vmatprep.mubr.msk.f32.mxu1 %vm12747_vm4, %v48571_v38  ;;  %v48574_v60 = vld [vmem:[#allocation89_spill] sm:$0xff] }
 0x80e   : > { %v40694_v15 = vpop.f32.mrf.mxu1  ;;  %v40749_v2 = vpop.f32.mrf.mxu0  ;;  %v48580_v49 = vld [vmem:[#allocation45_spill] sm:$0xff] }
 0x80f   : > { %v48581_v38 = vld [vmem:[#allocation53_spill] sm:$0xff]  ;;  %v48583_v2 = vld [vmem:[#allocation22_spill] sm:$0xff] }
 0x810   : > { %41138 = vmatmul.mubr.msk.f32.gmra.mxu1 %vm12747_vm4, %v48572_v23  ;;  %v23389_v17 = vpop.f32.mrf.mxu1  ;;  %v24229_v48 = vpop.f32.mrf.mxu0 }
 0x811   : > { %v46474_v47 = vadd.f32 %v23389_v17, %v48573_v58  ;;  %v46477_v50 = vadd.f32 %v23389_v17, %v48574_v60  ;;  %v46480_v59 = vadd.f32 %v24229_v48, %v48575_v43  ;;  %v46483_v41 = vadd.f32 %v24229_v48, %v48576_v42  ;;  %41140 = vmatprep.mubr.msk.f32.mxu1 %vm12747_vm4, %v48578_v9  ;;  %v48584_v48 = vld [vmem:[#allocation23_spill] sm:$0xff]  ;;  %v48585_v60 = vld [vmem:[#allocation90_spill] sm:$0xff] }
 0x812   : > { %v40699_v19 = vpop.f32.mrf.mxu1  ;;  %v40759_v21 = vpop.f32.mrf.mxu0 }
 0x813   : > { %48577 = vst [vmem:[#allocation73_spill] sm:$0xff] %v46483_v41  ;;  %v48587_v19 = vld [vmem:[#allocation61_spill] sm:$0xff] }
 0x814   : > { %41141 = vmatmul.mubr.msk.f32.gmra.mxu1 %vm12747_vm4, %v48579_v8  ;;  %v23459_v57 = vpop.f32.mrf.mxu1  ;;  %v24369_v52 = vpop.f32.mrf.mxu0  ;;  %v48589_v8 = vld [vmem:[#allocation24_spill] sm:$0xff] }
 0x815   : > { %v46490_v29 = vadd.f32 %v23459_v57, %v45619_v25  ;;  %v46493_v14 = vadd.f32 %v23459_v57, %v45621_v51  ;;  %v46496_v20 = vadd.f32 %v24369_v52, %v48580_v49  ;;  %v46499_v15 = vadd.f32 %v24369_v52, %v48581_v38  ;;  %41143 = vmatprep.mubr.msk.f32.mxu1 %vm12747_vm4, %v48583_v2  ;;  %v48586_v51 = vld [vmem:[#allocation91_spill] sm:$0xff]  ;;  %v48590_v49 = vld [vmem:[#allocation25_spill] sm:$0xff] }
 0x816   : > { %v40704_v23 = vpop.f32.mrf.mxu1  ;;  %v40769_v17 = vpop.f32.mrf.mxu0 }
 0x817   : > { %48582 = vst [vmem:[#allocation56_spill] sm:$0xff] %v46499_v15 }
 0x818   : > { %41144 = vmatmul.mubr.msk.f32.gmra.mxu1 %vm12747_vm4, %v48584_v48  ;;  %v23529_v58 = vpop.f32.mrf.mxu1  ;;  %v24509_v25 = vpop.f32.mrf.mxu0  ;;  %v48591_v48 = vld [vmem:[#allocation51_spill] sm:$0xff] }
 0x819   : > { %v46506_v43 = vadd.f32 %v23529_v58, %v48585_v60  ;;  %v46509_v42 = vadd.f32 %v23529_v58, %v48586_v51  ;;  %v46512_v9 = vadd.f32 %v24509_v25, %v45599_v40  ;;  %v46515_v21 = vadd.f32 %v24509_v25, %v48587_v19  ;;  %41146 = vmatprep.mubr.msk.f32.mxu1 %vm12747_vm4, %v48589_v8  ;;  %v48593_v25 = vld [vmem:[#allocation26_spill] sm:$0xff]  ;;  %v48594_v19 = vld [vmem:[#allocation27_spill] sm:$0xff] }
 0x81a   : > { %v40709_v57 = vpop.f32.mrf.mxu1  ;;  %v40779_v52 = vpop.f32.mrf.mxu0 }
 0x81b   : > { %48588 = vst [vmem:[#allocation64_spill] sm:$0xff] %v46515_v21 }
 0x81c   : > { %41147 = vmatmul.mubr.msk.f32.gmra.mxu1 %vm12747_vm4, %v48590_v49  ;;  %v23599_v38 = vpop.f32.mrf.mxu1  ;;  %v24649_v2 = vpop.f32.mrf.mxu0  ;;  %v48597_v49 = vld [vmem:[#allocation28_spill] sm:$0xff] }
 0x81d   : > { %v46522_v23 = vadd.f32 %v23599_v38, %v45627_v26  ;;  %v46525_v17 = vadd.f32 %v23599_v38, %v45629_v44  ;;  %v46528_v40 = vadd.f32 %v24649_v2, %v45611_v45  ;;  %v46531_v58 = vadd.f32 %v24649_v2, %v48591_v48  ;;  %41149 = vmatprep.mubr.msk.f32.mxu1 %vm12747_vm4, %v48593_v25  ;;  %v48595_v26 = vld [vmem:[#allocation72_spill] sm:$0xff]  ;;  %v48596_v44 = vld [vmem:[#allocation46_spill] sm:$0xff] }
 0x81e   : > { %v40714_v60 = vpop.f32.mrf.mxu1  ;;  %v40789_v51 = vpop.f32.mrf.mxu0  ;;  %v48598_v38 = vld [vmem:[#allocation70_spill] sm:$0xff] }
 0x81f   : > { %48592 = vst [vmem:[#allocation76_spill] sm:$0xff] %v46531_v58  ;;  %v48600_v51 = vld [vmem:[#allocation29_spill] sm:$0xff] }
 0x820   : > { %41150 = vmatmul.mubr.msk.f32.gmra.mxu1 %vm12747_vm4, %v48594_v19  ;;  %v23739_v8 = vpop.f32.mrf.mxu1 }
 0x821   : > { %v46538_v57 = vadd.f32 %v23739_v8, %v48595_v26  ;;  %v46541_v52 = vadd.f32 %v23739_v8, %v48596_v44  ;;  %v24858_v45 = vpop.f32.mrf.mxu0  ;;  %41152 = vmatprep.mubr.msk.f32.mxu1 %vm12747_vm4, %v48597_v49  ;;  %v48601_v26 = vld [vmem:[#allocation55_spill] sm:$0xff]  ;;  %v48603_v49 = vld [vmem:[#allocation30_spill] sm:$0xff] }
 0x822   : > { %v46546_v2 = vadd.f32 %v24858_v45, %v48598_v38  ;;  %v46549_v48 = vadd.f32 %v24858_v45, %v46296_v33  ;;  %v40724_v25 = vpop.f32.mrf.mxu1  ;;  %v48602_v8 = vld [vmem:[#allocation63_spill] sm:$0xff] }
 0x823   : > { %v40799_v60 = vpop.f32.mrf.mxu0 }
 0x824   : > { %48599 = vst [vmem:[#allocation66_spill] sm:$0xff] %v46549_v48  ;;  %41153 = vmatmul.mubr.msk.f32.gmra.mxu1 %vm12747_vm4, %v48600_v51  ;;  %v23879_v19 = vpop.f32.mrf.mxu1  ;;  %v48605_v60 = vld [vmem:[#allocation31_spill] sm:$0xff] }
 0x825   : > { %v46554_v53 = vadd.f32 %v23879_v19, %v48601_v26  ;;  %v46557_v44 = vadd.f32 %v23879_v19, %v48602_v8  ;;  %v24998_v58 = vpop.f32.mrf.mxu0  ;;  %41155 = vmatprep.mubr.msk.f32.mxu1 %vm12747_vm4, %v48603_v49  ;;  %v48606_v26 = vld [vmem:[#allocation52_spill] sm:$0xff]  ;;  %v48607_v19 = vld [vmem:[#allocation75_spill] sm:$0xff] }
 0x826   : > { %v46562_v38 = vadd.f32 %v24998_v58, %v46319_v7  ;;  %v46565_v33 = vadd.f32 %v24998_v58, %v46332_v62  ;;  %v40734_v45 = vpop.f32.mrf.mxu1  ;;  %v48608_v49 = vld [vmem:[#allocation32_spill] sm:$0xff] }
 0x827   : > { %v40809_v25 = vpop.f32.mrf.mxu0 }
 0x828   : > { %48604 = vst [vmem:[#allocation79_spill] sm:$0xff] %v46565_v33  ;;  %41156 = vmatmul.mubr.msk.f32.gmra.mxu1 %vm12747_vm4, %v48605_v60  ;;  %v24019_v51 = vpop.f32.mrf.mxu1  ;;  %v48610_v25 = vld [vmem:[#allocation33_spill] sm:$0xff] }
 0x829   : > { %v46570_v48 = vadd.f32 %v24019_v51, %v48606_v26  ;;  %v46573_v8 = vadd.f32 %v24019_v51, %v48607_v19  ;;  %v25138_v21 = vpop.f32.mrf.mxu0  ;;  %41158 = vmatprep.mubr.msk.f32.mxu1 %vm12747_vm4, %v48608_v49  ;;  %v48611_v26 = vld [vmem:[#allocation47_spill] sm:$0xff]  ;;  %v48612_v51 = vld [vmem:[#allocation57_spill] sm:$0xff]  ;;  %v48613_v49 = vld [vmem:[#allocation34_spill] sm:$0xff] }
 0x82a   : > { %v46578_v7 = vadd.f32 %v25138_v21, %v46347_v31  ;;  %v46581_v62 = vadd.f32 %v25138_v21, %v46356_v4  ;;  %v40744_v58 = vpop.f32.mrf.mxu1 }
 0x82b   : > { %v40819_v45 = vpop.f32.mrf.mxu0 }
 0x82c   : > { %48609 = vst [vmem:[#allocation68_spill] sm:$0xff] %v46581_v62  ;;  %41159 = vmatmul.mubr.msk.f32.gmra.mxu1 %vm12747_vm4, %v48610_v25  ;;  %v24159_v60 = vpop.f32.mrf.mxu1  ;;  %v48615_v45 = vld [vmem:[#allocation35_spill] sm:$0xff] }
 0x82d   : > { %v46586_v33 = vadd.f32 %v24159_v60, %v48611_v26  ;;  %v46589_v19 = vadd.f32 %v24159_v60, %v48612_v51  ;;  %v25278_v15 = vpop.f32.mrf.mxu0  ;;  %41161 = vmatprep.mubr.msk.f32.mxu1 %vm12747_vm4, %v48613_v49  ;;  %v48616_v26 = vld [vmem:[#allocation65_spill] sm:$0xff]  ;;  %v48618_v60 = vld [vmem:[#allocation54_spill] sm:$0xff]  ;;  %v48619_v49 = vld [vmem:[#allocation36_spill] sm:$0xff] }
 0x82e   : > { %v46594_v31 = vadd.f32 %v25278_v15, %v46371_v34  ;;  %v46597_v4 = vadd.f32 %v25278_v15, %v46383_v46  ;;  %v40754_v21 = vpop.f32.mrf.mxu1 }
 0x82f   : > { %v40829_v58 = vpop.f32.mrf.mxu0 }
 0x830   : > { %48614 = vst [vmem:[#allocation71_spill] sm:$0xff] %v46597_v4  ;;  %41162 = vmatmul.mubr.msk.f32.gmra.mxu1 %vm12747_vm4, %v48615_v45  ;;  %v24299_v25 = vpop.f32.mrf.mxu1  ;;  %v48621_v58 = vld [vmem:[#allocation37_spill] sm:$0xff] }
 0x831   : > { %v46602_v62 = vadd.f32 %v24299_v25, %v48616_v26  ;;  %v46605_v51 = vadd.f32 %v24299_v25, %v48618_v60  ;;  %v25418_v41 = vpop.f32.mrf.mxu0  ;;  %41164 = vmatprep.mubr.msk.f32.mxu1 %vm12747_vm4, %v48619_v49  ;;  %v48622_v26 = vld [vmem:[#allocation78_spill] sm:$0xff]  ;;  %v48624_v25 = vld [vmem:[#allocation48_spill] sm:$0xff] }
 0x832   : > { %v46610_v34 = vadd.f32 %v25418_v41, %v46400_v3  ;;  %v46613_v46 = vadd.f32 %v25418_v41, %v46411_v30  ;;  %v40764_v15 = vpop.f32.mrf.mxu1  ;;  %v48625_v49 = vld [vmem:[#allocation38_spill] sm:$0xff] }
 0x833   : > { %48617 = vst [vmem:[#allocation74_spill] sm:$0xff] %v46602_v62  ;;  %v40839_v21 = vpop.f32.mrf.mxu0 }
 0x834   : > { %48620 = vst [vmem:[#allocation77_spill] sm:$0xff] %v46613_v46  ;;  %41165 = vmatmul.mubr.msk.f32.gmra.mxu1 %vm12747_vm4, %v48621_v58  ;;  %v24439_v45 = vpop.f32.mrf.mxu1  ;;  %v48627_v21 = vld [vmem:[#allocation39_spill] sm:$0xff] }
 0x835   : > { %v46618_v4 = vadd.f32 %v24439_v45, %v48622_v26  ;;  %v46621_v60 = vadd.f32 %v24439_v45, %v48624_v25  ;;  %v25558_v62 = vpop.f32.mrf.mxu0  ;;  %41167 = vmatprep.mubr.msk.f32.mxu1 %vm12747_vm4, %v48625_v49  ;;  %v48628_v26 = vld [vmem:[#allocation58_spill] sm:$0xff]  ;;  %v48629_v45 = vld [vmem:[#allocation67_spill] sm:$0xff]  ;;  %v48630_v49 = vld [vmem:[#allocation40_spill] sm:$0xff] }
 0x836   : > { %v46626_v3 = vadd.f32 %v25558_v62, %v46429_v27  ;;  %v46629_v30 = vadd.f32 %v25558_v62, %v46442_v28  ;;  %v40774_v41 = vpop.f32.mrf.mxu1 }
 0x837   : > { %48623 = vst [vmem:[#allocation80_spill] sm:$0xff] %v46618_v4  ;;  %v40849_v15 = vpop.f32.mrf.mxu0 }
 0x838   : > { %48626 = vst [vmem:[#allocation81_spill] sm:$0xff] %v46629_v30  ;;  %41168 = vmatmul.mubr.msk.f32.gmra.mxu1 %vm12747_vm4, %v48627_v21  ;;  %v24579_v58 = vpop.f32.mrf.mxu1  ;;  %v48631_v15 = vld [vmem:[#allocation41_spill] sm:$0xff] }
 0x839   : > { %v46634_v46 = vadd.f32 %v24579_v58, %v48628_v26  ;;  %v46637_v25 = vadd.f32 %v24579_v58, %v48629_v45  ;;  %v25698_v4 = vpop.f32.mrf.mxu0  ;;  %41170 = vmatprep.mubr.msk.f32.mxu1 %vm12747_vm4, %v48630_v49  ;;  %v48632_v26 = vld [vmem:[#allocation60_spill] sm:$0xff]  ;;  %v48633_v45 = vld [vmem:[#allocation42_spill] sm:$0xff] }
 0x83a   : > { %v46642_v27 = vadd.f32 %v25698_v4, %v46461_v13  ;;  %v46645_v28 = vadd.f32 %v25698_v4, %v46474_v47  ;;  %v40784_v62 = vpop.f32.mrf.mxu1 }
 0x83b   : > { %v40859_v41 = vpop.f32.mrf.mxu0  ;;  %v48634_v62 = vld [vmem:[#allocation43_spill] sm:$0xff] }
 0x83c   : > { %41171 = vmatmul.mubr.msk.f32.gmra.mxu1 %vm12747_vm4, %v48631_v15  ;;  %v24719_v21 = vpop.f32.mrf.mxu1 }
 0x83d   : > { %v46650_v30 = vadd.f32 %v24719_v21, %v48632_v26  ;;  %v25838_v58 = vpop.f32.mrf.mxu0  ;;  %41173 = vmatprep.mubr.msk.f32.mxu1 %vm12747_vm4, %v48633_v45 }
 0x83e   : > { %v46655_v49 = vadd.f32 %v25838_v58, %v46493_v14  ;;  %v46658_v13 = vadd.f32 %v25838_v58, %v46506_v43  ;;  %v40794_v47 = vpop.f32.mrf.mxu1 }
 0x83f   : > { %v40869_v4 = vpop.f32.mrf.mxu0 }
 0x840   : > { %41174 = vmatmul.mubr.msk.f32.gmra.mxu1 %vm12747_vm4, %v48634_v62  ;;  %v24928_v41 = vpop.f32.mrf.mxu1 }
 0x841   : > { %v46663_v15 = vadd.f32 %v24928_v41, %v46299_v22  ;;  %v46666_v21 = vadd.f32 %v24928_v41, %v46316_v12  ;;  %v25978_v26 = vpop.f32.mrf.mxu0  ;;  %41263 = vmatprep.mubr.msk.f32.mxu1 %vm41919_vm1, %v48530_v37 }
 0x842   : > { %v46671_v14 = vadd.f32 %v25978_v26, %v46525_v17  ;;  %v46674_v43 = vadd.f32 %v25978_v26, %v46417_v39  ;;  %v40804_v58 = vpop.f32.mrf.mxu1 }
 0x843   : > { %v40879_v45 = vpop.f32.mrf.mxu0 }
 0x844   : > { %v25068_v47 = vpop.f32.mrf.mxu1 }
 0x845   : > { %v46677_v4 = vadd.f32 %v25068_v47, %v46335_v36  ;;  %v46680_v22 = vadd.f32 %v25068_v47, %v46344_v16  ;;  %v26118_v12 = vpop.f32.mrf.mxu0 }
 0x846   : > { %v46683_v62 = vadd.f32 %v26118_v12, %v46541_v52  ;;  %v46686_v41 = vadd.f32 %v26118_v12, %v46432_v35  ;;  %v40814_v17 = vpop.f32.mrf.mxu1 }
 0x847   : > { %v40889_v37 = vpop.f32.mrf.mxu0 }
 0x848   : > { %v25208_v39 = vpop.f32.mrf.mxu1 }
 0x849   : > { %v46689_v26 = vadd.f32 %v25208_v39, %v46359_v61  ;;  %v46692_v58 = vadd.f32 %v25208_v39, %v46368_v1  ;;  %v26258_v36 = vpop.f32.mrf.mxu0 }
 0x84a   : > { %v46695_v16 = vadd.f32 %v26258_v36, %v46557_v44  ;;  %v46698_v45 = vadd.f32 %v26258_v36, %v46448_v54  ;;  %v40824_v52 = vpop.f32.mrf.mxu1 }
 0x84b   : > { %v40899_v47 = vpop.f32.mrf.mxu0 }
 0x84c   : > { %v25348_v35 = vpop.f32.mrf.mxu1 }
 0x84d   : > { %v46701_v12 = vadd.f32 %v25348_v35, %v46386_v56  ;;  %v46704_v37 = vadd.f32 %v25348_v35, %v46397_v5  ;;  %v26398_v61 = vpop.f32.mrf.mxu0 }
 0x84e   : > { %v46707_v1 = vadd.f32 %v26398_v61, %v46573_v8  ;;  %v46710_v17 = vadd.f32 %v26398_v61, %v46464_v18  ;;  %v40834_v44 = vpop.f32.mrf.mxu1 }
 0x84f   : > { %v40909_v39 = vpop.f32.mrf.mxu0 }
 0x850   : > { %v25488_v54 = vpop.f32.mrf.mxu1 }
 0x851   : > { %v46713_v36 = vadd.f32 %v25488_v54, %v46414_v0  ;;  %v46716_v52 = vadd.f32 %v25488_v54, %v46426_v11  ;;  %v26538_v56 = vpop.f32.mrf.mxu0 }
 0x852   : > { %v46719_v5 = vadd.f32 %v26538_v56, %v46589_v19  ;;  %v46722_v47 = vadd.f32 %v26538_v56, %v46480_v59  ;;  %v40844_v8 = vpop.f32.mrf.mxu1 }
 0x853   : > { %v40919_v35 = vpop.f32.mrf.mxu0 }
 0x854   : > { %v25628_v18 = vpop.f32.mrf.mxu1 }
 0x855   : > { %v46725_v61 = vadd.f32 %v25628_v18, %v46445_v10  ;;  %v46728_v44 = vadd.f32 %v25628_v18, %v46458_v24  ;;  %v26678_v0 = vpop.f32.mrf.mxu0 }
 0x856   : > { %v46731_v11 = vadd.f32 %v26678_v0, %v46605_v51  ;;  %v46734_v39 = vadd.f32 %v26678_v0, %v46496_v20  ;;  %v40854_v19 = vpop.f32.mrf.mxu1 }
 0x857   : > { %v40929_v54 = vpop.f32.mrf.mxu0 }
 0x858   : > { %v25768_v59 = vpop.f32.mrf.mxu1 }
 0x859   : > { %v46737_v56 = vadd.f32 %v25768_v59, %v46477_v50  ;;  %v46740_v8 = vadd.f32 %v25768_v59, %v46490_v29  ;;  %v26818_v10 = vpop.f32.mrf.mxu0 }
 0x85a   : > { %v46743_v24 = vadd.f32 %v26818_v10, %v46621_v60  ;;  %v46746_v35 = vadd.f32 %v26818_v10, %v46512_v9  ;;  %v40864_v51 = vpop.f32.mrf.mxu1 }
 0x85b   : > { %v40939_v18 = vpop.f32.mrf.mxu0 }
 0x85c   : > { %48635 = vst [vmem:[#allocation82_spill] sm:$0xff] %v46746_v35  ;;  %v25908_v20 = vpop.f32.mrf.mxu1 }
 0x85d   : > { %v46749_v0 = vadd.f32 %v25908_v20, %v46509_v42  ;;  %v46752_v19 = vadd.f32 %v25908_v20, %v46522_v23  ;;  %v26958_v50 = vpop.f32.mrf.mxu0 }
 0x85e   : > { %v46755_v29 = vadd.f32 %v26958_v50, %v46637_v25  ;;  %v46758_v54 = vadd.f32 %v26958_v50, %v46528_v40  ;;  %v40874_v60 = vpop.f32.mrf.mxu1 }
 0x85f   : > { %v40949_v59 = vpop.f32.mrf.mxu0 }
 0x860   : > { %v26048_v9 = vpop.f32.mrf.mxu1 }
 0x861   : > { %v46761_v10 = vadd.f32 %v26048_v9, %v46420_v63  ;;  %v46764_v51 = vadd.f32 %v26048_v9, %v46538_v57  ;;  %v27167_v42 = vpop.f32.mrf.mxu0 }
 0x862   : > { %v46767_v23 = vadd.f32 %v27167_v42, %v46546_v2  ;;  %v40884_v18 = vpop.f32.mrf.mxu1 }
 0x863   : > { %v40959_v20 = vpop.f32.mrf.mxu0 }
 0x864   : > { %v26188_v25 = vpop.f32.mrf.mxu1 }
 0x865   : > { %v46770_v35 = vadd.f32 %v26188_v25, %v46435_v55  ;;  %v46773_v40 = vadd.f32 %v26188_v25, %v46554_v53  ;;  %v27307_v50 = vpop.f32.mrf.mxu0 }
 0x866   : > { %v46776_v63 = vadd.f32 %v27307_v50, %v46666_v21  ;;  %v46779_v57 = vadd.f32 %v27307_v50, %v46562_v38  ;;  %v40894_v60 = vpop.f32.mrf.mxu1 }
 0x867   : > { %v40969_v59 = vpop.f32.mrf.mxu0 }
 0x868   : > { %v26328_v2 = vpop.f32.mrf.mxu1 }
 0x869   : > { %v46782_v9 = vadd.f32 %v26328_v2, %v46451_v32  ;;  %v46785_v42 = vadd.f32 %v26328_v2, %v46570_v48  ;;  %v27447_v55 = vpop.f32.mrf.mxu0  ;;  %v48638_v2 = vld [vmem:[#allocation73_spill] sm:$0xff] }
 0x86a   : > { %v46788_v53 = vadd.f32 %v27447_v55, %v46680_v22  ;;  %v46791_v18 = vadd.f32 %v27447_v55, %v46578_v7  ;;  %v40904_v21 = vpop.f32.mrf.mxu1 }
 0x86b   : > { %v40979_v20 = vpop.f32.mrf.mxu0  ;;  %v48639_v21 = vld [vmem:[#allocation74_spill] sm:$0xff] }
 0x86c   : > { %v26468_v38 = vpop.f32.mrf.mxu1 }
 0x86d   : > { %v46794_v25 = vadd.f32 %v26468_v38, %v46467_v6  ;;  %v46797_v50 = vadd.f32 %v26468_v38, %v46586_v33  ;;  %v27587_v32 = vpop.f32.mrf.mxu0 }
 0x86e   : > { %v46800_v48 = vadd.f32 %v27587_v32, %v46692_v58  ;;  %v46803_v60 = vadd.f32 %v27587_v32, %v46594_v31  ;;  %v40914_v22 = vpop.f32.mrf.mxu1  ;;  %v48641_v32 = vld [vmem:[#allocation56_spill] sm:$0xff] }
 0x86f   : > { %v40989_v59 = vpop.f32.mrf.mxu0 }
 0x870   : > { %48636 = vst [vmem:[#allocation83_spill] sm:$0xff] %v46800_v48  ;;  %48637 = vst [vmem:[#allocation84_spill] sm:$0xff] %v46803_v60  ;;  %v26608_v7 = vpop.f32.mrf.mxu1  ;;  %v48642_v59 = vld [vmem:[#allocation80_spill] sm:$0xff] }
 0x871   : > { %v46806_v55 = vadd.f32 %v26608_v7, %v48638_v2  ;;  %v46809_v20 = vadd.f32 %v26608_v7, %v48639_v21  ;;  %v27727_v6 = vpop.f32.mrf.mxu0 }
 0x872   : > { %v46812_v33 = vadd.f32 %v27727_v6, %v46704_v37  ;;  %v46815_v38 = vadd.f32 %v27727_v6, %v46610_v34  ;;  %v40924_v58 = vpop.f32.mrf.mxu1  ;;  %v48644_v6 = vld [vmem:[#allocation64_spill] sm:$0xff] }
 0x873   : > { %v40999_v48 = vpop.f32.mrf.mxu0 }
 0x874   : > { %48640 = vst [vmem:[#allocation44_spill] sm:$0xff] %v46812_v33  ;;  %v26748_v31 = vpop.f32.mrf.mxu1 }
 0x875   : > { %v46818_v22 = vadd.f32 %v26748_v31, %v48641_v32  ;;  %v46821_v60 = vadd.f32 %v26748_v31, %v48642_v59  ;;  %v27867_v2 = vpop.f32.mrf.mxu0 }
 0x876   : > { %v46824_v7 = vadd.f32 %v27867_v2, %v46716_v52  ;;  %v46827_v21 = vadd.f32 %v27867_v2, %v46626_v3  ;;  %v40934_v37 = vpop.f32.mrf.mxu1  ;;  %v48646_v2 = vld [vmem:[#allocation76_spill] sm:$0xff] }
 0x877   : > { %v41009_v33 = vpop.f32.mrf.mxu0 }
 0x878   : > { %48643 = vst [vmem:[#allocation12_spill] sm:$0xff] %v46824_v7  ;;  %v26888_v34 = vpop.f32.mrf.mxu1 }
 0x879   : > { %v46830_v58 = vadd.f32 %v26888_v34, %v48644_v6  ;;  %v46833_v48 = vadd.f32 %v26888_v34, %v46634_v46  ;;  %v28007_v32 = vpop.f32.mrf.mxu0 }
 0x87a   : > { %v46836_v31 = vadd.f32 %v28007_v32, %v46728_v44  ;;  %v46839_v59 = vadd.f32 %v28007_v32, %v46642_v27  ;;  %v40944_v52 = vpop.f32.mrf.mxu1  ;;  %v48649_v32 = vld [vmem:[#allocation66_spill] sm:$0xff] }
 0x87b   : > { %v41019_v7 = vpop.f32.mrf.mxu0 }
 0x87c   : > { %48645 = vst [vmem:[#allocation85_spill] sm:$0xff] %v46836_v31  ;;  %v27028_v3 = vpop.f32.mrf.mxu1 }
 0x87d   : > { %v46842_v37 = vadd.f32 %v27028_v3, %v48646_v2  ;;  %v46845_v33 = vadd.f32 %v27028_v3, %v46650_v30  ;;  %v28147_v6 = vpop.f32.mrf.mxu0 }
 0x87e   : > { %v46848_v46 = vadd.f32 %v28147_v6, %v46740_v8  ;;  %v46851_v34 = vadd.f32 %v28147_v6, %v46655_v49  ;;  %v40954_v44 = vpop.f32.mrf.mxu1  ;;  %v48652_v6 = vld [vmem:[#allocation79_spill] sm:$0xff] }
 0x87f   : > { %v41029_v31 = vpop.f32.mrf.mxu0 }
 0x880   : > { %48647 = vst [vmem:[#allocation13_spill] sm:$0xff] %v46848_v46  ;;  %48648 = vst [vmem:[#allocation14_spill] sm:$0xff] %v46851_v34  ;;  %v27237_v27 = vpop.f32.mrf.mxu1 }
 0x881   : > { %v46854_v52 = vadd.f32 %v27237_v27, %v48649_v32  ;;  %v46857_v7 = vadd.f32 %v27237_v27, %v46663_v15  ;;  %v28287_v2 = vpop.f32.mrf.mxu0 }
 0x882   : > { %v46860_v30 = vadd.f32 %v28287_v2, %v46752_v19  ;;  %v46863_v3 = vadd.f32 %v28287_v2, %v46671_v14  ;;  %v40964_v8 = vpop.f32.mrf.mxu1  ;;  %v48655_v2 = vld [vmem:[#allocation68_spill] sm:$0xff] }
 0x883   : > { %v41039_v46 = vpop.f32.mrf.mxu0 }
 0x884   : > { %48650 = vst [vmem:[#allocation15_spill] sm:$0xff] %v46860_v30  ;;  %48651 = vst [vmem:[#allocation86_spill] sm:$0xff] %v46863_v3  ;;  %v27377_v49 = vpop.f32.mrf.mxu1 }
 0x885   : > { %v46866_v44 = vadd.f32 %v27377_v49, %v48652_v6  ;;  %v46869_v31 = vadd.f32 %v27377_v49, %v46677_v4  ;;  %v28427_v32 = vpop.f32.mrf.mxu0 }
 0x886   : > { %v46872_v15 = vadd.f32 %v28427_v32, %v46764_v51  ;;  %v46875_v27 = vadd.f32 %v28427_v32, %v46683_v62  ;;  %v40974_v19 = vpop.f32.mrf.mxu1  ;;  %v48658_v32 = vld [vmem:[#allocation71_spill] sm:$0xff] }
 0x887   : > { %v41049_v30 = vpop.f32.mrf.mxu0 }
 0x888   : > { %48653 = vst [vmem:[#allocation87_spill] sm:$0xff] %v46872_v15  ;;  %48654 = vst [vmem:[#allocation16_spill] sm:$0xff] %v46875_v27  ;;  %v27517_v14 = vpop.f32.mrf.mxu1 }
 0x889   : > { %v46878_v8 = vadd.f32 %v27517_v14, %v48655_v2  ;;  %v46881_v46 = vadd.f32 %v27517_v14, %v46689_v26  ;;  %v28567_v6 = vpop.f32.mrf.mxu0 }
 0x88a   : > { %v46884_v4 = vadd.f32 %v28567_v6, %v46773_v40  ;;  %v46887_v49 = vadd.f32 %v28567_v6, %v46695_v16  ;;  %v40984_v51 = vpop.f32.mrf.mxu1  ;;  %v48661_v6 = vld [vmem:[#allocation77_spill] sm:$0xff] }
 0x88b   : > { %v41059_v15 = vpop.f32.mrf.mxu0 }
 0x88c   : > { %48656 = vst [vmem:[#allocation17_spill] sm:$0xff] %v46884_v4  ;;  %48657 = vst [vmem:[#allocation50_spill] sm:$0xff] %v46887_v49  ;;  %v27657_v62 = vpop.f32.mrf.mxu1  ;;  %v47092_v49 = vld [vmem:[#allocation7 + $0x10] sm:$0xff] }
 0x88d   : > { %v46890_v19 = vadd.f32 %v27657_v62, %v48658_v32  ;;  %v46893_v30 = vadd.f32 %v27657_v62, %v46701_v12  ;;  %v28707_v2 = vpop.f32.mrf.mxu0 }
 0x88e   : > { %v46896_v26 = vadd.f32 %v28707_v2, %v46785_v42  ;;  %v46899_v14 = vadd.f32 %v28707_v2, %v46707_v1  ;;  %v40994_v40 = vpop.f32.mrf.mxu1  ;;  %v48664_v2 = vld [vmem:[#allocation81_spill] sm:$0xff] }
 0x88f   : > { %v41069_v4 = vpop.f32.mrf.mxu0 }
 0x890   : > { %48659 = vst [vmem:[#allocation59_spill] sm:$0xff] %v46896_v26  ;;  %48660 = vst [vmem:[#allocation18_spill] sm:$0xff] %v46899_v14  ;;  %v27797_v16 = vpop.f32.mrf.mxu1 }
 0x891   : > { %v46902_v51 = vadd.f32 %v27797_v16, %v48661_v6  ;;  %v46905_v15 = vadd.f32 %v27797_v16, %v46713_v36  ;;  %v28847_v32 = vpop.f32.mrf.mxu0 }
 0x892   : > { %v46908_v12 = vadd.f32 %v28847_v32, %v46797_v50  ;;  %v46911_v62 = vadd.f32 %v28847_v32, %v46719_v5  ;;  %v41004_v42 = vpop.f32.mrf.mxu1 }
 0x893   : > { %v41079_v26 = vpop.f32.mrf.mxu0 }
 0x894   : > { %48662 = vst [vmem:[#allocation19_spill] sm:$0xff] %v46908_v12  ;;  %48663 = vst [vmem:[#allocation88_spill] sm:$0xff] %v46911_v62  ;;  %v27937_v1 = vpop.f32.mrf.mxu1 }
 0x895   : > { %v46914_v40 = vadd.f32 %v27937_v1, %v48664_v2  ;;  %v46917_v4 = vadd.f32 %v27937_v1, %v46725_v61  ;;  %v28987_v6 = vpop.f32.mrf.mxu0 }
 0x896   : > { %v46920_v36 = vadd.f32 %v28987_v6, %v46809_v20  ;;  %v46923_v16 = vadd.f32 %v28987_v6, %v46731_v11  ;;  %v41014_v50 = vpop.f32.mrf.mxu1 }
 0x897   : > { %v41089_v12 = vpop.f32.mrf.mxu0 }
 0x898   : > { %48665 = vst [vmem:[#allocation89_spill] sm:$0xff] %v46920_v36  ;;  %48666 = vst [vmem:[#allocation49_spill] sm:$0xff] %v46923_v16  ;;  %v28077_v5 = vpop.f32.mrf.mxu1 }
 0x899   : > { %v46926_v32 = vadd.f32 %v28077_v5, %v46645_v28  ;;  %v46929_v26 = vadd.f32 %v28077_v5, %v46737_v56  ;;  %v29127_v42 = vpop.f32.mrf.mxu0 }
 0x89a   : > { %v46932_v61 = vadd.f32 %v29127_v42, %v46821_v60  ;;  %v46935_v1 = vadd.f32 %v29127_v42, %v46743_v24  ;;  %v41024_v20 = vpop.f32.mrf.mxu1 }
 0x89b   : > { %v41099_v2 = vpop.f32.mrf.mxu0 }
 0x89c   : > { %48667 = vst [vmem:[#allocation69_spill] sm:$0xff] %v46932_v61  ;;  %48668 = vst [vmem:[#allocation20_spill] sm:$0xff] %v46935_v1  ;;  %v28217_v11 = vpop.f32.mrf.mxu1 }
 0x89d   : > { %v46938_v6 = vadd.f32 %v28217_v11, %v46658_v13  ;;  %v46941_v12 = vadd.f32 %v28217_v11, %v46749_v0  ;;  %v29267_v28 = vpop.f32.mrf.mxu0 }
 0x89e   : > { %v46944_v56 = vadd.f32 %v29267_v28, %v46833_v48  ;;  %v46947_v50 = vadd.f32 %v29267_v28, %v46755_v29  ;;  %v41034_v60 = vpop.f32.mrf.mxu1 }
 0x89f   : > { %48669 = vst [vmem:[#allocation21_spill] sm:$0xff] %v46938_v6  ;;  %48670 = vst [vmem:[#allocation45_spill] sm:$0xff] %v46941_v12  ;;  %v41109_v5 = vpop.f32.mrf.mxu0 }
 0x8a0   : > { %48671 = vst [vmem:[#allocation53_spill] sm:$0xff] %v46944_v56  ;;  %48672 = vst [vmem:[#allocation22_spill] sm:$0xff] %v46947_v50  ;;  %v28357_v24 = vpop.f32.mrf.mxu1 }
 0x8a1   : > { %v46950_v42 = vadd.f32 %v28357_v24, %v46674_v43  ;;  %v46953_v20 = vadd.f32 %v28357_v24, %v46761_v10  ;;  %v29407_v13 = vpop.f32.mrf.mxu0 }
 0x8a2   : > { %v46956_v0 = vadd.f32 %v29407_v13, %v46845_v33  ;;  %v41044_v2 = vpop.f32.mrf.mxu1 }
 0x8a3   : > { %v41119_v11 = vpop.f32.mrf.mxu0 }
 0x8a4   : > { %48673 = vst [vmem:[#allocation23_spill] sm:$0xff] %v46956_v0  ;;  %v28497_v48 = vpop.f32.mrf.mxu1 }
 0x8a5   : > { %v46959_v56 = vadd.f32 %v28497_v48, %v46686_v41  ;;  %v46962_v29 = vadd.f32 %v28497_v48, %v46770_v35  ;;  %v29776_v28 = vpop.f32.mrf.mxu0 }
 0x8a6   : > { %v46965_v43 = vadd.f32 %v29776_v28, %v46767_v23  ;;  %v41054_v60 = vpop.f32.mrf.mxu1 }
 0x8a7   : > { %v41180_v10 = vpop.f32.mrf.mxu0 }
 0x8a8   : > { %48674 = vst [vmem:[#allocation90_spill] sm:$0xff] %v46965_v43  ;;  %v28637_v5 = vpop.f32.mrf.mxu1 }
 0x8a9   : > { %v46968_v24 = vadd.f32 %v28637_v5, %v46698_v45  ;;  %v46971_v33 = vadd.f32 %v28637_v5, %v46782_v9 }
 0x8aa   : > { %v41064_v13 = vpop.f32.mrf.mxu1 }
 0x8ac   : > { %v28777_v2 = vpop.f32.mrf.mxu1 }
 0x8ad   : > { %v46974_v41 = vadd.f32 %v28777_v2, %v46710_v17  ;;  %v46977_v35 = vadd.f32 %v28777_v2, %v46794_v25  ;;  %v48679_v25 = vld [vmem:[#allocation82_spill] sm:$0xff] }
 0x8ae   : > { %v41074_v11 = vpop.f32.mrf.mxu1 }
 0x8b0   : > { %v28917_v23 = vpop.f32.mrf.mxu1 }
 0x8b1   : > { %v46980_v48 = vadd.f32 %v28917_v23, %v46722_v47  ;;  %v46983_v28 = vadd.f32 %v28917_v23, %v46806_v55 }
 0x8b2   : > { %v41084_v45 = vpop.f32.mrf.mxu1 }
 0x8b3   : > { %48675 = vst [vmem:[#allocation91_spill] sm:$0xff] %v46980_v48  ;;  %48676 = vst [vmem:[#allocation61_spill] sm:$0xff] %v46983_v28  ;;  %v47213_v48 = vld [vmem:[#allocation7 + $0x28] sm:$0xff] }
 0x8b4   : > { %v29057_v60 = vpop.f32.mrf.mxu1 }
 0x8b5   : > { %v46986_v9 = vadd.f32 %v29057_v60, %v46734_v39  ;;  %v46989_v10 = vadd.f32 %v29057_v60, %v46818_v22 }
 0x8b6   : > { %v41094_v17 = vpop.f32.mrf.mxu1 }
 0x8b7   : > { %48677 = vst [vmem:[#allocation24_spill] sm:$0xff] %v46986_v9  ;;  %48678 = vst [vmem:[#allocation25_spill] sm:$0xff] %v46989_v10  ;;  %v48684_v17 = vld [vmem:[#allocation62_spill] sm:$0xff] }
 0x8b8   : > { %v29197_v5 = vpop.f32.mrf.mxu1 }
 0x8b9   : > { %v46992_v13 = vadd.f32 %v29197_v5, %v48679_v25  ;;  %v46995_v2 = vadd.f32 %v29197_v5, %v46830_v58  ;;  %v48685_v58 = vmov 0.0  }
 0x8ba   : > { %v41104_v47 = vpop.f32.mrf.mxu1 }
 0x8bb   : > { %48680 = vst [vmem:[#allocation51_spill] sm:$0xff] %v46992_v13  ;;  %48681 = vst [vmem:[#allocation26_spill] sm:$0xff] %v46995_v2 }
 0x8bc   : > { %v29337_v11 = vpop.f32.mrf.mxu1 }
 0x8bd   : > { %v46998_v55 = vadd.f32 %v29337_v11, %v46758_v54  ;;  %v47001_v23 = vadd.f32 %v29337_v11, %v46842_v37 }
 0x8be   : > { %v41114_v39 = vpop.f32.mrf.mxu1 }
 0x8bf   : > { %48682 = vst [vmem:[#allocation27_spill] sm:$0xff] %v46998_v55  ;;  %48683 = vst [vmem:[#allocation72_spill] sm:$0xff] %v47001_v23 }
 0x8c4   : > { %v47003_v45 = vpop.f32.mrf.mxu1 }
 0x8c6   : > { %v47005_v22 = vpop.f32.mrf.mxu1 }
 0x8c7   : > { %41182 = vmatpush3.msra.mxu0 %v47005_v22 }
 0x8c8   : > { %v47008_v60 = vpop.f32.mrf.mxu1  ;;  %41184 = vmatmul.mubr.msk.f32.vlgmr.msra.gmra.mxu0 %vm13072_vm5, %v48684_v17  ;;  %41186 = vmatprep.subr.mxu0 %v48685_v58 }
 0x8c9   : > { %41187 = vmatpush3.msra.mxu0 %v47003_v45  ;;  %41188 = vmatprep.mubr.msk.f32.mxu0 %vm41919_vm1, %v48685_v58 }
 0x8ca   : > { %v47016_v54 = vpop.f32.mrf.mxu1  ;;  %41191 = vmatprep.subr.mxu0 %v48685_v58 }
 0x8cc   : > { %v47019_v37 = vpop.f32.mrf.mxu1  ;;  %41189 = vmatmul.mubr.msk.f32.vlgmr.msra.gmra.mxu0 %vm13072_vm5, %v48684_v17 }
 0x8cd   : > { %41192 = vmatpush3.msra.mxu0 %v47016_v54  ;;  %41193 = vmatprep.mubr.msk.f32.mxu0 %vm41919_vm1, %v48685_v58 }
 0x8ce   : > { %v47026_v5 = vpop.f32.mrf.mxu1  ;;  %41196 = vmatprep.subr.mxu0 %v48685_v58 }
 0x8d0   : > { %v47029_v25 = vpop.f32.mrf.mxu1  ;;  %41194 = vmatmul.mubr.msk.f32.vlgmr.msra.gmra.mxu0 %vm13072_vm5, %v48684_v17 }
 0x8d1   : > { %41197 = vmatpush3.msra.mxu0 %v47008_v60  ;;  %41198 = vmatprep.mubr.msk.f32.mxu0 %vm41919_vm1, %v48685_v58 }
 0x8d2   : > { %v47036_v47 = vpop.f32.mrf.mxu1  ;;  %41201 = vmatprep.subr.mxu0 %v48685_v58 }
 0x8d4   : > { %v47039_v11 = vpop.f32.mrf.mxu1  ;;  %41199 = vmatmul.mubr.msk.f32.vlgmr.msra.gmra.mxu0 %vm13072_vm5, %v48684_v17 }
 0x8d5   : > { %41202 = vmatpush3.msra.mxu0 %v47026_v5  ;;  %41203 = vmatprep.mubr.msk.f32.mxu0 %vm41919_vm1, %v48685_v58 }
 0x8d6   : > { %v47046_v39 = vpop.f32.mrf.mxu1  ;;  %41206 = vmatprep.subr.mxu0 %v48685_v58 }
 0x8d8   : > { %v47049_v43 = vpop.f32.mrf.mxu1  ;;  %41204 = vmatmul.mubr.msk.f32.vlgmr.msra.gmra.mxu0 %vm13072_vm5, %v48684_v17 }
 0x8d9   : > { %41207 = vmatpush3.msra.mxu0 %v47019_v37  ;;  %41208 = vmatprep.mubr.msk.f32.mxu0 %vm41919_vm1, %v48685_v58 }
 0x8da   : > { %v47056_v0 = vpop.f32.mrf.mxu1  ;;  %41211 = vmatprep.subr.mxu0 %v48685_v58 }
 0x8dc   : > { %v47059_v50 = vpop.f32.mrf.mxu1  ;;  %41209 = vmatmul.mubr.msk.f32.vlgmr.msra.gmra.mxu0 %vm13072_vm5, %v48684_v17 }
 0x8dd   : > { %41212 = vmatpush3.msra.mxu0 %v47036_v47  ;;  %41213 = vmatprep.mubr.msk.f32.mxu0 %vm41919_vm1, %v48685_v58 }
 0x8de   : > { %v47066_v1 = vpop.f32.mrf.mxu1  ;;  %41216 = vmatprep.subr.mxu0 %v48685_v58 }
 0x8e0   : > { %v47069_v61 = vpop.f32.mrf.mxu1  ;;  %41214 = vmatmul.mubr.msk.f32.vlgmr.msra.gmra.mxu0 %vm13072_vm5, %v48684_v17 }
 0x8e1   : > { %41217 = vmatpush3.msra.mxu0 %v47029_v25  ;;  %41218 = vmatprep.mubr.msk.f32.mxu0 %vm41919_vm1, %v48685_v58 }
 0x8e2   : > { %v47076_v16 = vpop.f32.mrf.mxu1  ;;  %41221 = vmatprep.subr.mxu0 %v48685_v58 }
 0x8e4   : > { %v47079_v36 = vpop.f32.mrf.mxu1  ;;  %41219 = vmatmul.mubr.msk.f32.vlgmr.msra.gmra.mxu0 %vm13072_vm5, %v48684_v17 }
 0x8e5   : > { %41222 = vmatpush3.msra.mxu0 %v47046_v39  ;;  %41223 = vmatprep.mubr.msk.f32.mxu0 %vm41919_vm1, %v48685_v58 }
 0x8e6   : > { %v47086_v62 = vpop.f32.mrf.mxu1  ;;  %41226 = vmatprep.subr.mxu0 %v48685_v58 }
 0x8e7   : > { %41262 = vmatpush3.msra.mxu1 %v47086_v62 }
 0x8e8   : > { %v47090_v14 = vpop.f32.mrf.mxu1  ;;  %41224 = vmatmul.mubr.msk.f32.vlgmr.msra.gmra.mxu0 %vm13072_vm5, %v47092_v49  ;;  %41264 = vmatmul.mubr.msk.f32.vlgmr.msra.gmra.mxu1 %vm13072_vm5, %v47092_v49 }
 0x8e9   : > { %41227 = vmatpush3.msra.mxu0 %v47039_v11  ;;  %41271 = vmatprep.subr.mxu1 %v48685_v58 }
 0x8ea   : > { %v47100_v17 = vpop.f32.mrf.mxu1  ;;  %41228 = vmatprep.mubr.msk.f32.mxu0 %vm41919_vm1, %v48685_v58  ;;  %41231 = vmatprep.subr.mxu0 %v48685_v58 }
 0x8eb   : > { %41272 = vmatpush3.msra.mxu1 %v47100_v17  ;;  %41273 = vmatprep.mubr.msk.f32.mxu1 %vm41919_vm1, %v48685_v58 }
 0x8ec   : > { %v47108_v27 = vpop.f32.mrf.mxu1  ;;  %41229 = vmatmul.mubr.msk.f32.vlgmr.msra.gmra.mxu0 %vm13072_vm5, %v47092_v49  ;;  %41274 = vmatmul.mubr.msk.f32.vlgmr.msra.gmra.mxu1 %vm13072_vm5, %v47092_v49 }
 0x8ed   : > { %41232 = vmatpush3.msra.mxu0 %v47056_v0  ;;  %41281 = vmatprep.subr.mxu1 %v48685_v58 }
 0x8ee   : > { %v47116_v23 = vpop.f32.mrf.mxu1  ;;  %41233 = vmatprep.mubr.msk.f32.mxu0 %vm41919_vm1, %v48685_v58  ;;  %41236 = vmatprep.subr.mxu0 %v48685_v58 }
 0x8ef   : > { %41282 = vmatpush3.msra.mxu1 %v47116_v23  ;;  %41283 = vmatprep.mubr.msk.f32.mxu1 %vm41919_vm1, %v48685_v58 }
 0x8f0   : > { %v47124_v55 = vpop.f32.mrf.mxu1  ;;  %41234 = vmatmul.mubr.msk.f32.vlgmr.msra.gmra.mxu0 %vm13072_vm5, %v47092_v49  ;;  %41284 = vmatmul.mubr.msk.f32.vlgmr.msra.gmra.mxu1 %vm13072_vm5, %v47092_v49 }
 0x8f1   : > { %41237 = vmatpush3.msra.mxu0 %v47049_v43  ;;  %41291 = vmatprep.subr.mxu1 %v48685_v58 }
 0x8f2   : > { %v47132_v3 = vpop.f32.mrf.mxu1  ;;  %41238 = vmatprep.mubr.msk.f32.mxu0 %vm41919_vm1, %v48685_v58  ;;  %41241 = vmatprep.subr.mxu0 %v48685_v58 }
 0x8f3   : > { %41292 = vmatpush3.msra.mxu1 %v47132_v3  ;;  %41293 = vmatprep.mubr.msk.f32.mxu1 %vm41919_vm1, %v48685_v58 }
 0x8f4   : > { %v47140_v2 = vpop.f32.mrf.mxu1  ;;  %41239 = vmatmul.mubr.msk.f32.vlgmr.msra.gmra.mxu0 %vm13072_vm5, %v47092_v49  ;;  %41294 = vmatmul.mubr.msk.f32.vlgmr.msra.gmra.mxu1 %vm13072_vm5, %v47092_v49 }
 0x8f5   : > { %41242 = vmatpush3.msra.mxu0 %v47066_v1  ;;  %41301 = vmatprep.subr.mxu1 %v48685_v58 }
 0x8f6   : > { %v47148_v13 = vpop.f32.mrf.mxu1  ;;  %41243 = vmatprep.mubr.msk.f32.mxu0 %vm41919_vm1, %v48685_v58  ;;  %41246 = vmatprep.subr.mxu0 %v48685_v58 }
 0x8f7   : > { %41302 = vmatpush3.msra.mxu1 %v47148_v13  ;;  %41303 = vmatprep.mubr.msk.f32.mxu1 %vm41919_vm1, %v48685_v58 }
 0x8f8   : > { %v47156_v12 = vpop.f32.mrf.mxu1  ;;  %41244 = vmatmul.mubr.msk.f32.vlgmr.msra.gmra.mxu0 %vm13072_vm5, %v47092_v49  ;;  %41304 = vmatmul.mubr.msk.f32.vlgmr.msra.gmra.mxu1 %vm13072_vm5, %v47092_v49 }
 0x8f9   : > { %41247 = vmatpush3.msra.mxu0 %v47059_v50  ;;  %41311 = vmatprep.subr.mxu1 %v48685_v58 }
 0x8fa   : > { %v47164_v6 = vpop.f32.mrf.mxu1  ;;  %41248 = vmatprep.mubr.msk.f32.mxu0 %vm41919_vm1, %v48685_v58  ;;  %41251 = vmatprep.subr.mxu0 %v48685_v58 }
 0x8fb   : > { %41312 = vmatpush3.msra.mxu1 %v47164_v6  ;;  %41313 = vmatprep.mubr.msk.f32.mxu1 %vm41919_vm1, %v48685_v58 }
 0x8fc   : > { %v47172_v10 = vpop.f32.mrf.mxu1  ;;  %41249 = vmatmul.mubr.msk.f32.vlgmr.msra.gmra.mxu0 %vm13072_vm5, %v47092_v49  ;;  %41314 = vmatmul.mubr.msk.f32.vlgmr.msra.gmra.mxu1 %vm13072_vm5, %v47092_v49 }
 0x8fd   : > { %41252 = vmatpush3.msra.mxu0 %v47076_v16  ;;  %41321 = vmatprep.subr.mxu1 %v48685_v58 }
 0x8fe   : > { %v47180_v9 = vpop.f32.mrf.mxu1  ;;  %41253 = vmatprep.mubr.msk.f32.mxu0 %vm41919_vm1, %v48685_v58  ;;  %41256 = vmatprep.subr.mxu0 %v48685_v58 }
 0x8ff   : > { %41322 = vmatpush3.msra.mxu1 %v47180_v9  ;;  %41323 = vmatprep.mubr.msk.f32.mxu1 %vm41919_vm1, %v48685_v58 }
 0x900   : > { %v47188_v34 = vpop.f32.mrf.mxu1  ;;  %41254 = vmatmul.mubr.msk.f32.vlgmr.msra.gmra.mxu0 %vm13072_vm5, %v47092_v49  ;;  %41324 = vmatmul.mubr.msk.f32.vlgmr.msra.gmra.mxu1 %vm13072_vm5, %v47092_v49 }
 0x901   : > { %41257 = vmatpush3.msra.mxu0 %v47069_v61  ;;  %41331 = vmatprep.subr.mxu1 %v48685_v58 }
 0x902   : > { %v47196_v28 = vpop.f32.mrf.mxu1  ;;  %41258 = vmatprep.mubr.msk.f32.mxu0 %vm41919_vm1, %v48685_v58  ;;  %41266 = vmatprep.subr.mxu0 %v48685_v58 }
 0x903   : > { %41332 = vmatpush3.msra.mxu1 %v47196_v28  ;;  %41333 = vmatprep.mubr.msk.f32.mxu1 %vm41919_vm1, %v48685_v58 }
 0x904   : > { %41259 = vmatmul.mubr.msk.f32.vlgmr.msra.gmra.mxu0 %vm13072_vm5, %v47092_v49  ;;  %41334 = vmatmul.mubr.msk.f32.vlgmr.msra.gmra.mxu1 %vm13072_vm5, %v47092_v49 }
 0x905   : > { %41267 = vmatpush3.msra.mxu0 %v47079_v36  ;;  %41341 = vmatprep.subr.mxu1 %v48685_v58 }
 0x906   : > { %41342 = vmatpush3.msra.mxu1 %v47005_v22  ;;  %41268 = vmatprep.mubr.msk.f32.mxu0 %vm41919_vm1, %v48685_v58 }
 0x907   : > { %41276 = vmatprep.subr.mxu0 %v48685_v58  ;;  %41343 = vmatprep.mubr.msk.f32.mxu1 %vm41919_vm1, %v48685_v58 }
 0x908   : > { %41351 = vmatprep.subr.mxu1 %v48685_v58  ;;  %41269 = vmatmul.mubr.msk.f32.vlgmr.msra.gmra.mxu0 %vm13072_vm5, %v47092_v49 }
 0x909   : > { %41277 = vmatpush3.msra.mxu0 %v47090_v14  ;;  %41344 = vmatmul.mubr.msk.f32.vlgmr.msra.gmra.mxu1 %vm13072_vm5, %v47213_v48 }
 0x90a   : > { %41352 = vmatpush3.msra.mxu1 %v47016_v54  ;;  %41278 = vmatprep.mubr.msk.f32.mxu0 %vm41919_vm1, %v48685_v58 }
 0x90b   : > { %41286 = vmatprep.subr.mxu0 %v48685_v58  ;;  %41353 = vmatprep.mubr.msk.f32.mxu1 %vm41919_vm1, %v48685_v58 }
 0x90c   : > { %41361 = vmatprep.subr.mxu1 %v48685_v58  ;;  %41279 = vmatmul.mubr.msk.f32.vlgmr.msra.gmra.mxu0 %vm13072_vm5, %v47092_v49 }
 0x90d   : > { %41287 = vmatpush3.msra.mxu0 %v47108_v27  ;;  %41354 = vmatmul.mubr.msk.f32.vlgmr.msra.gmra.mxu1 %vm13072_vm5, %v47213_v48 }
 0x90e   : > { %41362 = vmatpush3.msra.mxu1 %v47026_v5  ;;  %41288 = vmatprep.mubr.msk.f32.mxu0 %vm41919_vm1, %v48685_v58 }
 0x90f   : > { %41296 = vmatprep.subr.mxu0 %v48685_v58  ;;  %41363 = vmatprep.mubr.msk.f32.mxu1 %vm41919_vm1, %v48685_v58 }
 0x910   : > { %41371 = vmatprep.subr.mxu1 %v48685_v58  ;;  %41289 = vmatmul.mubr.msk.f32.vlgmr.msra.gmra.mxu0 %vm13072_vm5, %v47092_v49 }
 0x911   : > { %41297 = vmatpush3.msra.mxu0 %v47124_v55  ;;  %41364 = vmatmul.mubr.msk.f32.vlgmr.msra.gmra.mxu1 %vm13072_vm5, %v47213_v48 }
 0x912   : > { %41372 = vmatpush3.msra.mxu1 %v47036_v47  ;;  %41298 = vmatprep.mubr.msk.f32.mxu0 %vm41919_vm1, %v48685_v58 }
 0x913   : > { %41306 = vmatprep.subr.mxu0 %v48685_v58  ;;  %41373 = vmatprep.mubr.msk.f32.mxu1 %vm41919_vm1, %v48685_v58 }
 0x914   : > { %41381 = vmatprep.subr.mxu1 %v48685_v58  ;;  %41299 = vmatmul.mubr.msk.f32.vlgmr.msra.gmra.mxu0 %vm13072_vm5, %v47092_v49 }
 0x915   : > { %41307 = vmatpush3.msra.mxu0 %v47140_v2  ;;  %41374 = vmatmul.mubr.msk.f32.vlgmr.msra.gmra.mxu1 %vm13072_vm5, %v47213_v48 }
 0x916   : > { %41382 = vmatpush3.msra.mxu1 %v47046_v39  ;;  %41308 = vmatprep.mubr.msk.f32.mxu0 %vm41919_vm1, %v48685_v58 }
 0x917   : > { %41316 = vmatprep.subr.mxu0 %v48685_v58  ;;  %41383 = vmatprep.mubr.msk.f32.mxu1 %vm41919_vm1, %v48685_v58 }
 0x918   : > { %41391 = vmatprep.subr.mxu1 %v48685_v58  ;;  %41309 = vmatmul.mubr.msk.f32.vlgmr.msra.gmra.mxu0 %vm13072_vm5, %v47092_v49 }
 0x919   : > { %41317 = vmatpush3.msra.mxu0 %v47156_v12  ;;  %41384 = vmatmul.mubr.msk.f32.vlgmr.msra.gmra.mxu1 %vm13072_vm5, %v47213_v48 }
 0x91a   : > { %41392 = vmatpush3.msra.mxu1 %v47056_v0  ;;  %41318 = vmatprep.mubr.msk.f32.mxu0 %vm41919_vm1, %v48685_v58 }
 0x91b   : > { %41326 = vmatprep.subr.mxu0 %v48685_v58  ;;  %41393 = vmatprep.mubr.msk.f32.mxu1 %vm41919_vm1, %v48685_v58 }
 0x91c   : > { %41401 = vmatprep.subr.mxu1 %v48685_v58  ;;  %41319 = vmatmul.mubr.msk.f32.vlgmr.msra.gmra.mxu0 %vm13072_vm5, %v47092_v49 }
 0x91d   : > { %41327 = vmatpush3.msra.mxu0 %v47172_v10  ;;  %41394 = vmatmul.mubr.msk.f32.vlgmr.msra.gmra.mxu1 %vm13072_vm5, %v47213_v48 }
 0x91e   : > { %41402 = vmatpush3.msra.mxu1 %v47066_v1  ;;  %41328 = vmatprep.mubr.msk.f32.mxu0 %vm41919_vm1, %v48685_v58 }
 0x91f   : > { %41336 = vmatprep.subr.mxu0 %v48685_v58  ;;  %41403 = vmatprep.mubr.msk.f32.mxu1 %vm41919_vm1, %v48685_v58 }
 0x920   : > { %41411 = vmatprep.subr.mxu1 %v48685_v58  ;;  %41329 = vmatmul.mubr.msk.f32.vlgmr.msra.gmra.mxu0 %vm13072_vm5, %v47092_v49 }
 0x921   : > { %41337 = vmatpush3.msra.mxu0 %v47188_v34  ;;  %41404 = vmatmul.mubr.msk.f32.vlgmr.msra.gmra.mxu1 %vm13072_vm5, %v47213_v48 }
 0x922   : > { %41412 = vmatpush3.msra.mxu1 %v47076_v16  ;;  %41338 = vmatprep.mubr.msk.f32.mxu0 %vm41919_vm1, %v48685_v58 }
 0x923   : > { %41346 = vmatprep.subr.mxu0 %v48685_v58  ;;  %41413 = vmatprep.mubr.msk.f32.mxu1 %vm41919_vm1, %v48685_v58 }
 0x924   : > { %41421 = vmatprep.subr.mxu1 %v48685_v58  ;;  %41339 = vmatmul.mubr.msk.f32.vlgmr.msra.gmra.mxu0 %vm13072_vm5, %v47092_v49  ;;  %v47407_v49 = vld [vmem:[#allocation7 + $0x40] sm:$0xff] }
 0x925   : > { %41347 = vmatpush3.msra.mxu0 %v47003_v45  ;;  %41414 = vmatmul.mubr.msk.f32.vlgmr.msra.gmra.mxu1 %vm13072_vm5, %v47213_v48 }
 0x926   : > { %41422 = vmatpush3.msra.mxu1 %v47086_v62  ;;  %41348 = vmatprep.mubr.msk.f32.mxu0 %vm41919_vm1, %v48685_v58 }
 0x927   : > { %41356 = vmatprep.subr.mxu0 %v48685_v58  ;;  %41423 = vmatprep.mubr.msk.f32.mxu1 %vm41919_vm1, %v48685_v58 }
 0x928   : > { %41431 = vmatprep.subr.mxu1 %v48685_v58  ;;  %41349 = vmatmul.mubr.msk.f32.vlgmr.msra.gmra.mxu0 %vm13072_vm5, %v47213_v48 }
 0x929   : > { %41357 = vmatpush3.msra.mxu0 %v47008_v60  ;;  %41424 = vmatmul.mubr.msk.f32.vlgmr.msra.gmra.mxu1 %vm13072_vm5, %v47213_v48 }
 0x92a   : > { %41432 = vmatpush3.msra.mxu1 %v47100_v17  ;;  %41358 = vmatprep.mubr.msk.f32.mxu0 %vm41919_vm1, %v48685_v58 }
 0x92b   : > { %41366 = vmatprep.subr.mxu0 %v48685_v58  ;;  %41433 = vmatprep.mubr.msk.f32.mxu1 %vm41919_vm1, %v48685_v58 }
 0x92c   : > { %41441 = vmatprep.subr.mxu1 %v48685_v58  ;;  %41359 = vmatmul.mubr.msk.f32.vlgmr.msra.gmra.mxu0 %vm13072_vm5, %v47213_v48 }
 0x92d   : > { %41367 = vmatpush3.msra.mxu0 %v47019_v37  ;;  %41434 = vmatmul.mubr.msk.f32.vlgmr.msra.gmra.mxu1 %vm13072_vm5, %v47213_v48 }
 0x92e   : > { %41442 = vmatpush3.msra.mxu1 %v47116_v23  ;;  %41368 = vmatprep.mubr.msk.f32.mxu0 %vm41919_vm1, %v48685_v58 }
 0x92f   : > { %41376 = vmatprep.subr.mxu0 %v48685_v58  ;;  %41443 = vmatprep.mubr.msk.f32.mxu1 %vm41919_vm1, %v48685_v58 }
 0x930   : > { %41451 = vmatprep.subr.mxu1 %v48685_v58  ;;  %41369 = vmatmul.mubr.msk.f32.vlgmr.msra.gmra.mxu0 %vm13072_vm5, %v47213_v48 }
 0x931   : > { %41377 = vmatpush3.msra.mxu0 %v47029_v25  ;;  %41444 = vmatmul.mubr.msk.f32.vlgmr.msra.gmra.mxu1 %vm13072_vm5, %v47213_v48 }
 0x932   : > { %41452 = vmatpush3.msra.mxu1 %v47132_v3  ;;  %41378 = vmatprep.mubr.msk.f32.mxu0 %vm41919_vm1, %v48685_v58 }
 0x933   : > { %41386 = vmatprep.subr.mxu0 %v48685_v58  ;;  %41453 = vmatprep.mubr.msk.f32.mxu1 %vm41919_vm1, %v48685_v58 }
 0x934   : > { %41461 = vmatprep.subr.mxu1 %v48685_v58  ;;  %41379 = vmatmul.mubr.msk.f32.vlgmr.msra.gmra.mxu0 %vm13072_vm5, %v47213_v48 }
 0x935   : > { %41387 = vmatpush3.msra.mxu0 %v47039_v11  ;;  %41454 = vmatmul.mubr.msk.f32.vlgmr.msra.gmra.mxu1 %vm13072_vm5, %v47213_v48 }
 0x936   : > { %41462 = vmatpush3.msra.mxu1 %v47148_v13  ;;  %41388 = vmatprep.mubr.msk.f32.mxu0 %vm41919_vm1, %v48685_v58 }
 0x937   : > { %41396 = vmatprep.subr.mxu0 %v48685_v58  ;;  %41463 = vmatprep.mubr.msk.f32.mxu1 %vm41919_vm1, %v48685_v58 }
 0x938   : > { %41471 = vmatprep.subr.mxu1 %v48685_v58  ;;  %41389 = vmatmul.mubr.msk.f32.vlgmr.msra.gmra.mxu0 %vm13072_vm5, %v47213_v48 }
 0x939   : > { %41397 = vmatpush3.msra.mxu0 %v47049_v43  ;;  %41464 = vmatmul.mubr.msk.f32.vlgmr.msra.gmra.mxu1 %vm13072_vm5, %v47213_v48 }
 0x93a   : > { %41472 = vmatpush3.msra.mxu1 %v47164_v6  ;;  %41398 = vmatprep.mubr.msk.f32.mxu0 %vm41919_vm1, %v48685_v58 }
 0x93b   : > { %41406 = vmatprep.subr.mxu0 %v48685_v58  ;;  %41473 = vmatprep.mubr.msk.f32.mxu1 %vm41919_vm1, %v48685_v58 }
 0x93c   : > { %41481 = vmatprep.subr.mxu1 %v48685_v58  ;;  %41399 = vmatmul.mubr.msk.f32.vlgmr.msra.gmra.mxu0 %vm13072_vm5, %v47213_v48 }
 0x93d   : > { %41407 = vmatpush3.msra.mxu0 %v47059_v50  ;;  %41474 = vmatmul.mubr.msk.f32.vlgmr.msra.gmra.mxu1 %vm13072_vm5, %v47213_v48 }
 0x93e   : > { %41482 = vmatpush3.msra.mxu1 %v47180_v9  ;;  %41408 = vmatprep.mubr.msk.f32.mxu0 %vm41919_vm1, %v48685_v58 }
 0x93f   : > { %41416 = vmatprep.subr.mxu0 %v48685_v58  ;;  %41483 = vmatprep.mubr.msk.f32.mxu1 %vm41919_vm1, %v48685_v58 }
 0x940   : > { %41491 = vmatprep.subr.mxu1 %v48685_v58  ;;  %41409 = vmatmul.mubr.msk.f32.vlgmr.msra.gmra.mxu0 %vm13072_vm5, %v47213_v48 }
 0x941   : > { %41417 = vmatpush3.msra.mxu0 %v47069_v61  ;;  %41484 = vmatmul.mubr.msk.f32.vlgmr.msra.gmra.mxu1 %vm13072_vm5, %v47213_v48 }
 0x942   : > { %41492 = vmatpush3.msra.mxu1 %v47196_v28  ;;  %41418 = vmatprep.mubr.msk.f32.mxu0 %vm41919_vm1, %v48685_v58 }
 0x943   : > { %41426 = vmatprep.subr.mxu0 %v48685_v58  ;;  %41493 = vmatprep.mubr.msk.f32.mxu1 %vm41919_vm1, %v48685_v58 }
 0x944   : > { %41501 = vmatprep.subr.mxu1 %v48685_v58  ;;  %41419 = vmatmul.mubr.msk.f32.vlgmr.msra.gmra.mxu0 %vm13072_vm5, %v47213_v48 }
 0x945   : > { %41427 = vmatpush3.msra.mxu0 %v47079_v36  ;;  %41494 = vmatmul.mubr.msk.f32.vlgmr.msra.gmra.mxu1 %vm13072_vm5, %v47213_v48 }
 0x946   : > { %41502 = vmatpush3.msra.mxu1 %v47005_v22  ;;  %41428 = vmatprep.mubr.msk.f32.mxu0 %vm41919_vm1, %v48685_v58 }
 0x947   : > { %41436 = vmatprep.subr.mxu0 %v48685_v58  ;;  %41503 = vmatprep.mubr.msk.f32.mxu1 %vm41919_vm1, %v48685_v58 }
 0x948   : > { %41511 = vmatprep.subr.mxu1 %v48685_v58  ;;  %41429 = vmatmul.mubr.msk.f32.vlgmr.msra.gmra.mxu0 %vm13072_vm5, %v47213_v48 }
 0x949   : > { %41437 = vmatpush3.msra.mxu0 %v47090_v14  ;;  %41504 = vmatmul.mubr.msk.f32.vlgmr.msra.gmra.mxu1 %vm13072_vm5, %v47407_v49 }
 0x94a   : > { %41512 = vmatpush3.msra.mxu1 %v47016_v54  ;;  %41438 = vmatprep.mubr.msk.f32.mxu0 %vm41919_vm1, %v48685_v58 }
 0x94b   : > { %41446 = vmatprep.subr.mxu0 %v48685_v58  ;;  %41513 = vmatprep.mubr.msk.f32.mxu1 %vm41919_vm1, %v48685_v58 }
 0x94c   : > { %41521 = vmatprep.subr.mxu1 %v48685_v58  ;;  %41439 = vmatmul.mubr.msk.f32.vlgmr.msra.gmra.mxu0 %vm13072_vm5, %v47213_v48 }
 0x94d   : > { %41447 = vmatpush3.msra.mxu0 %v47108_v27  ;;  %41514 = vmatmul.mubr.msk.f32.vlgmr.msra.gmra.mxu1 %vm13072_vm5, %v47407_v49 }
 0x94e   : > { %41522 = vmatpush3.msra.mxu1 %v47026_v5  ;;  %41448 = vmatprep.mubr.msk.f32.mxu0 %vm41919_vm1, %v48685_v58 }
 0x94f   : > { %41456 = vmatprep.subr.mxu0 %v48685_v58  ;;  %41523 = vmatprep.mubr.msk.f32.mxu1 %vm41919_vm1, %v48685_v58 }
 0x950   : > { %41531 = vmatprep.subr.mxu1 %v48685_v58  ;;  %41449 = vmatmul.mubr.msk.f32.vlgmr.msra.gmra.mxu0 %vm13072_vm5, %v47213_v48 }
 0x951   : > { %41457 = vmatpush3.msra.mxu0 %v47124_v55  ;;  %41524 = vmatmul.mubr.msk.f32.vlgmr.msra.gmra.mxu1 %vm13072_vm5, %v47407_v49 }
 0x952   : > { %41532 = vmatpush3.msra.mxu1 %v47036_v47  ;;  %41458 = vmatprep.mubr.msk.f32.mxu0 %vm41919_vm1, %v48685_v58 }
 0x953   : > { %41466 = vmatprep.subr.mxu0 %v48685_v58  ;;  %41533 = vmatprep.mubr.msk.f32.mxu1 %vm41919_vm1, %v48685_v58 }
 0x954   : > { %41541 = vmatprep.subr.mxu1 %v48685_v58  ;;  %41459 = vmatmul.mubr.msk.f32.vlgmr.msra.gmra.mxu0 %vm13072_vm5, %v47213_v48 }
 0x955   : > { %41467 = vmatpush3.msra.mxu0 %v47140_v2  ;;  %41534 = vmatmul.mubr.msk.f32.vlgmr.msra.gmra.mxu1 %vm13072_vm5, %v47407_v49 }
 0x956   : > { %41542 = vmatpush3.msra.mxu1 %v47046_v39  ;;  %41468 = vmatprep.mubr.msk.f32.mxu0 %vm41919_vm1, %v48685_v58  ;;  %v48691_v39 = vld [vmem:[#allocation12_spill] sm:$0xff] }
 0x957   : > { %41476 = vmatprep.subr.mxu0 %v48685_v58  ;;  %41543 = vmatprep.mubr.msk.f32.mxu1 %vm41919_vm1, %v48685_v58 }
 0x958   : > { %41551 = vmatprep.subr.mxu1 %v48685_v58  ;;  %41469 = vmatmul.mubr.msk.f32.vlgmr.msra.gmra.mxu0 %vm13072_vm5, %v47213_v48 }
 0x959   : > { %41477 = vmatpush3.msra.mxu0 %v47156_v12  ;;  %41544 = vmatmul.mubr.msk.f32.vlgmr.msra.gmra.mxu1 %vm13072_vm5, %v47407_v49 }
 0x95a   : > { %41552 = vmatpush3.msra.mxu1 %v47056_v0  ;;  %41478 = vmatprep.mubr.msk.f32.mxu0 %vm41919_vm1, %v48685_v58 }
 0x95b   : > { %41486 = vmatprep.subr.mxu0 %v48685_v58  ;;  %41553 = vmatprep.mubr.msk.f32.mxu1 %vm41919_vm1, %v48685_v58 }
 0x95c   : > { %41561 = vmatprep.subr.mxu1 %v48685_v58  ;;  %41479 = vmatmul.mubr.msk.f32.vlgmr.msra.gmra.mxu0 %vm13072_vm5, %v47213_v48 }
 0x95d   : > { %41487 = vmatpush3.msra.mxu0 %v47172_v10  ;;  %41554 = vmatmul.mubr.msk.f32.vlgmr.msra.gmra.mxu1 %vm13072_vm5, %v47407_v49 }
 0x95e   : > { %41562 = vmatpush3.msra.mxu1 %v47066_v1  ;;  %41488 = vmatprep.mubr.msk.f32.mxu0 %vm41919_vm1, %v48685_v58 }
 0x95f   : > { %41496 = vmatprep.subr.mxu0 %v48685_v58  ;;  %41563 = vmatprep.mubr.msk.f32.mxu1 %vm41919_vm1, %v48685_v58 }
 0x960   : > { %41571 = vmatprep.subr.mxu1 %v48685_v58  ;;  %41489 = vmatmul.mubr.msk.f32.vlgmr.msra.gmra.mxu0 %vm13072_vm5, %v47213_v48 }
 0x961   : > { %41497 = vmatpush3.msra.mxu0 %v47188_v34  ;;  %41564 = vmatmul.mubr.msk.f32.vlgmr.msra.gmra.mxu1 %vm13072_vm5, %v47407_v49 }
 0x962   : > { %41572 = vmatpush3.msra.mxu1 %v47076_v16  ;;  %41498 = vmatprep.mubr.msk.f32.mxu0 %vm41919_vm1, %v48685_v58 }
 0x963   : > { %41506 = vmatprep.subr.mxu0 %v48685_v58  ;;  %41573 = vmatprep.mubr.msk.f32.mxu1 %vm41919_vm1, %v48685_v58 }
 0x964   : > { %41581 = vmatprep.subr.mxu1 %v48685_v58  ;;  %41499 = vmatmul.mubr.msk.f32.vlgmr.msra.gmra.mxu0 %vm13072_vm5, %v47213_v48 }
 0x965   : > { %41507 = vmatpush3.msra.mxu0 %v47003_v45  ;;  %41574 = vmatmul.mubr.msk.f32.vlgmr.msra.gmra.mxu1 %vm13072_vm5, %v47407_v49  ;;  %v48688_v45 = vld [vmem:[#allocation44_spill] sm:$0xff] }
 0x966   : > { %41582 = vmatpush3.msra.mxu1 %v47086_v62  ;;  %41508 = vmatprep.mubr.msk.f32.mxu0 %vm41919_vm1, %v48685_v58 }
 0x967   : > { %41516 = vmatprep.subr.mxu0 %v48685_v58  ;;  %41583 = vmatprep.mubr.msk.f32.mxu1 %vm41919_vm1, %v48685_v58 }
 0x968   : > { %41591 = vmatprep.subr.mxu1 %v48685_v58  ;;  %41509 = vmatmul.mubr.msk.f32.vlgmr.msra.gmra.mxu0 %vm13072_vm5, %v47407_v49 }
 0x969   : > { %41517 = vmatpush3.msra.mxu0 %v47008_v60  ;;  %41584 = vmatmul.mubr.msk.f32.vlgmr.msra.gmra.mxu1 %vm13072_vm5, %v47407_v49 }
 0x96a   : > { %41592 = vmatpush3.msra.mxu1 %v47100_v17  ;;  %41518 = vmatprep.mubr.msk.f32.mxu0 %vm41919_vm1, %v48685_v58 }
 0x96b   : > { %41526 = vmatprep.subr.mxu0 %v48685_v58  ;;  %41593 = vmatprep.mubr.msk.f32.mxu1 %vm41919_vm1, %v48685_v58 }
 0x96c   : > { %41601 = vmatprep.subr.mxu1 %v48685_v58  ;;  %41519 = vmatmul.mubr.msk.f32.vlgmr.msra.gmra.mxu0 %vm13072_vm5, %v47407_v49 }
 0x96d   : > { %41527 = vmatpush3.msra.mxu0 %v47019_v37  ;;  %41594 = vmatmul.mubr.msk.f32.vlgmr.msra.gmra.mxu1 %vm13072_vm5, %v47407_v49 }
 0x96e   : > { %41602 = vmatpush3.msra.mxu1 %v47116_v23  ;;  %41528 = vmatprep.mubr.msk.f32.mxu0 %vm41919_vm1, %v48685_v58 }
 0x96f   : > { %41536 = vmatprep.subr.mxu0 %v48685_v58  ;;  %41603 = vmatprep.mubr.msk.f32.mxu1 %vm41919_vm1, %v48685_v58 }
 0x970   : > { %41611 = vmatprep.subr.mxu1 %v48685_v58  ;;  %41529 = vmatmul.mubr.msk.f32.vlgmr.msra.gmra.mxu0 %vm13072_vm5, %v47407_v49 }
 0x971   : > { %41537 = vmatpush3.msra.mxu0 %v47029_v25  ;;  %41604 = vmatmul.mubr.msk.f32.vlgmr.msra.gmra.mxu1 %vm13072_vm5, %v47407_v49 }
 0x972   : > { %41612 = vmatpush3.msra.mxu1 %v47132_v3  ;;  %41538 = vmatprep.mubr.msk.f32.mxu0 %vm41919_vm1, %v48685_v58 }
 0x973   : > { %41546 = vmatprep.subr.mxu0 %v48685_v58  ;;  %41613 = vmatprep.mubr.msk.f32.mxu1 %vm41919_vm1, %v48685_v58 }
 0x974   : > { %41621 = vmatprep.subr.mxu1 %v48685_v58  ;;  %41539 = vmatmul.mubr.msk.f32.vlgmr.msra.gmra.mxu0 %vm13072_vm5, %v47407_v49 }
 0x975   : > { %41547 = vmatpush3.msra.mxu0 %v47039_v11  ;;  %41614 = vmatmul.mubr.msk.f32.vlgmr.msra.gmra.mxu1 %vm13072_vm5, %v47407_v49 }
 0x976   : > { %41622 = vmatpush3.msra.mxu1 %v47148_v13  ;;  %41548 = vmatprep.mubr.msk.f32.mxu0 %vm41919_vm1, %v48685_v58 }
 0x977   : > { %41556 = vmatprep.subr.mxu0 %v48685_v58  ;;  %41623 = vmatprep.mubr.msk.f32.mxu1 %vm41919_vm1, %v48685_v58 }
 0x978   : > { %41631 = vmatprep.subr.mxu1 %v48685_v58  ;;  %41549 = vmatmul.mubr.msk.f32.vlgmr.msra.gmra.mxu0 %vm13072_vm5, %v47407_v49 }
 0x979   : > { %41557 = vmatpush3.msra.mxu0 %v47049_v43  ;;  %41624 = vmatmul.mubr.msk.f32.vlgmr.msra.gmra.mxu1 %vm13072_vm5, %v47407_v49 }
 0x97a   : > { %41632 = vmatpush3.msra.mxu1 %v47164_v6  ;;  %41558 = vmatprep.mubr.msk.f32.mxu0 %vm41919_vm1, %v48685_v58 }
 0x97b   : > { %41566 = vmatprep.subr.mxu0 %v48685_v58  ;;  %41633 = vmatprep.mubr.msk.f32.mxu1 %vm41919_vm1, %v48685_v58 }
 0x97c   : > { %41641 = vmatprep.subr.mxu1 %v48685_v58  ;;  %41559 = vmatmul.mubr.msk.f32.vlgmr.msra.gmra.mxu0 %vm13072_vm5, %v47407_v49 }
 0x97d   : > { %41567 = vmatpush3.msra.mxu0 %v47059_v50  ;;  %41634 = vmatmul.mubr.msk.f32.vlgmr.msra.gmra.mxu1 %vm13072_vm5, %v47407_v49 }
 0x97e   : > { %41642 = vmatpush3.msra.mxu1 %v47180_v9  ;;  %41568 = vmatprep.mubr.msk.f32.mxu0 %vm41919_vm1, %v48685_v58 }
 0x97f   : > { %41576 = vmatprep.subr.mxu0 %v48685_v58  ;;  %41643 = vmatprep.mubr.msk.f32.mxu1 %vm41919_vm1, %v48685_v58 }
 0x980   : > { %41651 = vmatprep.subr.mxu1 %v48685_v58  ;;  %41569 = vmatmul.mubr.msk.f32.vlgmr.msra.gmra.mxu0 %vm13072_vm5, %v47407_v49 }
 0x981   : > { %41577 = vmatpush3.msra.mxu0 %v47069_v61  ;;  %41644 = vmatmul.mubr.msk.f32.vlgmr.msra.gmra.mxu1 %vm13072_vm5, %v47407_v49 }
 0x982   : > { %41652 = vmatpush3.msra.mxu1 %v47196_v28  ;;  %41578 = vmatprep.mubr.msk.f32.mxu0 %vm41919_vm1, %v48685_v58  ;;  %v48686_v28 = vld [vmem:[#allocation83_spill] sm:$0xff] }
 0x983   : > { %41586 = vmatprep.subr.mxu0 %v48685_v58  ;;  %41653 = vmatprep.mubr.msk.f32.mxu1 %vm41919_vm1, %v48685_v58 }
 0x984   : > { %41579 = vmatmul.mubr.msk.f32.vlgmr.msra.gmra.mxu0 %vm13072_vm5, %v47407_v49  ;;  %41661 = vmatprep.subr.mxu1 %v48685_v58 }
 0x985   : > { %41587 = vmatpush3.msra.mxu0 %v47079_v36  ;;  %41654 = vmatmul.mubr.msk.f32.vlgmr.msra.gmra.mxu1 %vm13072_vm5, %v47407_v49 }
 0x986   : > { %41588 = vmatprep.mubr.msk.f32.mxu0 %vm41919_vm1, %v48685_v58  ;;  %41596 = vmatprep.subr.mxu0 %v48685_v58 }
 0x987   : > { %41662 = vmatpush3.msra.mxu1 %v48685_v58  ;;  %41663 = vmatprep.mubr.msk.f32.mxu1 %vm41919_vm1, %v48685_v58 }
 0x988   : > { %v29846_v3 = vpop.f32.mrf.mxu0  ;;  %41589 = vmatmul.mubr.msk.f32.vlgmr.msra.gmra.mxu0 %vm13072_vm5, %v47407_v49 }
 0x989   : > { %v47607_v62 = vadd.f32 %v29846_v3, %v46854_v52  ;;  %v47610_v36 = vadd.f32 %v29846_v3, %v46857_v7  ;;  %41597 = vmatpush3.msra.mxu0 %v47090_v14  ;;  %41664 = vmatmul.mubr.msk.f32.vlgmr.msra.gmra.mxu1 %vm13072_vm5, %v47407_v49 }
 0x98a   : > { %v41185_v16 = vpop.f32.mrf.mxu0  ;;  %41598 = vmatprep.mubr.msk.f32.mxu0 %vm41919_vm1, %v48685_v58  ;;  %41606 = vmatprep.subr.mxu0 %v48685_v58 }
 0x98c   : > { %v29916_v61 = vpop.f32.mrf.mxu0  ;;  %41599 = vmatmul.mubr.msk.f32.vlgmr.msra.gmra.mxu0 %vm13072_vm5, %v47407_v49 }
 0x98d   : > { %v47621_v52 = vadd.f32 %v29916_v61, %v46776_v63  ;;  %v47624_v7 = vadd.f32 %v29916_v61, %v46779_v57  ;;  %41607 = vmatpush3.msra.mxu0 %v47108_v27  ;;  %41608 = vmatprep.mubr.msk.f32.mxu0 %vm41919_vm1, %v48685_v58 }
 0x98e   : > { %v41190_v14 = vpop.f32.mrf.mxu0  ;;  %41616 = vmatprep.subr.mxu0 %v48685_v58 }
 0x990   : > { %v29986_v1 = vpop.f32.mrf.mxu0  ;;  %41609 = vmatmul.mubr.msk.f32.vlgmr.msra.gmra.mxu0 %vm13072_vm5, %v47407_v49 }
 0x991   : > { %v47633_v6 = vadd.f32 %v29986_v1, %v46866_v44  ;;  %v47636_v63 = vadd.f32 %v29986_v1, %v46869_v31  ;;  %41617 = vmatpush3.msra.mxu0 %v47124_v55  ;;  %41618 = vmatprep.mubr.msk.f32.mxu0 %vm41919_vm1, %v48685_v58 }
 0x992   : > { %v41195_v57 = vpop.f32.mrf.mxu0  ;;  %41626 = vmatprep.subr.mxu0 %v48685_v58 }
 0x994   : > { %v30056_v27 = vpop.f32.mrf.mxu0  ;;  %41619 = vmatmul.mubr.msk.f32.vlgmr.msra.gmra.mxu0 %vm13072_vm5, %v47407_v49 }
 0x995   : > { %v47645_v50 = vadd.f32 %v30056_v27, %v46788_v53  ;;  %v47648_v44 = vadd.f32 %v30056_v27, %v46791_v18  ;;  %41627 = vmatpush3.msra.mxu0 %v47140_v2  ;;  %41628 = vmatprep.mubr.msk.f32.mxu0 %vm41919_vm1, %v48685_v58 }
 0x996   : > { %v41200_v31 = vpop.f32.mrf.mxu0  ;;  %41636 = vmatprep.subr.mxu0 %v48685_v58 }
 0x997   : > { %v48695_v31 = vld [vmem:[#allocation85_spill] sm:$0xff] }
 0x998   : > { %v30126_v0 = vpop.f32.mrf.mxu0  ;;  %41629 = vmatmul.mubr.msk.f32.vlgmr.msra.gmra.mxu0 %vm13072_vm5, %v47407_v49 }
 0x999   : > { %v47657_v43 = vadd.f32 %v30126_v0, %v46878_v8  ;;  %v47660_v53 = vadd.f32 %v30126_v0, %v46881_v46  ;;  %41637 = vmatpush3.msra.mxu0 %v47156_v12  ;;  %41638 = vmatprep.mubr.msk.f32.mxu0 %vm41919_vm1, %v48685_v58  ;;  %v48687_v8 = vld [vmem:[#allocation84_spill] sm:$0xff] }
 0x99a   : > { %v41205_v18 = vpop.f32.mrf.mxu0  ;;  %41646 = vmatprep.subr.mxu0 %v48685_v58 }
 0x99c   : > { %v30196_v48 = vpop.f32.mrf.mxu0  ;;  %41639 = vmatmul.mubr.msk.f32.vlgmr.msra.gmra.mxu0 %vm13072_vm5, %v47407_v49 }
 0x99d   : > { %v47669_v9 = vadd.f32 %v30196_v48, %v48686_v28  ;;  %v47672_v13 = vadd.f32 %v30196_v48, %v48687_v8  ;;  %41647 = vmatpush3.msra.mxu0 %v47172_v10  ;;  %41648 = vmatprep.mubr.msk.f32.mxu0 %vm41919_vm1, %v48685_v58 }
 0x99e   : > { %v41210_v46 = vpop.f32.mrf.mxu0  ;;  %41656 = vmatprep.subr.mxu0 %v48685_v58 }
 0x9a0   : > { %v30266_v12 = vpop.f32.mrf.mxu0  ;;  %41649 = vmatmul.mubr.msk.f32.vlgmr.msra.gmra.mxu0 %vm13072_vm5, %v47407_v49 }
 0x9a1   : > { %v47681_v2 = vadd.f32 %v30266_v12, %v46890_v19  ;;  %v47684_v55 = vadd.f32 %v30266_v12, %v46893_v30  ;;  %41657 = vmatpush3.msra.mxu0 %v47188_v34  ;;  %41658 = vmatprep.mubr.msk.f32.mxu0 %vm41919_vm1, %v48685_v58  ;;  %v48698_v12 = vld [vmem:[#allocation91_spill] sm:$0xff] }
 0x9a2   : > { %v41215_v10 = vpop.f32.mrf.mxu0 }
 0x9a4   : > { %v30336_v23 = vpop.f32.mrf.mxu0  ;;  %41659 = vmatmul.mubr.msk.f32.vlgmr.msra.gmra.mxu0 %vm13072_vm5, %v47407_v49 }
 0x9a5   : > { %v47692_v22 = vadd.f32 %v30336_v23, %v48688_v45  ;;  %v47695_v60 = vadd.f32 %v30336_v23, %v46815_v38 }
 0x9a6   : > { %v41220_v19 = vpop.f32.mrf.mxu0 }
 0x9a8   : > { %v30406_v54 = vpop.f32.mrf.mxu0  ;;  %v30966_v30 = vpop.f32.mrf.mxu1 }
 0x9a9   : > { %v47698_v37 = vadd.f32 %v30406_v54, %v46902_v51  ;;  %v47701_v34 = vadd.f32 %v30406_v54, %v46905_v15  ;;  %v47704_v58 = vadd.f32 %v30966_v30, %v46950_v42  ;;  %v47707_v5 = vadd.f32 %v30966_v30, %v46953_v20  ;;  %v48701_v54 = vld [vmem:[#allocation13_spill] sm:$0xff] }
 0x9aa   : > { %v41225_v25 = vpop.f32.mrf.mxu0  ;;  %v41265_v47 = vpop.f32.mrf.mxu1 }
 0x9ab   : > { %48689 = vst [vmem:[#allocation46_spill] sm:$0xff] %v47701_v34  ;;  %48690 = vst [vmem:[#allocation28_spill] sm:$0xff] %v47707_v5  ;;  %v48702_v25 = vld [vmem:[#allocation14_spill] sm:$0xff] }
 0x9ac   : > { %v30476_v11 = vpop.f32.mrf.mxu0  ;;  %v31106_v38 = vpop.f32.mrf.mxu1 }
 0x9ad   : > { %v47710_v17 = vadd.f32 %v30476_v11, %v48691_v39  ;;  %v47713_v49 = vadd.f32 %v30476_v11, %v46827_v21  ;;  %v47716_v51 = vadd.f32 %v31106_v38, %v46959_v56  ;;  %v47719_v15 = vadd.f32 %v31106_v38, %v46962_v29 }
 0x9ae   : > { %v41230_v42 = vpop.f32.mrf.mxu0  ;;  %v41275_v3 = vpop.f32.mrf.mxu1 }
 0x9af   : > { %48692 = vst [vmem:[#allocation70_spill] sm:$0xff] %v47719_v15 }
 0x9b0   : > { %v30546_v20 = vpop.f32.mrf.mxu0  ;;  %v31246_v16 = vpop.f32.mrf.mxu1 }
 0x9b1   : > { %v47722_v61 = vadd.f32 %v30546_v20, %v46914_v40  ;;  %v47725_v14 = vadd.f32 %v30546_v20, %v46917_v4  ;;  %v47728_v1 = vadd.f32 %v31246_v16, %v46968_v24  ;;  %v47731_v21 = vadd.f32 %v31246_v16, %v46971_v33  ;;  %v48706_v16 = vld [vmem:[#allocation21_spill] sm:$0xff] }
 0x9b2   : > { %v41235_v56 = vpop.f32.mrf.mxu0  ;;  %v41285_v57 = vpop.f32.mrf.mxu1 }
 0x9b3   : > { %48693 = vst [vmem:[#allocation29_spill] sm:$0xff] %v47725_v14  ;;  %48694 = vst [vmem:[#allocation55_spill] sm:$0xff] %v47731_v21  ;;  %v48707_v57 = vld [vmem:[#allocation45_spill] sm:$0xff] }
 0x9b4   : > { %v30616_v29 = vpop.f32.mrf.mxu0  ;;  %v31386_v27 = vpop.f32.mrf.mxu1 }
 0x9b5   : > { %v47734_v0 = vadd.f32 %v30616_v29, %v48695_v31  ;;  %v47737_v18 = vadd.f32 %v30616_v29, %v46839_v59  ;;  %v47740_v40 = vadd.f32 %v31386_v27, %v46974_v41  ;;  %v47743_v4 = vadd.f32 %v31386_v27, %v46977_v35  ;;  %v48699_v59 = vld [vmem:[#allocation61_spill] sm:$0xff]  ;;  %v48709_v27 = vld [vmem:[#allocation51_spill] sm:$0xff] }
 0x9b6   : > { %v41240_v24 = vpop.f32.mrf.mxu0  ;;  %v41295_v48 = vpop.f32.mrf.mxu1 }
 0x9b7   : > { %48696 = vst [vmem:[#allocation63_spill] sm:$0xff] %v47743_v4  ;;  %v48710_v24 = vld [vmem:[#allocation26_spill] sm:$0xff] }
 0x9b8   : > { %v30686_v33 = vpop.f32.mrf.mxu0  ;;  %v31526_v28 = vpop.f32.mrf.mxu1 }
 0x9b9   : > { %v47746_v8 = vadd.f32 %v30686_v33, %v46926_v32  ;;  %v47749_v46 = vadd.f32 %v30686_v33, %v46929_v26  ;;  %v47752_v10 = vadd.f32 %v31526_v28, %v48698_v12  ;;  %v47755_v23 = vadd.f32 %v31526_v28, %v48699_v59  ;;  %v48703_v32 = vld [vmem:[#allocation24_spill] sm:$0xff]  ;;  %v48704_v26 = vld [vmem:[#allocation25_spill] sm:$0xff] }
 0x9ba   : > { %v41245_v41 = vpop.f32.mrf.mxu0  ;;  %v41305_v45 = vpop.f32.mrf.mxu1 }
 0x9bb   : > { %48697 = vst [vmem:[#allocation30_spill] sm:$0xff] %v47749_v46  ;;  %48700 = vst [vmem:[#allocation31_spill] sm:$0xff] %v47755_v23  ;;  %v48712_v41 = vld [vmem:[#allocation15_spill] sm:$0xff] }
 0x9bc   : > { %v30756_v35 = vpop.f32.mrf.mxu0  ;;  %v31666_v19 = vpop.f32.mrf.mxu1 }
 0x9bd   : > { %v47758_v30 = vadd.f32 %v30756_v35, %v48701_v54  ;;  %v47761_v47 = vadd.f32 %v30756_v35, %v48702_v25  ;;  %v47764_v11 = vadd.f32 %v31666_v19, %v48703_v32  ;;  %v47767_v38 = vadd.f32 %v31666_v19, %v48704_v26  ;;  %v48713_v35 = vld [vmem:[#allocation86_spill] sm:$0xff]  ;;  %v48714_v54 = vld [vmem:[#allocation27_spill] sm:$0xff]  ;;  %v48715_v32 = vld [vmem:[#allocation72_spill] sm:$0xff] }
 0x9be   : > { %v41250_v39 = vpop.f32.mrf.mxu0  ;;  %v41315_v42 = vpop.f32.mrf.mxu1 }
 0x9bf   : > { %48705 = vst [vmem:[#allocation52_spill] sm:$0xff] %v47767_v38 }
 0x9c0   : > { %v30826_v3 = vpop.f32.mrf.mxu0  ;;  %v31806_v20 = vpop.f32.mrf.mxu1 }
 0x9c1   : > { %v47770_v56 = vadd.f32 %v30826_v3, %v48706_v16  ;;  %v47773_v29 = vadd.f32 %v30826_v3, %v48707_v57  ;;  %v47776_v31 = vadd.f32 %v31806_v20, %v48709_v27  ;;  %v47779_v48 = vadd.f32 %v31806_v20, %v48710_v24  ;;  %v48717_v20 = vld [vmem:[#allocation87_spill] sm:$0xff]  ;;  %v48718_v57 = vld [vmem:[#allocation16_spill] sm:$0xff] }
 0x9c2   : > { %v41255_v33 = vpop.f32.mrf.mxu0  ;;  %v41325_v28 = vpop.f32.mrf.mxu1 }
 0x9c3   : > { %48708 = vst [vmem:[#allocation75_spill] sm:$0xff] %v47773_v29  ;;  %48711 = vst [vmem:[#allocation32_spill] sm:$0xff] %v47779_v48 }
 0x9c4   : > { %v30896_v12 = vpop.f32.mrf.mxu0  ;;  %v31946_v59 = vpop.f32.mrf.mxu1 }
 0x9c5   : > { %v47782_v45 = vadd.f32 %v30896_v12, %v48712_v41  ;;  %v47785_v19 = vadd.f32 %v30896_v12, %v48713_v35  ;;  %v47788_v25 = vadd.f32 %v31946_v59, %v48714_v54  ;;  %v47791_v26 = vadd.f32 %v31946_v59, %v48715_v32  ;;  %v48719_v59 = vld [vmem:[#allocation17_spill] sm:$0xff]  ;;  %v48720_v54 = vld [vmem:[#allocation50_spill] sm:$0xff] }
 0x9c6   : > { %v41260_v39 = vpop.f32.mrf.mxu0  ;;  %v41335_v42 = vpop.f32.mrf.mxu1 }
 0x9c7   : > { %48716 = vst [vmem:[#allocation33_spill] sm:$0xff] %v47791_v26 }
 0x9c8   : > { %v31036_v3 = vpop.f32.mrf.mxu0 }
 0x9c9   : > { %v47794_v16 = vadd.f32 %v31036_v3, %v48717_v20  ;;  %v47797_v27 = vadd.f32 %v31036_v3, %v48718_v57  ;;  %v47799_v24 = vpop.f32.mrf.mxu1 }
 0x9ca   : > { %v47803_v33 = vadd.f32 %v47799_v24, %v47607_v62  ;;  %v41270_v28 = vpop.f32.mrf.mxu0  ;;  %v48721_v62 = vld [vmem:[#allocation59_spill] sm:$0xff] }
 0x9cb   : > { %v41345_v12 = vpop.f32.mrf.mxu1  ;;  %v48722_v28 = vld [vmem:[#allocation18_spill] sm:$0xff] }
 0x9cc   : > { %v31176_v41 = vpop.f32.mrf.mxu0 }
 0x9cd   : > { %v47806_v35 = vadd.f32 %v31176_v41, %v48719_v59  ;;  %v47809_v32 = vadd.f32 %v31176_v41, %v48720_v54  ;;  %v47811_v39 = vpop.f32.mrf.mxu1 }
 0x9ce   : > { %v47815_v42 = vadd.f32 %v47811_v39, %v47633_v6  ;;  %v41280_v3 = vpop.f32.mrf.mxu0  ;;  %v48723_v6 = vld [vmem:[#allocation19_spill] sm:$0xff] }
 0x9cf   : > { %v41355_v20 = vpop.f32.mrf.mxu1  ;;  %v48725_v3 = vld [vmem:[#allocation88_spill] sm:$0xff] }
 0x9d0   : > { %v31316_v57 = vpop.f32.mrf.mxu0 }
 0x9d1   : > { %v47818_v26 = vadd.f32 %v31316_v57, %v48721_v62  ;;  %v47821_v12 = vadd.f32 %v31316_v57, %v48722_v28  ;;  %v47823_v59 = vpop.f32.mrf.mxu1 }
 0x9d2   : > { %v47827_v41 = vadd.f32 %v47823_v59, %v47657_v43  ;;  %v41290_v54 = vpop.f32.mrf.mxu0  ;;  %v48727_v43 = vld [vmem:[#allocation89_spill] sm:$0xff] }
 0x9d3   : > { %v41365_v48 = vpop.f32.mrf.mxu1 }
 0x9d4   : > { %v31456_v38 = vpop.f32.mrf.mxu0  ;;  %v48729_v48 = vld [vmem:[#allocation49_spill] sm:$0xff] }
 0x9d5   : > { %v47830_v23 = vadd.f32 %v31456_v38, %v48723_v6  ;;  %v47833_v20 = vadd.f32 %v31456_v38, %v48725_v3  ;;  %v47835_v62 = vpop.f32.mrf.mxu1 }
 0x9d6   : > { %v47839_v57 = vadd.f32 %v47835_v62, %v47681_v2  ;;  %v41300_v28 = vpop.f32.mrf.mxu0  ;;  %v48732_v2 = vld [vmem:[#allocation69_spill] sm:$0xff] }
 0x9d7   : > { %48724 = vst [vmem:[#allocation47_spill] sm:$0xff] %v47830_v23  ;;  %48726 = vst [vmem:[#allocation57_spill] sm:$0xff] %v47833_v20  ;;  %v41375_v4 = vpop.f32.mrf.mxu1 }
 0x9d8   : > { %v31596_v21 = vpop.f32.mrf.mxu0  ;;  %v48734_v4 = vld [vmem:[#allocation20_spill] sm:$0xff] }
 0x9d9   : > { %v47842_v15 = vadd.f32 %v31596_v21, %v48727_v43  ;;  %v47845_v54 = vadd.f32 %v31596_v21, %v48729_v48  ;;  %v47847_v6 = vpop.f32.mrf.mxu1 }
 0x9da   : > { %v47851_v38 = vadd.f32 %v47847_v6, %v47698_v37  ;;  %v41310_v3 = vpop.f32.mrf.mxu0  ;;  %v48737_v37 = vld [vmem:[#allocation53_spill] sm:$0xff] }
 0x9db   : > { %48728 = vst [vmem:[#allocation34_spill] sm:$0xff] %v47842_v15  ;;  %48730 = vst [vmem:[#allocation35_spill] sm:$0xff] %v47845_v54  ;;  %v41385_v5 = vpop.f32.mrf.mxu1 }
 0x9dc   : > { %48731 = vst [vmem:[#allocation65_spill] sm:$0xff] %v47851_v38  ;;  %v31736_v29 = vpop.f32.mrf.mxu0  ;;  %v48739_v5 = vld [vmem:[#allocation22_spill] sm:$0xff] }
 0x9dd   : > { %v47854_v46 = vadd.f32 %v31736_v29, %v48732_v2  ;;  %v47857_v28 = vadd.f32 %v31736_v29, %v48734_v4  ;;  %v47859_v43 = vpop.f32.mrf.mxu1 }
 0x9de   : > { %v47863_v21 = vadd.f32 %v47859_v43, %v47722_v61  ;;  %v41320_v48 = vpop.f32.mrf.mxu0  ;;  %v48742_v61 = vld [vmem:[#allocation23_spill] sm:$0xff] }
 0x9df   : > { %48733 = vst [vmem:[#allocation54_spill] sm:$0xff] %v47854_v46  ;;  %48735 = vst [vmem:[#allocation36_spill] sm:$0xff] %v47857_v28  ;;  %v41395_v15 = vpop.f32.mrf.mxu1 }
 0x9e0   : > { %48736 = vst [vmem:[#allocation37_spill] sm:$0xff] %v47863_v21  ;;  %v31876_v54 = vpop.f32.mrf.mxu0 }
 0x9e1   : > { %v47866_v14 = vadd.f32 %v31876_v54, %v48737_v37  ;;  %v47869_v3 = vadd.f32 %v31876_v54, %v48739_v5  ;;  %v47871_v2 = vpop.f32.mrf.mxu1 }
 0x9e2   : > { %v47875_v29 = vadd.f32 %v47871_v2, %v47746_v8  ;;  %v41330_v4 = vpop.f32.mrf.mxu0 }
 0x9e3   : > { %48738 = vst [vmem:[#allocation78_spill] sm:$0xff] %v47866_v14  ;;  %48740 = vst [vmem:[#allocation48_spill] sm:$0xff] %v47869_v3  ;;  %v41405_v46 = vpop.f32.mrf.mxu1 }
 0x9e4   : > { %48741 = vst [vmem:[#allocation38_spill] sm:$0xff] %v47875_v29  ;;  %v32016_v28 = vpop.f32.mrf.mxu0 }
 0x9e5   : > { %v47878_v21 = vadd.f32 %v32016_v28, %v48742_v61  ;;  %v47880_v15 = vpop.f32.mrf.mxu1 }
 0x9e6   : > { %v47884_v48 = vadd.f32 %v47880_v15, %v47770_v56  ;;  %v41340_v54 = vpop.f32.mrf.mxu0 }
 0x9e7   : > { %48743 = vst [vmem:[#allocation39_spill] sm:$0xff] %v47878_v21  ;;  %v41415_v37 = vpop.f32.mrf.mxu1 }
 0x9e8   : > { %48744 = vst [vmem:[#allocation58_spill] sm:$0xff] %v47884_v48  ;;  %v47886_v5 = vpop.f32.mrf.mxu0 }
 0x9e9   : > { %v47888_v14 = vpop.f32.mrf.mxu1 }
 0x9ea   : > { %v47892_v8 = vadd.f32 %v47888_v14, %v47704_v58  ;;  %v41350_v46 = vpop.f32.mrf.mxu0 }
 0x9eb   : > { %v41425_v4 = vpop.f32.mrf.mxu1 }
 0x9ec   : > { %48745 = vst [vmem:[#allocation67_spill] sm:$0xff] %v47892_v8  ;;  %v47894_v28 = vpop.f32.mrf.mxu0 }
 0x9ed   : > { %v47896_v61 = vpop.f32.mrf.mxu1 }
 0x9ee   : > { %v47900_v56 = vadd.f32 %v47896_v61, %v47716_v51  ;;  %v41360_v54 = vpop.f32.mrf.mxu0 }
 0x9ef   : > { %v41435_v37 = vpop.f32.mrf.mxu1 }
 0x9f0   : > { %48746 = vst [vmem:[#allocation40_spill] sm:$0xff] %v47900_v56  ;;  %v47902_v21 = vpop.f32.mrf.mxu0 }
 0x9f1   : > { %v47904_v48 = vpop.f32.mrf.mxu1 }
 0x9f2   : > { %v47908_v58 = vadd.f32 %v47904_v48, %v47728_v1  ;;  %v41370_v46 = vpop.f32.mrf.mxu0 }
 0x9f3   : > { %v41445_v4 = vpop.f32.mrf.mxu1 }
 0x9f4   : > { %48747 = vst [vmem:[#allocation41_spill] sm:$0xff] %v47908_v58  ;;  %v47910_v8 = vpop.f32.mrf.mxu0 }
 0x9f5   : > { %v47912_v3 = vpop.f32.mrf.mxu1 }
 0x9f6   : > { %v47916_v51 = vadd.f32 %v47912_v3, %v47740_v40  ;;  %v41380_v54 = vpop.f32.mrf.mxu0 }
 0x9f7   : > { %v41455_v37 = vpop.f32.mrf.mxu1 }
 0x9f8   : > { %48748 = vst [vmem:[#allocation60_spill] sm:$0xff] %v47916_v51  ;;  %v47918_v56 = vpop.f32.mrf.mxu0 }
 0x9f9   : > { %v47920_v29 = vpop.f32.mrf.mxu1 }
 0x9fa   : > { %48749 = vst [vmem:[#allocation42_spill] sm:$0xff] %v47920_v29  ;;  %v47924_v1 = vadd.f32 %v47920_v29, %v47752_v10  ;;  %v41390_v46 = vpop.f32.mrf.mxu0 }
 0x9fb   : > { %v41465_v4 = vpop.f32.mrf.mxu1 }
 0x9fc   : > { %48750 = vst [vmem:[#allocation43_spill] sm:$0xff] %v47924_v1  ;;  %v47926_v58 = vpop.f32.mrf.mxu0 }
 0x9fd   : > { %v47928_v38 = vpop.f32.mrf.mxu1 }
 0x9fe   : > { %48751 = vst [vmem:[#allocation73_spill] sm:$0xff] %v47928_v38  ;;  %v47932_v40 = vadd.f32 %v47928_v38, %v47764_v11  ;;  %v41400_v54 = vpop.f32.mrf.mxu0 }
 0x9ff   : > { %v41475_v37 = vpop.f32.mrf.mxu1 }
 0xa00   : > { %48752 = vst [vmem:[#allocation74_spill] sm:$0xff] %v47932_v40  ;;  %v47934_v51 = vpop.f32.mrf.mxu0  ;;  %v48757_v40 = vld [vmem:[#allocation90_spill] sm:$0xff] }
 0xa01   : > { %v47936_v23 = vpop.f32.mrf.mxu1  ;;  %v34329_v38 = vadd.f32 %v47799_v24, %v48757_v40 }
 0xa02   : > { %48753 = vst [vmem:[#allocation56_spill] sm:$0xff] %v47936_v23  ;;  %v47940_v10 = vadd.f32 %v47936_v23, %v47776_v31  ;;  %v41410_v46 = vpop.f32.mrf.mxu0  ;;  %v34333_v23 = vadd.f32 %v47811_v39, %v47624_v7  ;;  %v34336_v7 = vadd.f32 %v47894_v28, %v47645_v50 }
 0xa03   : > { %v41485_v4 = vpop.f32.mrf.mxu1 }
 0xa04   : > { %48754 = vst [vmem:[#allocation80_spill] sm:$0xff] %v47940_v10  ;;  %v47942_v1 = vpop.f32.mrf.mxu0  ;;  %v47955_v4 = vpop.permute.xlu0 %36775 }
 0xa05   : > { %v47944_v29 = vpop.f32.mrf.mxu1 }
 0xa06   : > { %48755 = vst [vmem:[#allocation64_spill] sm:$0xff] %v47944_v29  ;;  %v47948_v11 = vadd.f32 %v47944_v29, %v47788_v25  ;;  %v41420_v54 = vpop.f32.mrf.mxu0  ;;  %v34332_v25 = vadd.f32 %v47886_v5, %v47621_v52 }
 0xa07   : > { %v41495_v37 = vpop.f32.mrf.mxu1 }
 0xa08   : > { %48756 = vst [vmem:[#allocation76_spill] sm:$0xff] %v47948_v11  ;;  %v47952_v20 = vpop.f32.mrf.mxu0 }
 0xa09   : > { %v34464_v34 = vpop.f32.mrf.mxu1 }
 0xa0a   : > { %v36708_v31 = vadd.f32 %v34464_v34, %v34329_v38  ;;  %v41430_v46 = vpop.f32.mrf.mxu0 }
 0xa0b   : > { %v41505_v10 = vpop.f32.mrf.mxu1 }
 0xa0c   : > { %v36778_v54 = vadd.f32 %v47955_v4, %v36708_v31  ;;  %v47962_v37 = vpop.f32.mrf.mxu0  ;;  %v34337_v10 = vadd.f32 %v47823_v59, %v47648_v44 }
 0xa0d   : > { %v34604_v24 = vpop.f32.mrf.mxu1 }
 0xa0e   : > { %v36842_v40 = vmax.f32 %v36778_v54, 0.0  ;;  %v36711_v11 = vadd.f32 %v34604_v24, %v34332_v25  ;;  %v36712_v29 = vadd.f32 %v34604_v24, %v34333_v23  ;;  %v41440_v34 = vpop.f32.mrf.mxu0  ;;  %v34341_v24 = vadd.f32 %v47835_v62, %v47672_v13 }
 0xa0f   : > { %v41515_v38 = vpop.f32.mrf.mxu1 }
 0xa10   : > { %36907 = vst.msk [vmem:[%s47968_s22] sm:$0xff] %vm36906_vm6, %v36842_v40  ;;  %v36781_v52 = vadd.f32 %v47955_v4, %v36711_v11  ;;  %v36782_v39 = vadd.f32 %v47955_v4, %v36712_v29  ;;  %v47974_v23 = vpop.f32.mrf.mxu0  ;;  %v34340_v40 = vadd.f32 %v47902_v21, %v47669_v9  ;;  %v34345_v9 = vadd.f32 %v47847_v6, %v47695_v60 }
 0xa11   : > { %v34744_v31 = vpop.f32.mrf.mxu1 }
 0xa12   : > { %v36845_v46 = vmax.f32 %v36781_v52, 0.0  ;;  %v36846_v25 = vmax.f32 %v36782_v39, 0.0  ;;  %v36715_v44 = vadd.f32 %v34744_v31, %v34336_v7  ;;  %v36716_v59 = vadd.f32 %v34744_v31, %v34337_v10  ;;  %v41450_v54 = vpop.f32.mrf.mxu0 }
 0xa13   : > { %v41525_v50 = vpop.f32.mrf.mxu1  ;;  %v34344_v31 = vadd.f32 %v47910_v8, %v47692_v22  ;;  %v34349_v22 = vadd.f32 %v47859_v43, %v47713_v49 }
 0xa14   : > { %36910 = vst.msk [vmem:[%s47968_s22 + $0x18] sm:$0xff] %vm36906_vm6, %v36845_v46  ;;  %36911 = vst.msk [vmem:[%s47968_s22 + $0x20] sm:$0xff] %vm36906_vm6, %v36846_v25  ;;  %v36785_v29 = vadd.f32 %v47955_v4, %v36715_v44  ;;  %v36786_v11 = vadd.f32 %v47955_v4, %v36716_v59  ;;  %v47986_v34 = vpop.f32.mrf.mxu0 }
 0xa15   : > { %v34884_v38 = vpop.f32.mrf.mxu1 }
 0xa16   : > { %v36849_v10 = vmax.f32 %v36785_v29, 0.0  ;;  %v36850_v7 = vmax.f32 %v36786_v11, 0.0  ;;  %v36719_v52 = vadd.f32 %v34884_v38, %v34340_v40  ;;  %v36720_v13 = vadd.f32 %v34884_v38, %v34341_v24  ;;  %v41460_v62 = vpop.f32.mrf.mxu0 }
 0xa17   : > { %v41535_v39 = vpop.f32.mrf.mxu1  ;;  %v34348_v29 = vadd.f32 %v47918_v56, %v47710_v17  ;;  %v34353_v17 = vadd.f32 %v47871_v2, %v47737_v18 }
 0xa18   : > { %36914 = vst.msk [vmem:[%s47968_s22 + $0x38] sm:$0xff] %vm36906_vm6, %v36849_v10  ;;  %36915 = vst.msk [vmem:[%s47968_s22 + $0x40] sm:$0xff] %vm36906_vm6, %v36850_v7  ;;  %v36789_v46 = vadd.f32 %v47955_v4, %v36719_v52  ;;  %v36790_v25 = vadd.f32 %v47955_v4, %v36720_v13  ;;  %v47998_v44 = vpop.f32.mrf.mxu0 }
 0xa19   : > { %v35024_v59 = vpop.f32.mrf.mxu1 }
 0xa1a   : > { %v36853_v54 = vmax.f32 %v36789_v46, 0.0  ;;  %v36854_v50 = vmax.f32 %v36790_v25, 0.0  ;;  %v36723_v24 = vadd.f32 %v35024_v59, %v34344_v31  ;;  %v36724_v60 = vadd.f32 %v35024_v59, %v34345_v9  ;;  %v41470_v6 = vpop.f32.mrf.mxu0 }
 0xa1b   : > { %v41545_v40 = vpop.f32.mrf.mxu1  ;;  %v34352_v9 = vadd.f32 %v47926_v58, %v47734_v0  ;;  %v34357_v0 = vadd.f32 %v47880_v15, %v47761_v47  ;;  %v34356_v6 = vadd.f32 %v47934_v51, %v47758_v30  ;;  %v34331_v30 = vadd.f32 %v47886_v5, %v47610_v36 }
 0xa1c   : > { %36918 = vst.msk [vmem:[%s47968_s22 + $0x58] sm:$0xff] %vm36906_vm6, %v36853_v54  ;;  %36919 = vst.msk [vmem:[%s47968_s22 + $0x60] sm:$0xff] %vm36906_vm6, %v36854_v50  ;;  %v36793_v11 = vadd.f32 %v47955_v4, %v36723_v24  ;;  %v36794_v38 = vadd.f32 %v47955_v4, %v36724_v60  ;;  %v48010_v10 = vpop.f32.mrf.mxu0 }
 0xa1d   : > { %v35164_v7 = vpop.f32.mrf.mxu1 }
 0xa1e   : > { %v36857_v52 = vmax.f32 %v36793_v11, 0.0  ;;  %v36858_v13 = vmax.f32 %v36794_v38, 0.0  ;;  %v36727_v62 = vadd.f32 %v35164_v7, %v34348_v29  ;;  %v36728_v49 = vadd.f32 %v35164_v7, %v34349_v22  ;;  %v41480_v43 = vpop.f32.mrf.mxu0 }
 0xa1f   : > { %v41555_v39 = vpop.f32.mrf.mxu1 }
 0xa20   : > { %36922 = vst.msk [vmem:[%s47968_s22 + $0x78] sm:$0xff] %vm36906_vm6, %v36857_v52  ;;  %36923 = vst.msk [vmem:[%s47968_s22 + $0x80] sm:$0xff] %vm36906_vm6, %v36858_v13  ;;  %v36797_v31 = vadd.f32 %v47955_v4, %v36727_v62  ;;  %v36798_v46 = vadd.f32 %v47955_v4, %v36728_v49  ;;  %v48022_v25 = vpop.f32.mrf.mxu0  ;;  %v34361_v62 = vadd.f32 %v47888_v14, %v47785_v19 }
 0xa21   : > { %v35304_v59 = vpop.f32.mrf.mxu1  ;;  %v34360_v49 = vadd.f32 %v47942_v1, %v47782_v45 }
 0xa22   : > { %v36861_v54 = vmax.f32 %v36797_v31, 0.0  ;;  %v36862_v50 = vmax.f32 %v36798_v46, 0.0  ;;  %v36731_v24 = vadd.f32 %v35304_v59, %v34352_v9  ;;  %v36732_v18 = vadd.f32 %v35304_v59, %v34353_v17  ;;  %v41490_v2 = vpop.f32.mrf.mxu0 }
 0xa23   : > { %v41565_v60 = vpop.f32.mrf.mxu1  ;;  %v34335_v59 = vadd.f32 %v47894_v28, %v47636_v63 }
 0xa24   : > { %36926 = vst.msk [vmem:[%s47968_s22 + $0x98] sm:$0xff] %vm36906_vm6, %v36861_v54  ;;  %36927 = vst.msk [vmem:[%s47968_s22 + $0xa0] sm:$0xff] %vm36906_vm6, %v36862_v50  ;;  %v36801_v40 = vadd.f32 %v47955_v4, %v36731_v24  ;;  %v36802_v22 = vadd.f32 %v47955_v4, %v36732_v18  ;;  %v48034_v29 = vpop.f32.mrf.mxu0  ;;  %v34365_v18 = vadd.f32 %v47896_v61, %v47797_v27 }
 0xa25   : > { %v35444_v11 = vpop.f32.mrf.mxu1 }
 0xa26   : > { %v36865_v38 = vmax.f32 %v36801_v40, 0.0  ;;  %v36866_v7 = vmax.f32 %v36802_v22, 0.0  ;;  %v36735_v52 = vadd.f32 %v35444_v11, %v34356_v6  ;;  %v36736_v47 = vadd.f32 %v35444_v11, %v34357_v0  ;;  %v41500_v15 = vpop.f32.mrf.mxu0 }
 0xa27   : > { %v41575_v13 = vpop.f32.mrf.mxu1  ;;  %v34369_v15 = vadd.f32 %v47904_v48, %v47809_v32 }
 0xa28   : > { %36930 = vst.msk [vmem:[%s47968_s22 + $0xb8] sm:$0xff] %vm36906_vm6, %v36865_v38  ;;  %36931 = vst.msk [vmem:[%s47968_s22 + $0xc0] sm:$0xff] %vm36906_vm6, %v36866_v7  ;;  %v36805_v43 = vadd.f32 %v47955_v4, %v36735_v52  ;;  %v36806_v39 = vadd.f32 %v47955_v4, %v36736_v47  ;;  %v34534_v17 = vpop.f32.mrf.mxu0  ;;  %v34339_v7 = vadd.f32 %v47902_v21, %v47660_v53 }
 0xa29   : > { %v36709_v36 = vadd.f32 %v34534_v17, %v47803_v33  ;;  %v36710_v5 = vadd.f32 %v34534_v17, %v34331_v30  ;;  %v35584_v9 = vpop.f32.mrf.mxu1  ;;  %v34364_v33 = vadd.f32 %v47952_v20, %v47794_v16  ;;  %v34368_v30 = vadd.f32 %v47962_v37, %v47806_v35 }
 0xa2a   : > { %v36869_v31 = vmax.f32 %v36805_v43, 0.0  ;;  %v36870_v14 = vmax.f32 %v36806_v39, 0.0  ;;  %v36739_v19 = vadd.f32 %v35584_v9, %v34360_v49  ;;  %v36740_v46 = vadd.f32 %v35584_v9, %v34361_v62  ;;  %v41510_v45 = vpop.f32.mrf.mxu0 }
 0xa2b   : > { %v36779_v54 = vadd.f32 %v47955_v4, %v36709_v36  ;;  %v36780_v50 = vadd.f32 %v47955_v4, %v36710_v5  ;;  %v41585_v24 = vpop.f32.mrf.mxu1  ;;  %v34343_v9 = vadd.f32 %v47910_v8, %v47684_v55 }
 0xa2c   : > { %36934 = vst.msk [vmem:[%s47968_s22 + $0xd8] sm:$0xff] %vm36906_vm6, %v36869_v31  ;;  %36935 = vst.msk [vmem:[%s47968_s22 + $0xe0] sm:$0xff] %vm36906_vm6, %v36870_v14  ;;  %v36809_v2 = vadd.f32 %v47955_v4, %v36739_v19  ;;  %v36810_v63 = vadd.f32 %v47955_v4, %v36740_v46  ;;  %v34674_v28 = vpop.f32.mrf.mxu0  ;;  %v34373_v19 = vadd.f32 %v47912_v3, %v47821_v12 }
 0xa2d   : > { %v36843_v60 = vmax.f32 %v36779_v54, 0.0  ;;  %v36844_v0 = vmax.f32 %v36780_v50, 0.0  ;;  %v36713_v6 = vadd.f32 %v34674_v28, %v47815_v42  ;;  %v36714_v27 = vadd.f32 %v34674_v28, %v34335_v59  ;;  %v35724_v61 = vpop.f32.mrf.mxu1 }
 0xa2e   : > { %v36873_v16 = vmax.f32 %v36809_v2, 0.0  ;;  %v36874_v40 = vmax.f32 %v36810_v63, 0.0  ;;  %v36743_v22 = vadd.f32 %v35724_v61, %v34364_v33  ;;  %v36744_v11 = vadd.f32 %v35724_v61, %v34365_v18  ;;  %v41520_v38 = vpop.f32.mrf.mxu0  ;;  %v48758_v63 = vld [vmem:[#allocation46_spill] sm:$0xff] }
 0xa2f   : > { %36908 = vst.msk [vmem:[%s47968_s22 + $0x8] sm:$0xff] %vm36906_vm6, %v36843_v60  ;;  %36909 = vst.msk [vmem:[%s47968_s22 + $0x10] sm:$0xff] %vm36906_vm6, %v36844_v0  ;;  %v36783_v52 = vadd.f32 %v47955_v4, %v36713_v6  ;;  %v36784_v42 = vadd.f32 %v47955_v4, %v36714_v27  ;;  %v41595_v47 = vpop.f32.mrf.mxu1  ;;  %v34372_v46 = vadd.f32 %v47974_v23, %v47818_v26  ;;  %v48759_v6 = vld [vmem:[#allocation57_spill] sm:$0xff]  ;;  %v48760_v27 = vld [vmem:[#allocation42_spill] sm:$0xff] }
 0xa30   : > { %36938 = vst.msk [vmem:[%s47968_s22 + $0xf8] sm:$0xff] %vm36906_vm6, %v36873_v16  ;;  %36939 = vst.msk [vmem:[%s47968_s22 + $0x100] sm:$0xff] %vm36906_vm6, %v36874_v40  ;;  %v36813_v53 = vadd.f32 %v47955_v4, %v36743_v22  ;;  %v36814_v21 = vadd.f32 %v47955_v4, %v36744_v11  ;;  %v34814_v13 = vpop.f32.mrf.mxu0  ;;  %v34347_v28 = vadd.f32 %v47918_v56, %v48758_v63  ;;  %v48761_v16 = vld [vmem:[#allocation47_spill] sm:$0xff]  ;;  %v48769_v63 = vld [vmem:[#allocation36_spill] sm:$0xff] }
 0xa31   : > { %v36847_v62 = vmax.f32 %v36783_v52, 0.0  ;;  %v36848_v49 = vmax.f32 %v36784_v42, 0.0  ;;  %v36717_v43 = vadd.f32 %v34814_v13, %v47827_v41  ;;  %v36718_v32 = vadd.f32 %v34814_v13, %v34339_v7  ;;  %v35864_v48 = vpop.f32.mrf.mxu1  ;;  %v48762_v52 = vld [vmem:[#allocation65_spill] sm:$0xff] }
 0xa32   : > { %v36877_v35 = vmax.f32 %v36813_v53, 0.0  ;;  %v36878_v39 = vmax.f32 %v36814_v21, 0.0  ;;  %v36747_v17 = vadd.f32 %v35864_v48, %v34368_v30  ;;  %v36748_v36 = vadd.f32 %v35864_v48, %v34369_v15  ;;  %v41530_v5 = vpop.f32.mrf.mxu0 }
 0xa33   : > { %36912 = vst.msk [vmem:[%s47968_s22 + $0x28] sm:$0xff] %vm36906_vm6, %v36847_v62  ;;  %36913 = vst.msk [vmem:[%s47968_s22 + $0x30] sm:$0xff] %vm36906_vm6, %v36848_v49  ;;  %v36787_v31 = vadd.f32 %v47955_v4, %v36717_v43  ;;  %v36788_v41 = vadd.f32 %v47955_v4, %v36718_v32  ;;  %v41605_v14 = vpop.f32.mrf.mxu1  ;;  %v34377_v61 = vadd.f32 %v48760_v27, %v48759_v6  ;;  %v48763_v49 = vld [vmem:[#allocation29_spill] sm:$0xff]  ;;  %v48766_v5 = vld [vmem:[#allocation34_spill] sm:$0xff] }
 0xa34   : > { %36942 = vst.msk [vmem:[%s47968_s22 + $0x118] sm:$0xff] %vm36906_vm6, %v36877_v35  ;;  %36943 = vst.msk [vmem:[%s47968_s22 + $0x120] sm:$0xff] %vm36906_vm6, %v36878_v39  ;;  %v36817_v55 = vadd.f32 %v47955_v4, %v36747_v17  ;;  %v36818_v8 = vadd.f32 %v47955_v4, %v36748_v36  ;;  %v34954_v45 = vpop.f32.mrf.mxu0  ;;  %v34376_v40 = vadd.f32 %v47986_v34, %v48761_v16  ;;  %v48764_v39 = vld [vmem:[#allocation35_spill] sm:$0xff]  ;;  %v48765_v17 = vld [vmem:[#allocation73_spill] sm:$0xff] }
 0xa35   : > { %v36851_v59 = vmax.f32 %v36787_v31, 0.0  ;;  %v36852_v54 = vmax.f32 %v36788_v41, 0.0  ;;  %v36721_v50 = vadd.f32 %v34954_v45, %v47839_v57  ;;  %v36722_v12 = vadd.f32 %v34954_v45, %v34343_v9  ;;  %v36004_v3 = vpop.f32.mrf.mxu1 }
 0xa36   : > { %v36881_v26 = vmax.f32 %v36817_v55, 0.0  ;;  %v36882_v24 = vmax.f32 %v36818_v8, 0.0  ;;  %v36751_v18 = vadd.f32 %v36004_v3, %v34372_v46  ;;  %v36752_v33 = vadd.f32 %v36004_v3, %v34373_v19  ;;  %v41540_v2 = vpop.f32.mrf.mxu0  ;;  %v48767_v46 = vld [vmem:[#allocation37_spill] sm:$0xff] }
 0xa37   : > { %36916 = vst.msk [vmem:[%s47968_s22 + $0x48] sm:$0xff] %vm36906_vm6, %v36851_v59  ;;  %36917 = vst.msk [vmem:[%s47968_s22 + $0x50] sm:$0xff] %vm36906_vm6, %v36852_v54  ;;  %v36791_v60 = vadd.f32 %v47955_v4, %v36721_v50  ;;  %v36792_v57 = vadd.f32 %v47955_v4, %v36722_v12  ;;  %v41615_v0 = vpop.f32.mrf.mxu1  ;;  %v34351_v43 = vadd.f32 %v47926_v58, %v48763_v49  ;;  %v48775_v49 = vld [vmem:[#allocation64_spill] sm:$0xff] }
 0xa38   : > { %36946 = vst.msk [vmem:[%s47968_s22 + $0x138] sm:$0xff] %vm36906_vm6, %v36881_v26  ;;  %36947 = vst.msk [vmem:[%s47968_s22 + $0x140] sm:$0xff] %vm36906_vm6, %v36882_v24  ;;  %v36821_v56 = vadd.f32 %v47955_v4, %v36751_v18  ;;  %v36822_v22 = vadd.f32 %v47955_v4, %v36752_v33  ;;  %v35094_v11 = vpop.f32.mrf.mxu0  ;;  %v34381_v36 = vadd.f32 %v48765_v17, %v48764_v39  ;;  %v48768_v26 = vld [vmem:[#allocation30_spill] sm:$0xff] }
 0xa39   : > { %v36855_v38 = vmax.f32 %v36791_v60, 0.0  ;;  %v36856_v7 = vmax.f32 %v36792_v57, 0.0  ;;  %v36725_v42 = vadd.f32 %v35094_v11, %v48762_v52  ;;  %v36726_v47 = vadd.f32 %v35094_v11, %v34347_v28  ;;  %v36144_v15 = vpop.f32.mrf.mxu1  ;;  %v48770_v28 = vld [vmem:[#allocation56_spill] sm:$0xff]  ;;  %v48771_v57 = vld [vmem:[#allocation54_spill] sm:$0xff] }
 0xa3a   : > { %v36885_v30 = vmax.f32 %v36821_v56, 0.0  ;;  %v36886_v53 = vmax.f32 %v36822_v22, 0.0  ;;  %v36755_v21 = vadd.f32 %v36144_v15, %v34376_v40  ;;  %v36756_v13 = vadd.f32 %v36144_v15, %v34377_v61  ;;  %v41550_v62 = vpop.f32.mrf.mxu0  ;;  %v48772_v40 = vld [vmem:[#allocation38_spill] sm:$0xff]  ;;  %v48773_v15 = vld [vmem:[#allocation75_spill] sm:$0xff] }
 0xa3b   : > { %36920 = vst.msk [vmem:[%s47968_s22 + $0x68] sm:$0xff] %vm36906_vm6, %v36855_v38  ;;  %36921 = vst.msk [vmem:[%s47968_s22 + $0x70] sm:$0xff] %vm36906_vm6, %v36856_v7  ;;  %v36795_v32 = vadd.f32 %v47955_v4, %v36725_v42  ;;  %v36796_v48 = vadd.f32 %v47955_v4, %v36726_v47  ;;  %v41625_v35 = vpop.f32.mrf.mxu1  ;;  %v34380_v9 = vadd.f32 %v47998_v44, %v48766_v5  ;;  %v48774_v62 = vld [vmem:[#allocation48_spill] sm:$0xff]  ;;  %v48777_v5 = vld [vmem:[#allocation58_spill] sm:$0xff] }
 0xa3c   : > { %36950 = vst.msk [vmem:[%s47968_s22 + $0x158] sm:$0xff] %vm36906_vm6, %v36885_v30  ;;  %36951 = vst.msk [vmem:[%s47968_s22 + $0x160] sm:$0xff] %vm36906_vm6, %v36886_v53  ;;  %v36825_v58 = vadd.f32 %v47955_v4, %v36755_v21  ;;  %v36826_v31 = vadd.f32 %v47955_v4, %v36756_v13  ;;  %v35234_v41 = vpop.f32.mrf.mxu0  ;;  %v34355_v24 = vadd.f32 %v47934_v51, %v48768_v26 }
 0xa3d   : > { %v36859_v14 = vmax.f32 %v36795_v32, 0.0  ;;  %v36860_v19 = vmax.f32 %v36796_v48, 0.0  ;;  %v36729_v55 = vadd.f32 %v35234_v41, %v48767_v46  ;;  %v36730_v8 = vadd.f32 %v35234_v41, %v34351_v43  ;;  %v36284_v45 = vpop.f32.mrf.mxu1  ;;  %v48776_v32 = vld [vmem:[#allocation78_spill] sm:$0xff] }
 0xa3e   : > { %v36889_v59 = vmax.f32 %v36825_v58, 0.0  ;;  %v36890_v54 = vmax.f32 %v36826_v31, 0.0  ;;  %v36759_v50 = vadd.f32 %v36284_v45, %v34380_v9  ;;  %v36760_v12 = vadd.f32 %v36284_v45, %v34381_v36  ;;  %v41560_v3 = vpop.f32.mrf.mxu0 }
 0xa3f   : > { %36924 = vst.msk [vmem:[%s47968_s22 + $0x88] sm:$0xff] %vm36906_vm6, %v36859_v14  ;;  %36925 = vst.msk [vmem:[%s47968_s22 + $0x90] sm:$0xff] %vm36906_vm6, %v36860_v19  ;;  %v36799_v18 = vadd.f32 %v47955_v4, %v36729_v55  ;;  %v36800_v33 = vadd.f32 %v47955_v4, %v36730_v8  ;;  %v41635_v2 = vpop.f32.mrf.mxu1  ;;  %v34385_v60 = vadd.f32 %v48770_v28, %v48769_v63  ;;  %v48778_v8 = vld [vmem:[#allocation28_spill] sm:$0xff] }
 0xa40   : > { %v34384_v0 = vadd.f32 %v48010_v10, %v48771_v57  ;;  %36954 = vst.msk [vmem:[%s47968_s22 + $0x178] sm:$0xff] %vm36906_vm6, %v36889_v59  ;;  %36955 = vst.msk [vmem:[%s47968_s22 + $0x180] sm:$0xff] %vm36906_vm6, %v36890_v54  ;;  %v36829_v51 = vadd.f32 %v47955_v4, %v36759_v50  ;;  %v36830_v6 = vadd.f32 %v47955_v4, %v36760_v12  ;;  %v35374_v27 = vpop.f32.mrf.mxu0  ;;  %v48779_v12 = vld [vmem:[#allocation39_spill] sm:$0xff] }
 0xa41   : > { %v36863_v61 = vmax.f32 %v36799_v18, 0.0  ;;  %v36864_v16 = vmax.f32 %v36800_v33, 0.0  ;;  %v36733_v56 = vadd.f32 %v35374_v27, %v48772_v40  ;;  %v36734_v22 = vadd.f32 %v35374_v27, %v34355_v24  ;;  %v36424_v11 = vpop.f32.mrf.mxu1  ;;  %v48780_v2 = vld [vmem:[#allocation67_spill] sm:$0xff]  ;;  %v48781_v27 = vld [vmem:[#allocation70_spill] sm:$0xff] }
 0xa42   : > { %v36893_v38 = vmax.f32 %v36829_v51, 0.0  ;;  %v36894_v7 = vmax.f32 %v36830_v6, 0.0  ;;  %v36763_v52 = vadd.f32 %v36424_v11, %v34384_v0  ;;  %v36764_v42 = vadd.f32 %v36424_v11, %v34385_v60  ;;  %v41570_v47 = vpop.f32.mrf.mxu0 }
 0xa43   : > { %v34359_v30 = vadd.f32 %v47942_v1, %v48773_v15  ;;  %36928 = vst.msk [vmem:[%s47968_s22 + $0xa8] sm:$0xff] %vm36906_vm6, %v36863_v61  ;;  %36929 = vst.msk [vmem:[%s47968_s22 + $0xb0] sm:$0xff] %vm36906_vm6, %v36864_v16  ;;  %v36803_v53 = vadd.f32 %v47955_v4, %v36733_v56  ;;  %v36804_v21 = vadd.f32 %v47955_v4, %v36734_v22  ;;  %v41645_v13 = vpop.f32.mrf.mxu1 }
 0xa44   : > { %v34389_v43 = vadd.f32 %v48775_v49, %v48774_v62  ;;  %v34388_v48 = vadd.f32 %v48022_v25, %v48776_v32  ;;  %36958 = vst.msk [vmem:[%s47968_s22 + $0x198] sm:$0xff] %vm36906_vm6, %v36893_v38  ;;  %36959 = vst.msk [vmem:[%s47968_s22 + $0x1a0] sm:$0xff] %vm36906_vm6, %v36894_v7  ;;  %v36833_v1 = vadd.f32 %v47955_v4, %v36763_v52  ;;  %v35514_v39 = vpop.f32.mrf.mxu0  ;;  %v48782_v7 = vld [vmem:[#allocation40_spill] sm:$0xff]  ;;  %v48784_v32 = vld [vmem:[#allocation41_spill] sm:$0xff] }
 0xa45   : > { %v36834_v35 = vadd.f32 %v47955_v4, %v36764_v42  ;;  %v36867_v17 = vmax.f32 %v36803_v53, 0.0  ;;  %v36868_v36 = vmax.f32 %v36804_v21, 0.0  ;;  %v36737_v9 = vadd.f32 %v35514_v39, %v48777_v5  ;;  %v36564_v31 = vpop.f32.mrf.mxu1 }
 0xa46   : > { %v36738_v58 = vadd.f32 %v35514_v39, %v34359_v30  ;;  %v36897_v41 = vmax.f32 %v36833_v1, 0.0  ;;  %v36767_v19 = vadd.f32 %v36564_v31, %v34388_v48  ;;  %v36768_v46 = vadd.f32 %v36564_v31, %v34389_v43  ;;  %v41580_v55 = vpop.f32.mrf.mxu0  ;;  %v48783_v30 = vld [vmem:[#allocation55_spill] sm:$0xff]  ;;  %v48786_v31 = vld [vmem:[#allocation60_spill] sm:$0xff] }
 0xa47   : > { %v36898_v14 = vmax.f32 %v36834_v35, 0.0  ;;  %v34363_v45 = vadd.f32 %v47952_v20, %v48778_v8  ;;  %36932 = vst.msk [vmem:[%s47968_s22 + $0xc8] sm:$0xff] %vm36906_vm6, %v36867_v17  ;;  %36933 = vst.msk [vmem:[%s47968_s22 + $0xd0] sm:$0xff] %vm36906_vm6, %v36868_v36  ;;  %v36807_v59 = vadd.f32 %v47955_v4, %v36737_v9  ;;  %v41655_v50 = vpop.f32.mrf.mxu1  ;;  %v34392_v3 = vadd.f32 %v48034_v29, %v48779_v12 }
 0xa48   : > { %v36808_v54 = vadd.f32 %v47955_v4, %v36738_v58  ;;  %36962 = vst.msk [vmem:[%s47968_s22 + $0x1b8] sm:$0xff] %vm36906_vm6, %v36897_v41  ;;  %v36837_v20 = vadd.f32 %v47955_v4, %v36767_v19  ;;  %v36838_v26 = vadd.f32 %v47955_v4, %v36768_v46  ;;  %v35654_v24 = vpop.f32.mrf.mxu0  ;;  %v34367_v61 = vadd.f32 %v47962_v37, %v48781_v27  ;;  %v48787_v46 = vld [vmem:[#allocation31_spill] sm:$0xff] }
 0xa49   : > { %36963 = vst.msk [vmem:[%s47968_s22 + $0x1c0] sm:$0xff] %vm36906_vm6, %v36898_v14  ;;  %v36871_v18 = vmax.f32 %v36807_v59, 0.0  ;;  %v36741_v63 = vadd.f32 %v35654_v24, %v48780_v2  ;;  %v36742_v28 = vadd.f32 %v35654_v24, %v34363_v45  ;;  %v36704_v60 = vpop.f32.mrf.mxu1  ;;  %v34371_v53 = vadd.f32 %v47974_v23, %v48783_v30  ;;  %v48785_v23 = vld [vmem:[#allocation63_spill] sm:$0xff]  ;;  %v48794_v30 = vld [vmem:[#allocation76_spill] sm:$0xff] }
 0xa4a   : > { %v36872_v33 = vmax.f32 %v36808_v54, 0.0  ;;  %v36901_v57 = vmax.f32 %v36837_v20, 0.0  ;;  %v36902_v0 = vmax.f32 %v36838_v26, 0.0  ;;  %v36771_v51 = vadd.f32 %v36704_v60, %v34392_v3  ;;  %v41590_v6 = vpop.f32.mrf.mxu0  ;;  %v48788_v50 = vld [vmem:[#allocation43_spill] sm:$0xff]  ;;  %v48789_v26 = vld [vmem:[#allocation52_spill] sm:$0xff] }
 0xa4b   : > { %36936 = vst.msk [vmem:[%s47968_s22 + $0xe8] sm:$0xff] %vm36906_vm6, %v36871_v18  ;;  %v36811_v16 = vadd.f32 %v47955_v4, %v36741_v63  ;;  %v36812_v40 = vadd.f32 %v47955_v4, %v36742_v28  ;;  %v41665_v56 = vpop.f32.mrf.mxu1  ;;  %v34375_v39 = vadd.f32 %v47986_v34, %v48785_v23  ;;  %v34379_v34 = vadd.f32 %v47998_v44, %v48787_v46  ;;  %v48790_v28 = vld [vmem:[#allocation74_spill] sm:$0xff] }
 0xa4c   : > { %36937 = vst.msk [vmem:[%s47968_s22 + $0xf0] sm:$0xff] %vm36906_vm6, %v36872_v33  ;;  %36966 = vst.msk [vmem:[%s47968_s22 + $0x1d8] sm:$0xff] %vm36906_vm6, %v36901_v57  ;;  %v36841_v22 = vadd.f32 %v47955_v4, %v36771_v51  ;;  %v35794_v11 = vpop.f32.mrf.mxu0  ;;  %v34383_v44 = vadd.f32 %v48010_v10, %v48789_v26  ;;  %v48791_v51 = vld [vmem:[#allocation32_spill] sm:$0xff] }
 0xa4d   : > { %36967 = vst.msk [vmem:[%s47968_s22 + $0x1e0] sm:$0xff] %vm36906_vm6, %v36902_v0  ;;  %v36875_v37 = vmax.f32 %v36811_v16, 0.0  ;;  %v36876_v38 = vmax.f32 %v36812_v40, 0.0  ;;  %v36745_v52 = vadd.f32 %v35794_v11, %v48782_v7  ;;  %v36746_v42 = vadd.f32 %v35794_v11, %v34367_v61  ;;  %v48792_v56 = vld [vmem:[#allocation80_spill] sm:$0xff] }
 0xa4e   : > { %v36905_v47 = vmax.f32 %v36841_v22, 0.0  ;;  %v41600_v15 = vpop.f32.mrf.mxu0  ;;  %v34387_v10 = vadd.f32 %v48022_v25, %v48791_v51  ;;  %v48793_v25 = vld [vmem:[#allocation33_spill] sm:$0xff] }
 0xa4f   : > { %36940 = vst.msk [vmem:[%s47968_s22 + $0x108] sm:$0xff] %vm36906_vm6, %v36875_v37  ;;  %36941 = vst.msk [vmem:[%s47968_s22 + $0x110] sm:$0xff] %vm36906_vm6, %v36876_v38  ;;  %v36815_v21 = vadd.f32 %v47955_v4, %v36745_v52  ;;  %v36816_v13 = vadd.f32 %v47955_v4, %v36746_v42  ;;  %v34391_v38 = vadd.f32 %v48034_v29, %v48793_v25 }
 0xa50   : > { %36970 = vst.msk [vmem:[%s47968_s22 + $0x1f8] sm:$0xff] %vm36906_vm6, %v36905_v47  ;;  %v35934_v62 = vpop.f32.mrf.mxu0 }
 0xa51   : > { %v36879_v49 = vmax.f32 %v36815_v21, 0.0  ;;  %v36880_v43 = vmax.f32 %v36816_v13, 0.0  ;;  %v36749_v48 = vadd.f32 %v35934_v62, %v48784_v32  ;;  %v36750_v1 = vadd.f32 %v35934_v62, %v34371_v53 }
 0xa52   : > { %v41610_v35 = vpop.f32.mrf.mxu0 }
 0xa53   : > { %36944 = vst.msk [vmem:[%s47968_s22 + $0x128] sm:$0xff] %vm36906_vm6, %v36879_v49  ;;  %36945 = vst.msk [vmem:[%s47968_s22 + $0x130] sm:$0xff] %vm36906_vm6, %v36880_v43  ;;  %v36819_v17 = vadd.f32 %v47955_v4, %v36749_v48  ;;  %v36820_v36 = vadd.f32 %v47955_v4, %v36750_v1 }
 0xa54   : > { %v36074_v5 = vpop.f32.mrf.mxu0 }
 0xa55   : > { %v36883_v9 = vmax.f32 %v36819_v17, 0.0  ;;  %v36884_v58 = vmax.f32 %v36820_v36, 0.0  ;;  %v36753_v41 = vadd.f32 %v36074_v5, %v48786_v31  ;;  %v36754_v14 = vadd.f32 %v36074_v5, %v34375_v39 }
 0xa56   : > { %v41620_v19 = vpop.f32.mrf.mxu0 }
 0xa57   : > { %36948 = vst.msk [vmem:[%s47968_s22 + $0x148] sm:$0xff] %vm36906_vm6, %v36883_v9  ;;  %36949 = vst.msk [vmem:[%s47968_s22 + $0x150] sm:$0xff] %vm36906_vm6, %v36884_v58  ;;  %v36823_v55 = vadd.f32 %v47955_v4, %v36753_v41  ;;  %v36824_v8 = vadd.f32 %v47955_v4, %v36754_v14 }
 0xa58   : > { %v36214_v45 = vpop.f32.mrf.mxu0 }
 0xa59   : > { %v36887_v59 = vmax.f32 %v36823_v55, 0.0  ;;  %v36888_v54 = vmax.f32 %v36824_v8, 0.0  ;;  %v36757_v12 = vadd.f32 %v36214_v45, %v48788_v50  ;;  %v36758_v3 = vadd.f32 %v36214_v45, %v34379_v34 }
 0xa5a   : > { %v41630_v20 = vpop.f32.mrf.mxu0 }
 0xa5b   : > { %36952 = vst.msk [vmem:[%s47968_s22 + $0x168] sm:$0xff] %vm36906_vm6, %v36887_v59  ;;  %36953 = vst.msk [vmem:[%s47968_s22 + $0x170] sm:$0xff] %vm36906_vm6, %v36888_v54  ;;  %v36827_v24 = vadd.f32 %v47955_v4, %v36757_v12  ;;  %v36828_v18 = vadd.f32 %v47955_v4, %v36758_v3 }
 0xa5c   : > { %v36354_v33 = vpop.f32.mrf.mxu0 }
 0xa5d   : > { %v36891_v2 = vmax.f32 %v36827_v24, 0.0  ;;  %v36892_v63 = vmax.f32 %v36828_v18, 0.0  ;;  %v36761_v60 = vadd.f32 %v36354_v33, %v48790_v28  ;;  %v36762_v57 = vadd.f32 %v36354_v33, %v34383_v44 }
 0xa5e   : > { %v41640_v0 = vpop.f32.mrf.mxu0 }
 0xa5f   : > { %36956 = vst.msk [vmem:[%s47968_s22 + $0x188] sm:$0xff] %vm36906_vm6, %v36891_v2  ;;  %36957 = vst.msk [vmem:[%s47968_s22 + $0x190] sm:$0xff] %vm36906_vm6, %v36892_v63  ;;  %v36831_v6 = vadd.f32 %v47955_v4, %v36761_v60  ;;  %v36832_v27 = vadd.f32 %v47955_v4, %v36762_v57 }
 0xa60   : > { %v36494_v61 = vpop.f32.mrf.mxu0 }
 0xa61   : > { %v36895_v16 = vmax.f32 %v36831_v6, 0.0  ;;  %v36896_v40 = vmax.f32 %v36832_v27, 0.0  ;;  %v36765_v22 = vadd.f32 %v36494_v61, %v48792_v56  ;;  %v36766_v11 = vadd.f32 %v36494_v61, %v34387_v10 }
 0xa62   : > { %v41650_v37 = vpop.f32.mrf.mxu0 }
 0xa63   : > { %36960 = vst.msk [vmem:[%s47968_s22 + $0x1a8] sm:$0xff] %vm36906_vm6, %v36895_v16  ;;  %36961 = vst.msk [vmem:[%s47968_s22 + $0x1b0] sm:$0xff] %vm36906_vm6, %v36896_v40  ;;  %v36835_v7 = vadd.f32 %v47955_v4, %v36765_v22  ;;  %v36836_v52 = vadd.f32 %v47955_v4, %v36766_v11 }
 0xa64   : > { %v36634_v42 = vpop.f32.mrf.mxu0 }
 0xa65   : > { %v36899_v47 = vmax.f32 %v36835_v7, 0.0  ;;  %v36900_v15 = vmax.f32 %v36836_v52, 0.0  ;;  %v36769_v53 = vadd.f32 %v36634_v42, %v48794_v30  ;;  %v36770_v21 = vadd.f32 %v36634_v42, %v34391_v38 }
 0xa66   : > { %v41660_v29 = vpop.f32.mrf.mxu0 }
 0xa67   : > { %36964 = vst.msk [vmem:[%s47968_s22 + $0x1c8] sm:$0xff] %vm36906_vm6, %v36899_v47  ;;  %36965 = vst.msk [vmem:[%s47968_s22 + $0x1d0] sm:$0xff] %vm36906_vm6, %v36900_v15  ;;  %v36839_v13 = vadd.f32 %v47955_v4, %v36769_v53  ;;  %v36840_v62 = vadd.f32 %v47955_v4, %v36770_v21 }
 0xa69   : > { %v36903_v49 = vmax.f32 %v36839_v13, 0.0  ;;  %v36904_v43 = vmax.f32 %v36840_v62, 0.0 }
 0xa6b   : > { %36968 = vst.msk [vmem:[%s47968_s22 + $0x1e8] sm:$0xff] %vm36906_vm6, %v36903_v49  ;;  %36969 = vst.msk [vmem:[%s47968_s22 + $0x1f0] sm:$0xff] %vm36906_vm6, %v36904_v43 }
 0xa6c   : > { %41854 = shalt.err (!%p41851_p9)
}
 0xa6d   : > { %s41855_s9 = scalar_lea.hbm %s48276_s14, 8192  ;;  %s41859_s21 = scalar_lea.hbm %s48332_s7, 16384 }
 0xa6e   : > { %p41856_p13 = scmp.ne.s32.totalorder %s48276_s14, %s41855_s9  ;;  %p41860_p4 = scmp.lt.s32.totalorder %s48276_s14, %s48332_s7 }
 0xa6f   : > { %p41861_p8 = scmp.lt.s32.totalorder %s41859_s21, %s41855_s9 }
 0xa70   : > { %p41857_p5 = pnand %p41856_p13, %p48795_p10 }
 0xa71   : > { %p41862_p3 = por %p41861_p8, %p41860_p4 }
 0xa72   : > { %p41858_p0 = pneg %p41857_p5 }
 0xa74   : > { %p41863_p11 = pnand %p41862_p3, %p41858_p0 }
 0xa76   : > { %41866 = shalt.err (!%p41863_p11)
}
 0xa77   : > { %s41922_s10 = smov 128   ;;  %s41923_s29 = smov 8  }
 0xa78   : > { %41676 = dma.vmem_to_hbm [thread:$0]  (%p48795_p10), %s48278_s19, 8192, %s48276_s14, %s36972_s28, %s41922_s10, %s41922_s10, %s41923_s29  }
 0xa79 PF: > { %s37000_s1 = sand.u32 1, %s41897_s24   ;;  %p48796_p1 = scmp.ne.s32.totalorder %s48395_s8, 0 }
 0xa7a   : > { %p48797_p2 = scmp.ge.s32.totalorder %s41909_s27, 2  ;;  %s37001_s16 = scalar_lea.sflag [#allocation4], %s37000_s1 }
 0xa7c   : > { %p41690_p6 = pnand %p48797_p2, %p48796_p1 }
 0xa7e   : > { %p41691_p12 = pneg %p41690_p6 }
 0xa80   : > { %41892 = dma.done.wait (%p41691_p12), %s37001_s16, 8192  }
 0xa81   : > { %41894 = vsyncadd (%p41691_p12), %s37001_s16, 4294959104  ;;  %p21_p7 = scmp.ge.s32.totalorder %s42036_s23, 4   ;;  %s48798_s24 = smov %s41901_s25 }
 0xa82   : > { %s48799_s25 = smov %s41905_s26  ;;  %s48800_s26 = smov %s42052_s12 }
 0xa83   : > { %s48801_s27 = smov %s42036_s23  ;;  %23 = sbr.rel (!%p21_p7) target bundleno = 8 (0x8), region = 121 }
 0xa88   :  { %37006 = vsyncpa [#allocation3], 1 }
 0xa89   :  { %37008 = vsyncpa [#allocation3 + $0x1], 1 }
 0xa8a   :  { %37009 = vsyncpa [#allocation6], 1 }
 0xa8b   :  { %37010 = vsyncpa [#allocation4], 1 }
 0xa8c   :  { %37012 = vsyncpa [#allocation4 + $0x1], 1 }

</bundles_post_ra>
